<compile_context>
chip_gen: v7x
topology: tpu7x:2x2x1
jax: 0.10.0
libtpu: 0.0.40
codegen_flags: <defaults>
</compile_context>

<pallas_src>
import jax
import jax.numpy as jnp
from jax import lax
from jax.experimental import pallas as pl
from jax.experimental.pallas import tpu as pltpu


# ----------------------------------------------------------------------------
# Fused kernel: conv1+relu+pool -> conv2+relu+pool -> GAP -> fc1+relu -> fc2
# ----------------------------------------------------------------------------
def cnn_fused_kernel(x_ref, w1_ref, b1_ref, w2_ref, b2_ref, gap_ref,
                     wf1_ref, bf1_ref, wf2_ref, bf2_ref, o_ref,
                     xpad1_ref, xpad2_ref):
    N, H, W, C0 = x_ref.shape
    C1 = w1_ref.shape[-1]
    C2 = w2_ref.shape[-1]
    H2, W2 = H // 2, W // 2
    H4, W4 = H2 // 2, W2 // 2

    def conv3x3_relu(xpad_ref, w_ref, b_ref, n, h, w, cin):
        # im2col: one (n*h*w, 9*cin) patch matrix -> a single MXU matmul
        # (bf16 operands, f32 accumulation).
        xp = xpad_ref[...]                                   # (n, h+2, w+2, cin)
        cols = [xp[:, kh:kh + h, kw:kw + w, :].reshape(n * h * w, cin)
                for kh in range(3) for kw in range(3)]
        patches = jnp.concatenate(cols, axis=-1).astype(jnp.bfloat16)
        acc = jnp.dot(patches, w_ref[...].astype(jnp.bfloat16),
                      preferred_element_type=jnp.float32)    # (n*h*w, cout)
        return jnp.maximum(acc + b_ref[...], 0.0)

    def maxpool2x2(y_mat, n, h, w, c):
        # rows of y_mat are ordered (n, h, w); pool with elementwise maxima
        y = y_mat.reshape(n, h, w, c)
        y = y.reshape(n, h // 2, 2, w, c)
        y = jnp.maximum(y[:, :, 0], y[:, :, 1])              # pool H (major dim)
        y = y.reshape(n, h // 2, w // 2, 2, c)
        y = jnp.maximum(y[:, :, :, 0], y[:, :, :, 1])        # pool W (sublane pair)
        return y                                             # (n, h/2, w/2, c)

    # ---- stage 1: conv1 -> relu -> pool (padding built in VMEM scratch) ----
    xpad1_ref[...] = jnp.zeros_like(xpad1_ref)
    xpad1_ref[:, 1:H + 1, 1:W + 1, :] = x_ref[...]
    y1 = conv3x3_relu(xpad1_ref, w1_ref, b1_ref, N, H, W, C0)
    y1 = maxpool2x2(y1, N, H, W, C1)                         # (N, H2, W2, C1)

    # ---- stage 2: conv2 -> relu -> pool (intermediate never leaves VMEM) ----
    xpad2_ref[...] = jnp.zeros_like(xpad2_ref)
    xpad2_ref[:, 1:H2 + 1, 1:W2 + 1, :] = y1
    y2 = conv3x3_relu(xpad2_ref, w2_ref, b2_ref, N, H2, W2, C1)
    y2 = maxpool2x2(y2, N, H2, W2, C2)                       # (N, H4, W4, C2)

    # ---- stage 3: global average pool as a matmul, then fc1+relu, fc2 ----
    g = jnp.dot(gap_ref[...], y2.reshape(N * H4 * W4, C2),
                preferred_element_type=jnp.float32)          # (N, C2)
    h = jnp.maximum(
        jnp.dot(g.astype(jnp.bfloat16), wf1_ref[...].astype(jnp.bfloat16),
                preferred_element_type=jnp.float32) + bf1_ref[...], 0.0)
    o_ref[...] = (jnp.dot(h.astype(jnp.bfloat16),
                          wf2_ref[...].astype(jnp.bfloat16),
                          preferred_element_type=jnp.float32) + bf2_ref[...])


# ----------------------------------------------------------------------------
# Wrapper: one pallas_call for the whole forward (input is NCHW like PyTorch)
# ----------------------------------------------------------------------------
def cnn_forward(x_nchw, params):
    x = jnp.transpose(x_nchw, (0, 2, 3, 1)).astype(jnp.float32)   # NCHW -> NHWC
    N, H, W, C0 = x.shape
    w1, b1 = params["w_conv1"], params["b_conv1"]
    w2, b2 = params["w_conv2"], params["b_conv2"]
    wf1, bf1 = params["w_fc1"], params["b_fc1"]
    wf2, bf2 = params["w_fc2"], params["b_fc2"]
    C1, C2 = w1.shape[-1], w2.shape[-1]
    H2, W2 = H // 2, W // 2
    H4, W4 = H2 // 2, W2 // 2
    n_out = wf2.shape[-1]

    # GAP as matmul: (N, N*H4*W4) block-averaging matrix (constant under jit).
    gap = jnp.kron(jnp.eye(N, dtype=jnp.float32),
                   jnp.full((1, H4 * W4), 1.0 / (H4 * W4), jnp.float32))

    vmem = pltpu.MemorySpace.VMEM
    return pl.pallas_call(
        cnn_fused_kernel,
        out_shape=jax.ShapeDtypeStruct((N, n_out), jnp.float32),
        in_specs=[pl.BlockSpec(memory_space=vmem)] * 10,
        out_specs=pl.BlockSpec(memory_space=vmem),
        scratch_shapes=[
            pltpu.VMEM((N, H + 2, W + 2, C0), jnp.float32),    # padded conv1 in
            pltpu.VMEM((N, H2 + 2, W2 + 2, C1), jnp.float32),  # padded conv2 in
        ],
    )(x,
      w1.reshape(9 * C0, C1), b1.reshape(1, C1),               # im2col weights
      w2.reshape(9 * C1, C2), b2.reshape(1, C2),
      gap,
      wf1, bf1.reshape(1, -1), wf2, bf2.reshape(1, -1))


# ----------------------------------------------------------------------------
# Deterministic parameter init (PyTorch-style uniform(-1/sqrt(fan_in), +))
# ----------------------------------------------------------------------------
def init_params(key):
    def uni(k, shape, fan_in):
        bound = 1.0 / jnp.sqrt(jnp.float32(fan_in))
        return jax.random.uniform(k, shape, jnp.float32, -bound, bound)

    ks = jax.random.split(key, 8)
    return {
        # conv weights in HWIO
        "w_conv1": uni(ks[0], (3, 3, 10, 32), 10 * 9),
        "b_conv1": uni(ks[1], (32,), 10 * 9),
        "w_conv2": uni(ks[2], (3, 3, 32, 64), 32 * 9),
        "b_conv2": uni(ks[3], (64,), 32 * 9),
        # fc weights as (in, out)
        "w_fc1": uni(ks[4], (64, 128), 64),
        "b_fc1": uni(ks[5], (128,), 64),
        "w_fc2": uni(ks[6], (128, 10), 128),
        "b_fc2": uni(ks[7], (10,), 128),
    }


# ----------------------------------------------------------------------------
# Pure-JAX reference (independent of the Pallas path) for a sanity check
# ----------------------------------------------------------------------------
def reference_forward(x_nchw, p):
    x = jnp.transpose(x_nchw, (0, 2, 3, 1))
    dn = ("NHWC", "HWIO", "NHWC")

    def block(x, w, b):
        y = lax.conv_general_dilated(x, w, (1, 1), "SAME",
                                     dimension_numbers=dn) + b
        y = jnp.maximum(y, 0.0)
        return lax.reduce_window(y, -jnp.inf, lax.max,
                                 (1, 2, 2, 1), (1, 2, 2, 1), "VALID")

    x = block(x, p["w_conv1"], p["b_conv1"])
    x = block(x, p["w_conv2"], p["b_conv2"])
    g = jnp.mean(x, axis=(1, 2))
    h = jnp.maximum(g @ p["w_fc1"] + p["b_fc1"], 0.0)
    return h @ p["w_fc2"] + p["b_fc2"]


if __name__ == "__main__":
    key = jax.random.PRNGKey(0)
    k_x, k_p = jax.random.split(key)

    # small shapes consistent with the module: batch=2, in_channels=10, 16x16
    x = jax.random.normal(k_x, (2, 10, 16, 16), jnp.float32)   # NCHW
    params = init_params(k_p)

    fwd = jax.jit(cnn_forward)
    out = jax.block_until_ready(fwd(x, params))
    assert out.shape == (2, 10), out.shape

    ref = jax.block_until_ready(reference_forward(x, params))
    # bf16 matmul operands with f32 accumulation -> loosen tolerance slightly
    max_err = float(jnp.max(jnp.abs(out - ref)))
    assert jnp.allclose(out, ref, atol=5e-2, rtol=5e-2), max_err

    print("KERNEL_OK")
</pallas_src>

<mosaic_0001>
module attributes {stable_mosaic.version = 11 : i64} {
  func.func @cnn_fused_kernel(%arg0: memref<2x16x16x10xf32, #tpu.memory_space<vmem>>, %arg1: memref<90x32xf32, #tpu.memory_space<vmem>>, %arg2: memref<1x32xf32, #tpu.memory_space<vmem>>, %arg3: memref<288x64xf32, #tpu.memory_space<vmem>>, %arg4: memref<1x64xf32, #tpu.memory_space<vmem>>, %arg5: memref<2x32xf32, #tpu.memory_space<vmem>>, %arg6: memref<64x128xf32, #tpu.memory_space<vmem>>, %arg7: memref<1x128xf32, #tpu.memory_space<vmem>>, %arg8: memref<128x10xf32, #tpu.memory_space<vmem>>, %arg9: memref<1x10xf32, #tpu.memory_space<vmem>>, %arg10: memref<2x10xf32, #tpu.memory_space<vmem>>, %arg11: memref<2x18x18x10xf32, #tpu.memory_space<vmem>>, %arg12: memref<2x10x10x32xf32, #tpu.memory_space<vmem>>) attributes {dimension_semantics = [], scalar_prefetch = 0 : i64, scratch_operands = 2 : i64, tpu.core_type = #tpu.core_type<tc>} {
    %cst = arith.constant 0.000000e+00 : f32
    %0 = vector.broadcast %cst : f32 to vector<2x18x18x10xf32>
    %c0 = arith.constant 0 : index
    %c0_0 = arith.constant 0 : index
    %c0_1 = arith.constant 0 : index
    %c0_2 = arith.constant 0 : index
    %1 = vector.load %arg11[%c0, %c0_0, %c0_1, %c0_2] : memref<2x18x18x10xf32, #tpu.memory_space<vmem>>, vector<2x18x18x10xf32>
    tpu.vector_store %arg11[%c0, %c0_0, %c0_1, %c0_2], %0 {strides = array<i32>} : memref<2x18x18x10xf32, #tpu.memory_space<vmem>>, vector<2x18x18x10xf32>,
    %c0_3 = arith.constant 0 : index
    %c0_4 = arith.constant 0 : index
    %c0_5 = arith.constant 0 : index
    %c0_6 = arith.constant 0 : index
    %2 = vector.load %arg0[%c0_3, %c0_4, %c0_5, %c0_6] : memref<2x16x16x10xf32, #tpu.memory_space<vmem>>, vector<2x16x16x10xf32>
    %c0_7 = arith.constant 0 : index
    %c1 = arith.constant 1 : index
    %c1_8 = arith.constant 1 : index
    %c0_9 = arith.constant 0 : index
    %3 = vector.load %arg11[%c0_7, %c1, %c1_8, %c0_9] : memref<2x18x18x10xf32, #tpu.memory_space<vmem>>, vector<2x16x16x10xf32>
    tpu.vector_store %arg11[%c0_7, %c1, %c1_8, %c0_9], %2 {strides = array<i32>} : memref<2x18x18x10xf32, #tpu.memory_space<vmem>>, vector<2x16x16x10xf32>,
    %c0_10 = arith.constant 0 : index
    %c0_11 = arith.constant 0 : index
    %c0_12 = arith.constant 0 : index
    %c0_13 = arith.constant 0 : index
    %4 = vector.load %arg11[%c0_10, %c0_11, %c0_12, %c0_13] : memref<2x18x18x10xf32, #tpu.memory_space<vmem>>, vector<2x18x18x10xf32>
    %5 = vector.extract_strided_slice %4 {offsets = [0, 0, 0, 0], sizes = [2, 16, 16, 10], strides = [1, 1, 1, 1]} : vector<2x18x18x10xf32> to vector<2x16x16x10xf32>
    %6 = vector.shape_cast %5 : vector<2x16x16x10xf32> to vector<512x10xf32>
    %7 = vector.extract_strided_slice %4 {offsets = [0, 0, 1, 0], sizes = [2, 16, 16, 10], strides = [1, 1, 1, 1]} : vector<2x18x18x10xf32> to vector<2x16x16x10xf32>
    %8 = vector.shape_cast %7 : vector<2x16x16x10xf32> to vector<512x10xf32>
    %9 = vector.extract_strided_slice %4 {offsets = [0, 0, 2, 0], sizes = [2, 16, 16, 10], strides = [1, 1, 1, 1]} : vector<2x18x18x10xf32> to vector<2x16x16x10xf32>
    %10 = vector.shape_cast %9 : vector<2x16x16x10xf32> to vector<512x10xf32>
    %11 = vector.extract_strided_slice %4 {offsets = [0, 1, 0, 0], sizes = [2, 16, 16, 10], strides = [1, 1, 1, 1]} : vector<2x18x18x10xf32> to vector<2x16x16x10xf32>
    %12 = vector.shape_cast %11 : vector<2x16x16x10xf32> to vector<512x10xf32>
    %13 = vector.extract_strided_slice %4 {offsets = [0, 1, 1, 0], sizes = [2, 16, 16, 10], strides = [1, 1, 1, 1]} : vector<2x18x18x10xf32> to vector<2x16x16x10xf32>
    %14 = vector.shape_cast %13 : vector<2x16x16x10xf32> to vector<512x10xf32>
    %15 = vector.extract_strided_slice %4 {offsets = [0, 1, 2, 0], sizes = [2, 16, 16, 10], strides = [1, 1, 1, 1]} : vector<2x18x18x10xf32> to vector<2x16x16x10xf32>
    %16 = vector.shape_cast %15 : vector<2x16x16x10xf32> to vector<512x10xf32>
    %17 = vector.extract_strided_slice %4 {offsets = [0, 2, 0, 0], sizes = [2, 16, 16, 10], strides = [1, 1, 1, 1]} : vector<2x18x18x10xf32> to vector<2x16x16x10xf32>
    %18 = vector.shape_cast %17 : vector<2x16x16x10xf32> to vector<512x10xf32>
    %19 = vector.extract_strided_slice %4 {offsets = [0, 2, 1, 0], sizes = [2, 16, 16, 10], strides = [1, 1, 1, 1]} : vector<2x18x18x10xf32> to vector<2x16x16x10xf32>
    %20 = vector.shape_cast %19 : vector<2x16x16x10xf32> to vector<512x10xf32>
    %21 = vector.extract_strided_slice %4 {offsets = [0, 2, 2, 0], sizes = [2, 16, 16, 10], strides = [1, 1, 1, 1]} : vector<2x18x18x10xf32> to vector<2x16x16x10xf32>
    %22 = vector.shape_cast %21 : vector<2x16x16x10xf32> to vector<512x10xf32>
    %23 = tpu.concatenate %6, %8, %10, %12, %14, %16, %18, %20, %22 in 1 : vector<512x10xf32>, vector<512x10xf32>, vector<512x10xf32>, vector<512x10xf32>, vector<512x10xf32>, vector<512x10xf32>, vector<512x10xf32>, vector<512x10xf32>, vector<512x10xf32> -> vector<512x90xf32>
    %24 = arith.truncf %23 : vector<512x90xf32> to vector<512x90xbf16>
    %c0_14 = arith.constant 0 : index
    %c0_15 = arith.constant 0 : index
    %25 = vector.load %arg1[%c0_14, %c0_15] : memref<90x32xf32, #tpu.memory_space<vmem>>, vector<90x32xf32>
    %26 = arith.truncf %25 : vector<90x32xf32> to vector<90x32xbf16>
    %cst_16 = arith.constant dense<0.000000e+00> : vector<512x32xf32>
    %27 = tpu.matmul %24, %26, %cst_16 {dimension_numbers = #tpu.dot_dimension_numbers<[1], [0], [0], [1], [0, 0, 1, 1], [], []>} : vector<512x90xbf16>, vector<90x32xbf16>, vector<512x32xf32> -> vector<512x32xf32>
    %c0_17 = arith.constant 0 : index
    %c0_18 = arith.constant 0 : index
    %28 = vector.load %arg2[%c0_17, %c0_18] : memref<1x32xf32, #tpu.memory_space<vmem>>, vector<1x32xf32>
    %29 = vector.broadcast %28 : vector<1x32xf32> to vector<512x32xf32>
    %30 = arith.addf %27, %29 : vector<512x32xf32>
    %cst_19 = arith.constant 0.000000e+00 : f32
    %31 = vector.broadcast %cst_19 : f32 to vector<512x32xf32>
    %32 = arith.maximumf %30, %31 : vector<512x32xf32>
    %33 = vector.shape_cast %32 : vector<512x32xf32> to vector<2x16x16x32xf32>
    %34 = vector.shape_cast %33 : vector<2x16x16x32xf32> to vector<2x8x2x16x32xf32>
    %35 = vector.extract_strided_slice %34 {offsets = [0, 0, 0, 0, 0], sizes = [2, 8, 1, 16, 32], strides = [1, 1, 1, 1, 1]} : vector<2x8x2x16x32xf32> to vector<2x8x1x16x32xf32>
    %36 = vector.shape_cast %35 : vector<2x8x1x16x32xf32> to vector<2x8x16x32xf32>
    %37 = vector.extract_strided_slice %34 {offsets = [0, 0, 1, 0, 0], sizes = [2, 8, 1, 16, 32], strides = [1, 1, 1, 1, 1]} : vector<2x8x2x16x32xf32> to vector<2x8x1x16x32xf32>
    %38 = vector.shape_cast %37 : vector<2x8x1x16x32xf32> to vector<2x8x16x32xf32>
    %39 = arith.maximumf %36, %38 : vector<2x8x16x32xf32>
    %40 = vector.shape_cast %39 : vector<2x8x16x32xf32> to vector<2x8x8x2x32xf32>
    %41 = vector.extract_strided_slice %40 {offsets = [0, 0, 0, 0, 0], sizes = [2, 8, 8, 1, 32], strides = [1, 1, 1, 1, 1]} : vector<2x8x8x2x32xf32> to vector<2x8x8x1x32xf32>
    %42 = vector.shape_cast %41 : vector<2x8x8x1x32xf32> to vector<2x8x8x32xf32>
    %43 = vector.extract_strided_slice %40 {offsets = [0, 0, 0, 1, 0], sizes = [2, 8, 8, 1, 32], strides = [1, 1, 1, 1, 1]} : vector<2x8x8x2x32xf32> to vector<2x8x8x1x32xf32>
    %44 = vector.shape_cast %43 : vector<2x8x8x1x32xf32> to vector<2x8x8x32xf32>
    %45 = arith.maximumf %42, %44 : vector<2x8x8x32xf32>
    %cst_20 = arith.constant 0.000000e+00 : f32
    %46 = vector.broadcast %cst_20 : f32 to vector<2x10x10x32xf32>
    %c0_21 = arith.constant 0 : index
    %c0_22 = arith.constant 0 : index
    %c0_23 = arith.constant 0 : index
    %c0_24 = arith.constant 0 : index
    %47 = vector.load %arg12[%c0_21, %c0_22, %c0_23, %c0_24] : memref<2x10x10x32xf32, #tpu.memory_space<vmem>>, vector<2x10x10x32xf32>
    tpu.vector_store %arg12[%c0_21, %c0_22, %c0_23, %c0_24], %46 {strides = array<i32>} : memref<2x10x10x32xf32, #tpu.memory_space<vmem>>, vector<2x10x10x32xf32>,
    %c0_25 = arith.constant 0 : index
    %c1_26 = arith.constant 1 : index
    %c1_27 = arith.constant 1 : index
    %c0_28 = arith.constant 0 : index
    %48 = vector.load %arg12[%c0_25, %c1_26, %c1_27, %c0_28] : memref<2x10x10x32xf32, #tpu.memory_space<vmem>>, vector<2x8x8x32xf32>
    tpu.vector_store %arg12[%c0_25, %c1_26, %c1_27, %c0_28], %45 {strides = array<i32>} : memref<2x10x10x32xf32, #tpu.memory_space<vmem>>, vector<2x8x8x32xf32>,
    %c0_29 = arith.constant 0 : index
    %c0_30 = arith.constant 0 : index
    %c0_31 = arith.constant 0 : index
    %c0_32 = arith.constant 0 : index
    %49 = vector.load %arg12[%c0_29, %c0_30, %c0_31, %c0_32] : memref<2x10x10x32xf32, #tpu.memory_space<vmem>>, vector<2x10x10x32xf32>
    %50 = vector.extract_strided_slice %49 {offsets = [0, 0, 0, 0], sizes = [2, 8, 8, 32], strides = [1, 1, 1, 1]} : vector<2x10x10x32xf32> to vector<2x8x8x32xf32>
    %51 = vector.shape_cast %50 : vector<2x8x8x32xf32> to vector<128x32xf32>
    %52 = vector.extract_strided_slice %49 {offsets = [0, 0, 1, 0], sizes = [2, 8, 8, 32], strides = [1, 1, 1, 1]} : vector<2x10x10x32xf32> to vector<2x8x8x32xf32>
    %53 = vector.shape_cast %52 : vector<2x8x8x32xf32> to vector<128x32xf32>
    %54 = vector.extract_strided_slice %49 {offsets = [0, 0, 2, 0], sizes = [2, 8, 8, 32], strides = [1, 1, 1, 1]} : vector<2x10x10x32xf32> to vector<2x8x8x32xf32>
    %55 = vector.shape_cast %54 : vector<2x8x8x32xf32> to vector<128x32xf32>
    %56 = vector.extract_strided_slice %49 {offsets = [0, 1, 0, 0], sizes = [2, 8, 8, 32], strides = [1, 1, 1, 1]} : vector<2x10x10x32xf32> to vector<2x8x8x32xf32>
    %57 = vector.shape_cast %56 : vector<2x8x8x32xf32> to vector<128x32xf32>
    %58 = vector.extract_strided_slice %49 {offsets = [0, 1, 1, 0], sizes = [2, 8, 8, 32], strides = [1, 1, 1, 1]} : vector<2x10x10x32xf32> to vector<2x8x8x32xf32>
    %59 = vector.shape_cast %58 : vector<2x8x8x32xf32> to vector<128x32xf32>
    %60 = vector.extract_strided_slice %49 {offsets = [0, 1, 2, 0], sizes = [2, 8, 8, 32], strides = [1, 1, 1, 1]} : vector<2x10x10x32xf32> to vector<2x8x8x32xf32>
    %61 = vector.shape_cast %60 : vector<2x8x8x32xf32> to vector<128x32xf32>
    %62 = vector.extract_strided_slice %49 {offsets = [0, 2, 0, 0], sizes = [2, 8, 8, 32], strides = [1, 1, 1, 1]} : vector<2x10x10x32xf32> to vector<2x8x8x32xf32>
    %63 = vector.shape_cast %62 : vector<2x8x8x32xf32> to vector<128x32xf32>
    %64 = vector.extract_strided_slice %49 {offsets = [0, 2, 1, 0], sizes = [2, 8, 8, 32], strides = [1, 1, 1, 1]} : vector<2x10x10x32xf32> to vector<2x8x8x32xf32>
    %65 = vector.shape_cast %64 : vector<2x8x8x32xf32> to vector<128x32xf32>
    %66 = vector.extract_strided_slice %49 {offsets = [0, 2, 2, 0], sizes = [2, 8, 8, 32], strides = [1, 1, 1, 1]} : vector<2x10x10x32xf32> to vector<2x8x8x32xf32>
    %67 = vector.shape_cast %66 : vector<2x8x8x32xf32> to vector<128x32xf32>
    %68 = tpu.concatenate %51, %53, %55, %57, %59, %61, %63, %65, %67 in 1 : vector<128x32xf32>, vector<128x32xf32>, vector<128x32xf32>, vector<128x32xf32>, vector<128x32xf32>, vector<128x32xf32>, vector<128x32xf32>, vector<128x32xf32>, vector<128x32xf32> -> vector<128x288xf32>
    %69 = arith.truncf %68 : vector<128x288xf32> to vector<128x288xbf16>
    %c0_33 = arith.constant 0 : index
    %c0_34 = arith.constant 0 : index
    %70 = vector.load %arg3[%c0_33, %c0_34] : memref<288x64xf32, #tpu.memory_space<vmem>>, vector<288x64xf32>
    %71 = arith.truncf %70 : vector<288x64xf32> to vector<288x64xbf16>
    %cst_35 = arith.constant dense<0.000000e+00> : vector<128x64xf32>
    %72 = tpu.matmul %69, %71, %cst_35 {dimension_numbers = #tpu.dot_dimension_numbers<[1], [0], [0], [1], [0, 0, 1, 1], [], []>} : vector<128x288xbf16>, vector<288x64xbf16>, vector<128x64xf32> -> vector<128x64xf32>
    %c0_36 = arith.constant 0 : index
    %c0_37 = arith.constant 0 : index
    %73 = vector.load %arg4[%c0_36, %c0_37] : memref<1x64xf32, #tpu.memory_space<vmem>>, vector<1x64xf32>
    %74 = vector.broadcast %73 : vector<1x64xf32> to vector<128x64xf32>
    %75 = arith.addf %72, %74 : vector<128x64xf32>
    %cst_38 = arith.constant 0.000000e+00 : f32
    %76 = vector.broadcast %cst_38 : f32 to vector<128x64xf32>
    %77 = arith.maximumf %75, %76 : vector<128x64xf32>
    %78 = vector.shape_cast %77 : vector<128x64xf32> to vector<2x8x8x64xf32>
    %79 = vector.shape_cast %78 : vector<2x8x8x64xf32> to vector<2x4x2x8x64xf32>
    %80 = vector.extract_strided_slice %79 {offsets = [0, 0, 0, 0, 0], sizes = [2, 4, 1, 8, 64], strides = [1, 1, 1, 1, 1]} : vector<2x4x2x8x64xf32> to vector<2x4x1x8x64xf32>
    %81 = vector.shape_cast %80 : vector<2x4x1x8x64xf32> to vector<2x4x8x64xf32>
    %82 = vector.extract_strided_slice %79 {offsets = [0, 0, 1, 0, 0], sizes = [2, 4, 1, 8, 64], strides = [1, 1, 1, 1, 1]} : vector<2x4x2x8x64xf32> to vector<2x4x1x8x64xf32>
    %83 = vector.shape_cast %82 : vector<2x4x1x8x64xf32> to vector<2x4x8x64xf32>
    %84 = arith.maximumf %81, %83 : vector<2x4x8x64xf32>
    %85 = vector.shape_cast %84 : vector<2x4x8x64xf32> to vector<2x4x4x2x64xf32>
    %86 = vector.extract_strided_slice %85 {offsets = [0, 0, 0, 0, 0], sizes = [2, 4, 4, 1, 64], strides = [1, 1, 1, 1, 1]} : vector<2x4x4x2x64xf32> to vector<2x4x4x1x64xf32>
    %87 = vector.shape_cast %86 : vector<2x4x4x1x64xf32> to vector<2x4x4x64xf32>
    %88 = vector.extract_strided_slice %85 {offsets = [0, 0, 0, 1, 0], sizes = [2, 4, 4, 1, 64], strides = [1, 1, 1, 1, 1]} : vector<2x4x4x2x64xf32> to vector<2x4x4x1x64xf32>
    %89 = vector.shape_cast %88 : vector<2x4x4x1x64xf32> to vector<2x4x4x64xf32>
    %90 = arith.maximumf %87, %89 : vector<2x4x4x64xf32>
    %c0_39 = arith.constant 0 : index
    %c0_40 = arith.constant 0 : index
    %91 = vector.load %arg5[%c0_39, %c0_40] : memref<2x32xf32, #tpu.memory_space<vmem>>, vector<2x32xf32>
    %92 = vector.shape_cast %90 : vector<2x4x4x64xf32> to vector<32x64xf32>
    %cst_41 = arith.constant dense<0.000000e+00> : vector<2x64xf32>
    %93 = tpu.matmul %91, %92, %cst_41 {dimension_numbers = #tpu.dot_dimension_numbers<[1], [0], [0], [1], [0, 0, 1, 1], [], []>} : vector<2x32xf32>, vector<32x64xf32>, vector<2x64xf32> -> vector<2x64xf32>
    %94 = arith.truncf %93 : vector<2x64xf32> to vector<2x64xbf16>
    %c0_42 = arith.constant 0 : index
    %c0_43 = arith.constant 0 : index
    %95 = vector.load %arg6[%c0_42, %c0_43] : memref<64x128xf32, #tpu.memory_space<vmem>>, vector<64x128xf32>
    %96 = arith.truncf %95 : vector<64x128xf32> to vector<64x128xbf16>
    %cst_44 = arith.constant dense<0.000000e+00> : vector<2x128xf32>
    %97 = tpu.matmul %94, %96, %cst_44 {dimension_numbers = #tpu.dot_dimension_numbers<[1], [0], [0], [1], [0, 0, 1, 1], [], []>} : vector<2x64xbf16>, vector<64x128xbf16>, vector<2x128xf32> -> vector<2x128xf32>
    %c0_45 = arith.constant 0 : index
    %c0_46 = arith.constant 0 : index
    %98 = vector.load %arg7[%c0_45, %c0_46] : memref<1x128xf32, #tpu.memory_space<vmem>>, vector<1x128xf32>
    %99 = vector.broadcast %98 : vector<1x128xf32> to vector<2x128xf32>
    %100 = arith.addf %97, %99 : vector<2x128xf32>
    %cst_47 = arith.constant 0.000000e+00 : f32
    %101 = vector.broadcast %cst_47 : f32 to vector<2x128xf32>
    %102 = arith.maximumf %100, %101 : vector<2x128xf32>
    %103 = arith.truncf %102 : vector<2x128xf32> to vector<2x128xbf16>
    %c0_48 = arith.constant 0 : index
    %c0_49 = arith.constant 0 : index
    %104 = vector.load %arg8[%c0_48, %c0_49] : memref<128x10xf32, #tpu.memory_space<vmem>>, vector<128x10xf32>
    %105 = arith.truncf %104 : vector<128x10xf32> to vector<128x10xbf16>
    %cst_50 = arith.constant dense<0.000000e+00> : vector<2x10xf32>
    %106 = tpu.matmul %103, %105, %cst_50 {dimension_numbers = #tpu.dot_dimension_numbers<[1], [0], [0], [1], [0, 0, 1, 1], [], []>} : vector<2x128xbf16>, vector<128x10xbf16>, vector<2x10xf32> -> vector<2x10xf32>
    %c0_51 = arith.constant 0 : index
    %c0_52 = arith.constant 0 : index
    %107 = vector.load %arg9[%c0_51, %c0_52] : memref<1x10xf32, #tpu.memory_space<vmem>>, vector<1x10xf32>
    %108 = vector.broadcast %107 : vector<1x10xf32> to vector<2x10xf32>
    %109 = arith.addf %106, %108 : vector<2x10xf32>
    %c0_53 = arith.constant 0 : index
    %c0_54 = arith.constant 0 : index
    %110 = vector.load %arg10[%c0_53, %c0_54] : memref<2x10xf32, #tpu.memory_space<vmem>>, vector<2x10xf32>
    tpu.vector_store %arg10[%c0_53, %c0_54], %109 {strides = array<i32>} : memref<2x10xf32, #tpu.memory_space<vmem>>, vector<2x10xf32>,
    return
  }
}

</mosaic_0001>

<bundles_post_ra>
// kernel: cnn_forward.1
= control target key start
LH: loop header
LB: loop body
LE: loop exit
PB: predicated region body
PF: predicated region fallthrough
CT: control target
= control target key end

     0   :  { %vm13378_vm0 = vcmask 80896   ;;  %vm13376_vm1 = vcmask 74752   ;;  %v13374_v2 = vmov 0.0   ;;  %s13363_s0 = inlined_call_operand.vmem [shape: f32[2,16,16,10], index: 0, kind: input, shape index: {}]   ;;  %s13364_s1 = inlined_call_operand.vmem [shape: f32[90,32], index: 1, kind: input, shape index: {}]   ;;  %s13365_s2 = inlined_call_operand.vmem [shape: f32[1,32], index: 2, kind: input, shape index: {}]   ;;  %s13366_s3 = inlined_call_operand.vmem [shape: f32[288,64], index: 3, kind: input, shape index: {}]   ;;  %s13367_s4 = inlined_call_operand.vmem [shape: f32[1,64], index: 4, kind: input, shape index: {}]   ;;  %s13368_s5 = inlined_call_operand.vmem [shape: f32[2,32], index: 5, kind: input, shape index: {}]   ;;  %s13369_s6 = inlined_call_operand.vmem [shape: f32[64,128], index: 6, kind: input, shape index: {}]   ;;  %s13370_s7 = inlined_call_operand.vmem [shape: f32[1,128], index: 7, kind: input, shape index: {}]   ;;  %s13371_s8 = inlined_call_operand.vmem [shape: f32[128,10], index: 8, kind: input, shape index: {}]   ;;  %s13372_s9 = inlined_call_operand.vmem [shape: f32[1,10], index: 9, kind: input, shape index: {}]   ;;  %s13373_s10 = inlined_call_operand.hbm [shape: f32[2,10], index: 10, kind: output, shape index: {}]  }
   0x1   :  { %v9360_v0 = vld [vmem:[%s13363_s0 + $0x10] sm:$0xff]  ;;  %v9365_v1 = vld [vmem:[%s13363_s0 + $0x18] sm:$0xff]  ;;  %45 = vst.msk [vmem:[#allocation2 + $0x30] sm:$0xff] %vm13378_vm0, %v13374_v2  ;;  %46 = vst.msk [vmem:[#allocation2 + $0x38] sm:$0xff] %vm13378_vm0, %v13374_v2 }
   0x2   :  { %47 = vst.msk [vmem:[#allocation2 + $0x40] sm:$0x3] %vm13376_vm1, %v13374_v2  ;;  %41 = vst.msk [vmem:[#allocation2 + $0x10] sm:$0x3] %vm13376_vm1, %v13374_v2  ;;  %v147_v3 = vld [vmem:[%s13363_s0] sm:$0xff]  ;;  %v148_v4 = vld [vmem:[%s13363_s0 + $0x8] sm:$0xff] }
   0x3   :  { %38 = vst.msk [vmem:[#allocation2] sm:$0xff] %vm13378_vm0, %v13374_v2  ;;  %39 = vst.msk [vmem:[#allocation2 + $0x8] sm:$0xff] %vm13378_vm0, %v13374_v2  ;;  %v151_v5 = vld [vmem:[%s13363_s0 + $0x20] sm:$0xff]  ;;  %v152_v6 = vld [vmem:[%s13363_s0 + $0x28] sm:$0xff] }
   0x4   :  { %42 = vst.msk [vmem:[#allocation2 + $0x18] sm:$0xff] %vm13378_vm0, %v13374_v2  ;;  %43 = vst.msk [vmem:[#allocation2 + $0x20] sm:$0xff] %vm13378_vm0, %v13374_v2  ;;  %v153_v7 = vld [vmem:[%s13363_s0 + $0x30] sm:$0xff]  ;;  %v154_v8 = vld [vmem:[%s13363_s0 + $0x38] sm:$0xff] }
   0x5   :  { %44 = vst.msk [vmem:[#allocation2 + $0x28] sm:$0x3] %vm13376_vm1, %v13374_v2  ;;  %50 = vst.msk [vmem:[#allocation2 + $0x58] sm:$0x3] %vm13376_vm1, %v13374_v2  ;;  %v155_v9 = vld [vmem:[%s13363_s0 + $0x40] sm:$0xff]  ;;  %v156_v10 = vld [vmem:[%s13363_s0 + $0x48] sm:$0xff] }
   0x6   :  { %48 = vst.msk [vmem:[#allocation2 + $0x48] sm:$0xff] %vm13378_vm0, %v13374_v2  ;;  %49 = vst.msk [vmem:[#allocation2 + $0x50] sm:$0xff] %vm13378_vm0, %v13374_v2  ;;  %v157_v11 = vld [vmem:[%s13363_s0 + $0x50] sm:$0xff]  ;;  %v158_v12 = vld [vmem:[%s13363_s0 + $0x58] sm:$0xff] }
   0x7   :  { %51 = vst.msk [vmem:[#allocation2 + $0x60] sm:$0xff] %vm13378_vm0, %v13374_v2  ;;  %52 = vst.msk [vmem:[#allocation2 + $0x68] sm:$0xff] %vm13378_vm0, %v13374_v2  ;;  %v159_v13 = vld [vmem:[%s13363_s0 + $0x60] sm:$0xff]  ;;  %v160_v14 = vld [vmem:[%s13363_s0 + $0x68] sm:$0xff] }
   0x8   :  { %53 = vst.msk [vmem:[#allocation2 + $0x70] sm:$0x3] %vm13376_vm1, %v13374_v2  ;;  %56 = vst.msk [vmem:[#allocation2 + $0x88] sm:$0x3] %vm13376_vm1, %v13374_v2  ;;  %v161_v15 = vld [vmem:[%s13363_s0 + $0x70] sm:$0xff]  ;;  %v162_v16 = vld [vmem:[%s13363_s0 + $0x78] sm:$0xff] }
   0x9   :  { %54 = vst.msk [vmem:[#allocation2 + $0x78] sm:$0xff] %vm13378_vm0, %v13374_v2  ;;  %55 = vst.msk [vmem:[#allocation2 + $0x80] sm:$0xff] %vm13378_vm0, %v13374_v2  ;;  %v163_v17 = vld [vmem:[%s13363_s0 + $0x80] sm:$0xff]  ;;  %v164_v18 = vld [vmem:[%s13363_s0 + $0x88] sm:$0xff] }
   0xa   :  { %57 = vst.msk [vmem:[#allocation2 + $0x90] sm:$0xff] %vm13378_vm0, %v13374_v2  ;;  %58 = vst.msk [vmem:[#allocation2 + $0x98] sm:$0xff] %vm13378_vm0, %v13374_v2 }
   0xb   :  { %59 = vst.msk [vmem:[#allocation2 + $0xa0] sm:$0x3] %vm13376_vm1, %v13374_v2  ;;  %62 = vst.msk [vmem:[#allocation2 + $0xb8] sm:$0x3] %vm13376_vm1, %v13374_v2 }
   0xc   :  { %60 = vst.msk [vmem:[#allocation2 + $0xa8] sm:$0xff] %vm13378_vm0, %v13374_v2  ;;  %61 = vst.msk [vmem:[#allocation2 + $0xb0] sm:$0xff] %vm13378_vm0, %v13374_v2 }
   0xd   :  { %63 = vst.msk [vmem:[#allocation2 + $0xc0] sm:$0xff] %vm13378_vm0, %v13374_v2  ;;  %64 = vst.msk [vmem:[#allocation2 + $0xc8] sm:$0xff] %vm13378_vm0, %v13374_v2 }
   0xe   :  { %65 = vst.msk [vmem:[#allocation2 + $0xd0] sm:$0x3] %vm13376_vm1, %v13374_v2  ;;  %68 = vst.msk [vmem:[#allocation2 + $0xe8] sm:$0x3] %vm13376_vm1, %v13374_v2 }
   0xf   :  { %66 = vst.msk [vmem:[#allocation2 + $0xd8] sm:$0xff] %vm13378_vm0, %v13374_v2  ;;  %67 = vst.msk [vmem:[#allocation2 + $0xe0] sm:$0xff] %vm13378_vm0, %v13374_v2 }
  0x10   :  { %69 = vst.msk [vmem:[#allocation2 + $0xf0] sm:$0xff] %vm13378_vm0, %v13374_v2  ;;  %70 = vst.msk [vmem:[#allocation2 + $0xf8] sm:$0xff] %vm13378_vm0, %v13374_v2 }
  0x11   :  { %71 = vst.msk [vmem:[#allocation2 + $0x100] sm:$0x3] %vm13376_vm1, %v13374_v2  ;;  %74 = vst.msk [vmem:[#allocation2 + $0x118] sm:$0x3] %vm13376_vm1, %v13374_v2 }
  0x12   :  { %72 = vst.msk [vmem:[#allocation2 + $0x108] sm:$0xff] %vm13378_vm0, %v13374_v2  ;;  %73 = vst.msk [vmem:[#allocation2 + $0x110] sm:$0xff] %vm13378_vm0, %v13374_v2 }
  0x13   :  { %75 = vst.msk [vmem:[#allocation2 + $0x120] sm:$0xff] %vm13378_vm0, %v13374_v2  ;;  %76 = vst.msk [vmem:[#allocation2 + $0x128] sm:$0xff] %vm13378_vm0, %v13374_v2 }
  0x14   :  { %77 = vst.msk [vmem:[#allocation2 + $0x130] sm:$0x3] %vm13376_vm1, %v13374_v2  ;;  %80 = vst.msk [vmem:[#allocation2 + $0x148] sm:$0x3] %vm13376_vm1, %v13374_v2 }
  0x15   :  { %78 = vst.msk [vmem:[#allocation2 + $0x138] sm:$0xff] %vm13378_vm0, %v13374_v2  ;;  %79 = vst.msk [vmem:[#allocation2 + $0x140] sm:$0xff] %vm13378_vm0, %v13374_v2 }
  0x16   :  { %81 = vst.msk [vmem:[#allocation2 + $0x150] sm:$0xff] %vm13378_vm0, %v13374_v2  ;;  %82 = vst.msk [vmem:[#allocation2 + $0x158] sm:$0xff] %vm13378_vm0, %v13374_v2 }
  0x17   :  { %83 = vst.msk [vmem:[#allocation2 + $0x160] sm:$0x3] %vm13376_vm1, %v13374_v2  ;;  %86 = vst.msk [vmem:[#allocation2 + $0x178] sm:$0x3] %vm13376_vm1, %v13374_v2 }
  0x18   :  { %84 = vst.msk [vmem:[#allocation2 + $0x168] sm:$0xff] %vm13378_vm0, %v13374_v2  ;;  %85 = vst.msk [vmem:[#allocation2 + $0x170] sm:$0xff] %vm13378_vm0, %v13374_v2 }
  0x19   :  { %87 = vst.msk [vmem:[#allocation2 + $0x180] sm:$0xff] %vm13378_vm0, %v13374_v2  ;;  %88 = vst.msk [vmem:[#allocation2 + $0x188] sm:$0xff] %vm13378_vm0, %v13374_v2 }
  0x1a   :  { %89 = vst.msk [vmem:[#allocation2 + $0x190] sm:$0x3] %vm13376_vm1, %v13374_v2  ;;  %92 = vst.msk [vmem:[#allocation2 + $0x1a8] sm:$0x3] %vm13376_vm1, %v13374_v2 }
  0x1b   :  { %90 = vst.msk [vmem:[#allocation2 + $0x198] sm:$0xff] %vm13378_vm0, %v13374_v2  ;;  %91 = vst.msk [vmem:[#allocation2 + $0x1a0] sm:$0xff] %vm13378_vm0, %v13374_v2 }
  0x1c   :  { %93 = vst.msk [vmem:[#allocation2 + $0x1b0] sm:$0xff] %vm13378_vm0, %v13374_v2  ;;  %94 = vst.msk [vmem:[#allocation2 + $0x1b8] sm:$0xff] %vm13378_vm0, %v13374_v2 }
  0x1d   :  { %95 = vst.msk [vmem:[#allocation2 + $0x1c0] sm:$0x3] %vm13376_vm1, %v13374_v2  ;;  %98 = vst.msk [vmem:[#allocation2 + $0x1d8] sm:$0x3] %vm13376_vm1, %v13374_v2 }
  0x1e   :  { %96 = vst.msk [vmem:[#allocation2 + $0x1c8] sm:$0xff] %vm13378_vm0, %v13374_v2  ;;  %97 = vst.msk [vmem:[#allocation2 + $0x1d0] sm:$0xff] %vm13378_vm0, %v13374_v2 }
  0x1f   :  { %99 = vst.msk [vmem:[#allocation2 + $0x1e0] sm:$0xff] %vm13378_vm0, %v13374_v2  ;;  %100 = vst.msk [vmem:[#allocation2 + $0x1e8] sm:$0xff] %vm13378_vm0, %v13374_v2 }
  0x20   :  { %101 = vst.msk [vmem:[#allocation2 + $0x1f0] sm:$0x3] %vm13376_vm1, %v13374_v2  ;;  %104 = vst.msk [vmem:[#allocation2 + $0x208] sm:$0x3] %vm13376_vm1, %v13374_v2 }
  0x21   :  { %102 = vst.msk [vmem:[#allocation2 + $0x1f8] sm:$0xff] %vm13378_vm0, %v13374_v2  ;;  %103 = vst.msk [vmem:[#allocation2 + $0x200] sm:$0xff] %vm13378_vm0, %v13374_v2 }
  0x22   :  { %105 = vst.msk [vmem:[#allocation2 + $0x210] sm:$0xff] %vm13378_vm0, %v13374_v2  ;;  %106 = vst.msk [vmem:[#allocation2 + $0x218] sm:$0xff] %vm13378_vm0, %v13374_v2 }
  0x23   :  { %107 = vst.msk [vmem:[#allocation2 + $0x220] sm:$0x3] %vm13376_vm1, %v13374_v2  ;;  %110 = vst.msk [vmem:[#allocation2 + $0x238] sm:$0x3] %vm13376_vm1, %v13374_v2 }
  0x24   :  { %108 = vst.msk [vmem:[#allocation2 + $0x228] sm:$0xff] %vm13378_vm0, %v13374_v2  ;;  %109 = vst.msk [vmem:[#allocation2 + $0x230] sm:$0xff] %vm13378_vm0, %v13374_v2 }
  0x25   :  { %111 = vst.msk [vmem:[#allocation2 + $0x240] sm:$0xff] %vm13378_vm0, %v13374_v2  ;;  %112 = vst.msk [vmem:[#allocation2 + $0x248] sm:$0xff] %vm13378_vm0, %v13374_v2 }
  0x26   :  { %113 = vst.msk [vmem:[#allocation2 + $0x250] sm:$0x3] %vm13376_vm1, %v13374_v2  ;;  %116 = vst.msk [vmem:[#allocation2 + $0x268] sm:$0x3] %vm13376_vm1, %v13374_v2 }
  0x27   :  { %114 = vst.msk [vmem:[#allocation2 + $0x258] sm:$0xff] %vm13378_vm0, %v13374_v2  ;;  %115 = vst.msk [vmem:[#allocation2 + $0x260] sm:$0xff] %vm13378_vm0, %v13374_v2 }
  0x28   :  { %117 = vst.msk [vmem:[#allocation2 + $0x270] sm:$0xff] %vm13378_vm0, %v13374_v2  ;;  %118 = vst.msk [vmem:[#allocation2 + $0x278] sm:$0xff] %vm13378_vm0, %v13374_v2 }
  0x29   :  { %119 = vst.msk [vmem:[#allocation2 + $0x280] sm:$0x3] %vm13376_vm1, %v13374_v2  ;;  %122 = vst.msk [vmem:[#allocation2 + $0x298] sm:$0x3] %vm13376_vm1, %v13374_v2 }
  0x2a   :  { %120 = vst.msk [vmem:[#allocation2 + $0x288] sm:$0xff] %vm13378_vm0, %v13374_v2  ;;  %121 = vst.msk [vmem:[#allocation2 + $0x290] sm:$0xff] %vm13378_vm0, %v13374_v2 }
  0x2b   :  { %123 = vst.msk [vmem:[#allocation2 + $0x2a0] sm:$0xff] %vm13378_vm0, %v13374_v2  ;;  %124 = vst.msk [vmem:[#allocation2 + $0x2a8] sm:$0xff] %vm13378_vm0, %v13374_v2 }
  0x2c   :  { %125 = vst.msk [vmem:[#allocation2 + $0x2b0] sm:$0x3] %vm13376_vm1, %v13374_v2  ;;  %128 = vst.msk [vmem:[#allocation2 + $0x2c8] sm:$0x3] %vm13376_vm1, %v13374_v2 }
  0x2d   :  { %126 = vst.msk [vmem:[#allocation2 + $0x2b8] sm:$0xff] %vm13378_vm0, %v13374_v2  ;;  %127 = vst.msk [vmem:[#allocation2 + $0x2c0] sm:$0xff] %vm13378_vm0, %v13374_v2 }
  0x2e   :  { %129 = vst.msk [vmem:[#allocation2 + $0x2d0] sm:$0xff] %vm13378_vm0, %v13374_v2  ;;  %130 = vst.msk [vmem:[#allocation2 + $0x2d8] sm:$0xff] %vm13378_vm0, %v13374_v2 }
  0x2f   :  { %131 = vst.msk [vmem:[#allocation2 + $0x2e0] sm:$0x3] %vm13376_vm1, %v13374_v2  ;;  %134 = vst.msk [vmem:[#allocation2 + $0x2f8] sm:$0x3] %vm13376_vm1, %v13374_v2 }
  0x30   :  { %132 = vst.msk [vmem:[#allocation2 + $0x2e8] sm:$0xff] %vm13378_vm0, %v13374_v2  ;;  %133 = vst.msk [vmem:[#allocation2 + $0x2f0] sm:$0xff] %vm13378_vm0, %v13374_v2 }
  0x31   :  { %135 = vst.msk [vmem:[#allocation2 + $0x300] sm:$0xff] %vm13378_vm0, %v13374_v2  ;;  %136 = vst.msk [vmem:[#allocation2 + $0x308] sm:$0xff] %vm13378_vm0, %v13374_v2 }
  0x32   :  { %137 = vst.msk [vmem:[#allocation2 + $0x310] sm:$0x3] %vm13376_vm1, %v13374_v2  ;;  %140 = vst.msk [vmem:[#allocation2 + $0x328] sm:$0x3] %vm13376_vm1, %v13374_v2 }
  0x33   :  { %138 = vst.msk [vmem:[#allocation2 + $0x318] sm:$0xff] %vm13378_vm0, %v13374_v2  ;;  %139 = vst.msk [vmem:[#allocation2 + $0x320] sm:$0xff] %vm13378_vm0, %v13374_v2 }
  0x34   :  { %141 = vst.msk [vmem:[#allocation2 + $0x330] sm:$0xff] %vm13378_vm0, %v13374_v2  ;;  %142 = vst.msk [vmem:[#allocation2 + $0x338] sm:$0xff] %vm13378_vm0, %v13374_v2 }
  0x35   :  { %143 = vst.msk [vmem:[#allocation2 + $0x340] sm:$0x3] %vm13376_vm1, %v13374_v2  ;;  %146 = vst.msk [vmem:[#allocation2 + $0x358] sm:$0x3] %vm13376_vm1, %v13374_v2 }
  0x36   :  { %144 = vst.msk [vmem:[#allocation2 + $0x348] sm:$0xff] %vm13378_vm0, %v13374_v2  ;;  %145 = vst.msk [vmem:[#allocation2 + $0x350] sm:$0xff] %vm13378_vm0, %v13374_v2 }
  0x37   :  { %214 = vst.msk [vmem:[#allocation2 + $0x31] sm:$0xff] %vm13378_vm0, %v9360_v0  ;;  %215 = vst.msk [vmem:[#allocation2 + $0x39] sm:$0xff] %vm13378_vm0, %v9365_v1 }
  0x38   :  { %212 = vst.msk [vmem:[#allocation2 + $0x19] sm:$0xff] %vm13378_vm0, %v147_v3  ;;  %213 = vst.msk [vmem:[#allocation2 + $0x21] sm:$0xff] %vm13378_vm0, %v148_v4 }
  0x39   :  { %216 = vst.msk [vmem:[#allocation2 + $0x49] sm:$0xff] %vm13378_vm0, %v151_v5  ;;  %217 = vst.msk [vmem:[#allocation2 + $0x51] sm:$0xff] %vm13378_vm0, %v152_v6 }
  0x3a   :  { %218 = vst.msk [vmem:[#allocation2 + $0x61] sm:$0xff] %vm13378_vm0, %v153_v7  ;;  %219 = vst.msk [vmem:[#allocation2 + $0x69] sm:$0xff] %vm13378_vm0, %v154_v8 }
  0x3b   :  { %220 = vst.msk [vmem:[#allocation2 + $0x79] sm:$0xff] %vm13378_vm0, %v155_v9  ;;  %221 = vst.msk [vmem:[#allocation2 + $0x81] sm:$0xff] %vm13378_vm0, %v156_v10 }
  0x3c   :  { %222 = vst.msk [vmem:[#allocation2 + $0x91] sm:$0xff] %vm13378_vm0, %v157_v11  ;;  %223 = vst.msk [vmem:[#allocation2 + $0x99] sm:$0xff] %vm13378_vm0, %v158_v12 }
  0x3d   :  { %224 = vst.msk [vmem:[#allocation2 + $0xa9] sm:$0xff] %vm13378_vm0, %v159_v13  ;;  %225 = vst.msk [vmem:[#allocation2 + $0xb1] sm:$0xff] %vm13378_vm0, %v160_v14 }
  0x3e   :  { %226 = vst.msk [vmem:[#allocation2 + $0xc1] sm:$0xff] %vm13378_vm0, %v161_v15  ;;  %227 = vst.msk [vmem:[#allocation2 + $0xc9] sm:$0xff] %vm13378_vm0, %v162_v16 }
  0x3f   :  { %15 = vsyncpa [#allocation5], 0  ;;  %228 = vst.msk [vmem:[#allocation2 + $0xd9] sm:$0xff] %vm13378_vm0, %v163_v17  ;;  %v9651_v19 = vld [vmem:[#allocation2] sm:$0xff]  ;;  %v9653_v20 = vld [vmem:[#allocation2 + $0x8] sm:$0xff]  ;;  %vm13377_vm2 = vcmask 1045504  }
  0x40   :  { %229 = vst.msk [vmem:[#allocation2 + $0xe1] sm:$0xff] %vm13378_vm0, %v164_v18  ;;  %v278_v21 = vld [vmem:[#allocation2 + $0x10] sm:$0x3]  ;;  %vm480_vm3 = vcmask 1046528   ;;  %v283_v23 = vld [vmem:[#allocation2 + $0x38] sm:$0xff]  ;;  %v642_v25 = vrot.slane %v9651_v19, 2 }
  0x41   :  { %v282_v22 = vld [vmem:[#allocation2 + $0x30] sm:$0xff]  ;;  %v9655_v24 = vld [vmem:[#allocation2 + $0x18] sm:$0xff]  ;;  %v643_v26 = vrot.slane %v9653_v20, 2  ;;  %v645_v27 = vrot.slane %v278_v21, 2  ;;  %v9661_v29 = vld [vmem:[#allocation2 + $0x20] sm:$0xff]  ;;  %v481_v30 = vrot.slane %v9651_v19, 1 }
  0x42   :  { %v9659_v28 = vpack.i.bf16 %v283_v23, %v282_v22  ;;  %v482_v31 = vrot.slane %v9653_v20, 1  ;;  %v484_v32 = vrot.slane %v278_v21, 1  ;;  %v281_v33 = vld [vmem:[#allocation2 + $0x28] sm:$0x3]  ;;  %v7667_v34 = vpack.i.bf16 %v9661_v29, %v9655_v24  ;;  %s9287_s29 = smov 30   ;;  %s9288_s30 = smov 20  }
  0x43   :  { %v644_v35 = vsel %vm13377_vm2, %v642_v25, %v643_v26  ;;  %v646_v36 = vsel %vm13377_vm2, %v643_v26, %v645_v27  ;;  %v647_v37 = vrot.slane %v9655_v24, 2  ;;  %v648_v41 = vrot.slane %v9661_v29, 2  ;;  %v284_v42 = vld [vmem:[#allocation2 + $0x40] sm:$0x3]  ;;  %s9289_s11 = smov 10   ;;  %v285_v1 = vld [vmem:[#allocation2 + $0x48] sm:$0xff] }
  0x44   :  { %7673 = vrot.lane.b32.xlu1 %v9659_v28, %s9287_s29  ;;  %v7682_v38 = vpack.i.bf16 %v646_v36, %v644_v35  ;;  %v483_v39 = vsel %vm480_vm3, %v481_v30, %v482_v31  ;;  %v485_v40 = vsel %vm480_vm3, %v482_v31, %v484_v32  ;;  %7668 = vrot.lane.b32.xlu0 %v7667_v34, %s9287_s29  ;;  %v650_v44 = vrot.slane %v281_v33, 2  ;;  %v165_v3 = vld [vmem:[%s13363_s0 + $0x90] sm:$0xff]  ;;  %v166_v4 = vld [vmem:[%s13363_s0 + $0x98] sm:$0xff]  ;;  %s9290_s20 = smov 40   ;;  %s9291_s21 = smov 50   ;;  %v288_v26 = vld [vmem:[#allocation2 + $0x60] sm:$0xff] }
  0x45   :  { %v7677_v43 = vpack.i.bf16 %v485_v40, %v483_v39  ;;  %v486_v45 = vrot.slane %v9655_v24, 1  ;;  %v487_v46 = vrot.slane %v9661_v29, 1  ;;  %v649_v47 = vsel %vm13377_vm2, %v647_v37, %v648_v41  ;;  %v286_v5 = vld [vmem:[#allocation2 + $0x50] sm:$0xff]  ;;  %v287_v6 = vld [vmem:[#allocation2 + $0x58] sm:$0x3]  ;;  %230 = vst.msk [vmem:[#allocation2 + $0xf1] sm:$0xff] %vm13378_vm0, %v165_v3 }
  0x46   :  { %v489_v48 = vrot.slane %v281_v33, 1  ;;  %v491_v49 = vrot.slane %v282_v22, 1  ;;  %v492_v50 = vrot.slane %v283_v23, 1  ;;  %v651_v51 = vsel %vm13377_vm2, %v648_v41, %v650_v44  ;;  %231 = vst.msk [vmem:[#allocation2 + $0xf9] sm:$0xff] %vm13378_vm0, %v166_v4  ;;  %v167_v7 = vld [vmem:[%s13363_s0 + $0xa0] sm:$0xff]  ;;  %v168_v8 = vld [vmem:[%s13363_s0 + $0xa8] sm:$0xff] }
  0x47   :  { %v488_v52 = vsel %vm480_vm3, %v486_v45, %v487_v46  ;;  %v494_v53 = vrot.slane %v284_v42, 1  ;;  %v7692_v54 = vpack.i.bf16 %v651_v51, %v649_v47  ;;  %v652_v57 = vrot.slane %v282_v22, 2  ;;  %232 = vst.msk [vmem:[#allocation2 + $0x109] sm:$0xff] %vm13378_vm0, %v167_v7  ;;  %233 = vst.msk [vmem:[#allocation2 + $0x111] sm:$0xff] %vm13378_vm0, %v168_v8  ;;  %s9292_s22 = smov 60   ;;  %s9293_s23 = smov 70  }
  0x48   :  { %7683 = vrot.lane.b32.xlu1 %v7682_v38, %s9288_s30  ;;  %v490_v55 = vsel %vm480_vm3, %v487_v46, %v489_v48  ;;  %v493_v56 = vsel %vm480_vm3, %v491_v49, %v492_v50  ;;  %7678 = vrot.lane.b32.xlu0 %v7677_v43, %s9289_s11  ;;  %v653_v60 = vrot.slane %v283_v23, 2  ;;  %v655_v61 = vrot.slane %v284_v42, 2  ;;  %s9294_s24 = smov 80   ;;  %v289_v27 = vld [vmem:[#allocation2 + $0x68] sm:$0xff]  ;;  %v169_v30 = vld [vmem:[%s13363_s0 + $0xb0] sm:$0xff]  ;;  %v170_v31 = vld [vmem:[%s13363_s0 + $0xb8] sm:$0xff] }
  0x49   :  { %v7687_v58 = vpack.i.bf16 %v490_v55, %v488_v52  ;;  %v495_v59 = vsel %vm480_vm3, %v492_v50, %v494_v53  ;;  %v496_v10 = vrot.slane %v285_v1, 1  ;;  %v497_v11 = vrot.slane %v286_v5, 1  ;;  %234 = vst.msk [vmem:[#allocation2 + $0x121] sm:$0xff] %vm13378_vm0, %v169_v30  ;;  %235 = vst.msk [vmem:[#allocation2 + $0x129] sm:$0xff] %vm13378_vm0, %v170_v31  ;;  %v2941_v35 = vld [vmem:[%s13364_s1] sm:$0xff]  ;;  %v2942_v36 = vld [vmem:[%s13364_s1 + $0x8] sm:$0xff] }
  0x4a   :  { %v7702_v62 = vpack.i.bf16 %v495_v59, %v493_v56  ;;  %v654_v63 = vsel %vm13377_vm2, %v652_v57, %v653_v60  ;;  %v656_v0 = vsel %vm13377_vm2, %v653_v60, %v655_v61  ;;  %v499_v12 = vrot.slane %v287_v6, 1  ;;  %v2943_v37 = vld [vmem:[%s13364_s1 + $0x10] sm:$0xff]  ;;  %v2944_v38 = vld [vmem:[%s13364_s1 + $0x18] sm:$0xff]  ;;  %v2945_v46 = vld [vmem:[%s13364_s1 + $0x20] sm:$0xff] }
  0x4b   :  { %v7712_v9 = vpack.i.bf16 %v656_v0, %v654_v63  ;;  %v7722_v13 = vpack.i.bf16 %v286_v5, %v285_v1  ;;  %v498_v14 = vsel %vm480_vm3, %v496_v10, %v497_v11  ;;  %v657_v17 = vrot.slane %v285_v1, 2  ;;  %v2946_v47 = vld [vmem:[%s13364_s1 + $0x28] sm:$0xff]  ;;  %v291_v50 = vld [vmem:[#allocation2 + $0x78] sm:$0xff]  ;;  %v2947_v55 = vld [vmem:[%s13364_s1 + $0x30] sm:$0xff] }
  0x4c   :  { %7693 = vrot.lane.b32.xlu1 %v7692_v54, %s9288_s30  ;;  %7688 = vrot.lane.b32.xlu0 %v7687_v58, %s9289_s11  ;;  %v500_v15 = vsel %vm480_vm3, %v497_v11, %v499_v12  ;;  %v658_v18 = vrot.slane %v286_v5, 2  ;;  %v660_v21 = vrot.slane %v287_v6, 2  ;;  %v501_v32 = vrot.slane %v288_v26, 1  ;;  %v2948_v56 = vld [vmem:[%s13364_s1 + $0x38] sm:$0xff]  ;;  %v293_v57 = vld [vmem:[#allocation2 + $0x88] sm:$0x3] }
  0x4d   :  { %v9713_v16 = vpack.i.bf16 %v500_v15, %v498_v14  ;;  %v502_v33 = vrot.slane %v289_v27, 1  ;;  %v7772_v39 = vpack.i.bf16 %v289_v27, %v288_v26  ;;  %v662_v40 = vrot.slane %v288_v26, 2  ;;  %v172_v59 = vld [vmem:[%s13363_s0 + $0xc8] sm:$0xff]  ;;  %v2949_v1 = vld [vmem:[%s13364_s1 + $0x40] sm:$0xff]  ;;  %v2951_v8 = vld [vmem:[%s13364_s1 + $0x50] sm:$0xff] }
  0x4e   :  { %v659_v22 = vsel %vm13377_vm2, %v657_v17, %v658_v18  ;;  %v661_v23 = vsel %vm13377_vm2, %v658_v18, %v660_v21  ;;  %v2953_v41 = vpack.c.bf16 %v2942_v36, %v2941_v35  ;;  %v663_v44 = vrot.slane %v289_v27, 2  ;;  %237 = vst.msk [vmem:[#allocation2 + $0x141] sm:$0xff] %vm13378_vm0, %v172_v59  ;;  %v2950_v3 = vld [vmem:[%s13364_s1 + $0x48] sm:$0xff]  ;;  %v294_v21 = vld [vmem:[#allocation2 + $0x90] sm:$0xff]  ;;  %v174_v26 = vld [vmem:[%s13363_s0 + $0xd8] sm:$0xff] }
  0x4f   :  { %v9724_v25 = vpack.i.bf16 %v661_v23, %v659_v22  ;;  %v503_v42 = vsel %vm480_vm3, %v501_v32, %v502_v33  ;;  %v2954_v48 = vpack.c.bf16 %v2944_v38, %v2943_v37  ;;  %v2955_v51 = vpack.c.bf16 %v2946_v47, %v2945_v46  ;;  %v295_v22 = vld [vmem:[#allocation2 + $0x98] sm:$0xff]  ;;  %v296_v23 = vld [vmem:[#allocation2 + $0xa0] sm:$0x3]  ;;  %239 = vst.msk [vmem:[#allocation2 + $0x159] sm:$0xff] %vm13378_vm0, %v174_v26 }
  0x50   :  { %7703 = vrot.lane.b32.xlu1 %v7702_v62, %s9290_s20  ;;  %7698 = vrot.lane.b32.xlu0 %v7687_v58, %s9290_s20  ;;  %v664_v52 = vsel %vm13377_vm2, %v662_v40, %v663_v44  ;;  %v171_v58 = vld [vmem:[%s13363_s0 + $0xc0] sm:$0xff]  ;;  %v2956_v61 = vpack.c.bf16 %v2948_v56, %v2947_v55  ;;  %v509_v0 = vrot.slane %v293_v57, 1  ;;  %v2957_v5 = vpack.c.bf16 %v2950_v3, %v2949_v1  ;;  %v297_v40 = vld [vmem:[#allocation2 + $0xa8] sm:$0xff] }
  0x51   :  { %7505 = vmatprep.subr.bf16.mxu0 %v2953_v41  ;;  %236 = vst.msk [vmem:[#allocation2 + $0x139] sm:$0xff] %vm13378_vm0, %v171_v58  ;;  %vm3063_vm4 = vcmask 1044480   ;;  %v667_v12 = vrot.slane %v291_v50, 2  ;;  %v670_v14 = vrot.slane %v293_v57, 2  ;;  %v511_v27 = vrot.slane %v294_v21, 1  ;;  %v300_v59 = vld [vmem:[#allocation2 + $0xc0] sm:$0xff] }
  0x52   :  { %7506 = vmatpush3.bf16.msra.mxu0 %v2953_v41  ;;  %v514_v30 = vrot.slane %v296_v23, 1  ;;  %v7852_v31 = vpack.i.bf16 %v295_v22, %v294_v21  ;;  %v672_v32 = vrot.slane %v294_v21, 2  ;;  %v673_v35 = vrot.slane %v295_v22, 2  ;;  %v298_v41 = vld [vmem:[#allocation2 + $0xb0] sm:$0xff] }
  0x53   :  { %7507 = vmatprep.subr.bf16.mxu0 %v2954_v48  ;;  %v675_v36 = vrot.slane %v296_v23, 2  ;;  %v516_v46 = vrot.slane %v297_v40, 1  ;;  %v517_v47 = vrot.slane %v298_v41, 1  ;;  %vm2454_vm5 = vcmask 162816  }
  0x54   :  { %7713 = vrot.lane.b32.xlu1 %v7712_v9, %s9291_s21  ;;  %7708 = vrot.lane.b32.xlu0 %v7692_v54, %s9291_s21  ;;  %v292_v54 = vld [vmem:[#allocation2 + $0x80] sm:$0xff]  ;;  %v674_v38 = vsel %vm13377_vm2, %v672_v32, %v673_v35  ;;  %vm13387_vm6 = vcmask 244736   ;;  %vm13383_vm7 = vcmask 326656   ;;  %vm13382_vm8 = vcmask 408576  }
  0x55   :  { %v507_v63 = vrot.slane %v292_v54, 1  ;;  %v7802_v4 = vpack.i.bf16 %v292_v54, %v291_v50  ;;  %vm2714_vm9 = vcmask 490496   ;;  %vm13379_vm10 = vcmask 572416  }
  0x56   :  { %7508 = vmatpush3.bf16.msra.mxu0 %v2954_v48  ;;  %vm2844_vm11 = vcmask 654336   ;;  %vm2966_vm12 = vcmask 736256   ;;  %vm13384_vm13 = vcmask 261120   ;;  %vm4670_vm14 = vcmask 254976  }
  0x57   :  { %7509 = vmatprep.subr.bf16.mxu0 %v2955_v51  ;;  %v510_v7 = vsel %vm480_vm3, %v507_v63, %v509_v0  ;;  %v521_v0 = vrot.slane %v300_v59, 1  ;;  %vm5350_vm15 = vcmask 1041409   ;;  %vm13389_vm1 = vcmask 1044484  }
  0x58   :  { %7723 = vrot.lane.b32.xlu1 %v7722_v13, %s9292_s22  ;;  %7718 = vrot.lane.b32.xlu0 %v9659_v28, %s9292_s22  ;;  %v290_v28 = vld [vmem:[#allocation2 + $0x70] sm:$0x3] }
  0x59   :  { %v504_v34 = vrot.slane %v290_v28, 1  ;;  %v665_v45 = vrot.slane %v290_v28, 2  ;;  %v512_v28 = vrot.slane %v295_v22, 1 }
  0x5a   :  { %7510 = vmatpush3.bf16.msra.mxu0 %v2955_v51 }
  0x5b   :  { %v505_v43 = vsel %vm480_vm3, %v502_v33, %v504_v34  ;;  %v666_v53 = vsel %vm13377_vm2, %v663_v44, %v665_v45  ;;  %7511 = vmatprep.subr.bf16.mxu0 %v2956_v61  ;;  %v513_v33 = vsel %vm480_vm3, %v511_v27, %v512_v28  ;;  %v515_v34 = vsel %vm480_vm3, %v512_v28, %v514_v30  ;;  %v176_v44 = vld [vmem:[%s13363_s0 + $0xe8] sm:$0xff]  ;;  %v179_v28 = vld [vmem:[%s13363_s0 + $0x100] sm:$0xff] }
  0x5c   :  { %7733 = vrot.lane.b32.xlu1 %v9713_v16, %s9293_s23  ;;  %7728 = vrot.lane.b32.xlu0 %v7702_v62, %s9293_s23  ;;  %v7782_v49 = vpack.i.bf16 %v505_v43, %v503_v42  ;;  %v7792_v60 = vpack.i.bf16 %v666_v53, %v664_v52  ;;  %v7862_v37 = vpack.i.bf16 %v515_v34, %v513_v33  ;;  %v299_v42 = vld [vmem:[#allocation2 + $0xb8] sm:$0x3]  ;;  %v175_v43 = vld [vmem:[%s13363_s0 + $0xe0] sm:$0xff]  ;;  %v677_v53 = vrot.slane %v297_v40, 2  ;;  %v180_v30 = vld [vmem:[%s13363_s0 + $0x108] sm:$0xff] }
  0x5d   :  { %240 = vst.msk [vmem:[#allocation2 + $0x169] sm:$0xff] %vm13378_vm0, %v175_v43  ;;  %241 = vst.msk [vmem:[#allocation2 + $0x171] sm:$0xff] %vm13378_vm0, %v176_v44  ;;  %v519_v48 = vrot.slane %v299_v42, 1  ;;  %v680_v55 = vrot.slane %v299_v42, 2  ;;  %v308_v42 = vld [vmem:[#allocation2 + $0x100] sm:$0x3] }
  0x5e   :  { %7512 = vmatpush3.bf16.msra.mxu0 %v2956_v61  ;;  %v302_v61 = vld [vmem:[#allocation2 + $0xd0] sm:$0x3]  ;;  %244 = vst.msk [vmem:[#allocation2 + $0x1c9] sm:$0xff] %vm13378_vm0, %v179_v28  ;;  %245 = vst.msk [vmem:[#allocation2 + $0x1d1] sm:$0xff] %vm13378_vm0, %v180_v30 }
  0x5f   :  { %7513 = vmatprep.subr.bf16.mxu0 %v2957_v5  ;;  %v520_v51 = vsel %vm480_vm3, %v517_v47, %v519_v48  ;;  %v524_v3 = vrot.slane %v302_v61, 1 }
  0x60   :  { %7743 = vrot.lane.b32.xlu1 %v7702_v62, %s9289_s11  ;;  %7738 = vrot.lane.b32.xlu0 %v7712_v9, %s9294_s24  ;;  %v506_v62 = vrot.slane %v291_v50, 1  ;;  %v518_v50 = vsel %vm480_vm3, %v516_v46, %v517_v47  ;;  %v534_v47 = vrot.slane %v308_v42, 1 }
  0x61   :  { %v7892_v52 = vpack.i.bf16 %v520_v51, %v518_v50  ;;  %v695_v51 = vrot.slane %v308_v42, 2 }
  0x62   :  { %v508_v6 = vsel %vm480_vm3, %v506_v62, %v507_v63  ;;  %7514 = vmatpush3.bf16.msra.mxu0 %v2957_v5  ;;  %v177_v62 = vld [vmem:[%s13363_s0 + $0xf0] sm:$0xff]  ;;  %v178_v63 = vld [vmem:[%s13363_s0 + $0xf8] sm:$0xff]  ;;  %v682_v5 = vrot.slane %v300_v59, 2 }
  0x63   :  { %v7812_v10 = vpack.i.bf16 %v510_v7, %v508_v6  ;;  %242 = vst.msk [vmem:[#allocation2 + $0x181] sm:$0xff] %vm13378_vm0, %v177_v62  ;;  %243 = vst.msk [vmem:[#allocation2 + $0x189] sm:$0xff] %vm13378_vm0, %v178_v63 }
  0x64   :  { %7753 = vrot.lane.b32.xlu1 %v9713_v16, %s9289_s11  ;;  %7748 = vrot.lane.b32.xlu0 %v9724_v25, %s9294_s24 }
  0x68   :  { %7763 = vrot.lane.b32.xlu1 %v9724_v25, %s9288_s30  ;;  %7758 = vrot.lane.b32.xlu0 %v7712_v9, %s9288_s30  ;;  %v2952_v9 = vld [vmem:[%s13364_s1 + $0x58] sm:$0x3] }
  0x69   :  { %v2958_v11 = vpack.c.bf16 %v2952_v9, %v2951_v8  ;;  %v685_v9 = vrot.slane %v302_v61, 2 }
  0x6b   :  { %7650 = vmatprep.subr.msk.bf16.mxu0 %vm3063_vm4, %v2958_v11  ;;  %v3065_v15 = vsel %vm3063_vm4, %v2958_v11, 0  ;;  %vm5352_vm4 = vcmask 1042434  }
  0x6c   :  { %7773 = vrot.lane.b32.xlu1 %v7772_v39, %s9287_s29  ;;  %7768 = vrot.lane.b32.xlu0 %v7722_v13, %s9287_s29  ;;  %v668_v13 = vrot.slane %v292_v54, 2  ;;  %v678_v54 = vrot.slane %v298_v41, 2 }
  0x6d   :  { %7516 = vmatpush3.bf16.msra.mxu0 %v3065_v15  ;;  %v305_v15 = vld [vmem:[#allocation2 + $0xe8] sm:$0x3] }
  0x6e   :  { %v671_v17 = vsel %vm13377_vm2, %v668_v13, %v670_v14  ;;  %7624 = vmatprep.subr.bf16.mxu0 %v13374_v2  ;;  %v679_v56 = vsel %vm13377_vm2, %v677_v53, %v678_v54  ;;  %v681_v57 = vsel %vm13377_vm2, %v678_v54, %v680_v55  ;;  %v304_v14 = vld [vmem:[#allocation2 + $0xe0] sm:$0xff]  ;;  %v529_v21 = vrot.slane %v305_v15, 1  ;;  %v182_v53 = vld [vmem:[%s13363_s0 + $0x118] sm:$0xff]  ;;  %v9918_v55 = vld [vmem:[#allocation2 + $0x108] sm:$0xff] }
  0x6f   :  { %v7907_v58 = vpack.i.bf16 %v681_v57, %v679_v56  ;;  %v688_v34 = vrot.slane %v304_v14, 2  ;;  %247 = vst.msk [vmem:[#allocation2 + $0x1e9] sm:$0xff] %vm13378_vm0, %v182_v53  ;;  %v9926_v57 = vld [vmem:[#allocation2 + $0x110] sm:$0xff] }
  0x70   :  { %7783 = vrot.lane.b32.xlu1 %v7782_v49, %s9290_s20  ;;  %7778 = vrot.lane.b32.xlu0 %v9713_v16, %s9290_s20  ;;  %v669_v16 = vsel %vm13377_vm2, %v667_v12, %v668_v13  ;;  %v303_v13 = vld [vmem:[#allocation2 + $0xd8] sm:$0xff] }
  0x71   :  { %v7827_v18 = vpack.i.bf16 %v671_v17, %v669_v16  ;;  %v526_v17 = vrot.slane %v303_v13, 1  ;;  %v9872_v22 = vpack.i.bf16 %v304_v14, %v303_v13  ;;  %v687_v33 = vrot.slane %v303_v13, 2 }
  0x74   :  { %7793 = vrot.lane.b32.xlu1 %v7792_v60, %s9291_s21  ;;  %7788 = vrot.lane.b32.xlu0 %v9724_v25, %s9291_s21  ;;  %v173_v25 = vld [vmem:[%s13363_s0 + $0xd0] sm:$0xff] }
  0x75   :  { %238 = vst.msk [vmem:[#allocation2 + $0x151] sm:$0xff] %vm13378_vm0, %v173_v25 }
  0x78   :  { %7803 = vrot.lane.b32.xlu1 %v7802_v4, %s9292_s22  ;;  %7798 = vrot.lane.b32.xlu0 %v7772_v39, %s9292_s22  ;;  %v676_v39 = vsel %vm13377_vm2, %v673_v35, %v675_v36  ;;  %v690_v35 = vrot.slane %v305_v15, 2  ;;  %v9959_v15 = vpack.i.bf16 %v9926_v57, %v9918_v55 }
  0x79   :  { %v7872_v45 = vpack.i.bf16 %v676_v39, %v674_v38  ;;  %v689_v38 = vsel %vm13377_vm2, %v687_v33, %v688_v34 }
  0x7a   :  { %v691_v39 = vsel %vm13377_vm2, %v688_v34, %v690_v35 }
  0x7b   :  { %v9906_v44 = vpack.i.bf16 %v691_v39, %v689_v38 }
  0x7c   :  { %7813 = vrot.lane.b32.xlu1 %v7812_v10, %s9293_s23  ;;  %7808 = vrot.lane.b32.xlu0 %v7782_v49, %s9293_s23 }
  0x80   :  { %7823 = vrot.lane.b32.xlu1 %v7782_v49, %s9289_s11  ;;  %7818 = vrot.lane.b32.xlu0 %v7792_v60, %s9294_s24  ;;  %v7882_v49 = vpack.i.bf16 %v298_v41, %v297_v40  ;;  %v306_v40 = vld [vmem:[#allocation2 + $0xf0] sm:$0xff]  ;;  %v307_v41 = vld [vmem:[#allocation2 + $0xf8] sm:$0xff] }
  0x81   :  { %v532_v46 = vrot.slane %v307_v41, 1  ;;  %v693_v50 = vrot.slane %v307_v41, 2  ;;  %v9924_v56 = vpack.i.bf16 %v307_v41, %v306_v40 }
  0x83   :  { %v535_v62 = vsel %vm480_vm3, %v532_v46, %v534_v47 }
  0x84   :  { %7833 = vrot.lane.b32.xlu1 %v7812_v10, %s9289_s11  ;;  %7828 = vrot.lane.b32.xlu0 %v7827_v18, %s9294_s24 }
  0x88   :  { %7843 = vrot.lane.b32.xlu1 %v7827_v18, %s9288_s30  ;;  %7838 = vrot.lane.b32.xlu0 %v7792_v60, %s9288_s30  ;;  %v301_v60 = vld [vmem:[#allocation2 + $0xc8] sm:$0xff] }
  0x89   :  { %v522_v1 = vrot.slane %v301_v60, 1  ;;  %v683_v8 = vrot.slane %v301_v60, 2 }
  0x8b   :  { %v523_v6 = vsel %vm480_vm3, %v521_v0, %v522_v1  ;;  %v525_v7 = vsel %vm480_vm3, %v522_v1, %v524_v3  ;;  %v684_v11 = vsel %vm13377_vm2, %v682_v5, %v683_v8  ;;  %v686_v12 = vsel %vm13377_vm2, %v683_v8, %v685_v9 }
  0x8c   :  { %7853 = vrot.lane.b32.xlu1 %v7852_v31, %s9287_s29  ;;  %7848 = vrot.lane.b32.xlu0 %v7802_v4, %s9287_s29  ;;  %v7932_v4 = vpack.i.bf16 %v301_v60, %v300_v59  ;;  %v9867_v16 = vpack.i.bf16 %v686_v12, %v684_v11  ;;  %v696_v1 = vsel %vm13377_vm2, %v693_v50, %v695_v51  ;;  %v536_v3 = vrot.slane %v9918_v55, 1 }
  0x90   :  { %7863 = vrot.lane.b32.xlu1 %v7862_v37, %s9290_s20  ;;  %7858 = vrot.lane.b32.xlu0 %v7812_v10, %s9290_s20  ;;  %v7942_v10 = vpack.i.bf16 %v525_v7, %v523_v6  ;;  %v537_v7 = vrot.slane %v9926_v57, 1 }
  0x94   :  { %7873 = vrot.lane.b32.xlu1 %v7872_v45, %s9291_s21  ;;  %7868 = vrot.lane.b32.xlu0 %v7827_v18, %s9291_s21  ;;  %v527_v18 = vrot.slane %v304_v14, 1 }
  0x96   :  { %v528_v23 = vsel %vm480_vm3, %v526_v17, %v527_v18  ;;  %v530_v25 = vsel %vm480_vm3, %v527_v18, %v529_v21 }
  0x98   :  { %7883 = vrot.lane.b32.xlu1 %v7882_v49, %s9292_s22  ;;  %7878 = vrot.lane.b32.xlu0 %v7852_v31, %s9292_s22  ;;  %v9889_v31 = vpack.i.bf16 %v530_v25, %v528_v23  ;;  %v9971_v25 = vsel %vm480_vm3, %v536_v3, %v537_v7 }
  0x9c   :  { %7893 = vrot.lane.b32.xlu1 %v7892_v52, %s9293_s23  ;;  %7888 = vrot.lane.b32.xlu0 %v7862_v37, %s9293_s23 }
  0xa0   :  { %7903 = vrot.lane.b32.xlu1 %v7862_v37, %s9289_s11  ;;  %7898 = vrot.lane.b32.xlu0 %v7872_v45, %s9294_s24 }
  0xa4   :  { %7913 = vrot.lane.b32.xlu1 %v7892_v52, %s9289_s11  ;;  %7908 = vrot.lane.b32.xlu0 %v7907_v58, %s9294_s24 }
  0xa8   :  { %7923 = vrot.lane.b32.xlu1 %v7907_v58, %s9288_s30  ;;  %7918 = vrot.lane.b32.xlu0 %v7872_v45, %s9288_s30  ;;  %v531_v45 = vrot.slane %v306_v40, 1 }
  0xaa   :  { %v533_v61 = vsel %vm480_vm3, %v531_v45, %v532_v46 }
  0xab   :  { %v9947_v11 = vpack.i.bf16 %v535_v62, %v533_v61 }
  0xac   :  { %7933 = vrot.lane.b32.xlu1 %v7932_v4, %s9287_s29  ;;  %7928 = vrot.lane.b32.xlu0 %v7882_v49, %s9287_s29  ;;  %v692_v49 = vrot.slane %v306_v40, 2 }
  0xae   :  { %v694_v0 = vsel %vm13377_vm2, %v692_v49, %v693_v50 }
  0xaf   :  { %v9955_v14 = vpack.i.bf16 %v696_v1, %v694_v0 }
  0xb0   :  { %7943 = vrot.lane.b32.xlu1 %v7942_v10, %s9290_s20  ;;  %7938 = vrot.lane.b32.xlu0 %v7892_v52, %s9290_s20  ;;  %v181_v52 = vld [vmem:[%s13363_s0 + $0x110] sm:$0xff] }
  0xb1   :  { %246 = vst.msk [vmem:[#allocation2 + $0x1e1] sm:$0xff] %vm13378_vm0, %v181_v52 }
  0xb4   :  { %7953 = vrot.lane.b32.xlu1 %v9867_v16, %s9291_s21  ;;  %7948 = vrot.lane.b32.xlu0 %v7907_v58, %s9291_s21  ;;  %v9928_v58 = vld [vmem:[#allocation2 + $0x118] sm:$0x3] }
  0xb5   :  { %v539_v8 = vrot.slane %v9928_v58, 1  ;;  %v700_v33 = vrot.slane %v9928_v58, 2 }
  0xb6   :  { %v9877_v26 = vpop.permute.xlu1 %7673  ;;  %v9879_v27 = vpop.permute.xlu0 %7668 }
  0xb7   :  { %v9974_v28 = vsel %vm480_vm3, %v537_v7, %v539_v8  ;;  %v7675_v34 = vunpack.i.l.bf16 %v9877_v26  ;;  %v7671_v35 = vunpack.i.h.bf16 %v9879_v27 }
  0xb8   :  { %7963 = vrot.lane.b32.xlu1 %v9872_v22, %s9292_s22  ;;  %7958 = vrot.lane.b32.xlu0 %v7932_v4, %s9292_s22 }
  0xba   :  { %v9894_v32 = vpop.permute.xlu1 %7683  ;;  %v7679_v36 = vpop.permute.xlu0 %7678 }
  0xbb   :  { %v7681_v59 = vunpack.i.h.bf16 %v7679_v36  ;;  %v7680_v60 = vunpack.i.l.bf16 %v7679_v36  ;;  %v7686_v9 = vunpack.i.h.bf16 %v9894_v32  ;;  %v7670_v36 = vunpack.i.l.bf16 %v9879_v27  ;;  %v184_v27 = vld [vmem:[%s13363_s0 + $0x128] sm:$0xff] }
  0xbc   :  { %7973 = vrot.lane.b32.xlu1 %v9889_v31, %s9293_s23  ;;  %7968 = vrot.lane.b32.xlu0 %v7942_v10, %s9293_s23  ;;  %249 = vst.msk [vmem:[#allocation2 + $0x201] sm:$0xff] %vm13378_vm0, %v184_v27  ;;  %v314_v27 = vld [vmem:[#allocation2 + $0x130] sm:$0x3] }
  0xbd   :  { %v2391_v12 = vsel %vm13378_vm0, %v9653_v20, %v7681_v59  ;;  %v2390_v13 = vsel %vm13378_vm0, %v9651_v19, %v7680_v60  ;;  %v697_v20 = vrot.slane %v9918_v55, 2  ;;  %v705_v55 = vrot.slane %v314_v27, 2 }
  0xbe   :  { %v9899_v37 = vpop.permute.xlu1 %7693  ;;  %v7689_v43 = vpop.permute.xlu0 %7688  ;;  %v2456_v30 = vsel %vm2454_vm5, %v2391_v12, %v7686_v9 }
  0xbf   :  { %v7691_v4 = vunpack.i.h.bf16 %v7689_v43  ;;  %v7690_v5 = vunpack.i.l.bf16 %v7689_v43  ;;  %v7696_v17 = vunpack.i.h.bf16 %v9899_v37  ;;  %v7695_v18 = vunpack.i.l.bf16 %v9899_v37 }
  0xc0   :  { %7983 = vrot.lane.b32.xlu1 %v7942_v10, %s9289_s11  ;;  %7978 = vrot.lane.b32.xlu0 %v9867_v16, %s9294_s24  ;;  %v7685_v10 = vunpack.i.l.bf16 %v9894_v32  ;;  %v2521_v42 = vsel %vm13387_vm6, %v2456_v30, %v7671_v35 }
  0xc1   :  { %v2393_v19 = vsel %vm13378_vm0, %v9661_v29, %v7691_v4  ;;  %v698_v29 = vrot.slane %v9926_v57, 2 }
  0xc2   :  { %v9908_v48 = vpop.permute.xlu1 %7703  ;;  %v9916_v54 = vpop.permute.xlu0 %7698  ;;  %v2455_v32 = vsel %vm2454_vm5, %v2390_v13, %v7685_v10  ;;  %v2458_v37 = vsel %vm2454_vm5, %v2393_v19, %v7696_v17 }
  0xc3   :  { %v7701_v39 = vunpack.i.h.bf16 %v9916_v54  ;;  %v7700_v40 = vunpack.i.l.bf16 %v9916_v54  ;;  %v7706_v47 = vunpack.i.h.bf16 %v9908_v48  ;;  %v7705_v49 = vunpack.i.l.bf16 %v9908_v48 }
  0xc4   :  { %7993 = vrot.lane.b32.xlu1 %v9889_v31, %s9289_s11  ;;  %7988 = vrot.lane.b32.xlu0 %v9906_v44, %s9294_s24 }
  0xc5   :  { %v2586_v61 = vsel %vm13383_vm7, %v2521_v42, %v7701_v39 }
  0xc6   :  { %v9934_v63 = vpop.permute.xlu1 %7713  ;;  %v9939_v6 = vpop.permute.xlu0 %7708 }
  0xc7   :  { %v7711_v43 = vunpack.i.h.bf16 %v9939_v6  ;;  %v7710_v45 = vunpack.i.l.bf16 %v9939_v6  ;;  %v7716_v48 = vunpack.i.h.bf16 %v9934_v63  ;;  %v7715_v62 = vunpack.i.l.bf16 %v9934_v63 }
  0xc8   :  { %8003 = vrot.lane.b32.xlu1 %v9906_v44, %s9288_s30  ;;  %7998 = vrot.lane.b32.xlu0 %v9867_v16, %s9288_s30  ;;  %v2392_v16 = vsel %vm13378_vm0, %v9655_v24, %v7690_v5  ;;  %v7676_v24 = vunpack.i.h.bf16 %v9877_v26  ;;  %v183_v26 = vld [vmem:[%s13363_s0 + $0x120] sm:$0xff] }
  0xc9   :  { %v2457_v38 = vsel %vm2454_vm5, %v2392_v16, %v7695_v18  ;;  %248 = vst.msk [vmem:[#allocation2 + $0x1f9] sm:$0xff] %vm13378_vm0, %v183_v26  ;;  %v2651_v3 = vsel %vm13382_vm8, %v2586_v61, %v7711_v43  ;;  %v313_v26 = vld [vmem:[#allocation2 + $0x128] sm:$0xff]  ;;  %v315_v43 = vld [vmem:[#allocation2 + $0x138] sm:$0xff] }
  0xca   :  { %v9963_v21 = vpop.permute.xlu1 %7723  ;;  %v7719_v23 = vpop.permute.xlu0 %7718  ;;  %v2522_v52 = vsel %vm13387_vm6, %v2457_v38, %v7675_v34  ;;  %v2523_v53 = vsel %vm13387_vm6, %v2458_v37, %v7676_v24  ;;  %v10040_v24 = vpack.i.bf16 %v9974_v28, %v9971_v25  ;;  %v312_v25 = vld [vmem:[#allocation2 + $0x120] sm:$0xff]  ;;  %v707_v57 = vrot.slane %v315_v43, 2 }
  0xcb   :  { %v7721_v50 = vunpack.i.h.bf16 %v7719_v23  ;;  %v7720_v51 = vunpack.i.l.bf16 %v7719_v23  ;;  %v7726_v4 = vunpack.i.h.bf16 %v9963_v21  ;;  %v7725_v5 = vunpack.i.l.bf16 %v9963_v21 }
  0xcc   :  { %8013 = vrot.lane.b32.xlu1 %v9924_v56, %s9287_s29  ;;  %8008 = vrot.lane.b32.xlu0 %v9872_v22, %s9287_s29  ;;  %v2520_v22 = vsel %vm13387_vm6, %v2455_v32, %v7670_v36  ;;  %v2587_v17 = vsel %vm13383_vm7, %v2522_v52, %v7705_v49  ;;  %v2588_v18 = vsel %vm13383_vm7, %v2523_v53, %v7706_v47  ;;  %v541_v49 = vrot.slane %v312_v25, 1 }
  0xcd   :  { %v2585_v60 = vsel %vm13383_vm7, %v2520_v22, %v7700_v40  ;;  %v2716_v63 = vsel %vm2714_vm9, %v2651_v3, %v7721_v50  ;;  %v2652_v23 = vsel %vm13382_vm8, %v2587_v17, %v7715_v62  ;;  %v2653_v30 = vsel %vm13382_vm8, %v2588_v18, %v7716_v48  ;;  %v10112_v17 = vld [vmem:[#allocation2 + $0x158] sm:$0xff] }
  0xce   :  { %v7734_v41 = vpop.permute.xlu1 %7733  ;;  %v7729_v46 = vpop.permute.xlu0 %7728  ;;  %v2650_v1 = vsel %vm13382_vm8, %v2585_v60, %v7710_v45  ;;  %v2717_v34 = vsel %vm2714_vm9, %v2652_v23, %v7725_v5  ;;  %v2718_v35 = vsel %vm2714_vm9, %v2653_v30, %v7726_v4  ;;  %v316_v45 = vld [vmem:[#allocation2 + $0x140] sm:$0xff]  ;;  %v701_v47 = vsel %vm13377_vm2, %v698_v29, %v700_v33 }
  0xcf   :  { %v7731_v54 = vunpack.i.h.bf16 %v7729_v46  ;;  %v7730_v59 = vunpack.i.l.bf16 %v7729_v46  ;;  %v2715_v8 = vsel %vm2714_vm9, %v2650_v1, %v7720_v51  ;;  %v7736_v9 = vunpack.i.h.bf16 %v7734_v41  ;;  %v317_v46 = vld [vmem:[#allocation2 + $0x148] sm:$0x3] }
  0xd0   :  { %8023 = vrot.lane.b32.xlu1 %v9947_v11, %s9290_s20  ;;  %8018 = vrot.lane.b32.xlu0 %v9889_v31, %s9290_s20  ;;  %v7735_v10 = vunpack.i.l.bf16 %v7734_v41  ;;  %v542_v50 = vrot.slane %v313_v26, 1  ;;  %v544_v51 = vrot.slane %v314_v27, 1  ;;  %v702_v52 = vrot.slane %v312_v25, 2 }
  0xd1   :  { %v2780_v12 = vsel %vm13379_vm10, %v2715_v8, %v7730_v59  ;;  %v2781_v13 = vsel %vm13379_vm10, %v2716_v63, %v7731_v54  ;;  %v2783_v39 = vsel %vm13379_vm10, %v2718_v35, %v7736_v9  ;;  %v703_v53 = vrot.slane %v313_v26, 2 }
  0xd2   :  { %v10016_v0 = vpop.permute.xlu1 %7743  ;;  %v7739_v6 = vpop.permute.xlu0 %7738  ;;  %v2782_v38 = vsel %vm13379_vm10, %v2717_v34, %v7735_v10  ;;  %v547_v59 = vrot.slane %v316_v45, 1  ;;  %v549_v58 = vrot.slane %v317_v46, 1  ;;  %v710_v33 = vrot.slane %v317_v46, 2 }
  0xd3   :  { %v7741_v31 = vunpack.i.h.bf16 %v7739_v6  ;;  %v7740_v7 = vunpack.i.l.bf16 %v7739_v6  ;;  %v10082_v48 = vpack.i.bf16 %v313_v26, %v312_v25  ;;  %v543_v62 = vsel %vm480_vm3, %v541_v49, %v542_v50 }
  0xd4   :  { %8033 = vrot.lane.b32.xlu1 %v9955_v14, %s9291_s21  ;;  %8028 = vrot.lane.b32.xlu0 %v9906_v44, %s9291_s21  ;;  %v545_v1 = vsel %vm480_vm3, %v542_v50, %v544_v51  ;;  %v704_v4 = vsel %vm13377_vm2, %v702_v52, %v703_v53  ;;  %v706_v5 = vsel %vm13377_vm2, %v703_v53, %v705_v55  ;;  %v9189_v51 = vld [vmem:[#allocation2 + $0x38] sm:$0xff]  ;;  %v9190_v53 = vld [vmem:[#allocation2 + $0x30] sm:$0xff] }
  0xd5   :  { %v2845_v19 = vsel %vm2844_vm11, %v2780_v12, %v7740_v7  ;;  %v2846_v16 = vsel %vm2844_vm11, %v2781_v13, %v7741_v31  ;;  %v185_v31 = vld [vmem:[%s13363_s0 + $0x130] sm:$0xff]  ;;  %v186_v7 = vld [vmem:[%s13363_s0 + $0x138] sm:$0xff]  ;;  %v10106_v10 = vpack.i.bf16 %v545_v1, %v543_v62  ;;  %v10108_v12 = vpack.i.bf16 %v316_v45, %v315_v43  ;;  %v188_v62 = vld [vmem:[%s13363_s0 + $0x148] sm:$0xff] }
  0xd6   :  { %v10032_v21 = vpop.permute.xlu1 %7753  ;;  %v7749_v32 = vpop.permute.xlu0 %7748  ;;  %v2909_v44 = vpack.c.bf16 %v2846_v16, %v2845_v19  ;;  %250 = vst.msk [vmem:[#allocation2 + $0x211] sm:$0xff] %vm13378_vm0, %v185_v31  ;;  %251 = vst.msk [vmem:[#allocation2 + $0x219] sm:$0xff] %vm13378_vm0, %v186_v7  ;;  %v10110_v13 = vld [vmem:[#allocation2 + $0x150] sm:$0xff]  ;;  %v10116_v18 = vpack.i.bf16 %v706_v5, %v704_v4 }
  0xd7   :  { %v7751_v36 = vunpack.i.h.bf16 %v7749_v32  ;;  %v7750_v37 = vunpack.i.l.bf16 %v7749_v32  ;;  %v10128_v32 = vpack.i.bf16 %v10112_v17, %v10110_v13  ;;  %v7756_v34 = vunpack.i.h.bf16 %v10032_v21  ;;  %253 = vst.msk [vmem:[#allocation2 + $0x231] sm:$0xff] %vm13378_vm0, %v188_v62 }
  0xd8   :  { %8043 = vrot.lane.b32.xlu1 %v9959_v15, %s9292_s22  ;;  %8038 = vrot.lane.b32.xlu0 %v9924_v56, %s9292_s22  ;;  %v699_v56 = vsel %vm13377_vm2, %v697_v20, %v698_v29  ;;  %v546_v20 = vrot.slane %v315_v43, 1  ;;  %v708_v29 = vrot.slane %v316_v45, 2  ;;  %v7755_v35 = vunpack.i.l.bf16 %v10032_v21 }
  0xd9   :  { %7517 = vmatprep.mubr.msk.bf16.mxu0 %vm2966_vm12, %v2909_v44  ;;  %v2847_v28 = vsel %vm2844_vm11, %v2782_v38, %v7750_v37  ;;  %v2848_v40 = vsel %vm2844_vm11, %v2783_v39, %v7751_v36  ;;  %v10080_v61 = vpack.i.bf16 %v701_v47, %v699_v56  ;;  %v10130_v44 = vld [vmem:[#allocation2 + $0x160] sm:$0x3]  ;;  %v551_v36 = vrot.slane %v10110_v13, 1  ;;  %v9188_v47 = vld [vmem:[#allocation2 + $0x48] sm:$0xff] }
  0xda   :  { %v10053_v41 = vpop.permute.xlu1 %7763  ;;  %v10055_v22 = vpop.permute.xlu0 %7758  ;;  %v2910_v42 = vpack.c.bf16 %v2848_v40, %v2847_v28  ;;  %v548_v6 = vsel %vm480_vm3, %v546_v20, %v547_v59  ;;  %v709_v63 = vsel %vm13377_vm2, %v707_v57, %v708_v29  ;;  %v711_v9 = vsel %vm13377_vm2, %v708_v29, %v710_v33  ;;  %v187_v33 = vld [vmem:[%s13363_s0 + $0x140] sm:$0xff] }
  0xdb   :  { %v10122_v23 = vpack.i.bf16 %v711_v9, %v709_v63  ;;  %v552_v37 = vrot.slane %v10112_v17, 1  ;;  %v7746_v38 = vunpack.i.h.bf16 %v10016_v0  ;;  %v7745_v39 = vunpack.i.l.bf16 %v10016_v0  ;;  %252 = vst.msk [vmem:[#allocation2 + $0x229] sm:$0xff] %vm13378_vm0, %v187_v33 }
  0xdc   :  { %8053 = vrot.lane.b32.xlu1 %v10040_v24, %s9293_s23  ;;  %8048 = vrot.lane.b32.xlu0 %v9947_v11, %s9293_s23  ;;  %v7766_v25 = vunpack.i.h.bf16 %v10053_v41  ;;  %v7765_v28 = vunpack.i.l.bf16 %v10053_v41  ;;  %v7761_v21 = vunpack.i.h.bf16 %v10055_v22  ;;  %v7760_v40 = vunpack.i.l.bf16 %v10055_v22 }
  0xdd   :  { %7518 = vmatmul.mubr.msk.bf16.vlgmr.msra.gmra.mrb[0].mxu0 %vm2966_vm12, %v2910_v42  ;;  %v554_v27 = vrot.slane %v10130_v44, 1  ;;  %v712_v42 = vrot.slane %v10110_v13, 2  ;;  %v713_v41 = vrot.slane %v10112_v17, 2  ;;  %v715_v46 = vrot.slane %v10130_v44, 2 }
  0xde   :  { %v10072_v54 = vpop.permute.xlu1 %7773  ;;  %v10074_v60 = vpop.permute.xlu0 %7768  ;;  %v2396_v22 = vsel %vm13378_vm0, %v9188_v47, %v7755_v35  ;;  %v2395_v52 = vsel %vm13378_vm0, %v9189_v51, %v7746_v38 }
  0xdf   :  { %v7776_v43 = vunpack.i.h.bf16 %v10072_v54  ;;  %v7775_v0 = vunpack.i.l.bf16 %v10072_v54  ;;  %v7771_v49 = vunpack.i.h.bf16 %v10074_v60  ;;  %v7770_v50 = vunpack.i.l.bf16 %v10074_v60 }
  0xe0   :  { %8063 = vrot.lane.b32.xlu1 %v9947_v11, %s9289_s11  ;;  %8058 = vrot.lane.b32.xlu0 %v9955_v14, %s9294_s24  ;;  %v550_v11 = vsel %vm480_vm3, %v547_v59, %v549_v58  ;;  %v2394_v54 = vsel %vm13378_vm0, %v9190_v53, %v7745_v39  ;;  %v2461_v55 = vsel %vm2454_vm5, %v2396_v22, %v7765_v28 }
  0xe1   :  { %v10118_v19 = vpack.i.bf16 %v550_v11, %v548_v6  ;;  %v2460_v59 = vsel %vm2454_vm5, %v2395_v52, %v7761_v21  ;;  %v2459_v58 = vsel %vm2454_vm5, %v2394_v54, %v7760_v40  ;;  %v2526_v1 = vsel %vm13387_vm6, %v2461_v55, %v7775_v0  ;;  %v322_v55 = vld [vmem:[#allocation2 + $0x170] sm:$0xff] }
  0xe2   :  { %v10086_v3 = vpop.permute.xlu1 %7783  ;;  %v10098_v8 = vpop.permute.xlu0 %7778  ;;  %v2524_v11 = vsel %vm13387_vm6, %v2459_v58, %v7770_v50  ;;  %v2525_v31 = vsel %vm13387_vm6, %v2460_v59, %v7771_v49 }
  0xe3   :  { %v7781_v60 = vunpack.i.h.bf16 %v10098_v8  ;;  %v7780_v57 = vunpack.i.l.bf16 %v10098_v8  ;;  %v7786_v63 = vunpack.i.h.bf16 %v10086_v3  ;;  %v7785_v9 = vunpack.i.l.bf16 %v10086_v3 }
  0xe4   :  { %8073 = vrot.lane.b32.xlu1 %v10040_v24, %s9289_s11  ;;  %8068 = vrot.lane.b32.xlu0 %v10080_v61, %s9294_s24 }
  0xe5   :  { %v2589_v35 = vsel %vm13383_vm7, %v2524_v11, %v7780_v57  ;;  %v2590_v38 = vsel %vm13383_vm7, %v2525_v31, %v7781_v60  ;;  %v324_v11 = vld [vmem:[#allocation2 + $0x180] sm:$0xff]  ;;  %v325_v31 = vld [vmem:[#allocation2 + $0x188] sm:$0xff] }
  0xe6   :  { %v10120_v16 = vpop.permute.xlu1 %7793  ;;  %v10124_v30 = vpop.permute.xlu0 %7788 }
  0xe7   :  { %v7791_v4 = vunpack.i.h.bf16 %v10124_v30  ;;  %v7790_v5 = vunpack.i.l.bf16 %v10124_v30  ;;  %v7796_v39 = vunpack.i.h.bf16 %v10120_v16 }
  0xe8   :  { %8083 = vrot.lane.b32.xlu1 %v10080_v61, %s9288_s30  ;;  %8078 = vrot.lane.b32.xlu0 %v9955_v14, %s9288_s30  ;;  %v9187_v14 = vld [vmem:[#allocation2 + $0x50] sm:$0xff] }
  0xe9   :  { %v2397_v56 = vsel %vm13378_vm0, %v9187_v14, %v7756_v34  ;;  %v2654_v21 = vsel %vm13382_vm8, %v2589_v35, %v7790_v5  ;;  %v2655_v40 = vsel %vm13382_vm8, %v2590_v38, %v7791_v4  ;;  %v557_v5 = vrot.slane %v322_v55, 1 }
  0xea   :  { %v10146_v26 = vpop.permute.xlu1 %7803  ;;  %v7799_v45 = vpop.permute.xlu0 %7798  ;;  %v2462_v20 = vsel %vm2454_vm5, %v2397_v56, %v7766_v25  ;;  %v7795_v25 = vunpack.i.l.bf16 %v10120_v16  ;;  %v10204_v16 = vld [vmem:[#allocation2 + $0x168] sm:$0xff]  ;;  %v714_v38 = vsel %vm13377_vm2, %v712_v42, %v713_v41  ;;  %v818_v42 = vrot.slane %v324_v11, 2 }
  0xeb   :  { %v7801_v7 = vunpack.i.h.bf16 %v7799_v45  ;;  %v7800_v8 = vunpack.i.l.bf16 %v7799_v45  ;;  %v7806_v3 = vunpack.i.h.bf16 %v10146_v26 }
  0xec   :  { %8093 = vrot.lane.b32.xlu1 %v10082_v48, %s9287_s29  ;;  %8088 = vrot.lane.b32.xlu0 %v9959_v15, %s9287_s29  ;;  %v2527_v15 = vsel %vm13387_vm6, %v2462_v20, %v7776_v43  ;;  %v7805_v43 = vunpack.i.l.bf16 %v10146_v26  ;;  %v2591_v26 = vsel %vm13383_vm7, %v2526_v1, %v7785_v9  ;;  %v323_v20 = vld [vmem:[#allocation2 + $0x178] sm:$0x3]  ;;  %v553_v9 = vsel %vm480_vm3, %v551_v36, %v552_v37 }
  0xed   :  { %v2720_v45 = vsel %vm2714_vm9, %v2655_v40, %v7801_v7  ;;  %v2592_v51 = vsel %vm13383_vm7, %v2527_v15, %v7786_v63  ;;  %v2656_v59 = vsel %vm13382_vm8, %v2591_v26, %v7795_v25  ;;  %v716_v36 = vsel %vm13377_vm2, %v713_v41, %v715_v46 }
  0xee   :  { %v7814_v29 = vpop.permute.xlu1 %7813  ;;  %v7809_v6 = vpop.permute.xlu0 %7808  ;;  %v2657_v58 = vsel %vm13382_vm8, %v2592_v51, %v7796_v39  ;;  %v717_v39 = vrot.slane %v10204_v16, 2  ;;  %v808_v25 = vrot.slane %v324_v11, 1  ;;  %v819_v40 = vrot.slane %v325_v31, 2 }
  0xef   :  { %v7811_v34 = vunpack.i.h.bf16 %v7809_v6  ;;  %v7810_v30 = vunpack.i.l.bf16 %v7809_v6  ;;  %v7816_v47 = vunpack.i.h.bf16 %v7814_v29  ;;  %v7815_v22 = vunpack.i.l.bf16 %v7814_v29 }
  0xf0   :  { %8103 = vrot.lane.b32.xlu1 %v10106_v10, %s9290_s20  ;;  %8098 = vrot.lane.b32.xlu0 %v10040_v24, %s9290_s20  ;;  %v2719_v24 = vsel %vm2714_vm9, %v2654_v21, %v7800_v8  ;;  %v2721_v29 = vsel %vm2714_vm9, %v2656_v59, %v7805_v43  ;;  %v2722_v33 = vsel %vm2714_vm9, %v2657_v58, %v7806_v3  ;;  %v559_v6 = vrot.slane %v323_v20, 1  ;;  %v10266_v43 = vld [vmem:[#allocation2 + $0x198] sm:$0xff] }
  0xf1   :  { %v2784_v49 = vsel %vm13379_vm10, %v2719_v24, %v7810_v30  ;;  %v2785_v50 = vsel %vm13379_vm10, %v2720_v45, %v7811_v34  ;;  %v2786_v15 = vsel %vm13379_vm10, %v2721_v29, %v7815_v22  ;;  %v2787_v4 = vsel %vm13379_vm10, %v2722_v33, %v7816_v47  ;;  %v326_v34 = vld [vmem:[#allocation2 + $0x190] sm:$0x3]  ;;  %v10270_v24 = vld [vmem:[#allocation2 + $0x1a8] sm:$0x3]  ;;  %v190_v59 = vld [vmem:[%s13363_s0 + $0x158] sm:$0xff] }
  0xf2   :  { %v10194_v28 = vpop.permute.xlu1 %7823  ;;  %v7819_v0 = vpop.permute.xlu0 %7818  ;;  %v809_v21 = vrot.slane %v325_v31, 1  ;;  %v560_v17 = vsel %vm480_vm3, %v557_v5, %v559_v6  ;;  %v811_v44 = vrot.slane %v326_v34, 1  ;;  %v821_v3 = vrot.slane %v326_v34, 2  ;;  %v10310_v29 = vld [vmem:[#allocation2 + $0x1c0] sm:$0x3]  ;;  %255 = vst.msk [vmem:[#allocation2 + $0x249] sm:$0xff] %vm13378_vm0, %v190_v59 }
  0xf3   :  { %v7821_v14 = vunpack.i.h.bf16 %v7819_v0  ;;  %v7820_v56 = vunpack.i.l.bf16 %v7819_v0  ;;  %v10268_v0 = vld [vmem:[#allocation2 + $0x1a0] sm:$0xff]  ;;  %v10316_v33 = vpack.i.bf16 %v325_v31, %v324_v11  ;;  %v564_v31 = vrot.slane %v10310_v29, 1 }
  0xf4   :  { %8113 = vrot.lane.b32.xlu1 %v10116_v18, %s9291_s21  ;;  %8108 = vrot.lane.b32.xlu0 %v10080_v61, %s9291_s21  ;;  %v556_v61 = vrot.slane %v10204_v16, 1  ;;  %v812_v26 = vsel %vm480_vm3, %v809_v21, %v811_v44  ;;  %v835_v51 = vrot.slane %v10268_v0, 1 }
  0xf5   :  { %v2849_v52 = vsel %vm2844_vm11, %v2784_v49, %v7820_v56  ;;  %v2850_v53 = vsel %vm2844_vm11, %v2785_v50, %v7821_v14  ;;  %v10274_v14 = vpack.i.bf16 %v716_v36, %v714_v38  ;;  %v10277_v56 = vpack.i.bf16 %v322_v55, %v10204_v16  ;;  %v10347_v36 = vld [vmem:[#allocation2 + $0x1c8] sm:$0xff] }
  0xf6   :  { %v10214_v54 = vpop.permute.xlu1 %7833  ;;  %v7829_v60 = vpop.permute.xlu0 %7828  ;;  %v2911_v57 = vpack.c.bf16 %v2850_v53, %v2849_v52  ;;  %v558_v13 = vsel %vm480_vm3, %v556_v61, %v557_v5  ;;  %v810_v50 = vsel %vm480_vm3, %v808_v25, %v809_v21  ;;  %v834_v16 = vrot.slane %v10266_v43, 1  ;;  %v10308_v61 = vld [vmem:[#allocation2 + $0x1b8] sm:$0xff] }
  0xf7   :  { %v7831_v62 = vunpack.i.h.bf16 %v7829_v60  ;;  %v7830_v1 = vunpack.i.l.bf16 %v7829_v60  ;;  %v10281_v47 = vpack.i.bf16 %v560_v17, %v558_v13  ;;  %v837_v52 = vrot.slane %v10270_v24, 1 }
  0xf8   :  { %8123 = vrot.lane.b32.xlu1 %v10108_v12, %s9292_s22  ;;  %8118 = vrot.lane.b32.xlu0 %v10082_v48, %s9292_s22  ;;  %v555_v48 = vsel %vm480_vm3, %v552_v37, %v554_v27  ;;  %v718_v37 = vrot.slane %v322_v55, 2  ;;  %v720_v27 = vrot.slane %v323_v20, 2  ;;  %v820_v53 = vsel %vm13377_vm2, %v818_v42, %v819_v40  ;;  %v189_v20 = vld [vmem:[%s13363_s0 + $0x150] sm:$0xff] }
  0xf9   :  { %7521 = vmatprep.mubr.msk.bf16.mxu0 %vm2966_vm12, %v2911_v57  ;;  %v2852_v7 = vsel %vm2844_vm11, %v2787_v4, %v7831_v62  ;;  %v2851_v8 = vsel %vm2844_vm11, %v2786_v15, %v7830_v1  ;;  %v10264_v46 = vpack.i.bf16 %v555_v48, %v553_v9  ;;  %v822_v55 = vsel %vm13377_vm2, %v819_v40, %v821_v3  ;;  %v10306_v57 = vld [vmem:[#allocation2 + $0x1b0] sm:$0xff] }
  0xfa   :  { %v10230_v63 = vpop.permute.xlu1 %7843  ;;  %v10242_v30 = vpop.permute.xlu0 %7838  ;;  %v2912_v35 = vpack.c.bf16 %v2852_v7, %v2851_v8  ;;  %v719_v22 = vsel %vm13377_vm2, %v717_v39, %v718_v37  ;;  %v721_v49 = vsel %vm13377_vm2, %v718_v37, %v720_v27  ;;  %254 = vst.msk [vmem:[#allocation2 + $0x241] sm:$0xff] %vm13378_vm0, %v189_v20  ;;  %v10318_v62 = vpack.i.bf16 %v812_v26, %v810_v50  ;;  %v10349_v39 = vld [vmem:[#allocation2 + $0x1d0] sm:$0xff] }
  0xfb   :  { %v10304_v60 = vpack.i.bf16 %v721_v49, %v719_v22  ;;  %v10322_v1 = vpack.i.bf16 %v822_v55, %v820_v53  ;;  %v10325_v15 = vsel %vm480_vm3, %v834_v16, %v835_v51  ;;  %v10328_v4 = vsel %vm480_vm3, %v835_v51, %v837_v52  ;;  %v9191_v22 = vld [vmem:[#allocation2 + $0x80] sm:$0xff]  ;;  %v9192_v49 = vld [vmem:[#allocation2 + $0x78] sm:$0xff]  ;;  %v9193_v16 = vld [vmem:[#allocation2 + $0x68] sm:$0xff] }
  0xfc   :  { %8133 = vrot.lane.b32.xlu1 %v10118_v19, %s9293_s23  ;;  %8128 = vrot.lane.b32.xlu0 %v10106_v10, %s9293_s23  ;;  %v561_v6 = vrot.slane %v10306_v57, 1  ;;  %v562_v11 = vrot.slane %v10308_v61, 1  ;;  %v845_v8 = vrot.slane %v10268_v0, 2  ;;  %v8282_v9 = vpack.i.bf16 %v10268_v0, %v10266_v43  ;;  %v9194_v52 = vld [vmem:[#allocation2 + $0x60] sm:$0xff] }
  0xfd   :  { %7522 = vmatmul.mubr.msk.bf16.gmra.mrb[4].mxu0 %vm2966_vm12, %v2912_v35  ;;  %v844_v48 = vrot.slane %v10266_v43, 2  ;;  %v7836_v34 = vunpack.i.h.bf16 %v10214_v54  ;;  %v7835_v35 = vunpack.i.l.bf16 %v10214_v54  ;;  %v7826_v37 = vunpack.i.h.bf16 %v10194_v28 }
  0xfe   :  { %v10262_v41 = vpop.permute.xlu1 %7853  ;;  %v10272_v45 = vpop.permute.xlu0 %7848  ;;  %v7825_v27 = vunpack.i.l.bf16 %v10194_v28  ;;  %v7846_v25 = vunpack.i.h.bf16 %v10230_v63  ;;  %v7845_v21 = vunpack.i.l.bf16 %v10230_v63  ;;  %v7841_v54 = vunpack.i.h.bf16 %v10242_v30 }
  0xff   :  { %v7840_v13 = vunpack.i.l.bf16 %v10242_v30  ;;  %v10362_v44 = vsel %vm480_vm3, %v561_v6, %v562_v11  ;;  %v10365_v42 = vsel %vm480_vm3, %v562_v11, %v564_v31  ;;  %v7856_v28 = vunpack.i.h.bf16 %v10262_v41 }
 0x100   :  { %8143 = vrot.lane.b32.xlu1 %v10106_v10, %s9289_s11  ;;  %8138 = vrot.lane.b32.xlu0 %v10116_v18, %s9294_s24  ;;  %v7855_v40 = vunpack.i.l.bf16 %v10262_v41  ;;  %v566_v3 = vrot.slane %v10347_v36, 1  ;;  %v2401_v30 = vsel %vm13378_vm0, %v9191_v22, %v7836_v34  ;;  %v2400_v50 = vsel %vm13378_vm0, %v9192_v49, %v7835_v35  ;;  %v191_v34 = vld [vmem:[%s13363_s0 + $0x160] sm:$0xff]  ;;  %v192_v35 = vld [vmem:[%s13363_s0 + $0x168] sm:$0xff] }
 0x101   :  { %v7851_v26 = vunpack.i.h.bf16 %v10272_v45  ;;  %v7850_v51 = vunpack.i.l.bf16 %v10272_v45  ;;  %v2399_v41 = vsel %vm13378_vm0, %v9193_v16, %v7826_v37  ;;  %v2398_v53 = vsel %vm13378_vm0, %v9194_v52, %v7825_v27  ;;  %256 = vst.msk [vmem:[#allocation2 + $0x259] sm:$0xff] %vm13378_vm0, %v191_v34  ;;  %257 = vst.msk [vmem:[#allocation2 + $0x261] sm:$0xff] %vm13378_vm0, %v192_v35 }
 0x102   :  { %v10292_v10 = vpop.permute.xlu1 %7863  ;;  %v10302_v58 = vpop.permute.xlu0 %7858  ;;  %v2465_v55 = vsel %vm2454_vm5, %v2400_v50, %v7845_v21  ;;  %v2466_v20 = vsel %vm2454_vm5, %v2401_v30, %v7846_v25  ;;  %v2464_v59 = vsel %vm2454_vm5, %v2399_v41, %v7841_v54  ;;  %v2463_v45 = vsel %vm2454_vm5, %v2398_v53, %v7840_v13 }
 0x103   :  { %v7861_v6 = vunpack.i.h.bf16 %v10302_v58  ;;  %v7860_v11 = vunpack.i.l.bf16 %v10302_v58  ;;  %v2530_v37 = vsel %vm13387_vm6, %v2465_v55, %v7855_v40  ;;  %v2528_v58 = vsel %vm13387_vm6, %v2463_v45, %v7850_v51 }
 0x104   :  { %8153 = vrot.lane.b32.xlu1 %v10118_v19, %s9289_s11  ;;  %8148 = vrot.lane.b32.xlu0 %v10122_v23, %s9294_s24  ;;  %v2529_v54 = vsel %vm13387_vm6, %v2464_v59, %v7851_v26  ;;  %v7865_v40 = vunpack.i.l.bf16 %v10292_v10 }
 0x105   :  { %v2593_v49 = vsel %vm13383_vm7, %v2528_v58, %v7860_v11  ;;  %v2594_v50 = vsel %vm13383_vm7, %v2529_v54, %v7861_v6 }
 0x106   :  { %v10330_v5 = vpop.permute.xlu1 %7873  ;;  %v10335_v7 = vpop.permute.xlu0 %7868 }
 0x107   :  { %v7871_v27 = vunpack.i.h.bf16 %v10335_v7  ;;  %v7870_v25 = vunpack.i.l.bf16 %v10335_v7  ;;  %v7876_v26 = vunpack.i.h.bf16 %v10330_v5 }
 0x108   :  { %8163 = vrot.lane.b32.xlu1 %v10122_v23, %s9288_s30  ;;  %8158 = vrot.lane.b32.xlu0 %v10116_v18, %s9288_s30  ;;  %v567_v18 = vrot.slane %v10349_v39, 1 }
 0x109   :  { %v2658_v16 = vsel %vm13382_vm8, %v2593_v49, %v7870_v25  ;;  %v2659_v41 = vsel %vm13382_vm8, %v2594_v50, %v7871_v27  ;;  %v727_v49 = vrot.slane %v10347_v36, 2  ;;  %v336_v50 = vld [vmem:[#allocation2 + $0x1e0] sm:$0xff] }
 0x10a   :  { %v10359_v17 = vpop.permute.xlu1 %7883  ;;  %v7879_v63 = vpop.permute.xlu0 %7878 }
 0x10b   :  { %v7881_v13 = vunpack.i.h.bf16 %v7879_v63  ;;  %v7880_v22 = vunpack.i.l.bf16 %v7879_v63  ;;  %v7875_v63 = vunpack.i.l.bf16 %v10330_v5  ;;  %v7885_v52 = vunpack.i.l.bf16 %v10359_v17  ;;  %v335_v5 = vld [vmem:[#allocation2 + $0x1d8] sm:$0x3] }
 0x10c   :  { %8173 = vrot.lane.b32.xlu1 %v10128_v32, %s9287_s29  ;;  %8168 = vrot.lane.b32.xlu0 %v10108_v12, %s9287_s29  ;;  %v2531_v12 = vsel %vm13387_vm6, %v2466_v20, %v7856_v28  ;;  %v7866_v28 = vunpack.i.h.bf16 %v10292_v10  ;;  %v7886_v10 = vunpack.i.h.bf16 %v10359_v17  ;;  %v2595_v17 = vsel %vm13383_vm7, %v2530_v37, %v7865_v40 }
 0x10d   :  { %v2724_v55 = vsel %vm2714_vm9, %v2659_v41, %v7881_v13  ;;  %v2660_v58 = vsel %vm13382_vm8, %v2595_v17, %v7875_v63  ;;  %v341_v17 = vld [vmem:[#allocation2 + $0x208] sm:$0x3] }
 0x10e   :  { %v7894_v31 = vpop.permute.xlu1 %7893  ;;  %v7889_v21 = vpop.permute.xlu0 %7888  ;;  %v2596_v35 = vsel %vm13383_vm7, %v2531_v12, %v7866_v28 }
 0x10f   :  { %v7891_v30 = vunpack.i.h.bf16 %v7889_v21  ;;  %v7890_v7 = vunpack.i.l.bf16 %v7889_v21  ;;  %v7896_v45 = vunpack.i.h.bf16 %v7894_v31  ;;  %v7895_v6 = vunpack.i.l.bf16 %v7894_v31 }
 0x110   :  { %8183 = vrot.lane.b32.xlu1 %v10264_v46, %s9290_s20  ;;  %8178 = vrot.lane.b32.xlu0 %v10118_v19, %s9290_s20  ;;  %v2723_v19 = vsel %vm2714_vm9, %v2658_v16, %v7880_v22  ;;  %v2661_v31 = vsel %vm13382_vm8, %v2596_v35, %v7876_v26  ;;  %v569_v22 = vrot.slane %v335_v5, 1  ;;  %v337_v26 = vld [vmem:[#allocation2 + $0x1e8] sm:$0xff] }
 0x111   :  { %v2788_v11 = vsel %vm13379_vm10, %v2723_v19, %v7890_v7  ;;  %v2789_v34 = vsel %vm13379_vm10, %v2724_v55, %v7891_v30  ;;  %v2725_v30 = vsel %vm2714_vm9, %v2660_v58, %v7885_v52  ;;  %v847_v7 = vrot.slane %v10270_v24, 2 }
 0x112   :  { %v10411_v51 = vpop.permute.xlu1 %7903  ;;  %v7899_v53 = vpop.permute.xlu0 %7898  ;;  %v2790_v12 = vsel %vm13379_vm10, %v2725_v30, %v7895_v6  ;;  %v730_v52 = vrot.slane %v335_v5, 2  ;;  %v722_v55 = vrot.slane %v10306_v57, 2  ;;  %v723_v24 = vrot.slane %v10308_v61, 2 }
 0x113   :  { %v7901_v20 = vunpack.i.h.bf16 %v7899_v53  ;;  %v7900_v59 = vunpack.i.l.bf16 %v7899_v53  ;;  %v338_v53 = vld [vmem:[#allocation2 + $0x1f0] sm:$0x3]  ;;  %v572_v6 = vrot.slane %v337_v26, 1  ;;  %v568_v57 = vsel %vm480_vm3, %v566_v3, %v567_v18 }
 0x114   :  { %8193 = vrot.lane.b32.xlu1 %v10274_v14, %s9291_s21  ;;  %8188 = vrot.lane.b32.xlu0 %v10122_v23, %s9291_s21  ;;  %v2726_v23 = vsel %vm2714_vm9, %v2661_v31, %v7886_v10  ;;  %v728_v10 = vrot.slane %v10349_v39, 2  ;;  %v570_v61 = vsel %vm480_vm3, %v567_v18, %v569_v22  ;;  %v574_v5 = vrot.slane %v338_v53, 1 }
 0x115   :  { %v2853_v27 = vsel %vm2844_vm11, %v2788_v11, %v7900_v59  ;;  %v2854_v25 = vsel %vm2844_vm11, %v2789_v34, %v7901_v20  ;;  %v2791_v28 = vsel %vm13379_vm10, %v2726_v23, %v7896_v45  ;;  %v725_v20 = vrot.slane %v10310_v29, 2  ;;  %v339_v11 = vld [vmem:[#allocation2 + $0x1f8] sm:$0xff]  ;;  %v340_v34 = vld [vmem:[#allocation2 + $0x200] sm:$0xff] }
 0x116   :  { %v10429_v21 = vpop.permute.xlu1 %7913  ;;  %v7909_v54 = vpop.permute.xlu0 %7908  ;;  %v2913_v13 = vpack.c.bf16 %v2854_v25, %v2853_v27  ;;  %v571_v45 = vrot.slane %v336_v50, 1  ;;  %v10474_v29 = vsel %vm13377_vm2, %v844_v48, %v845_v8  ;;  %v10481_v3 = vsel %vm13377_vm2, %v845_v8, %v847_v7 }
 0x117   :  { %v7911_v37 = vunpack.i.h.bf16 %v7909_v54  ;;  %v7910_v40 = vunpack.i.l.bf16 %v7909_v54  ;;  %v732_v27 = vrot.slane %v336_v50, 2  ;;  %v733_v18 = vrot.slane %v337_v26, 2 }
 0x118   :  { %8203 = vrot.lane.b32.xlu1 %v10277_v56, %s9292_s22  ;;  %8198 = vrot.lane.b32.xlu0 %v10128_v32, %s9292_s22  ;;  %v735_v25 = vrot.slane %v338_v53, 2  ;;  %v729_v31 = vsel %vm13377_vm2, %v727_v49, %v728_v10  ;;  %v731_v48 = vsel %vm13377_vm2, %v728_v10, %v730_v52  ;;  %v10488_v54 = vsel %vm13377_vm2, %v722_v55, %v723_v24  ;;  %v193_v10 = vld [vmem:[%s13363_s0 + $0x170] sm:$0xff]  ;;  %v194_v52 = vld [vmem:[%s13363_s0 + $0x178] sm:$0xff] }
 0x119   :  { %7525 = vmatprep.mubr.msk.bf16.mxu0 %vm2966_vm12, %v2913_v13  ;;  %v2856_v63 = vsel %vm2844_vm11, %v2791_v28, %v7911_v37  ;;  %v2855_v16 = vsel %vm2844_vm11, %v2790_v12, %v7910_v40  ;;  %v10491_v13 = vsel %vm13377_vm2, %v723_v24, %v725_v20  ;;  %v573_v8 = vsel %vm480_vm3, %v571_v45, %v572_v6  ;;  %v10523_v45 = vld [vmem:[#allocation2 + $0x210] sm:$0xff]  ;;  %v9197_v55 = vld [vmem:[#allocation2 + $0x98] sm:$0xff] }
 0x11a   :  { %v10446_v41 = vpop.permute.xlu1 %7923  ;;  %v10449_v19 = vpop.permute.xlu0 %7918  ;;  %v2914_v32 = vpack.c.bf16 %v2856_v63, %v2855_v16  ;;  %v576_v22 = vrot.slane %v339_v11, 1  ;;  %v577_v30 = vrot.slane %v340_v34, 1  ;;  %v579_v23 = vrot.slane %v341_v17, 1  ;;  %258 = vst.msk [vmem:[#allocation2 + $0x271] sm:$0xff] %vm13378_vm0, %v193_v10  ;;  %259 = vst.msk [vmem:[#allocation2 + $0x279] sm:$0xff] %vm13378_vm0, %v194_v52 }
 0x11b   :  { %v575_v37 = vsel %vm480_vm3, %v572_v6, %v574_v5  ;;  %v737_v40 = vrot.slane %v339_v11, 2  ;;  %v738_v12 = vrot.slane %v340_v34, 2  ;;  %v740_v28 = vrot.slane %v341_v17, 2  ;;  %v10525_v6 = vld [vmem:[#allocation2 + $0x218] sm:$0xff] }
 0x11c   :  { %8213 = vrot.lane.b32.xlu1 %v10281_v47, %s9293_s23  ;;  %8208 = vrot.lane.b32.xlu0 %v10264_v46, %s9293_s23  ;;  %v10501_v49 = vpack.i.bf16 %v570_v61, %v568_v57  ;;  %v734_v63 = vsel %vm13377_vm2, %v732_v27, %v733_v18  ;;  %v736_v16 = vsel %vm13377_vm2, %v733_v18, %v735_v25  ;;  %v581_v25 = vrot.slane %v10523_v45, 1 }
 0x11d   :  { %7526 = vmatmul.mubr.msk.bf16.gmra.mrb[8].mxu0 %vm2966_vm12, %v2914_v32  ;;  %v10515_v32 = vpack.i.bf16 %v731_v48, %v729_v31  ;;  %v10519_v24 = vpack.i.bf16 %v337_v26, %v336_v50  ;;  %v10531_v57 = vpack.i.bf16 %v575_v37, %v573_v8  ;;  %v578_v61 = vsel %vm480_vm3, %v576_v22, %v577_v30  ;;  %v10551_v22 = vld [vmem:[#allocation2 + $0x220] sm:$0x3] }
 0x11e   :  { %v10476_v35 = vpop.permute.xlu1 %7933  ;;  %v10483_v58 = vpop.permute.xlu0 %7928  ;;  %v580_v50 = vsel %vm480_vm3, %v577_v30, %v579_v23  ;;  %v10537_v26 = vpack.i.bf16 %v736_v16, %v734_v63  ;;  %v739_v5 = vsel %vm13377_vm2, %v737_v40, %v738_v12  ;;  %v741_v17 = vsel %vm13377_vm2, %v738_v12, %v740_v28 }
 0x11f   :  { %v10543_v18 = vpack.i.bf16 %v340_v34, %v339_v11  ;;  %v582_v31 = vrot.slane %v10525_v6, 1  ;;  %v10549_v8 = vpack.i.bf16 %v580_v50, %v578_v61  ;;  %v7916_v30 = vunpack.i.h.bf16 %v10429_v21  ;;  %v9195_v50 = vld [vmem:[#allocation2 + $0xb0] sm:$0xff] }
 0x120   :  { %8223 = vrot.lane.b32.xlu1 %v10264_v46, %s9289_s11  ;;  %8218 = vrot.lane.b32.xlu0 %v10274_v14, %s9294_s24  ;;  %v7915_v23 = vunpack.i.l.bf16 %v10429_v21  ;;  %v10557_v37 = vpack.i.bf16 %v741_v17, %v739_v5  ;;  %v7906_v11 = vunpack.i.h.bf16 %v10411_v51  ;;  %v7905_v34 = vunpack.i.l.bf16 %v10411_v51  ;;  %v9196_v5 = vld [vmem:[#allocation2 + $0xa8] sm:$0xff]  ;;  %v9198_v46 = vld [vmem:[#allocation2 + $0x90] sm:$0xff] }
 0x121   :  { %v7926_v40 = vunpack.i.h.bf16 %v10446_v41  ;;  %v7925_v12 = vunpack.i.l.bf16 %v10446_v41  ;;  %v7921_v28 = vunpack.i.h.bf16 %v10449_v19  ;;  %v7920_v21 = vunpack.i.l.bf16 %v10449_v19 }
 0x122   :  { %v10499_v7 = vpop.permute.xlu1 %7943  ;;  %v10513_v53 = vpop.permute.xlu0 %7938  ;;  %v10572_v16 = vsel %vm480_vm3, %v581_v25, %v582_v31  ;;  %v584_v51 = vrot.slane %v10551_v22, 1  ;;  %v7936_v10 = vunpack.i.h.bf16 %v10476_v35  ;;  %v7935_v41 = vunpack.i.l.bf16 %v10476_v35 }
 0x123   :  { %v743_v61 = vrot.slane %v10525_v6, 2  ;;  %v2405_v19 = vsel %vm13378_vm0, %v9195_v50, %v7916_v30  ;;  %v2404_v17 = vsel %vm13378_vm0, %v9196_v5, %v7915_v23  ;;  %v7931_v25 = vunpack.i.h.bf16 %v10483_v58 }
 0x124   :  { %8233 = vrot.lane.b32.xlu1 %v10281_v47, %s9289_s11  ;;  %8228 = vrot.lane.b32.xlu0 %v10304_v60, %s9294_s24  ;;  %v7930_v20 = vunpack.i.l.bf16 %v10483_v58  ;;  %v2403_v35 = vsel %vm13378_vm0, %v9197_v55, %v7906_v11  ;;  %v2402_v2 = vsel %vm13378_vm0, %v9198_v46, %v7905_v34  ;;  %v2469_v59 = vsel %vm2454_vm5, %v2404_v17, %v7925_v12 }
 0x125   :  { %v2470_v30 = vsel %vm2454_vm5, %v2405_v19, %v7926_v40  ;;  %v2468_v23 = vsel %vm2454_vm5, %v2403_v35, %v7921_v28  ;;  %v2467_v58 = vsel %vm2454_vm5, %v2402_v2, %v7920_v21  ;;  %v7941_v50 = vunpack.i.h.bf16 %v10513_v53  ;;  %v196_v2 = vld [vmem:[%s13363_s0 + $0x188] sm:$0xff] }
 0x126   :  { %v10541_v27 = vpop.permute.xlu1 %7953  ;;  %v10547_v48 = vpop.permute.xlu0 %7948  ;;  %v7940_v5 = vunpack.i.l.bf16 %v10513_v53  ;;  %v2534_v55 = vsel %vm13387_vm6, %v2469_v59, %v7935_v41  ;;  %v2535_v46 = vsel %vm13387_vm6, %v2470_v30, %v7936_v10  ;;  %v2532_v53 = vsel %vm13387_vm6, %v2467_v58, %v7930_v20  ;;  %261 = vst.msk [vmem:[#allocation2 + $0x291] sm:$0xff] %vm13378_vm0, %v196_v2 }
 0x127   :  { %v7951_v11 = vunpack.i.h.bf16 %v10547_v48  ;;  %v7950_v34 = vunpack.i.l.bf16 %v10547_v48  ;;  %v2533_v12 = vsel %vm13387_vm6, %v2468_v23, %v7931_v25  ;;  %v7946_v48 = vunpack.i.h.bf16 %v10499_v7 }
 0x128   :  { %8243 = vrot.lane.b32.xlu1 %v10304_v60, %s9288_s30  ;;  %8238 = vrot.lane.b32.xlu0 %v10274_v14, %s9288_s30  ;;  %v742_v14 = vrot.slane %v10523_v45, 2  ;;  %v7945_v21 = vunpack.i.l.bf16 %v10499_v7  ;;  %v2597_v20 = vsel %vm13383_vm7, %v2532_v53, %v7940_v5  ;;  %v7956_v19 = vunpack.i.h.bf16 %v10541_v27 }
 0x129   :  { %v7955_v17 = vunpack.i.l.bf16 %v10541_v27  ;;  %v2662_v35 = vsel %vm13382_vm8, %v2597_v20, %v7950_v34  ;;  %v2600_v2 = vsel %vm13383_vm7, %v2535_v46, %v7946_v48 }
 0x12a   :  { %v10567_v63 = vpop.permute.xlu1 %7963  ;;  %v7959_v52 = vpop.permute.xlu0 %7958 }
 0x12b   :  { %v7961_v59 = vunpack.i.h.bf16 %v7959_v52  ;;  %v7960_v28 = vunpack.i.l.bf16 %v7959_v52  ;;  %v2598_v52 = vsel %vm13383_vm7, %v2533_v12, %v7941_v50  ;;  %v7966_v7 = vunpack.i.h.bf16 %v10567_v63 }
 0x12c   :  { %8253 = vrot.lane.b32.xlu1 %v10316_v33, %s9287_s29  ;;  %8248 = vrot.lane.b32.xlu0 %v10277_v56, %s9287_s29  ;;  %v195_v56 = vld [vmem:[%s13363_s0 + $0x180] sm:$0xff]  ;;  %v2663_v30 = vsel %vm13382_vm8, %v2598_v52, %v7951_v11  ;;  %v7965_v23 = vunpack.i.l.bf16 %v10567_v63  ;;  %v2599_v63 = vsel %vm13383_vm7, %v2534_v55, %v7945_v21  ;;  %v345_v52 = vld [vmem:[#allocation2 + $0x228] sm:$0xff] }
 0x12d   :  { %260 = vst.msk [vmem:[#allocation2 + $0x289] sm:$0xff] %vm13378_vm0, %v195_v56  ;;  %v2728_v5 = vsel %vm2714_vm9, %v2663_v30, %v7961_v59  ;;  %v585_v30 = vsel %vm480_vm3, %v582_v31, %v584_v51  ;;  %v13390_v51 = vpack.i.bf16 %v10328_v4, %v10325_v15 }
 0x12e   :  { %v7974_v38 = vpop.permute.xlu1 %7973  ;;  %v7969_v40 = vpop.permute.xlu0 %7968  ;;  %v10690_v15 = vpack.i.bf16 %v585_v30, %v10572_v16 }
 0x12f   :  { %v7971_v10 = vunpack.i.h.bf16 %v7969_v40  ;;  %v7970_v41 = vunpack.i.l.bf16 %v7969_v40  ;;  %v7976_v27 = vunpack.i.h.bf16 %v7974_v38  ;;  %v7975_v56 = vunpack.i.l.bf16 %v7974_v38 }
 0x130   :  { %8263 = vrot.lane.b32.xlu1 %v10318_v62, %s9290_s20  ;;  %8258 = vrot.lane.b32.xlu0 %v10281_v47, %s9290_s20  ;;  %v2727_v47 = vsel %vm2714_vm9, %v2662_v35, %v7960_v28  ;;  %v2664_v28 = vsel %vm13382_vm8, %v2599_v63, %v7955_v17  ;;  %v2665_v38 = vsel %vm13382_vm8, %v2600_v2, %v7956_v19  ;;  %v347_v17 = vld [vmem:[#allocation2 + $0x238] sm:$0x3] }
 0x131   :  { %v2792_v34 = vsel %vm13379_vm10, %v2727_v47, %v7970_v41  ;;  %v2793_v11 = vsel %vm13379_vm10, %v2728_v5, %v7971_v10  ;;  %v745_v10 = vrot.slane %v10551_v22, 2  ;;  %v2729_v55 = vsel %vm2714_vm9, %v2664_v28, %v7965_v23 }
 0x132   :  { %v10619_v25 = vpop.permute.xlu1 %7983  ;;  %v7979_v58 = vpop.permute.xlu0 %7978  ;;  %v2730_v46 = vsel %vm2714_vm9, %v2665_v38, %v7966_v7  ;;  %v2794_v19 = vsel %vm13379_vm10, %v2729_v55, %v7975_v56  ;;  %v589_v22 = vrot.slane %v347_v17, 1  ;;  %v10678_v5 = vpack.i.bf16 %v10525_v6, %v10523_v45 }
 0x133   :  { %v7981_v50 = vunpack.i.h.bf16 %v7979_v58  ;;  %v7980_v40 = vunpack.i.l.bf16 %v7979_v58  ;;  %v2795_v35 = vsel %vm13379_vm10, %v2730_v46, %v7976_v27  ;;  %v746_v31 = vsel %vm13377_vm2, %v743_v61, %v745_v10  ;;  %v350_v27 = vld [vmem:[#allocation2 + $0x250] sm:$0x3]  ;;  %v10722_v46 = vld [vmem:[#allocation2 + $0x260] sm:$0xff] }
 0x134   :  { %8273 = vrot.lane.b32.xlu1 %v10322_v1, %s9291_s21  ;;  %8268 = vrot.lane.b32.xlu0 %v10304_v60, %s9291_s21  ;;  %v346_v60 = vld [vmem:[#allocation2 + $0x230] sm:$0xff]  ;;  %v750_v56 = vrot.slane %v347_v17, 2  ;;  %v594_v2 = vrot.slane %v350_v27, 1  ;;  %v755_v38 = vrot.slane %v350_v27, 2  ;;  %v7985_v27 = vunpack.i.l.bf16 %v10619_v25 }
 0x135   :  { %v2857_v53 = vsel %vm2844_vm11, %v2792_v34, %v7980_v40  ;;  %v2858_v12 = vsel %vm2844_vm11, %v2793_v11, %v7981_v50  ;;  %v587_v23 = vrot.slane %v346_v60, 1  ;;  %v10680_v50 = vld [vmem:[#allocation2 + $0x240] sm:$0xff]  ;;  %v10682_v40 = vld [vmem:[#allocation2 + $0x248] sm:$0xff]  ;;  %v10704_v16 = vpack.i.bf16 %v346_v60, %v345_v52 }
 0x136   :  { %v10637_v59 = vpop.permute.xlu1 %7993  ;;  %v7989_v41 = vpop.permute.xlu0 %7988  ;;  %v2915_v20 = vpack.c.bf16 %v2858_v12, %v2857_v53  ;;  %v592_v63 = vrot.slane %v10682_v40, 1  ;;  %v13391_v53 = vpack.i.bf16 %v10365_v42, %v10362_v44  ;;  %v752_v12 = vrot.slane %v10680_v50, 2 }
 0x137   :  { %v7991_v48 = vunpack.i.h.bf16 %v7989_v41  ;;  %v7990_v21 = vunpack.i.l.bf16 %v7989_v41  ;;  %v590_v11 = vsel %vm480_vm3, %v587_v23, %v589_v22  ;;  %v753_v28 = vrot.slane %v10682_v40, 2 }
 0x138   :  { %8283 = vrot.lane.b32.xlu1 %v8282_v9, %s9292_s22  ;;  %8278 = vrot.lane.b32.xlu0 %v10316_v33, %s9292_s22  ;;  %v586_v9 = vrot.slane %v345_v52, 1  ;;  %v744_v33 = vsel %vm13377_vm2, %v742_v14, %v743_v61  ;;  %v747_v14 = vrot.slane %v345_v52, 2  ;;  %v748_v61 = vrot.slane %v346_v60, 2  ;;  %v10720_v60 = vld [vmem:[#allocation2 + $0x258] sm:$0xff] }
 0x139   :  { %7529 = vmatprep.mubr.msk.bf16.mxu0 %vm2966_vm12, %v2915_v20  ;;  %v2860_v7 = vsel %vm2844_vm11, %v2795_v35, %v7991_v48  ;;  %v2859_v43 = vsel %vm2844_vm11, %v2794_v19, %v7990_v21  ;;  %v10692_v4 = vpack.i.bf16 %v746_v31, %v744_v33  ;;  %v595_v52 = vsel %vm480_vm3, %v592_v63, %v594_v2  ;;  %v10724_v48 = vld [vmem:[#allocation2 + $0x268] sm:$0x3] }
 0x13a   :  { %v10660_v0 = vpop.permute.xlu1 %8003  ;;  %v10662_v58 = vpop.permute.xlu0 %7998  ;;  %v2916_v47 = vpack.c.bf16 %v2860_v7, %v2859_v43  ;;  %v588_v45 = vsel %vm480_vm3, %v586_v9, %v587_v23  ;;  %v749_v41 = vsel %vm13377_vm2, %v747_v14, %v748_v61  ;;  %v751_v20 = vsel %vm13377_vm2, %v748_v61, %v750_v56 }
 0x13b   :  { %v10714_v55 = vpack.i.bf16 %v590_v11, %v588_v45  ;;  %v754_v21 = vsel %vm13377_vm2, %v752_v12, %v753_v28  ;;  %v756_v17 = vsel %vm13377_vm2, %v753_v28, %v755_v38  ;;  %v13392_v19 = vmov 0.0   ;;  %v9199_v12 = vld [vmem:[#allocation2 + $0xe0] sm:$0xff] }
 0x13c   :  { %8293 = vrot.lane.b32.xlu1 %v13390_v51, %s9293_s23  ;;  %8288 = vrot.lane.b32.xlu0 %v10318_v62, %s9293_s23  ;;  %v591_v62 = vrot.slane %v10680_v50, 1  ;;  %4672 = vst.msk [vmem:[#allocation3 + $0x10] sm:$0xff] %vm13384_vm13, %v13392_v19  ;;  %4669 = vst.msk [vmem:[#allocation3] sm:$0xff] %vm13384_vm13, %v13392_v19  ;;  %v13393_v35 = vpack.i.bf16 %v10481_v3, %v10474_v29  ;;  %v10818_v30 = vpack.i.bf16 %v10682_v40, %v10680_v50 }
 0x13d   :  { %7530 = vmatmul.mubr.msk.bf16.gmra.mrb[12].mxu0 %vm2966_vm12, %v2916_v47  ;;  %4673 = vst.msk [vmem:[#allocation3 + $0x18] sm:$0x3] %vm4670_vm14, %v13392_v19  ;;  %4671 = vst.msk [vmem:[#allocation3 + $0x8] sm:$0x3] %vm4670_vm14, %v13392_v19  ;;  %v596_v9 = vrot.slane %v10720_v60, 1  ;;  %v597_v23 = vrot.slane %v10722_v46, 1  ;;  %v10829_v31 = vpack.i.bf16 %v756_v17, %v754_v21  ;;  %v7996_v22 = vunpack.i.h.bf16 %v10637_v59 }
 0x13e   :  { %v10687_v34 = vpop.permute.xlu1 %8013  ;;  %v10695_v6 = vpop.permute.xlu0 %8008  ;;  %v593_v42 = vsel %vm480_vm3, %v591_v62, %v592_v63  ;;  %4674 = vst.msk [vmem:[#allocation3 + $0x20] sm:$0xff] %vm13384_vm13, %v13392_v19  ;;  %4676 = vst.msk [vmem:[#allocation3 + $0x30] sm:$0xff] %vm13384_vm13, %v13392_v19  ;;  %v599_v47 = vrot.slane %v10724_v48, 1  ;;  %v757_v29 = vrot.slane %v10720_v60, 2  ;;  %v758_v3 = vrot.slane %v10722_v46, 2 }
 0x13f   :  { %4675 = vst.msk [vmem:[#allocation3 + $0x28] sm:$0x3] %vm4670_vm14, %v13392_v19  ;;  %4677 = vst.msk [vmem:[#allocation3 + $0x38] sm:$0x3] %vm4670_vm14, %v13392_v19  ;;  %v10822_v43 = vpack.i.bf16 %v595_v52, %v593_v42  ;;  %v7995_v51 = vunpack.i.l.bf16 %v10637_v59  ;;  %v10839_v50 = vpack.i.bf16 %v10722_v46, %v10720_v60  ;;  %v7986_v40 = vunpack.i.h.bf16 %v10619_v25  ;;  %v9201_v42 = vld [vmem:[#allocation2 + $0xc8] sm:$0xff]  ;;  %v9202_v60 = vld [vmem:[#allocation2 + $0xc0] sm:$0xff] }
 0x140   :  { %8303 = vrot.lane.b32.xlu1 %v13391_v53, %s9289_s11  ;;  %8298 = vrot.lane.b32.xlu0 %v10322_v1, %s9294_s24  ;;  %v10728_v1 = vpack.i.bf16 %v751_v20, %v749_v41  ;;  %4678 = vst.msk [vmem:[#allocation3 + $0x40] sm:$0xff] %vm13384_vm13, %v13392_v19  ;;  %4680 = vst.msk [vmem:[#allocation3 + $0x50] sm:$0xff] %vm13384_vm13, %v13392_v19  ;;  %v8006_v14 = vunpack.i.h.bf16 %v10660_v0  ;;  %v8005_v61 = vunpack.i.l.bf16 %v10660_v0  ;;  %v8001_v59 = vunpack.i.h.bf16 %v10662_v58  ;;  %v198_v53 = vld [vmem:[%s13363_s0 + $0x198] sm:$0xff] }
 0x141   :  { %4679 = vst.msk [vmem:[#allocation3 + $0x48] sm:$0x3] %vm4670_vm14, %v13392_v19  ;;  %4681 = vst.msk [vmem:[#allocation3 + $0x58] sm:$0x3] %vm4670_vm14, %v13392_v19  ;;  %v13394_v56 = vpack.i.bf16 %v10491_v13, %v10488_v54  ;;  %v8000_v45 = vunpack.i.l.bf16 %v10662_v58  ;;  %v10854_v62 = vsel %vm480_vm3, %v596_v9, %v597_v23  ;;  %v10857_v25 = vsel %vm480_vm3, %v597_v23, %v599_v47  ;;  %v197_v58 = vld [vmem:[%s13363_s0 + $0x190] sm:$0xff] }
 0x142   :  { %v10712_v10 = vpop.permute.xlu1 %8023  ;;  %v10716_v44 = vpop.permute.xlu0 %8018  ;;  %4682 = vst.msk [vmem:[#allocation3 + $0x60] sm:$0xff] %vm13384_vm13, %v13392_v19  ;;  %4684 = vst.msk [vmem:[#allocation3 + $0x70] sm:$0xff] %vm13384_vm13, %v13392_v19  ;;  %v8016_v63 = vunpack.i.h.bf16 %v10687_v34  ;;  %v8015_v0 = vunpack.i.l.bf16 %v10687_v34  ;;  %v10864_v54 = vsel %vm13377_vm2, %v757_v29, %v758_v3  ;;  %v760_v13 = vrot.slane %v10724_v48, 2  ;;  %v9200_v34 = vld [vmem:[#allocation2 + $0xd8] sm:$0xff] }
 0x143   :  { %4683 = vst.msk [vmem:[#allocation3 + $0x68] sm:$0x3] %vm4670_vm14, %v13392_v19  ;;  %4685 = vst.msk [vmem:[#allocation3 + $0x78] sm:$0x3] %vm4670_vm14, %v13392_v19  ;;  %v2409_v28 = vsel %vm13378_vm0, %v9199_v12, %v7996_v22  ;;  %v2408_v38 = vsel %vm13378_vm0, %v9200_v34, %v7995_v51  ;;  %v8011_v41 = vunpack.i.h.bf16 %v10695_v6  ;;  %v8010_v20 = vunpack.i.l.bf16 %v10695_v6 }
 0x144   :  { %8313 = vrot.lane.b32.xlu1 %v10501_v49, %s9289_s11  ;;  %4686 = vst.msk [vmem:[#allocation3 + $0x80] sm:$0xff] %vm13384_vm13, %v13392_v19  ;;  %4688 = vst.msk [vmem:[#allocation3 + $0x90] sm:$0xff] %vm13384_vm13, %v13392_v19  ;;  %8308 = vrot.lane.b32.xlu0 %v13393_v35, %s9294_s24  ;;  %v2407_v52 = vsel %vm13378_vm0, %v9201_v42, %v7986_v40  ;;  %v2406_v21 = vsel %vm13378_vm0, %v9202_v60, %v7985_v27  ;;  %v8021_v47 = vunpack.i.h.bf16 %v10716_v44  ;;  %v9295_v48 = vmov 1983009808  }
 0x145   :  { %4687 = vst.msk [vmem:[#allocation3 + $0x88] sm:$0x3] %vm4670_vm14, %v13392_v19  ;;  %4689 = vst.msk [vmem:[#allocation3 + $0x98] sm:$0x3] %vm4670_vm14, %v13392_v19  ;;  %v2473_v17 = vsel %vm2454_vm5, %v2408_v38, %v8005_v61  ;;  %v2474_v35 = vsel %vm2454_vm5, %v2409_v28, %v8006_v14  ;;  %v13395_v6 = vpack.i.bf16 %v10349_v39, %v10347_v36  ;;  %v8020_v29 = vunpack.i.l.bf16 %v10716_v44 }
 0x146   :  { %4690 = vst.msk [vmem:[#allocation3 + $0xa0] sm:$0xff] %vm13384_vm13, %v13392_v19  ;;  %4692 = vst.msk [vmem:[#allocation3 + $0xb0] sm:$0xff] %vm13384_vm13, %v13392_v19  ;;  %v10820_v7 = vpop.permute.xlu1 %8033  ;;  %v10827_v33 = vpop.permute.xlu0 %8028  ;;  %v2472_v9 = vsel %vm2454_vm5, %v2407_v52, %v8001_v59  ;;  %v2471_v23 = vsel %vm2454_vm5, %v2406_v21, %v8000_v45  ;;  %v2538_v51 = vsel %vm13387_vm6, %v2473_v17, %v8015_v0  ;;  %v8026_v44 = vunpack.i.h.bf16 %v10712_v10 }
 0x147   :  { %4691 = vst.msk [vmem:[#allocation3 + $0xa8] sm:$0x3] %vm4670_vm14, %v13392_v19  ;;  %4693 = vst.msk [vmem:[#allocation3 + $0xb8] sm:$0x3] %vm4670_vm14, %v13392_v19  ;;  %v2539_v40 = vsel %vm13387_vm6, %v2474_v35, %v8016_v63  ;;  %v8031_v27 = vunpack.i.h.bf16 %v10827_v33  ;;  %v8030_v14 = vunpack.i.l.bf16 %v10827_v33  ;;  %v2536_v36 = vsel %vm13387_vm6, %v2471_v23, %v8010_v20 }
 0x148   :  { %4694 = vst.msk [vmem:[#allocation3 + $0xc0] sm:$0xff] %vm13384_vm13, %v13392_v19  ;;  %4696 = vst.msk [vmem:[#allocation3 + $0xd0] sm:$0xff] %vm13384_vm13, %v13392_v19  ;;  %8323 = vrot.lane.b32.xlu1 %v10515_v32, %s9288_s30  ;;  %8318 = vrot.lane.b32.xlu0 %v13394_v56, %s9288_s30  ;;  %v2537_v39 = vsel %vm13387_vm6, %v2472_v9, %v8011_v41  ;;  %v8025_v45 = vunpack.i.l.bf16 %v10712_v10  ;;  %v2601_v33 = vsel %vm13383_vm7, %v2536_v36, %v8020_v29  ;;  %v355_v29 = vld [vmem:[#allocation2 + $0x278] sm:$0xff]  ;;  %v356_v36 = vld [vmem:[#allocation2 + $0x280] sm:$0x3]  ;;  %v3488_v46 = vlaneseq }
 0x149   :  { %4695 = vst.msk [vmem:[#allocation3 + $0xc8] sm:$0x3] %vm4670_vm14, %v13392_v19  ;;  %4697 = vst.msk [vmem:[#allocation3 + $0xd8] sm:$0x3] %vm4670_vm14, %v13392_v19  ;;  %v2666_v28 = vsel %vm13382_vm8, %v2601_v33, %v8030_v14  ;;  %v2604_v35 = vsel %vm13383_vm7, %v2539_v40, %v8026_v44  ;;  %v357_v33 = vld [vmem:[#allocation2 + $0x288] sm:$0xff] }
 0x14a   :  { %4698 = vst.msk [vmem:[#allocation3 + $0xe0] sm:$0xff] %vm13384_vm13, %v13392_v19  ;;  %4700 = vst.msk [vmem:[#allocation3 + $0xf0] sm:$0xff] %vm13384_vm13, %v13392_v19  ;;  %v10851_v11 = vpop.permute.xlu1 %8043  ;;  %v8039_v2 = vpop.permute.xlu0 %8038 }
 0x14b   :  { %4699 = vst.msk [vmem:[#allocation3 + $0xe8] sm:$0x3] %vm4670_vm14, %v13392_v19  ;;  %4701 = vst.msk [vmem:[#allocation3 + $0xf8] sm:$0x3] %vm4670_vm14, %v13392_v19  ;;  %v8041_v56 = vunpack.i.h.bf16 %v8039_v2  ;;  %v8040_v59 = vunpack.i.l.bf16 %v8039_v2  ;;  %v8035_v2 = vunpack.i.l.bf16 %v10820_v7  ;;  %v8046_v10 = vunpack.i.h.bf16 %v10851_v11 }
 0x14c   :  { %4702 = vst.msk [vmem:[#allocation3 + $0x100] sm:$0xff] %vm13384_vm13, %v13392_v19  ;;  %4704 = vst.msk [vmem:[#allocation3 + $0x110] sm:$0xff] %vm13384_vm13, %v13392_v19  ;;  %8333 = vrot.lane.b32.xlu1 %v10519_v24, %s9287_s29  ;;  %8328 = vrot.lane.b32.xlu0 %v13395_v6, %s9287_s29  ;;  %v8045_v38 = vunpack.i.l.bf16 %v10851_v11  ;;  %v2603_v11 = vsel %vm13383_vm7, %v2538_v51, %v8025_v45  ;;  %v200_v51 = vld [vmem:[%s13363_s0 + $0x1a8] sm:$0xff] }
 0x14d   :  { %4703 = vst.msk [vmem:[#allocation3 + $0x108] sm:$0x3] %vm4670_vm14, %v13392_v19  ;;  %4705 = vst.msk [vmem:[#allocation3 + $0x118] sm:$0x3] %vm4670_vm14, %v13392_v19 }
 0x14e   :  { %4706 = vst.msk [vmem:[#allocation3 + $0x120] sm:$0xff] %vm13384_vm13, %v13392_v19  ;;  %4708 = vst.msk [vmem:[#allocation3 + $0x130] sm:$0xff] %vm13384_vm13, %v13392_v19  ;;  %v8054_v22 = vpop.permute.xlu1 %8053  ;;  %v8049_v61 = vpop.permute.xlu0 %8048 }
 0x14f   :  { %4707 = vst.msk [vmem:[#allocation3 + $0x128] sm:$0x3] %vm4670_vm14, %v13392_v19  ;;  %4709 = vst.msk [vmem:[#allocation3 + $0x138] sm:$0x3] %vm4670_vm14, %v13392_v19  ;;  %v8051_v0 = vunpack.i.h.bf16 %v8049_v61  ;;  %v8050_v63 = vunpack.i.l.bf16 %v8049_v61  ;;  %v8055_v60 = vunpack.i.l.bf16 %v8054_v22  ;;  %vm5354_vm14 = vcmask 1043459  }
 0x150   :  { %262 = vst.msk [vmem:[#allocation2 + $0x2a1] sm:$0xff] %vm13378_vm0, %v197_v58  ;;  %263 = vst.msk [vmem:[#allocation2 + $0x2a9] sm:$0xff] %vm13378_vm0, %v198_v53  ;;  %8343 = vrot.lane.b32.xlu1 %v10531_v57, %s9290_s20  ;;  %8338 = vrot.lane.b32.xlu0 %v10501_v49, %s9290_s20  ;;  %v2602_v58 = vsel %vm13383_vm7, %v2537_v39, %v8021_v47  ;;  %v8036_v53 = vunpack.i.h.bf16 %v10820_v7  ;;  %v2731_v49 = vsel %vm2714_vm9, %v2666_v28, %v8040_v59  ;;  %v354_v47 = vld [vmem:[#allocation2 + $0x270] sm:$0xff] }
 0x151   :  { %v2667_v34 = vsel %vm13382_vm8, %v2602_v58, %v8031_v27  ;;  %v8056_v7 = vunpack.i.h.bf16 %v8054_v22  ;;  %v2796_v21 = vsel %vm13379_vm10, %v2731_v49, %v8050_v63  ;;  %v2668_v22 = vsel %vm13382_vm8, %v2603_v11, %v8035_v2  ;;  %265 = vst.msk [vmem:[#allocation2 + $0x2c1] sm:$0xff] %vm13378_vm0, %v200_v51  ;;  %v358_v58 = vld [vmem:[#allocation2 + $0x290] sm:$0xff] }
 0x152   :  { %v10909_v12 = vpop.permute.xlu1 %8063  ;;  %v8059_v41 = vpop.permute.xlu0 %8058  ;;  %v2732_v20 = vsel %vm2714_vm9, %v2667_v34, %v8041_v56  ;;  %v2669_v27 = vsel %vm13382_vm8, %v2604_v35, %v8036_v53  ;;  %v2733_v40 = vsel %vm2714_vm9, %v2668_v22, %v8045_v38  ;;  %v601_v63 = vrot.slane %v354_v47, 1 }
 0x153   :  { %v8061_v42 = vunpack.i.h.bf16 %v8059_v41  ;;  %v8060_v52 = vunpack.i.l.bf16 %v8059_v41  ;;  %v2797_v17 = vsel %vm13379_vm10, %v2732_v20, %v8051_v0  ;;  %v2734_v39 = vsel %vm2714_vm9, %v2669_v27, %v8046_v10 }
 0x154   :  { %8353 = vrot.lane.b32.xlu1 %v10537_v26, %s9291_s21  ;;  %8348 = vrot.lane.b32.xlu0 %v10515_v32, %s9291_s21  ;;  %v199_v32 = vld [vmem:[%s13363_s0 + $0x1a0] sm:$0xff]  ;;  %v2798_v44 = vsel %vm13379_vm10, %v2733_v40, %v8055_v60  ;;  %v2799_v45 = vsel %vm13379_vm10, %v2734_v39, %v8056_v7  ;;  %v761_v0 = vsel %vm13377_vm2, %v758_v3, %v760_v13  ;;  %v602_v34 = vrot.slane %v355_v29, 1 }
 0x155   :  { %v2861_v6 = vsel %vm2844_vm11, %v2796_v21, %v8060_v52  ;;  %v2862_v9 = vsel %vm2844_vm11, %v2797_v17, %v8061_v42  ;;  %264 = vst.msk [vmem:[#allocation2 + $0x2b9] sm:$0xff] %vm13378_vm0, %v199_v32  ;;  %v604_v10 = vrot.slane %v356_v36, 1  ;;  %v3486_v49 = vunpack.c.l.s4 %v9295_v48 }
 0x156   :  { %v10927_v23 = vpop.permute.xlu1 %8073  ;;  %v8069_v14 = vpop.permute.xlu0 %8068  ;;  %v2917_v61 = vpack.c.bf16 %v2862_v9, %v2861_v6  ;;  %v762_v20 = vrot.slane %v354_v47, 2  ;;  %v763_v3 = vrot.slane %v355_v29, 2  ;;  %v765_v13 = vrot.slane %v356_v36, 2 }
 0x157   :  { %v8071_v56 = vunpack.i.h.bf16 %v8069_v14  ;;  %v8070_v59 = vunpack.i.l.bf16 %v8069_v14  ;;  %v606_v42 = vrot.slane %v357_v33, 1  ;;  %v607_v52 = vrot.slane %v358_v58, 1 }
 0x158   :  { %8363 = vrot.lane.b32.xlu1 %v10543_v18, %s9292_s22  ;;  %8358 = vrot.lane.b32.xlu0 %v10519_v24, %s9292_s22  ;;  %v359_v24 = vld [vmem:[#allocation2 + $0x298] sm:$0x3]  ;;  %v10966_v7 = vpack.i.bf16 %v10857_v25, %v10854_v62  ;;  %v10971_v17 = vpack.i.bf16 %v761_v0, %v10864_v54  ;;  %v603_v35 = vsel %vm480_vm3, %v601_v63, %v602_v34  ;;  %v3487_v9 = vunpack.c.0.s8 %v3486_v49 }
 0x159   :  { %7533 = vmatprep.mubr.msk.bf16.mxu0 %vm2966_vm12, %v2917_v61  ;;  %v2864_v53 = vsel %vm2844_vm11, %v2799_v45, %v8071_v56  ;;  %v2863_v2 = vsel %vm2844_vm11, %v2798_v44, %v8070_v59  ;;  %v609_v60 = vrot.slane %v359_v24, 1  ;;  %v605_v6 = vsel %vm480_vm3, %v602_v34, %v604_v10  ;;  %v11002_v44 = vld [vmem:[#allocation2 + $0x2a0] sm:$0xff]  ;;  %v11004_v45 = vld [vmem:[#allocation2 + $0x2a8] sm:$0xff]  ;;  %v9203_v49 = vld [vmem:[#allocation2 + $0xf8] sm:$0xff] }
 0x15a   :  { %v10955_v28 = vpop.permute.xlu1 %8083  ;;  %v10957_v38 = vpop.permute.xlu0 %8078  ;;  %v2918_v41 = vpack.c.bf16 %v2864_v53, %v2863_v2  ;;  %v10977_v22 = vshrl.u32 %v3488_v46, 7  ;;  %v764_v62 = vsel %vm13377_vm2, %v762_v20, %v763_v3  ;;  %v766_v25 = vsel %vm13377_vm2, %v763_v3, %v765_v13 }
 0x15b   :  { %v608_v27 = vsel %vm480_vm3, %v606_v42, %v607_v52  ;;  %v610_v54 = vsel %vm480_vm3, %v607_v52, %v609_v60  ;;  %v767_v14 = vrot.slane %v357_v33, 2  ;;  %v768_v61 = vrot.slane %v358_v58, 2  ;;  %v9204_v42 = vld [vmem:[#allocation2 + $0xf0] sm:$0xff] }
 0x15c   :  { %8373 = vrot.lane.b32.xlu1 %v10549_v8, %s9293_s23  ;;  %8368 = vrot.lane.b32.xlu0 %v10531_v57, %s9293_s23  ;;  %v770_v36 = vrot.slane %v359_v24, 2  ;;  %v10989_v51 = vpack.i.bf16 %v355_v29, %v354_v47  ;;  %v10991_v40 = vpack.i.bf16 %v605_v6, %v603_v35  ;;  %v10996_v39 = vsub.s32 %v3487_v9, %v10977_v22  ;;  %v11011_v29 = vld [vmem:[#allocation2 + $0x2b0] sm:$0x3] }
 0x15d   :  { %7534 = vmatmul.mubr.msk.bf16.gmra.mrb[16].mxu0 %vm2966_vm12, %v2918_v41  ;;  %v10998_v56 = vpack.i.bf16 %v766_v25, %v764_v62  ;;  %v11000_v59 = vpack.i.bf16 %v358_v58, %v357_v33  ;;  %v8066_v0 = vunpack.i.h.bf16 %v10909_v12  ;;  %v11009_v47 = vpack.i.bf16 %v610_v54, %v608_v27  ;;  %v9206_v25 = vld [vmem:[#allocation2 + $0x108] sm:$0xff] }
 0x15e   :  { %v10968_v21 = vpop.permute.xlu1 %8093  ;;  %v10973_v11 = vpop.permute.xlu0 %8088  ;;  %v769_v63 = vsel %vm13377_vm2, %v767_v14, %v768_v61  ;;  %v771_v33 = vsel %vm13377_vm2, %v768_v61, %v770_v36  ;;  %v8065_v58 = vunpack.i.l.bf16 %v10909_v12  ;;  %v611_v2 = vrot.slane %v11002_v44, 1  ;;  %v202_v14 = vld [vmem:[%s13363_s0 + $0x1b8] sm:$0xff] }
 0x15f   :  { %v612_v34 = vrot.slane %v11004_v45, 1  ;;  %v8076_v10 = vunpack.i.h.bf16 %v10927_v23  ;;  %v8075_v24 = vunpack.i.l.bf16 %v10927_v23  ;;  %v614_v48 = vrot.slane %v11011_v29, 1  ;;  %267 = vst.msk [vmem:[#allocation2 + $0x2d9] sm:$0xff] %vm13378_vm0, %v202_v14 }
 0x160   :  { %8383 = vrot.lane.b32.xlu1 %v10531_v57, %s9289_s11  ;;  %8378 = vrot.lane.b32.xlu0 %v10537_v26, %s9294_s24  ;;  %v2411_v46 = vsel %vm13378_vm0, %v9203_v49, %v8066_v0  ;;  %v11030_v12 = vpack.i.bf16 %v771_v33, %v769_v63  ;;  %v8086_v20 = vunpack.i.h.bf16 %v10955_v28  ;;  %v8085_v3 = vunpack.i.l.bf16 %v10955_v28  ;;  %v9205_v28 = vld [vmem:[#allocation2 + $0x110] sm:$0xff]  ;;  %v11064_v33 = vld [vmem:[#allocation2 + $0x2b8] sm:$0xff] }
 0x161   :  { %v8081_v13 = vunpack.i.h.bf16 %v10957_v38  ;;  %v8080_v23 = vunpack.i.l.bf16 %v10957_v38  ;;  %v2410_v52 = vsel %vm13378_vm0, %v9204_v42, %v8065_v58  ;;  %v8096_v60 = vunpack.i.h.bf16 %v10968_v21  ;;  %v11066_v58 = vld [vmem:[#allocation2 + $0x2c0] sm:$0xff] }
 0x162   :  { %v10987_v32 = vpop.permute.xlu1 %8103  ;;  %v10993_v57 = vpop.permute.xlu0 %8098  ;;  %v8095_v35 = vunpack.i.l.bf16 %v10968_v21  ;;  %v11044_v9 = vsel %vm480_vm3, %v611_v2, %v612_v34  ;;  %v2413_v62 = vsel %vm13378_vm0, %v9205_v28, %v8076_v10  ;;  %v2412_v38 = vsel %vm13378_vm0, %v9206_v25, %v8075_v24  ;;  %v201_v21 = vld [vmem:[%s13363_s0 + $0x1b0] sm:$0xff] }
 0x163   :  { %v772_v54 = vrot.slane %v11002_v44, 2  ;;  %v8091_v61 = vunpack.i.h.bf16 %v10973_v11  ;;  %v8090_v36 = vunpack.i.l.bf16 %v10973_v11  ;;  %v773_v0 = vrot.slane %v11004_v45, 2  ;;  %266 = vst.msk [vmem:[#allocation2 + $0x2d1] sm:$0xff] %vm13378_vm0, %v201_v21 }
 0x164   :  { %8393 = vrot.lane.b32.xlu1 %v10549_v8, %s9289_s11  ;;  %8388 = vrot.lane.b32.xlu0 %v10557_v37, %s9294_s24  ;;  %v775_v63 = vrot.slane %v11011_v29, 2  ;;  %v2477_v2 = vsel %vm2454_vm5, %v2412_v38, %v8085_v3  ;;  %v2476_v11 = vsel %vm2454_vm5, %v2411_v46, %v8081_v13  ;;  %v2475_v10 = vsel %vm2454_vm5, %v2410_v52, %v8080_v23 }
 0x165   :  { %v2542_v24 = vsel %vm13387_vm6, %v2477_v2, %v8095_v35  ;;  %v8101_v49 = vunpack.i.h.bf16 %v10993_v57  ;;  %v8100_v42 = vunpack.i.l.bf16 %v10993_v57  ;;  %v616_v46 = vrot.slane %v11064_v33, 1 }
 0x166   :  { %v11018_v53 = vpop.permute.xlu1 %8113  ;;  %v11024_v41 = vpop.permute.xlu0 %8108  ;;  %v617_v13 = vrot.slane %v11066_v58, 1  ;;  %v2541_v23 = vsel %vm13387_vm6, %v2476_v11, %v8091_v61  ;;  %v8106_v57 = vunpack.i.h.bf16 %v10987_v32  ;;  %v8105_v35 = vunpack.i.l.bf16 %v10987_v32 }
 0x167   :  { %v8111_v3 = vunpack.i.h.bf16 %v11024_v41  ;;  %v2606_v21 = vsel %vm13383_vm7, %v2541_v23, %v8101_v49  ;;  %v8116_v14 = vunpack.i.h.bf16 %v11018_v53 }
 0x168   :  { %8403 = vrot.lane.b32.xlu1 %v10557_v37, %s9288_s30  ;;  %8398 = vrot.lane.b32.xlu0 %v10537_v26, %s9288_s30  ;;  %v11049_v26 = vsel %vm480_vm3, %v612_v34, %v614_v48  ;;  %v2478_v34 = vsel %vm2454_vm5, %v2413_v62, %v8086_v20  ;;  %v8110_v20 = vunpack.i.l.bf16 %v11024_v41  ;;  %v618_v29 = vsel %vm480_vm3, %v616_v46, %v617_v13 }
 0x169   :  { %v2543_v48 = vsel %vm13387_vm6, %v2478_v34, %v8096_v60  ;;  %v2671_v2 = vsel %vm13382_vm8, %v2606_v21, %v8111_v3 }
 0x16a   :  { %v11041_v6 = vpop.permute.xlu1 %8123  ;;  %v8119_v27 = vpop.permute.xlu0 %8118  ;;  %v2608_v23 = vsel %vm13383_vm7, %v2543_v48, %v8106_v57 }
 0x16b   :  { %v8121_v52 = vunpack.i.h.bf16 %v8119_v27  ;;  %v8120_v60 = vunpack.i.l.bf16 %v8119_v27  ;;  %v8115_v27 = vunpack.i.l.bf16 %v11018_v53  ;;  %v8126_v32 = vunpack.i.h.bf16 %v11041_v6  ;;  %v11106_v53 = vld [vmem:[#allocation2 + $0x2c8] sm:$0x3] }
 0x16c   :  { %8413 = vrot.lane.b32.xlu1 %v10678_v5, %s9287_s29  ;;  %8408 = vrot.lane.b32.xlu0 %v10543_v18, %s9287_s29  ;;  %v2540_v18 = vsel %vm13387_vm6, %v2475_v10, %v8090_v36  ;;  %v8125_v34 = vunpack.i.l.bf16 %v11041_v6  ;;  %v2607_v6 = vsel %vm13383_vm7, %v2542_v24, %v8105_v35  ;;  %v204_v24 = vld [vmem:[%s13363_s0 + $0x1c8] sm:$0xff] }
 0x16d   :  { %v2605_v38 = vsel %vm13383_vm7, %v2540_v18, %v8100_v42  ;;  %v2736_v10 = vsel %vm2714_vm9, %v2671_v2, %v8121_v52  ;;  %v2672_v21 = vsel %vm13382_vm8, %v2607_v6, %v8115_v27  ;;  %269 = vst.msk [vmem:[#allocation2 + $0x2f1] sm:$0xff] %vm13378_vm0, %v204_v24 }
 0x16e   :  { %v8134_v28 = vpop.permute.xlu1 %8133  ;;  %v8129_v62 = vpop.permute.xlu0 %8128  ;;  %v2670_v36 = vsel %vm13382_vm8, %v2605_v38, %v8110_v20  ;;  %v2737_v48 = vsel %vm2714_vm9, %v2672_v21, %v8125_v34 }
 0x16f   :  { %v8131_v25 = vunpack.i.h.bf16 %v8129_v62  ;;  %v8130_v41 = vunpack.i.l.bf16 %v8129_v62  ;;  %v8136_v62 = vunpack.i.h.bf16 %v8134_v28  ;;  %v8135_v20 = vunpack.i.l.bf16 %v8134_v28 }
 0x170   :  { %8423 = vrot.lane.b32.xlu1 %v10690_v15, %s9290_s20  ;;  %8418 = vrot.lane.b32.xlu0 %v10549_v8, %s9290_s20  ;;  %v2735_v8 = vsel %vm2714_vm9, %v2670_v36, %v8120_v60  ;;  %v2673_v28 = vsel %vm13382_vm8, %v2608_v23, %v8116_v14 }
 0x171   :  { %v2800_v3 = vsel %vm13379_vm10, %v2735_v8, %v8130_v41  ;;  %v2801_v18 = vsel %vm13379_vm10, %v2736_v10, %v8131_v25  ;;  %v619_v25 = vrot.slane %v11106_v53, 1  ;;  %v2738_v57 = vsel %vm2714_vm9, %v2673_v28, %v8126_v32 }
 0x172   :  { %v11096_v61 = vpop.permute.xlu1 %8143  ;;  %v8139_v11 = vpop.permute.xlu0 %8138  ;;  %v2802_v14 = vsel %vm13379_vm10, %v2737_v48, %v8135_v20  ;;  %v2803_v2 = vsel %vm13379_vm10, %v2738_v57, %v8136_v62  ;;  %v11139_v32 = vsub.s32 0, %v10977_v22  ;;  %v774_v10 = vsel %vm13377_vm2, %v772_v54, %v773_v0  ;;  %v366_v22 = vld [vmem:[#allocation2 + $0x2d0] sm:$0xff]  ;;  %v368_v54 = vld [vmem:[#allocation2 + $0x2e0] sm:$0x3] }
 0x173   :  { %v8141_v49 = vunpack.i.h.bf16 %v8139_v11  ;;  %v8140_v42 = vunpack.i.l.bf16 %v8139_v11  ;;  %v11159_v20 = vpack.i.bf16 %v11004_v45, %v11002_v44  ;;  %v777_v44 = vrot.slane %v11064_v33, 2 }
 0x174   :  { %8433 = vrot.lane.b32.xlu1 %v10692_v4, %s9291_s21  ;;  %8428 = vrot.lane.b32.xlu0 %v10557_v37, %s9291_s21  ;;  %v203_v37 = vld [vmem:[%s13363_s0 + $0x1c0] sm:$0xff]  ;;  %v778_v45 = vrot.slane %v11066_v58, 2  ;;  %v624_v6 = vrot.slane %v368_v54, 1  ;;  %v8145_v28 = vunpack.i.l.bf16 %v11096_v61  ;;  %v785_v24 = vrot.slane %v368_v54, 2  ;;  %v9210_v54 = vld [vmem:[#allocation2 + $0x138] sm:$0xff] }
 0x175   :  { %v2865_v52 = vsel %vm2844_vm11, %v2800_v3, %v8140_v42  ;;  %v2866_v60 = vsel %vm2844_vm11, %v2801_v18, %v8141_v49  ;;  %268 = vst.msk [vmem:[#allocation2 + $0x2e9] sm:$0xff] %vm13378_vm0, %v203_v37  ;;  %v367_v49 = vld [vmem:[#allocation2 + $0x2d8] sm:$0xff]  ;;  %v11163_v3 = vpack.i.bf16 %v11049_v26, %v11044_v9  ;;  %v780_v9 = vrot.slane %v11106_v53, 2 }
 0x176   :  { %v11116_v38 = vpop.permute.xlu1 %8153  ;;  %v8149_v41 = vpop.permute.xlu0 %8148  ;;  %v2919_v36 = vpack.c.bf16 %v2866_v60, %v2865_v52  ;;  %v622_v46 = vrot.slane %v367_v49, 1  ;;  %v8146_v53 = vunpack.i.h.bf16 %v11096_v61  ;;  %v779_v60 = vsel %vm13377_vm2, %v777_v44, %v778_v45  ;;  %v9207_v61 = vld [vmem:[#allocation2 + $0x128] sm:$0xff] }
 0x177   :  { %v8151_v35 = vunpack.i.h.bf16 %v8149_v41  ;;  %v8150_v27 = vunpack.i.l.bf16 %v8149_v41  ;;  %v781_v21 = vsel %vm13377_vm2, %v778_v45, %v780_v9  ;;  %v8156_v41 = vunpack.i.h.bf16 %v11116_v38 }
 0x178   :  { %8443 = vrot.lane.b32.xlu1 %v10704_v16, %s9292_s22  ;;  %8438 = vrot.lane.b32.xlu0 %v10678_v5, %s9292_s22  ;;  %v776_v5 = vsel %vm13377_vm2, %v773_v0, %v775_v63  ;;  %v620_v0 = vsel %vm480_vm3, %v617_v13, %v619_v25  ;;  %v621_v63 = vrot.slane %v366_v22, 1  ;;  %v11187_v13 = vpack.i.bf16 %v11066_v58, %v11064_v33 }
 0x179   :  { %7537 = vmatprep.mubr.msk.bf16.mxu0 %vm2966_vm12, %v2919_v36  ;;  %v2868_v34 = vsel %vm2844_vm11, %v2803_v2, %v8151_v35  ;;  %v2867_v11 = vsel %vm2844_vm11, %v2802_v14, %v8150_v27  ;;  %v11181_v26 = vpack.i.bf16 %v776_v5, %v774_v10  ;;  %v11191_v52 = vpack.i.bf16 %v620_v0, %v618_v29  ;;  %v9208_v10 = vld [vmem:[#allocation2 + $0x120] sm:$0xff] }
 0x17a   :  { %v11143_v8 = vpop.permute.xlu1 %8163  ;;  %v11155_v42 = vpop.permute.xlu0 %8158  ;;  %v2920_v62 = vpack.c.bf16 %v2868_v34, %v2867_v11  ;;  %v8155_v33 = vunpack.i.l.bf16 %v11116_v38  ;;  %v623_v58 = vsel %vm480_vm3, %v621_v63, %v622_v46  ;;  %v625_v25 = vsel %vm480_vm3, %v622_v46, %v624_v6  ;;  %v11222_v11 = vld [vmem:[#allocation2 + $0x2f8] sm:$0x3] }
 0x17b   :  { %v783_v37 = vrot.slane %v367_v49, 2  ;;  %v11209_v57 = vpack.i.bf16 %v781_v21, %v779_v60  ;;  %v2415_v35 = vsel %vm13378_vm0, %v9207_v61, %v8146_v53  ;;  %v8166_v38 = vunpack.i.h.bf16 %v11143_v8 }
 0x17c   :  { %8453 = vrot.lane.b32.xlu1 %v10714_v55, %s9293_s23  ;;  %8448 = vrot.lane.b32.xlu0 %v10690_v15, %s9293_s23  ;;  %v8165_v27 = vunpack.i.l.bf16 %v11143_v8  ;;  %v11216_v14 = vpack.i.bf16 %v367_v49, %v366_v22  ;;  %v11218_v2 = vld [vmem:[#allocation2 + $0x2e8] sm:$0xff]  ;;  %v11220_v34 = vld [vmem:[#allocation2 + $0x2f0] sm:$0xff]  ;;  %v2414_v5 = vsel %vm13378_vm0, %v9208_v10, %v8145_v28  ;;  %v2416_v8 = vsel %vm13378_vm0, %v9210_v54, %v8155_v33 }
 0x17d   :  { %7538 = vmatmul.mubr.msk.bf16.gmra.mrb[20].mxu0 %vm2966_vm12, %v2920_v62  ;;  %v9209_v62 = vld [vmem:[#allocation2 + $0x140] sm:$0xff]  ;;  %v8161_v49 = vunpack.i.h.bf16 %v11155_v42  ;;  %v8160_v0 = vunpack.i.l.bf16 %v11155_v42  ;;  %v786_v9 = vsel %vm13377_vm2, %v783_v37, %v785_v24  ;;  %v626_v6 = vrot.slane %v11218_v2, 1 }
 0x17e   :  { %v11183_v18 = vpop.permute.xlu1 %8173  ;;  %v11189_v23 = vpop.permute.xlu0 %8168  ;;  %v2417_v29 = vsel %vm13378_vm0, %v9209_v62, %v8156_v41  ;;  %v627_v53 = vrot.slane %v11220_v34, 1  ;;  %v629_v60 = vrot.slane %v11222_v11, 1  ;;  %v2481_v21 = vsel %vm2454_vm5, %v2416_v8, %v8165_v27 }
 0x17f   :  { %v8175_v63 = vunpack.i.l.bf16 %v11183_v18  ;;  %v2482_v28 = vsel %vm2454_vm5, %v2417_v29, %v8166_v38  ;;  %v8176_v42 = vunpack.i.h.bf16 %v11183_v18  ;;  %v8170_v41 = vunpack.i.l.bf16 %v11189_v23 }
 0x180   :  { %8463 = vrot.lane.b32.xlu1 %v10690_v15, %s9289_s11  ;;  %8458 = vrot.lane.b32.xlu0 %v10692_v4, %s9294_s24  ;;  %v782_v15 = vrot.slane %v366_v22, 2  ;;  %v11229_v22 = vpack.i.bf16 %v625_v25, %v623_v58  ;;  %v8171_v33 = vunpack.i.h.bf16 %v11189_v23  ;;  %v2479_v18 = vsel %vm2454_vm5, %v2414_v5, %v8160_v0 }
 0x181   :  { %v11260_v61 = vpack.i.bf16 %v11220_v34, %v11218_v2  ;;  %v2546_v23 = vsel %vm13387_vm6, %v2481_v21, %v8175_v63  ;;  %v630_v27 = vsel %vm480_vm3, %v627_v53, %v629_v60  ;;  %v2547_v10 = vsel %vm13387_vm6, %v2482_v28, %v8176_v42 }
 0x182   :  { %v11204_v36 = vpop.permute.xlu1 %8183  ;;  %v11207_v48 = vpop.permute.xlu0 %8178  ;;  %v784_v45 = vsel %vm13377_vm2, %v782_v15, %v783_v37  ;;  %v2480_v37 = vsel %vm2454_vm5, %v2415_v35, %v8161_v49  ;;  %v206_v35 = vld [vmem:[%s13363_s0 + $0x1d8] sm:$0xff]  ;;  %v2544_v5 = vsel %vm13387_vm6, %v2479_v18, %v8170_v41  ;;  %v787_v60 = vrot.slane %v11218_v2, 2 }
 0x183   :  { %v8186_v58 = vunpack.i.h.bf16 %v11204_v36  ;;  %v8185_v25 = vunpack.i.l.bf16 %v11204_v36  ;;  %v11252_v15 = vpack.i.bf16 %v786_v9, %v784_v45  ;;  %v628_v36 = vsel %vm480_vm3, %v626_v6, %v627_v53  ;;  %271 = vst.msk [vmem:[#allocation2 + $0x309] sm:$0xff] %vm13378_vm0, %v206_v35 }
 0x184   :  { %8473 = vrot.lane.b32.xlu1 %v10714_v55, %s9289_s11  ;;  %8468 = vrot.lane.b32.xlu0 %v10728_v1, %s9294_s24  ;;  %v8181_v62 = vunpack.i.h.bf16 %v11207_v48  ;;  %v8180_v29 = vunpack.i.l.bf16 %v11207_v48  ;;  %v2545_v54 = vsel %vm13387_vm6, %v2480_v37, %v8171_v33  ;;  %v11285_v63 = vpack.i.bf16 %v630_v27, %v628_v36 }
 0x185   :  { %v2611_v8 = vsel %vm13383_vm7, %v2546_v23, %v8185_v25  ;;  %v2612_v49 = vsel %vm13383_vm7, %v2547_v10, %v8186_v58  ;;  %v788_v21 = vrot.slane %v11220_v34, 2  ;;  %v790_v28 = vrot.slane %v11222_v11, 2 }
 0x186   :  { %v11233_v44 = vpop.permute.xlu1 %8193  ;;  %v8189_v46 = vpop.permute.xlu0 %8188  ;;  %v2609_v42 = vsel %vm13383_vm7, %v2544_v5, %v8180_v29  ;;  %v2610_v41 = vsel %vm13383_vm7, %v2545_v54, %v8181_v62 }
 0x187   :  { %v8195_v0 = vunpack.i.l.bf16 %v11233_v44  ;;  %v8191_v45 = vunpack.i.h.bf16 %v8189_v46  ;;  %v8190_v48 = vunpack.i.l.bf16 %v8189_v46  ;;  %v791_v36 = vsel %vm13377_vm2, %v788_v21, %v790_v28 }
 0x188   :  { %8483 = vrot.lane.b32.xlu1 %v10728_v1, %s9288_s30  ;;  %8478 = vrot.lane.b32.xlu0 %v10692_v4, %s9288_s30  ;;  %v205_v4 = vld [vmem:[%s13363_s0 + $0x1d0] sm:$0xff] }
 0x189   :  { %270 = vst.msk [vmem:[#allocation2 + $0x301] sm:$0xff] %vm13378_vm0, %v205_v4  ;;  %v2676_v2 = vsel %vm13382_vm8, %v2611_v8, %v8195_v0  ;;  %v2674_v34 = vsel %vm13382_vm8, %v2609_v42, %v8190_v48  ;;  %v2675_v11 = vsel %vm13382_vm8, %v2610_v41, %v8191_v45 }
 0x18a   :  { %v11256_v24 = vpop.permute.xlu1 %8203  ;;  %v8199_v38 = vpop.permute.xlu0 %8198 }
 0x18b   :  { %v8200_v6 = vunpack.i.l.bf16 %v8199_v38  ;;  %v8201_v33 = vunpack.i.h.bf16 %v8199_v38  ;;  %v8206_v25 = vunpack.i.h.bf16 %v11256_v24  ;;  %v789_v38 = vsel %vm13377_vm2, %v787_v60, %v788_v21  ;;  %v374_v60 = vld [vmem:[#allocation2 + $0x310] sm:$0x3]  ;;  %v208_v21 = vld [vmem:[%s13363_s0 + $0x1e8] sm:$0xff] }
 0x18c   :  { %8493 = vrot.lane.b32.xlu1 %v10818_v30, %s9287_s29  ;;  %8488 = vrot.lane.b32.xlu0 %v10704_v16, %s9287_s29  ;;  %v8196_v16 = vunpack.i.h.bf16 %v11233_v44  ;;  %v8205_v44 = vunpack.i.l.bf16 %v11256_v24  ;;  %273 = vst.msk [vmem:[#allocation2 + $0x321] sm:$0xff] %vm13378_vm0, %v208_v21 }
 0x18d   :  { %v2739_v18 = vsel %vm2714_vm9, %v2674_v34, %v8200_v6 }
 0x18e   :  { %v8214_v9 = vpop.permute.xlu1 %8213  ;;  %v8209_v53 = vpop.permute.xlu0 %8208  ;;  %v2677_v10 = vsel %vm13382_vm8, %v2612_v49, %v8196_v16  ;;  %v2741_v48 = vsel %vm2714_vm9, %v2676_v2, %v8205_v44  ;;  %v11336_v16 = vld [vmem:[#allocation3] sm:$0xff] }
 0x18f   :  { %v8211_v46 = vunpack.i.h.bf16 %v8209_v53  ;;  %v8210_v58 = vunpack.i.l.bf16 %v8209_v53  ;;  %v8215_v27 = vunpack.i.l.bf16 %v8214_v9  ;;  %v8216_v5 = vunpack.i.h.bf16 %v8214_v9 }
 0x190   :  { %8503 = vrot.lane.b32.xlu1 %v10822_v43, %s9290_s20  ;;  %8498 = vrot.lane.b32.xlu0 %v10714_v55, %s9290_s20  ;;  %v2740_v55 = vsel %vm2714_vm9, %v2675_v11, %v8201_v33  ;;  %v11317_v0 = vld [vmem:[#allocation2 + $0x300] sm:$0xff]  ;;  %v11319_v45 = vld [vmem:[#allocation2 + $0x308] sm:$0xff]  ;;  %v2742_v49 = vsel %vm2714_vm9, %v2677_v10, %v8206_v25  ;;  %v11323_v53 = vpack.i.bf16 %v791_v36, %v789_v38  ;;  %v795_v10 = vrot.slane %v374_v60, 2 }
 0x191   :  { %v2804_v24 = vsel %vm13379_vm10, %v2739_v18, %v8210_v58  ;;  %v2805_v62 = vsel %vm13379_vm10, %v2740_v55, %v8211_v46  ;;  %v2806_v28 = vsel %vm13379_vm10, %v2741_v48, %v8215_v27  ;;  %v11338_v33 = vld [vmem:[#allocation3 + $0x8] sm:$0x3]  ;;  %v2807_v46 = vsel %vm13379_vm10, %v2742_v49, %v8216_v5 }
 0x192   :  { %v11301_v37 = vpop.permute.xlu1 %8223  ;;  %v8219_v23 = vpop.permute.xlu0 %8218  ;;  %v631_v34 = vrot.slane %v11317_v0, 1  ;;  %v632_v18 = vrot.slane %v11319_v45, 1  ;;  %v5575_v27 = vrot.slane %v11338_v33, 1 }
 0x193   :  { %v8221_v4 = vunpack.i.h.bf16 %v8219_v23  ;;  %v8220_v35 = vunpack.i.l.bf16 %v8219_v23  ;;  %v8226_v58 = vunpack.i.h.bf16 %v11301_v37  ;;  %v8225_v2 = vunpack.i.l.bf16 %v11301_v37 }
 0x194   :  { %8513 = vrot.lane.b32.xlu1 %v10829_v31, %s9291_s21  ;;  %8508 = vrot.lane.b32.xlu0 %v10728_v1, %s9291_s21  ;;  %v207_v1 = vld [vmem:[%s13363_s0 + $0x1e0] sm:$0xff]  ;;  %v634_v23 = vrot.slane %v374_v60, 1  ;;  %v5574_v37 = vrot.slane %v11336_v16, 1  ;;  %v633_v48 = vsel %vm480_vm3, %v631_v34, %v632_v18  ;;  %v9213_v60 = vld [vmem:[#allocation2 + $0x170] sm:$0xff] }
 0x195   :  { %v2869_v29 = vsel %vm2844_vm11, %v2804_v24, %v8220_v35  ;;  %v2870_v54 = vsel %vm2844_vm11, %v2805_v62, %v8221_v4  ;;  %272 = vst.msk [vmem:[#allocation2 + $0x319] sm:$0xff] %vm13378_vm0, %v207_v1  ;;  %v792_v4 = vrot.slane %v11317_v0, 2  ;;  %v793_v35 = vrot.slane %v11319_v45, 2  ;;  %v9211_v62 = vld [vmem:[#allocation2 + $0x158] sm:$0xff] }
 0x196   :  { %v8234_v8 = vpop.permute.xlu1 %8233  ;;  %v8229_v9 = vpop.permute.xlu0 %8228  ;;  %v2921_v6 = vpack.c.bf16 %v2870_v54, %v2869_v29  ;;  %v11361_v24 = vpack.i.bf16 %v11319_v45, %v11317_v0  ;;  %v2419_v29 = vsel %vm13378_vm0, %v9211_v62, %v8226_v58  ;;  %v635_v49 = vsel %vm480_vm3, %v632_v18, %v634_v23 }
 0x197   :  { %v8231_v42 = vunpack.i.h.bf16 %v8229_v9  ;;  %v8230_v41 = vunpack.i.l.bf16 %v8229_v9  ;;  %v8236_v38 = vunpack.i.h.bf16 %v8234_v8  ;;  %v9212_v9 = vld [vmem:[#allocation2 + $0x150] sm:$0xff]  ;;  %v11373_v45 = vsel %vm480_vm3, %v5574_v37, %v5575_v27 }
 0x198   :  { %8523 = vrot.lane.b32.xlu1 %v10839_v50, %s9292_s22  ;;  %8518 = vrot.lane.b32.xlu0 %v10818_v30, %s9292_s22  ;;  %v8235_v30 = vunpack.i.l.bf16 %v8234_v8  ;;  %v796_v34 = vsel %vm13377_vm2, %v793_v35, %v795_v10 }
 0x199   :  { %7541 = vmatprep.mubr.msk.bf16.mxu0 %vm2966_vm12, %v2921_v6  ;;  %v2872_v11 = vsel %vm2844_vm11, %v2807_v46, %v8231_v42  ;;  %v2871_v25 = vsel %vm2844_vm11, %v2806_v28, %v8230_v41  ;;  %v2418_v6 = vsel %vm13378_vm0, %v9212_v9, %v8225_v2  ;;  %v2421_v1 = vsel %vm13378_vm0, %v9213_v60, %v8236_v38  ;;  %v9214_v41 = vld [vmem:[#allocation2 + $0x168] sm:$0xff] }
 0x19a   :  { %v8244_v44 = vpop.permute.xlu1 %8243  ;;  %v8239_v36 = vpop.permute.xlu0 %8238  ;;  %v2922_v55 = vpack.c.bf16 %v2872_v11, %v2871_v25  ;;  %v2420_v46 = vsel %vm13378_vm0, %v9214_v41, %v8235_v30  ;;  %v794_v2 = vsel %vm13377_vm2, %v792_v4, %v793_v35  ;;  %v377_v11 = vld [vmem:[#allocation2 + $0x328] sm:$0x3] }
 0x19b   :  { %v8245_v5 = vunpack.i.l.bf16 %v8244_v44  ;;  %v8246_v54 = vunpack.i.h.bf16 %v8244_v44  ;;  %v8241_v21 = vunpack.i.h.bf16 %v8239_v36  ;;  %v8240_v58 = vunpack.i.l.bf16 %v8239_v36 }
 0x19c   :  { %8533 = vrot.lane.b32.xlu1 %v10966_v7, %s9293_s23  ;;  %8528 = vrot.lane.b32.xlu0 %v10822_v43, %s9293_s23  ;;  %v11368_v42 = vld [vmem:[#allocation2 + $0x318] sm:$0xff]  ;;  %v11370_v0 = vld [vmem:[#allocation2 + $0x320] sm:$0xff]  ;;  %v11383_v44 = vpack.i.bf16 %v635_v49, %v633_v48  ;;  %v639_v37 = vrot.slane %v377_v11, 1  ;;  %v11389_v10 = vpack.i.bf16 %v796_v34, %v794_v2 }
 0x19d   :  { %7542 = vmatmul.mubr.msk.bf16.gmra.mrb[24].mxu0 %vm2966_vm12, %v2922_v55  ;;  %v2485_v25 = vsel %vm2454_vm5, %v2420_v46, %v8245_v5  ;;  %v636_v18 = vrot.slane %v11368_v42, 1  ;;  %v637_v23 = vrot.slane %v11370_v0, 1  ;;  %v2486_v38 = vsel %vm2454_vm5, %v2421_v1, %v8246_v54 }
 0x19e   :  { %v8254_v8 = vpop.permute.xlu1 %8253  ;;  %v8249_v28 = vpop.permute.xlu0 %8248  ;;  %v2484_v27 = vsel %vm2454_vm5, %v2419_v29, %v8241_v21  ;;  %v2483_v5 = vsel %vm2454_vm5, %v2418_v6, %v8240_v58  ;;  %v11398_v54 = vpack.i.bf16 %v11370_v0, %v11368_v42 }
 0x19f   :  { %v8256_v36 = vunpack.i.h.bf16 %v8254_v8  ;;  %v8251_v30 = vunpack.i.h.bf16 %v8249_v28  ;;  %v8250_v4 = vunpack.i.l.bf16 %v8249_v28  ;;  %v638_v29 = vsel %vm480_vm3, %v636_v18, %v637_v23 }
 0x1a0   :  { %8543 = vrot.lane.b32.xlu1 %v10822_v43, %s9289_s11  ;;  %8538 = vrot.lane.b32.xlu0 %v10829_v31, %s9294_s24  ;;  %v8255_v43 = vunpack.i.l.bf16 %v8254_v8  ;;  %v640_v8 = vsel %vm480_vm3, %v637_v23, %v639_v37 }
 0x1a1   :  { %v2551_v9 = vsel %vm13387_vm6, %v2486_v38, %v8256_v36  ;;  %v2548_v21 = vsel %vm13387_vm6, %v2483_v5, %v8250_v4  ;;  %v2549_v28 = vsel %vm13387_vm6, %v2484_v27, %v8251_v30  ;;  %v797_v38 = vrot.slane %v11368_v42, 2 }
 0x1a2   :  { %v8264_v55 = vpop.permute.xlu1 %8263  ;;  %v8259_v35 = vpop.permute.xlu0 %8258  ;;  %v2550_v49 = vsel %vm13387_vm6, %v2485_v25, %v8255_v43  ;;  %v11410_v25 = vpack.i.bf16 %v640_v8, %v638_v29  ;;  %v798_v36 = vrot.slane %v11370_v0, 2  ;;  %v800_v27 = vrot.slane %v377_v11, 2 }
 0x1a3   :  { %v8266_v62 = vunpack.i.h.bf16 %v8264_v55  ;;  %v8265_v48 = vunpack.i.l.bf16 %v8264_v55  ;;  %v8261_v6 = vunpack.i.h.bf16 %v8259_v35  ;;  %v8260_v60 = vunpack.i.l.bf16 %v8259_v35 }
 0x1a4   :  { %8553 = vrot.lane.b32.xlu1 %v10966_v7, %s9289_s11  ;;  %8548 = vrot.lane.b32.xlu0 %v10971_v17, %s9294_s24  ;;  %v799_v11 = vsel %vm13377_vm2, %v797_v38, %v798_v36 }
 0x1a5   :  { %v2615_v58 = vsel %vm13383_vm7, %v2550_v49, %v8265_v48  ;;  %v2616_v2 = vsel %vm13383_vm7, %v2551_v9, %v8266_v62  ;;  %v2613_v43 = vsel %vm13383_vm7, %v2548_v21, %v8260_v60  ;;  %v2614_v55 = vsel %vm13383_vm7, %v2549_v28, %v8261_v6  ;;  %v209_v62 = vld [vmem:[%s13363_s0 + $0x1f0] sm:$0xff]  ;;  %v11440_v60 = vld [vmem:[%s13365_s2] ss:$0 sm:$0xff] }
 0x1a6   :  { %v8274_v1 = vpop.permute.xlu1 %8273  ;;  %v8269_v46 = vpop.permute.xlu0 %8268  ;;  %v801_v48 = vsel %vm13377_vm2, %v798_v36, %v800_v27  ;;  %274 = vst.msk [vmem:[#allocation2 + $0x331] sm:$0xff] %vm13378_vm0, %v209_v62  ;;  %v5623_v21 = vrot.slane %v11338_v33, 2 }
 0x1a7   :  { %v8275_v41 = vunpack.i.l.bf16 %v8274_v1  ;;  %v8276_v34 = vunpack.i.h.bf16 %v8274_v1  ;;  %v8271_v18 = vunpack.i.h.bf16 %v8269_v46  ;;  %v8270_v23 = vunpack.i.l.bf16 %v8269_v46 }
 0x1a8   :  { %8563 = vrot.lane.b32.xlu1 %v10971_v17, %s9288_s30  ;;  %8558 = vrot.lane.b32.xlu0 %v10829_v31, %s9288_s30  ;;  %v210_v31 = vld [vmem:[%s13363_s0 + $0x1f8] sm:$0xff]  ;;  %v5622_v1 = vrot.slane %v11336_v16, 2 }
 0x1a9   :  { %v2680_v30 = vsel %vm13382_vm8, %v2615_v58, %v8275_v41  ;;  %275 = vst.msk [vmem:[#allocation2 + $0x339] sm:$0xff] %vm13378_vm0, %v210_v31  ;;  %v2681_v29 = vsel %vm13382_vm8, %v2616_v2, %v8276_v34  ;;  %v2678_v8 = vsel %vm13382_vm8, %v2613_v43, %v8270_v23  ;;  %v2679_v49 = vsel %vm13382_vm8, %v2614_v55, %v8271_v18 }
 0x1aa   :  { %v8284_v37 = vpop.permute.xlu1 %8283  ;;  %v8279_v5 = vpop.permute.xlu0 %8278  ;;  %v11445_v2 = vpack.i.bf16 %v801_v48, %v799_v11  ;;  %v11455_v36 = vsel %vm13377_vm2, %v5622_v1, %v5623_v21  ;;  %v9215_v1 = vld [vmem:[#allocation2 + $0x1b8] sm:$0xff]  ;;  %vm13388_vm2 = vcmask 1045509  }
 0x1ab   :  { %v8286_v4 = vunpack.i.h.bf16 %v8284_v37  ;;  %v8285_v35 = vunpack.i.l.bf16 %v8284_v37  ;;  %v8281_v42 = vunpack.i.h.bf16 %v8279_v5  ;;  %v8280_v0 = vunpack.i.l.bf16 %v8279_v5  ;;  %13396 = vst [vmem:[#allocation7_spill] sm:$0xff] %v11455_v36 }
 0x1ac   :  { %8573 = vrot.lane.b32.xlu1 %v10989_v51, %s9287_s29  ;;  %8568 = vrot.lane.b32.xlu0 %v10839_v50, %s9287_s29 }
 0x1ad   :  { %v2745_v9 = vsel %vm2714_vm9, %v2680_v30, %v8285_v35  ;;  %v2746_v28 = vsel %vm2714_vm9, %v2681_v29, %v8286_v4  ;;  %v2743_v50 = vsel %vm2714_vm9, %v2678_v8, %v8280_v0  ;;  %v2744_v34 = vsel %vm2714_vm9, %v2679_v49, %v8281_v42  ;;  %v11465_v8 = vld [vmem:[#allocation2 + $0x330] sm:$0xff] }
 0x1ae   :  { %v8294_v6 = vpop.permute.xlu1 %8293  ;;  %v8289_v58 = vpop.permute.xlu0 %8288 }
 0x1af   :  { %v8296_v41 = vunpack.i.h.bf16 %v8294_v6  ;;  %v8295_v46 = vunpack.i.l.bf16 %v8294_v6  ;;  %v8290_v18 = vunpack.i.l.bf16 %v8289_v58  ;;  %v8291_v38 = vunpack.i.h.bf16 %v8289_v58 }
 0x1b0   :  { %v7519_v23 = vpop.f32.mrb[0].mxu0  ;;  %8583 = vrot.lane.b32.xlu1 %v10991_v40, %s9290_s20  ;;  %8578 = vrot.lane.b32.xlu0 %v10966_v7, %s9290_s20  ;;  %v11467_v49 = vld [vmem:[#allocation2 + $0x338] sm:$0xff] }
 0x1b1   :  { %v3110_v16 = vadd.f32 %v7519_v23, %v11440_v60  ;;  %v3101_v33 = vpop.f32.mrb[1].mxu0  ;;  %v2810_v43 = vsel %vm13379_vm10, %v2745_v9, %v8295_v46  ;;  %v2811_v55 = vsel %vm13379_vm10, %v2746_v28, %v8296_v41  ;;  %v2808_v37 = vsel %vm13379_vm10, %v2743_v50, %v8290_v18  ;;  %v9216_v28 = vld [vmem:[#allocation2 + $0x1b0] sm:$0xff] }
 0x1b2   :  { %v3102_v27 = vadd.f32 %v11440_v60, %v3101_v33  ;;  %v7520_v30 = vpop.f32.mrb[2].mxu0  ;;  %v8304_v4 = vpop.permute.xlu1 %8303  ;;  %v2809_v9 = vsel %vm13379_vm10, %v2744_v34, %v8291_v38  ;;  %vm13385_vm10 = vcmask 1047559  }
 0x1b3   :  { %v3358_v35 = vmax.f32 %v3110_v16, 0.0  ;;  %v3113_v5 = vadd.f32 %v7520_v30, %v11440_v60  ;;  %v8306_v62 = vunpack.i.h.bf16 %v8304_v4  ;;  %v8305_v31 = vunpack.i.l.bf16 %v8304_v4  ;;  %v8299_v7 = vpop.permute.xlu0 %8298  ;;  %v3104_v42 = vpop.f32.mrb[3].mxu0 }
 0x1b4   :  { %v3356_v0 = vmax.f32 %v3102_v27, 0.0  ;;  %v8301_v11 = vunpack.i.h.bf16 %v8299_v7  ;;  %v8300_v48 = vunpack.i.l.bf16 %v8299_v7  ;;  %v3105_v29 = vadd.f32 %v11440_v60, %v3104_v42  ;;  %8593 = vrot.lane.b32.xlu1 %v10998_v56, %s9291_s21  ;;  %8588 = vrot.lane.b32.xlu0 %v10971_v17, %s9291_s21 }
 0x1b5   :  { %v3359_v6 = vmax.f32 %v3113_v5, 0.0  ;;  %v11471_v21 = vsel %vm13378_vm0, %v9215_v1, %v8306_v62  ;;  %v11474_v41 = vsel %vm13378_vm0, %v9216_v28, %v8305_v31  ;;  %v11482_v27 = vpack.i.bf16 %v11467_v49, %v11465_v8  ;;  %v9218_v62 = vld [vmem:[#allocation2 + $0x1c8] sm:$0xff] }
 0x1b6   :  { %v3420_v46 = vmax.f32 %v3356_v0, %v3358_v35  ;;  %v2873_v58 = vsel %vm2844_vm11, %v2808_v37, %v8300_v48  ;;  %v2874_v50 = vsel %vm2844_vm11, %v2809_v9, %v8301_v11  ;;  %v3357_v18 = vmax.f32 %v3105_v29, 0.0  ;;  %v8314_v23 = vpop.permute.xlu1 %8313  ;;  %v9217_v37 = vld [vmem:[#allocation2 + $0x1d0] sm:$0xff] }
 0x1b7   :  { %v8316_v34 = vunpack.i.h.bf16 %v8314_v23  ;;  %v8315_v38 = vunpack.i.l.bf16 %v8314_v23  ;;  %v8309_v16 = vpop.permute.xlu0 %8308  ;;  %v2923_v33 = vpack.c.bf16 %v2874_v50, %v2873_v58 }
 0x1b8   :  { %v3484_v30 = vcombine.high %v3420_v46, %v3420_v46  ;;  %v3491_v4 = vrot.slane %v3420_v46, %v10996_v39  ;;  %v3421_v17 = vmax.f32 %v3357_v18, %v3359_v6  ;;  %v8311_v35 = vunpack.i.h.bf16 %v8309_v16  ;;  %8603 = vrot.lane.b32.xlu1 %v11000_v59, %s9292_s22  ;;  %8598 = vrot.lane.b32.xlu0 %v10989_v51, %s9292_s22 }
 0x1b9   :  { %v2425_v5 = vsel %vm13378_vm0, %v9217_v37, %v8316_v34  ;;  %v2424_v31 = vsel %vm13378_vm0, %v9218_v62, %v8315_v38  ;;  %v8310_v7 = vunpack.i.l.bf16 %v8309_v16  ;;  %7545 = vmatprep.mubr.msk.bf16.mxu0 %vm2966_vm12, %v2923_v33  ;;  %vm13386_vm0 = vcmask 1046534  }
 0x1ba   :  { %v3498_v0 = vrot.slane %v3484_v30, %v10996_v39  ;;  %v3499_v11 = vcombine.high %v3491_v4, %v3491_v4  ;;  %v7201_v48 = vrot.slane %v3491_v4, 9  ;;  %v3501_v29 = vcombine.high %v3421_v17, %v3421_v17  ;;  %v8324_v9 = vpop.permute.xlu1 %8323 }
 0x1bb   :  { %v3508_v6 = vrot.slane %v3421_v17, %v10996_v39  ;;  %v2876_v1 = vsel %vm2844_vm11, %v2811_v55, %v8311_v35  ;;  %v2875_v28 = vsel %vm2844_vm11, %v2810_v43, %v8310_v7  ;;  %v11497_v46 = vpop.permute.xlu0 %8318  ;;  %v8325_v55 = vunpack.i.l.bf16 %v8324_v9 }
 0x1bc   :  { %v3500_v58 = vcombine.high %v3498_v0, %v3498_v0  ;;  %v7202_v50 = vrot.slane %v3499_v11, 9  ;;  %v7203_v18 = vrot.slane %v3498_v0, 9  ;;  %v4540_v23 = vmax.f32 %v3491_v4, %v7201_v48  ;;  %8613 = vrot.lane.b32.xlu1 %v11009_v47, %s9293_s23  ;;  %8608 = vrot.lane.b32.xlu0 %v10991_v40, %s9293_s23 }
 0x1bd   :  { %v3515_v34 = vrot.slane %v3501_v29, %v10996_v39  ;;  %v3516_v38 = vcombine.high %v3508_v6, %v3508_v6  ;;  %v7205_v16 = vrot.slane %v3508_v6, 9  ;;  %v8326_v17 = vunpack.i.h.bf16 %v8324_v9 }
 0x1be   :  { %v7204_v43 = vrot.slane %v3500_v58, 9  ;;  %v4541_v33 = vmax.f32 %v3499_v11, %v7202_v50  ;;  %v4542_v30 = vmax.f32 %v3498_v0, %v7203_v18  ;;  %v8334_v35 = vpop.permute.xlu1 %8333  ;;  %v4841_v29 = vrot.slane %v4540_v23, %v11139_v32 }
 0x1bf   :  { %v3517_v37 = vcombine.high %v3515_v34, %v3515_v34  ;;  %v7206_v4 = vrot.slane %v3516_v38, 9  ;;  %v7207_v62 = vrot.slane %v3515_v34, 9  ;;  %v4544_v7 = vmax.f32 %v3508_v6, %v7205_v16  ;;  %v8329_v48 = vpop.permute.xlu0 %8328 }
 0x1c0   :  { %v4543_v42 = vmax.f32 %v3500_v58, %v7204_v43  ;;  %v4845_v51 = vrot.slane %v4541_v33, %v11139_v32  ;;  %v4849_v19 = vrot.slane %v4542_v30, %v11139_v32  ;;  %8623 = vrot.lane.b32.xlu1 %v10991_v40, %s9289_s11  ;;  %v2489_v9 = vsel %vm2454_vm5, %v2424_v31, %v8325_v55 }
 0x1c1   :  { %v7208_v36 = vrot.slane %v3517_v37, 9  ;;  %v4545_v11 = vmax.f32 %v3516_v38, %v7206_v4  ;;  %v4546_v0 = vmax.f32 %v3515_v34, %v7207_v62  ;;  %8618 = vrot.lane.b32.xlu0 %v10998_v56, %s9294_s24  ;;  %v4857_v50 = vrot.slane %v4544_v7, %v11139_v32 }
 0x1c2   :  { %v4853_v6 = vrot.slane %v4543_v42, %v11139_v32  ;;  %v5351_v58 = vsel %vm5350_vm15, %v4845_v51, %v4841_v29  ;;  %v8321_v18 = vunpack.i.h.bf16 %v11497_v46  ;;  %v8344_v23 = vpop.permute.xlu1 %8343  ;;  %v2490_v34 = vsel %vm2454_vm5, %v2425_v5, %v8326_v17 }
 0x1c3   :  { %v5353_v16 = vsel %vm5352_vm4, %v4849_v19, %v5351_v58  ;;  %v4547_v40 = vmax.f32 %v3517_v37, %v7208_v36  ;;  %v4861_v38 = vrot.slane %v4545_v11, %v11139_v32  ;;  %v8339_v31 = vpop.permute.xlu0 %8338  ;;  %v4865_v55 = vrot.slane %v4546_v0, %v11139_v32 }
 0x1c4   :  { %v5355_v43 = vsel %vm5354_vm14, %v4853_v6, %v5353_v16  ;;  %v8320_v42 = vunpack.i.l.bf16 %v11497_v46  ;;  %v2924_v51 = vpack.c.bf16 %v2876_v1, %v2875_v28  ;;  %8633 = vrot.lane.b32.xlu1 %v11009_v47, %s9289_s11  ;;  %v2488_v19 = vsel %vm2454_vm5, %v11471_v21, %v8321_v18 }
 0x1c5   :  { %v5357_v33 = vsel %vm13389_vm1, %v4857_v50, %v5355_v43  ;;  %v8336_v36 = vunpack.i.h.bf16 %v8334_v35  ;;  %v8335_v30 = vunpack.i.l.bf16 %v8334_v35  ;;  %8628 = vrot.lane.b32.xlu0 %v11030_v12, %s9294_s24  ;;  %v4869_v5 = vrot.slane %v4547_v40, %v11139_v32 }
 0x1c6   :  { %v5359_v17 = vsel %vm13388_vm2, %v4861_v38, %v5357_v33  ;;  %7546 = vmatmul.mubr.msk.bf16.gmra.mrb[28].mxu0 %vm2966_vm12, %v2924_v51  ;;  %v8331_v1 = vunpack.i.h.bf16 %v8329_v48  ;;  %v8330_v28 = vunpack.i.l.bf16 %v8329_v48  ;;  %v8354_v46 = vpop.permute.xlu1 %8353  ;;  %v2487_v4 = vsel %vm2454_vm5, %v11474_v41, %v8320_v42  ;;  %v11550_v42 = vld [vmem:[#allocation2 + $0x340] sm:$0x3] }
 0x1c7   :  { %v5361_v37 = vsel %vm13386_vm0, %v4865_v55, %v5359_v17  ;;  %v2554_v21 = vsel %vm13387_vm6, %v2489_v9, %v8335_v30  ;;  %v8346_v35 = vunpack.i.h.bf16 %v8344_v23  ;;  %v8349_v62 = vpop.permute.xlu0 %8348  ;;  %v2555_v29 = vsel %vm13387_vm6, %v2490_v34, %v8336_v36 }
 0x1c8   :  { %v5363_v7 = vsel %vm13385_vm10, %v4869_v5, %v5361_v37  ;;  %v2552_v11 = vsel %vm13387_vm6, %v2487_v4, %v8330_v28  ;;  %v8345_v0 = vunpack.i.l.bf16 %v8344_v23  ;;  %8643 = vrot.lane.b32.xlu1 %v11030_v12, %s9288_s30  ;;  %v2553_v48 = vsel %vm13387_vm6, %v2488_v19, %v8331_v1 }
 0x1c9   :  { %5486 = vst.msk [vmem:[#allocation3 + $0x11] sm:$0xff] %vm13384_vm13, %v5363_v7  ;;  %v8341_v6 = vunpack.i.h.bf16 %v8339_v31  ;;  %v8340_v41 = vunpack.i.l.bf16 %v8339_v31  ;;  %v8356_v58 = vunpack.i.h.bf16 %v8354_v46  ;;  %8638 = vrot.lane.b32.xlu0 %v10998_v56, %s9288_s30  ;;  %v2620_v9 = vsel %vm13383_vm7, %v2555_v29, %v8346_v35 }
 0x1ca   :  { %v8355_v50 = vunpack.i.l.bf16 %v8354_v46  ;;  %v8351_v18 = vunpack.i.h.bf16 %v8349_v62  ;;  %v8350_v16 = vunpack.i.l.bf16 %v8349_v62  ;;  %v8364_v40 = vpop.permute.xlu1 %8363  ;;  %v2619_v23 = vsel %vm13383_vm7, %v2554_v21, %v8345_v0 }
 0x1cb   :  { %v2617_v38 = vsel %vm13383_vm7, %v2552_v11, %v8340_v41  ;;  %v2618_v34 = vsel %vm13383_vm7, %v2553_v48, %v8341_v6  ;;  %v8366_v55 = vunpack.i.h.bf16 %v8364_v40  ;;  %v8359_v43 = vpop.permute.xlu0 %8358  ;;  %v2685_v56 = vsel %vm13382_vm8, %v2620_v9, %v8356_v58 }
 0x1cc   :  { %v2684_v31 = vsel %vm13382_vm8, %v2619_v23, %v8355_v50  ;;  %v2682_v51 = vsel %vm13382_vm8, %v2617_v38, %v8350_v16  ;;  %v8365_v33 = vunpack.i.l.bf16 %v8364_v40  ;;  %8653 = vrot.lane.b32.xlu1 %v11159_v20, %s9287_s29  ;;  %v2683_v19 = vsel %vm13382_vm8, %v2618_v34, %v8351_v18 }
 0x1cd   :  { %v2750_v36 = vsel %vm2714_vm9, %v2685_v56, %v8366_v55  ;;  %v8361_v30 = vunpack.i.h.bf16 %v8359_v43  ;;  %v8360_v5 = vunpack.i.l.bf16 %v8359_v43  ;;  %8648 = vrot.lane.b32.xlu0 %v11000_v59, %s9287_s29  ;;  %v13397_v28 = vrot.slane %v11467_v49, 1 }
 0x1ce   :  { %v2749_v17 = vsel %vm2714_vm9, %v2684_v31, %v8365_v33  ;;  %v8374_v1 = vpop.permute.xlu1 %8373  ;;  %v13398_v46 = vrot.slane %v11465_v8, 1  ;;  %v816_v4 = vrot.slane %v11550_v42, 1  ;;  %v823_v29 = vrot.slane %v11465_v8, 2 }
 0x1cf   :  { %v2747_v21 = vsel %vm2714_vm9, %v2682_v51, %v8360_v5  ;;  %v8376_v35 = vunpack.i.h.bf16 %v8374_v1  ;;  %v8375_v62 = vunpack.i.l.bf16 %v8374_v1  ;;  %v8369_v7 = vpop.permute.xlu0 %8368  ;;  %v13399_v48 = vmov %v13397_v28 }
 0x1d0   :  { %v815_v37 = vsel %vm480_vm3, %v13398_v46, %v13397_v28  ;;  %v8371_v11 = vunpack.i.h.bf16 %v8369_v7  ;;  %v8370_v59 = vunpack.i.l.bf16 %v8369_v7  ;;  %v7523_v0 = vpop.f32.mrb[4].mxu0  ;;  %8663 = vrot.lane.b32.xlu1 %v11163_v3, %s9290_s20  ;;  %v817_v6 = vsel %vm480_vm3, %v13399_v48, %v816_v4 }
 0x1d1   :  { %v824_v41 = vrot.slane %v11467_v49, 2  ;;  %v2748_v58 = vsel %vm2714_vm9, %v2683_v19, %v8361_v30  ;;  %vm13400_vm8 = vcmask 572416   ;;  %v3126_v8 = vadd.f32 %v7523_v0, %v11440_v60  ;;  %8658 = vrot.lane.b32.xlu0 %v11009_v47, %s9290_s20  ;;  %v3117_v18 = vpop.f32.mrb[5].mxu0 }
 0x1d2   :  { %v2814_v9 = vsel %vm13400_vm8, %v2749_v17, %v8375_v62  ;;  %vm13401_vm7 = vmmov %vm13400_vm8  ;;  %v3118_v23 = vadd.f32 %v11440_v60, %v3117_v18  ;;  %v7524_v38 = vpop.f32.mrb[6].mxu0  ;;  %v8384_v49 = vpop.permute.xlu1 %8383  ;;  %v11585_v34 = vpack.i.bf16 %v817_v6, %v815_v37  ;;  %v9219_v17 = vld [vmem:[#allocation2 + $0x1e8] sm:$0xff]  ;;  %vm13405_vm8 = vcmask 80896   ;;  %v9221_v18 = vld [vmem:[#allocation2 + $0x200] sm:$0xff] }
 0x1d3   :  { %v2815_v50 = vsel %vm13401_vm7, %v2750_v36, %v8376_v35  ;;  %vm13402_vm13 = vmmov %vm13401_vm7  ;;  %v3362_v55 = vmax.f32 %v3126_v8, 0.0  ;;  %v3129_v43 = vadd.f32 %v7524_v38, %v11440_v60  ;;  %v8386_v31 = vunpack.i.h.bf16 %v8384_v49  ;;  %v8379_v56 = vpop.permute.xlu0 %8378  ;;  %v3120_v51 = vpop.f32.mrb[7].mxu0 }
 0x1d4   :  { %v2812_v16 = vsel %vm13402_vm13, %v2747_v21, %v8370_v59  ;;  %vm13403_vm10 = vmmov %vm13401_vm7  ;;  %vm13404_vm7 = vcmask 1045504   ;;  %v3360_v47 = vmax.f32 %v3118_v23, 0.0  ;;  %v8381_v19 = vunpack.i.h.bf16 %v8379_v56  ;;  %8673 = vrot.lane.b32.xlu1 %v11181_v26, %s9291_s21 }
 0x1d5   :  { %v2813_v40 = vsel %vm13403_vm10, %v2748_v58, %v8371_v11  ;;  %v825_v33 = vsel %vm13404_vm7, %v823_v29, %v824_v41  ;;  %v8380_v36 = vunpack.i.l.bf16 %v8379_v56  ;;  %v3121_v30 = vadd.f32 %v11440_v60, %v3120_v51  ;;  %8668 = vrot.lane.b32.xlu0 %v11030_v12, %s9291_s21  ;;  %vm13406_vm10 = vmmov %vm13404_vm7 }
 0x1d6   :  { %v3363_v5 = vmax.f32 %v3129_v43, 0.0  ;;  %v11593_v1 = vsel %vm13405_vm8, %v9219_v17, %v8386_v31  ;;  %v8385_v28 = vunpack.i.l.bf16 %v8384_v49  ;;  %v826_v46 = vrot.slane %v11550_v42, 2  ;;  %v8394_v62 = vpop.permute.xlu1 %8393  ;;  %v9220_v42 = vld [vmem:[#allocation2 + $0x1e0] sm:$0xff]  ;;  %vm13407_vm13 = vmmov %vm13405_vm8 }
 0x1d7   :  { %v3422_v37 = vmax.f32 %v3360_v47, %v3362_v55  ;;  %v2877_v4 = vsel %vm2844_vm11, %v2812_v16, %v8380_v36  ;;  %v2878_v21 = vsel %vm2844_vm11, %v2813_v40, %v8381_v19  ;;  %v3361_v35 = vmax.f32 %v3121_v30, 0.0  ;;  %v8389_v11 = vpop.permute.xlu0 %8388  ;;  %vm13408_vm7 = vmmov %vm13405_vm8  ;;  %v9222_v40 = vld [vmem:[#allocation2 + $0x1f8] sm:$0xff] }
 0x1d8   :  { %v8396_v7 = vunpack.i.h.bf16 %v8394_v62  ;;  %v8395_v29 = vunpack.i.l.bf16 %v8394_v62  ;;  %v2925_v59 = vpack.c.bf16 %v2878_v21, %v2877_v4  ;;  %v827_v0 = vsel %vm13406_vm10, %v824_v41, %v826_v46  ;;  %8683 = vrot.lane.b32.xlu1 %v11187_v13, %s9292_s22  ;;  %vm13409_vm8 = vmmov %vm13408_vm7 }
 0x1d9   :  { %v3518_v48 = vcombine.high %v3422_v37, %v3422_v37  ;;  %v3525_v6 = vrot.slane %v3422_v37, %v10996_v39  ;;  %v3423_v58 = vmax.f32 %v3361_v35, %v3363_v5  ;;  %v8391_v12 = vunpack.i.h.bf16 %v8389_v11  ;;  %8678 = vrot.lane.b32.xlu0 %v11159_v20, %s9292_s22 }
 0x1da   :  { %v11605_v8 = vsel %vm13407_vm13, %v9220_v42, %v8385_v28  ;;  %v2429_v16 = vsel %vm13408_vm7, %v9221_v18, %v8396_v7  ;;  %v2428_v23 = vsel %vm13409_vm8, %v9222_v40, %v8395_v29  ;;  %v8390_v38 = vunpack.i.l.bf16 %v8389_v11  ;;  %7549 = vmatprep.mubr.msk.bf16.mxu0 %vm2966_vm12, %v2925_v59  ;;  %v8404_v31 = vpop.permute.xlu1 %8403 }
 0x1db   :  { %v3532_v41 = vrot.slane %v3518_v48, %v10996_v39  ;;  %v3533_v49 = vcombine.high %v3525_v6, %v3525_v6  ;;  %v7209_v55 = vrot.slane %v3525_v6, 9  ;;  %v3535_v43 = vcombine.high %v3423_v58, %v3423_v58  ;;  %v8399_v19 = vpop.permute.xlu0 %8398 }
 0x1dc   :  { %v3542_v56 = vrot.slane %v3423_v58, %v10996_v39  ;;  %v2880_v51 = vsel %vm2844_vm11, %v2815_v50, %v8391_v12  ;;  %v2879_v47 = vsel %vm2844_vm11, %v2814_v9, %v8390_v38  ;;  %v11616_v36 = vpack.i.bf16 %v827_v0, %v825_v33  ;;  %8693 = vrot.lane.b32.xlu1 %v11191_v52, %s9293_s23 }
 0x1dd   :  { %v3534_v30 = vcombine.high %v3532_v41, %v3532_v41  ;;  %v7210_v5 = vrot.slane %v3533_v49, 9  ;;  %v7211_v20 = vrot.slane %v3532_v41, 9  ;;  %v4548_v17 = vmax.f32 %v3525_v6, %v7209_v55  ;;  %8688 = vrot.lane.b32.xlu0 %v11163_v3, %s9293_s23 }
 0x1de   :  { %v3549_v28 = vrot.slane %v3535_v43, %v10996_v39  ;;  %v3550_v46 = vcombine.high %v3542_v56, %v3542_v56  ;;  %v7213_v37 = vrot.slane %v3542_v56, 9  ;;  %v8405_v4 = vunpack.i.l.bf16 %v8404_v31  ;;  %v8414_v35 = vpop.permute.xlu1 %8413 }
 0x1df   :  { %v7212_v50 = vrot.slane %v3534_v30, 9  ;;  %v4549_v9 = vmax.f32 %v3533_v49, %v7210_v5  ;;  %v4550_v21 = vmax.f32 %v3532_v41, %v7211_v20  ;;  %v8406_v33 = vunpack.i.h.bf16 %v8404_v31  ;;  %v8409_v59 = vpop.permute.xlu0 %8408 }
 0x1e0   :  { %v3551_v62 = vcombine.high %v3549_v28, %v3549_v28  ;;  %v7214_v7 = vrot.slane %v3550_v46, 9  ;;  %v7215_v29 = vrot.slane %v3549_v28, 9  ;;  %v4552_v11 = vmax.f32 %v3542_v56, %v7213_v37  ;;  %8703 = vrot.lane.b32.xlu1 %v11163_v3, %s9289_s11 }
 0x1e1   :  { %v4551_v0 = vmax.f32 %v3534_v30, %v7212_v50  ;;  %v4873_v48 = vrot.slane %v4548_v17, %v11139_v32  ;;  %v4877_v6 = vrot.slane %v4549_v9, %v11139_v32  ;;  %v4881_v58 = vrot.slane %v4550_v21, %v11139_v32  ;;  %8698 = vrot.lane.b32.xlu0 %v11181_v26, %s9294_s24 }
 0x1e2   :  { %v7216_v12 = vrot.slane %v3551_v62, 9  ;;  %v4553_v42 = vmax.f32 %v3550_v46, %v7214_v7  ;;  %v4554_v18 = vmax.f32 %v3549_v28, %v7215_v29  ;;  %v2493_v40 = vsel %vm2454_vm5, %v2428_v23, %v8405_v4  ;;  %v8424_v43 = vpop.permute.xlu1 %8423 }
 0x1e3   :  { %v4885_v38 = vrot.slane %v4551_v0, %v11139_v32  ;;  %v5364_v41 = vsel %vm5350_vm15, %v4877_v6, %v4873_v48  ;;  %v4889_v49 = vrot.slane %v4552_v11, %v11139_v32  ;;  %v8401_v55 = vunpack.i.h.bf16 %v8399_v19  ;;  %v8419_v5 = vpop.permute.xlu0 %8418 }
 0x1e4   :  { %v5365_v31 = vsel %vm5352_vm4, %v4881_v58, %v5364_v41  ;;  %v4555_v56 = vmax.f32 %v3551_v62, %v7216_v12  ;;  %v4893_v3 = vrot.slane %v4553_v42, %v11139_v32  ;;  %v2494_v30 = vsel %vm2454_vm5, %v2429_v16, %v8406_v33  ;;  %8713 = vrot.lane.b32.xlu1 %v11191_v52, %s9289_s11 }
 0x1e5   :  { %v4897_v23 = vrot.slane %v4554_v18, %v11139_v32  ;;  %v5366_v20 = vsel %vm5354_vm14, %v4885_v38, %v5365_v31  ;;  %v8400_v17 = vunpack.i.l.bf16 %v8399_v19  ;;  %v2926_v28 = vpack.c.bf16 %v2880_v51, %v2879_v47  ;;  %8708 = vrot.lane.b32.xlu0 %v11209_v57, %s9294_s24  ;;  %v11666_v31 = vld [vmem:[#allocation2 + $0x350] sm:$0xff] }
 0x1e6   :  { %v5367_v46 = vsel %vm13389_vm1, %v4889_v49, %v5366_v20  ;;  %v2492_v37 = vsel %vm2454_vm5, %v11593_v1, %v8401_v55  ;;  %v8416_v4 = vunpack.i.h.bf16 %v8414_v35  ;;  %v8415_v50 = vunpack.i.l.bf16 %v8414_v35  ;;  %v8434_v19 = vpop.permute.xlu1 %8433 }
 0x1e7   :  { %v4901_v16 = vrot.slane %v4555_v56, %v11139_v32  ;;  %v5368_v9 = vsel %vm13388_vm2, %v4893_v3, %v5367_v46  ;;  %7550 = vmatmul.mubr.msk.bf16.gmra.mrb[32].mxu0 %vm2966_vm12, %v2926_v28  ;;  %v8411_v51 = vunpack.i.h.bf16 %v8409_v59  ;;  %v8410_v47 = vunpack.i.l.bf16 %v8409_v59  ;;  %v8429_v62 = vpop.permute.xlu0 %8428 }
 0x1e8   :  { %v5369_v21 = vsel %vm13386_vm0, %v4897_v23, %v5368_v9  ;;  %v2491_v33 = vsel %vm2454_vm5, %v11605_v8, %v8400_v17  ;;  %v2558_v1 = vsel %vm13387_vm6, %v2493_v40, %v8415_v50  ;;  %v8426_v35 = vunpack.i.h.bf16 %v8424_v43  ;;  %8723 = vrot.lane.b32.xlu1 %v11209_v57, %s9288_s30 }
 0x1e9   :  { %vm13410_vm10 = vcmask 1047559   ;;  %v2559_v29 = vsel %vm13387_vm6, %v2494_v30, %v8416_v4  ;;  %v2556_v11 = vsel %vm13387_vm6, %v2491_v33, %v8410_v47  ;;  %v8425_v0 = vunpack.i.l.bf16 %v8424_v43  ;;  %8718 = vrot.lane.b32.xlu0 %v11181_v26, %s9288_s30 }
 0x1ea   :  { %v5370_v7 = vsel %vm13410_vm10, %v4901_v16, %v5369_v21  ;;  %vm13411_vm13 = vcmask 261120   ;;  %v2557_v59 = vsel %vm13387_vm6, %v2492_v37, %v8411_v51  ;;  %v8421_v48 = vunpack.i.h.bf16 %v8419_v5  ;;  %v8444_v40 = vpop.permute.xlu1 %8443 }
 0x1eb   :  { %5487 = vst.msk [vmem:[#allocation3 + $0x21] sm:$0xff] %vm13411_vm13, %v5370_v7  ;;  %v8420_v8 = vunpack.i.l.bf16 %v8419_v5  ;;  %v8436_v6 = vunpack.i.h.bf16 %v8434_v19  ;;  %vm13412_vm7 = vcmask 326656   ;;  %v8435_v12 = vunpack.i.l.bf16 %v8434_v19  ;;  %v8439_v43 = vpop.permute.xlu0 %8438  ;;  %v11673_v5 = vld [vmem:[#allocation2 + $0x348] sm:$0xff] }
 0x1ec   :  { %v2624_v58 = vsel %vm13412_vm7, %v2559_v29, %v8426_v35  ;;  %v8431_v42 = vunpack.i.h.bf16 %v8429_v62  ;;  %v8430_v18 = vunpack.i.l.bf16 %v8429_v62  ;;  %vm13413_vm8 = vmmov %vm13412_vm7  ;;  %v8446_v55 = vunpack.i.h.bf16 %v8444_v40  ;;  %8733 = vrot.lane.b32.xlu1 %v11216_v14, %s9287_s29 }
 0x1ed   :  { %v2623_v38 = vsel %vm13413_vm8, %v2558_v1, %v8425_v0  ;;  %vm13414_vm10 = vmmov %vm13412_vm7  ;;  %vm13416_vm13 = vcmask 408576   ;;  %v8445_v30 = vunpack.i.l.bf16 %v8444_v40  ;;  %v8441_v17 = vunpack.i.h.bf16 %v8439_v43  ;;  %8728 = vrot.lane.b32.xlu0 %v11187_v13, %s9287_s29 }
 0x1ee   :  { %v2621_v41 = vsel %vm13414_vm10, %v2556_v11, %v8420_v8  ;;  %vm13415_vm0 = vmmov %vm13412_vm7  ;;  %v2688_v56 = vsel %vm13416_vm13, %v2623_v38, %v8435_v12  ;;  %v8440_v28 = vunpack.i.l.bf16 %v8439_v43  ;;  %v8454_v37 = vpop.permute.xlu1 %8453  ;;  %v840_v4 = vrot.slane %v11666_v31, 1  ;;  %v11698_v12 = vld [vmem:[#allocation2 + $0x358] sm:$0x3] }
 0x1ef   :  { %v2622_v49 = vsel %vm13415_vm0, %v2557_v59, %v8421_v48  ;;  %vm13417_vm6 = vmmov %vm13416_vm13  ;;  %v2753_v46 = vsel %vm2714_vm9, %v2688_v56, %v8445_v30  ;;  %v850_v50 = vrot.slane %v11666_v31, 2  ;;  %v8456_v9 = vunpack.i.h.bf16 %v8454_v37  ;;  %v8449_v47 = vpop.permute.xlu0 %8448 }
 0x1f0   :  { %v2689_v26 = vsel %vm13417_vm6, %v2624_v58, %v8436_v6  ;;  %vm13418_vm2 = vmmov %vm13417_vm6  ;;  %v8455_v51 = vunpack.i.l.bf16 %v8454_v37  ;;  %v8922_v19 = vpack.i.bf16 %v11666_v31, %v11673_v5  ;;  %v8451_v33 = vunpack.i.h.bf16 %v8449_v47  ;;  %v7527_v13 = vpop.f32.mrb[8].mxu0  ;;  %8743 = vrot.lane.b32.xlu1 %v11229_v22, %s9290_s20 }
 0x1f1   :  { %v2686_v3 = vsel %vm13418_vm2, %v2621_v41, %v8430_v18  ;;  %vm13419_vm7 = vmmov %vm13418_vm2  ;;  %v2754_v20 = vsel %vm2714_vm9, %v2689_v26, %v8446_v55  ;;  %v8450_v1 = vunpack.i.l.bf16 %v8449_v47  ;;  %v839_v35 = vrot.slane %v11673_v5, 1  ;;  %8738 = vrot.lane.b32.xlu0 %v11191_v52, %s9290_s20  ;;  %v3133_v11 = vpop.f32.mrb[9].mxu0 }
 0x1f2   :  { %v2687_v23 = vsel %vm13419_vm7, %v2622_v49, %v8431_v42  ;;  %v2751_v16 = vsel %vm2714_vm9, %v2686_v3, %v8440_v28  ;;  %vm13420_vm0 = vcmask 572416   ;;  %v3142_v29 = vadd.f32 %v7527_v13, %v11440_v60  ;;  %v7528_v6 = vpop.f32.mrb[10].mxu0  ;;  %v8464_v58 = vpop.permute.xlu1 %8463  ;;  %v9223_v3 = vld [vmem:[#allocation2 + $0x218] sm:$0xff] }
 0x1f3   :  { %v2752_v21 = vsel %vm2714_vm9, %v2687_v23, %v8441_v17  ;;  %v2818_v62 = vsel %vm13420_vm0, %v2753_v46, %v8455_v51  ;;  %vm13421_vm2 = vmmov %vm13420_vm0  ;;  %v849_v0 = vrot.slane %v11673_v5, 2  ;;  %v3134_v8 = vadd.f32 %v11440_v60, %v3133_v11  ;;  %v8459_v38 = vpop.permute.xlu0 %8458  ;;  %v3136_v41 = vpop.f32.mrb[11].mxu0  ;;  %v9225_v11 = vld [vmem:[#allocation2 + $0x230] sm:$0xff] }
 0x1f4   :  { %v2819_v7 = vsel %vm13421_vm2, %v2754_v20, %v8456_v9  ;;  %vm13422_vm6 = vmmov %vm13420_vm0  ;;  %v3366_v42 = vmax.f32 %v3142_v29, 0.0  ;;  %v3145_v18 = vadd.f32 %v7528_v6, %v11440_v60  ;;  %v8466_v40 = vunpack.i.h.bf16 %v8464_v58  ;;  %8753 = vrot.lane.b32.xlu1 %v11252_v15, %s9291_s21 }
 0x1f5   :  { %v2816_v59 = vsel %vm13422_vm6, %v2751_v16, %v8450_v1  ;;  %vm13423_vm8 = vmmov %vm13420_vm0  ;;  %v11702_v52 = vsel %vm480_vm3, %v839_v35, %v840_v4  ;;  %v3364_v49 = vmax.f32 %v3134_v8, 0.0  ;;  %v8461_v55 = vunpack.i.h.bf16 %v8459_v38  ;;  %8748 = vrot.lane.b32.xlu0 %v11209_v57, %s9291_s21  ;;  %v9224_v35 = vld [vmem:[#allocation2 + $0x210] sm:$0xff] }
 0x1f6   :  { %v2817_v48 = vsel %vm13423_vm8, %v2752_v21, %v8451_v33  ;;  %v8460_v43 = vunpack.i.l.bf16 %v8459_v38  ;;  %v3137_v56 = vadd.f32 %v11440_v60, %v3136_v41  ;;  %v3367_v26 = vmax.f32 %v3145_v18, 0.0  ;;  %v8474_v37 = vpop.permute.xlu1 %8473 }
 0x1f7   :  { %vm13424_vm10 = vcmask 80896   ;;  %v8465_v23 = vunpack.i.l.bf16 %v8464_v58  ;;  %v842_v20 = vrot.slane %v11698_v12, 1  ;;  %v3424_v17 = vmax.f32 %v3364_v49, %v3366_v42  ;;  %v8469_v51 = vpop.permute.xlu0 %8468 }
 0x1f8   :  { %v11708_v30 = vsel %vm13424_vm10, %v9223_v3, %v8466_v40  ;;  %v2881_v28 = vsel %vm2844_vm11, %v2816_v59, %v8460_v43  ;;  %v2882_v46 = vsel %vm2844_vm11, %v2817_v48, %v8461_v55  ;;  %v3365_v60 = vmax.f32 %v3137_v56, 0.0  ;;  %8763 = vrot.lane.b32.xlu1 %v11260_v61, %s9292_s22  ;;  %vm13425_vm13 = vmmov %vm13424_vm10  ;;  %v9226_v48 = vld [vmem:[#allocation2 + $0x228] sm:$0xff] }
 0x1f9   :  { %v8476_v16 = vunpack.i.h.bf16 %v8474_v37  ;;  %v8475_v9 = vunpack.i.l.bf16 %v8474_v37  ;;  %v2927_v47 = vpack.c.bf16 %v2882_v46, %v2881_v28  ;;  %v11716_v21 = vsel %vm480_vm3, %v840_v4, %v842_v20  ;;  %vm13426_vm7 = vmmov %vm13424_vm10  ;;  %8758 = vrot.lane.b32.xlu0 %v11216_v14, %s9292_s22 }
 0x1fa   :  { %v3552_v33 = vcombine.high %v3424_v17, %v3424_v17  ;;  %v3559_v1 = vrot.slane %v3424_v17, %v10996_v39  ;;  %v3425_v57 = vmax.f32 %v3365_v60, %v3367_v26  ;;  %v8471_v13 = vunpack.i.h.bf16 %v8469_v51  ;;  %vm13427_vm0 = vmmov %vm13426_vm7  ;;  %v8484_v40 = vpop.permute.xlu1 %8483 }
 0x1fb   :  { %v11722_v29 = vsel %vm13425_vm13, %v9224_v35, %v8465_v23  ;;  %v2433_v59 = vsel %vm13426_vm7, %v9225_v11, %v8476_v16  ;;  %v2432_v8 = vsel %vm13427_vm0, %v9226_v48, %v8475_v9  ;;  %v8470_v4 = vunpack.i.l.bf16 %v8469_v51  ;;  %7553 = vmatprep.mubr.msk.bf16.mxu0 %vm2966_vm12, %v2927_v47  ;;  %v8479_v55 = vpop.permute.xlu0 %8478 }
 0x1fc   :  { %v3566_v6 = vrot.slane %v3552_v33, %v10996_v39  ;;  %v3567_v58 = vcombine.high %v3559_v1, %v3559_v1  ;;  %v7217_v42 = vrot.slane %v3559_v1, 9  ;;  %v3569_v18 = vcombine.high %v3425_v57, %v3425_v57  ;;  %8773 = vrot.lane.b32.xlu1 %v11285_v63, %s9293_s23 }
 0x1fd   :  { %v3576_v38 = vrot.slane %v3425_v57, %v10996_v39  ;;  %v2884_v41 = vsel %vm2844_vm11, %v2819_v7, %v8471_v13  ;;  %v2883_v49 = vsel %vm2844_vm11, %v2818_v62, %v8470_v4  ;;  %v8932_v43 = vpack.i.bf16 %v11716_v21, %v11702_v52  ;;  %8768 = vrot.lane.b32.xlu0 %v11229_v22, %s9293_s23 }
 0x1fe   :  { %v3568_v56 = vcombine.high %v3566_v6, %v3566_v6  ;;  %v7218_v14 = vrot.slane %v3567_v58, 9  ;;  %v7219_v26 = vrot.slane %v3566_v6, 9  ;;  %v4556_v3 = vmax.f32 %v3559_v1, %v7217_v42  ;;  %v8494_v37 = vpop.permute.xlu1 %8493 }
 0x1ff   :  { %v3583_v23 = vrot.slane %v3569_v18, %v10996_v39  ;;  %v3584_v20 = vcombine.high %v3576_v38, %v3576_v38  ;;  %v7221_v17 = vrot.slane %v3576_v38, 9  ;;  %v8485_v28 = vunpack.i.l.bf16 %v8484_v40  ;;  %v8489_v33 = vpop.permute.xlu0 %8488 }
 0x200   :  { %v7220_v62 = vrot.slane %v3568_v56, 9  ;;  %v4557_v7 = vmax.f32 %v3567_v58, %v7218_v14  ;;  %v4558_v46 = vmax.f32 %v3566_v6, %v7219_v26  ;;  %v8486_v60 = vunpack.i.h.bf16 %v8484_v40  ;;  %8783 = vrot.lane.b32.xlu1 %v11229_v22, %s9289_s11 }
 0x201   :  { %v3585_v16 = vcombine.high %v3583_v23, %v3583_v23  ;;  %v7222_v9 = vrot.slane %v3584_v20, 9  ;;  %v7223_v51 = vrot.slane %v3583_v23, 9  ;;  %v4560_v47 = vmax.f32 %v3576_v38, %v7221_v17  ;;  %8778 = vrot.lane.b32.xlu0 %v11252_v15, %s9294_s24 }
 0x202   :  { %v4559_v1 = vmax.f32 %v3568_v56, %v7220_v62  ;;  %v4905_v57 = vrot.slane %v4556_v3, %v11139_v32  ;;  %v4909_v13 = vrot.slane %v4557_v7, %v11139_v32  ;;  %v4913_v35 = vrot.slane %v4558_v46, %v11139_v32  ;;  %v8504_v38 = vpop.permute.xlu1 %8503 }
 0x203   :  { %v7224_v11 = vrot.slane %v3585_v16, 9  ;;  %v4561_v48 = vmax.f32 %v3584_v20, %v7222_v9  ;;  %v4562_v4 = vmax.f32 %v3583_v23, %v7223_v51  ;;  %v2497_v6 = vsel %vm2454_vm5, %v2432_v8, %v8485_v28  ;;  %v8499_v3 = vpop.permute.xlu0 %8498 }
 0x204   :  { %v4917_v58 = vrot.slane %v4559_v1, %v11139_v32  ;;  %v5371_v42 = vsel %vm5350_vm15, %v4909_v13, %v4905_v57  ;;  %v4921_v18 = vrot.slane %v4560_v47, %v11139_v32  ;;  %v8481_v40 = vunpack.i.h.bf16 %v8479_v55  ;;  %8793 = vrot.lane.b32.xlu1 %v11285_v63, %s9289_s11 }
 0x205   :  { %v5372_v56 = vsel %vm5352_vm4, %v4913_v35, %v5371_v42  ;;  %v4563_v14 = vmax.f32 %v3585_v16, %v7224_v11  ;;  %v4925_v22 = vrot.slane %v4561_v48, %v11139_v32  ;;  %v2498_v26 = vsel %vm2454_vm5, %v2433_v59, %v8486_v60  ;;  %8788 = vrot.lane.b32.xlu0 %v11323_v53, %s9294_s24 }
 0x206   :  { %v4929_v8 = vrot.slane %v4562_v4, %v11139_v32  ;;  %v5373_v23 = vsel %vm5354_vm14, %v4917_v58, %v5372_v56  ;;  %v8480_v20 = vunpack.i.l.bf16 %v8479_v55  ;;  %v2928_v17 = vpack.c.bf16 %v2884_v41, %v2883_v49  ;;  %v8514_v55 = vpop.permute.xlu1 %8513 }
 0x207   :  { %v5374_v28 = vsel %vm13389_vm1, %v4921_v18, %v5373_v23  ;;  %v2496_v62 = vsel %vm2454_vm5, %v11708_v30, %v8481_v40  ;;  %v8496_v7 = vunpack.i.h.bf16 %v8494_v37  ;;  %v8495_v46 = vunpack.i.l.bf16 %v8494_v37  ;;  %v8509_v51 = vpop.permute.xlu0 %8508 }
 0x208   :  { %v4933_v59 = vrot.slane %v4563_v14, %v11139_v32  ;;  %vm13428_vm2 = vcmask 1045509   ;;  %7554 = vmatmul.mubr.msk.bf16.gmra.mrb[36].mxu0 %vm2966_vm12, %v2928_v17  ;;  %v8491_v41 = vunpack.i.h.bf16 %v8489_v33  ;;  %v8490_v49 = vunpack.i.l.bf16 %v8489_v33  ;;  %8803 = vrot.lane.b32.xlu1 %v11323_v53, %s9288_s30 }
 0x209   :  { %v5375_v60 = vsel %vm13428_vm2, %v4925_v22, %v5374_v28  ;;  %vm13429_vm6 = vcmask 1046534   ;;  %v2495_v9 = vsel %vm2454_vm5, %v11722_v29, %v8480_v20  ;;  %vm13430_vm8 = vcmask 244736   ;;  %8798 = vrot.lane.b32.xlu0 %v11252_v15, %s9288_s30 }
 0x20a   :  { %v5376_v16 = vsel %vm13429_vm6, %v4929_v8, %v5375_v60  ;;  %v2562_v30 = vsel %vm13430_vm8, %v2497_v6, %v8495_v46  ;;  %v8506_v37 = vunpack.i.h.bf16 %v8504_v38  ;;  %vm13431_vm10 = vcmask 1047559   ;;  %vm13432_vm13 = vmmov %vm13430_vm8  ;;  %v8524_v42 = vpop.permute.xlu1 %8523 }
 0x20b   :  { %v5377_v47 = vsel %vm13431_vm10, %v4933_v59, %v5376_v16  ;;  %v2563_v1 = vsel %vm13432_vm13, %v2498_v26, %v8496_v7  ;;  %vm13433_vm7 = vmmov %vm13430_vm8  ;;  %v8505_v13 = vunpack.i.l.bf16 %v8504_v38  ;;  %vm13434_vm0 = vcmask 261120   ;;  %v8519_v14 = vpop.permute.xlu0 %8518  ;;  %v11801_v59 = vld [vmem:[#allocation3 + $0x10] sm:$0xff] }
 0x20c   :  { %v2560_v57 = vsel %vm13433_vm7, %v2495_v9, %v8490_v49  ;;  %5488 = vst.msk [vmem:[#allocation3 + $0x31] sm:$0xff] %vm13434_vm0, %v5377_v47  ;;  %vm13435_vm2 = vmmov %vm13433_vm7  ;;  %v8501_v35 = vunpack.i.h.bf16 %v8499_v3  ;;  %v8500_v29 = vunpack.i.l.bf16 %v8499_v3  ;;  %v8516_v11 = vunpack.i.h.bf16 %v8514_v55  ;;  %8813 = vrot.lane.b32.xlu1 %v11361_v24, %s9287_s29  ;;  %v11821_v47 = vld [vmem:[%s13365_s2] ss:$0 sm:$0xff] }
 0x20d   :  { %v2561_v33 = vsel %vm13435_vm2, %v2496_v62, %v8491_v41  ;;  %vm13436_vm6 = vcmask 326656   ;;  %v8515_v4 = vunpack.i.l.bf16 %v8514_v55  ;;  %v8511_v6 = vunpack.i.h.bf16 %v8509_v51  ;;  %8808 = vrot.lane.b32.xlu0 %v11260_v61, %s9287_s29  ;;  %v11804_v61 = vld [vmem:[#allocation3 + $0x18] sm:$0x3] }
 0x20e   :  { %v2628_v48 = vsel %vm13436_vm6, %v2563_v1, %v8506_v37  ;;  %v8510_v58 = vunpack.i.l.bf16 %v8509_v51  ;;  %vm13437_vm8 = vmmov %vm13436_vm6  ;;  %v8526_v56 = vunpack.i.h.bf16 %v8524_v42  ;;  %vm13440_vm7 = vcmask 408576   ;;  %v8534_v62 = vpop.permute.xlu1 %8533 }
 0x20f   :  { %v2627_v18 = vsel %vm13437_vm8, %v2562_v30, %v8505_v13  ;;  %vm13438_vm10 = vmmov %vm13436_vm6  ;;  %v8525_v3 = vunpack.i.l.bf16 %v8524_v42  ;;  %v8521_v20 = vunpack.i.h.bf16 %v8519_v14  ;;  %v8520_v17 = vunpack.i.l.bf16 %v8519_v14  ;;  %v8529_v55 = vpop.permute.xlu0 %8528 }
 0x210   :  { %v2625_v40 = vsel %vm13438_vm10, %v2560_v57, %v8500_v29  ;;  %vm13439_vm13 = vmmov %vm13436_vm6  ;;  %v2692_v22 = vsel %vm13440_vm7, %v2627_v18, %v8515_v4  ;;  %vm13444_vm8 = vcmask 1045504   ;;  %v852_v46 = vrot.slane %v11698_v12, 2  ;;  %v7531_v37 = vpop.f32.mrb[12].mxu0  ;;  %8823 = vrot.lane.b32.xlu1 %v11383_v44, %s9290_s20 }
 0x211   :  { %v2626_v38 = vsel %vm13439_vm13, %v2561_v33, %v8501_v35  ;;  %vm13441_vm0 = vmmov %vm13440_vm7  ;;  %v2757_v28 = vsel %vm2714_vm9, %v2692_v22, %v8525_v3  ;;  %v11798_v7 = vsel %vm13444_vm8, %v849_v0, %v850_v50  ;;  %v8536_v41 = vunpack.i.h.bf16 %v8534_v62  ;;  %8818 = vrot.lane.b32.xlu0 %v11285_v63, %s9290_s20  ;;  %v3149_v57 = vpop.f32.mrb[13].mxu0 }
 0x212   :  { %v2693_v26 = vsel %vm13441_vm0, %v2628_v48, %v8516_v11  ;;  %vm13442_vm2 = vmmov %vm13441_vm0  ;;  %v8535_v49 = vunpack.i.l.bf16 %v8534_v62  ;;  %v8531_v9 = vunpack.i.h.bf16 %v8529_v55  ;;  %v8530_v30 = vunpack.i.l.bf16 %v8529_v55  ;;  %v7532_v35 = vpop.f32.mrb[14].mxu0  ;;  %v8544_v29 = vpop.permute.xlu1 %8543 }
 0x213   :  { %v2690_v15 = vsel %vm13442_vm2, %v2625_v40, %v8510_v58  ;;  %vm13443_vm6 = vmmov %vm13441_vm0  ;;  %v2758_v23 = vsel %vm2714_vm9, %v2693_v26, %v8526_v56  ;;  %vm13446_vm13 = vcmask 572416   ;;  %v3158_v1 = vadd.f32 %v11821_v47, %v7531_v37  ;;  %v8539_v63 = vpop.permute.xlu0 %8538  ;;  %v3152_v18 = vpop.f32.mrb[15].mxu0 }
 0x214   :  { %v2691_v8 = vsel %vm13443_vm6, %v2626_v38, %v8511_v6  ;;  %v2755_v60 = vsel %vm2714_vm9, %v2690_v15, %v8520_v17  ;;  %vm13445_vm10 = vmmov %vm13444_vm8  ;;  %v11815_v12 = vsel %vm13446_vm13, %v2757_v28, %v8535_v49  ;;  %v5625_v13 = vrot.slane %v11801_v59, 2  ;;  %8833 = vrot.lane.b32.xlu1 %v11389_v10, %s9291_s21  ;;  %v9228_v15 = vld [vmem:[#allocation2 + $0x248] sm:$0xff] }
 0x215   :  { %v2756_v16 = vsel %vm2714_vm9, %v2691_v8, %v8521_v20  ;;  %v11812_v0 = vsel %vm13445_vm10, %v850_v50, %v852_v46  ;;  %vm13447_vm7 = vmmov %vm13446_vm13  ;;  %v3150_v33 = vadd.f32 %v11821_v47, %v3149_v57  ;;  %v5626_v48 = vrot.slane %v11804_v61, 2  ;;  %v9229_v8 = vld [vmem:[#allocation2 + $0x240] sm:$0xff]  ;;  %8828 = vrot.lane.b32.xlu0 %v11323_v53, %s9291_s21  ;;  %v11855_v57 = vld [vmem:[#allocation3 + $0x28] sm:$0x3] }
 0x216   :  { %v2823_v51 = vsel %vm13447_vm7, %v2758_v23, %v8536_v41  ;;  %vm13448_vm0 = vmmov %vm13447_vm7  ;;  %v8942_v11 = vpack.i.bf16 %v11812_v0, %v11798_v7  ;;  %v3370_v4 = vmax.f32 %v3158_v1, 0.0  ;;  %v3161_v6 = vadd.f32 %v11821_v47, %v7532_v35  ;;  %v8554_v46 = vpop.permute.xlu1 %8553  ;;  %v9231_v35 = vld [vmem:[#allocation2 + $0x258] sm:$0xff] }
 0x217   :  { %v2820_v50 = vsel %vm13448_vm0, %v2755_v60, %v8530_v30  ;;  %v8546_v58 = vunpack.i.h.bf16 %v8544_v29  ;;  %v8545_v42 = vunpack.i.l.bf16 %v8544_v29  ;;  %v3368_v40 = vmax.f32 %v3150_v33, 0.0  ;;  %vm13449_vm2 = vmmov %vm13448_vm0  ;;  %v11847_v60 = vld [vmem:[#allocation3 + $0x20] sm:$0xff]  ;;  %v8549_v55 = vpop.permute.xlu0 %8548 }
 0x218   :  { %v8541_v38 = vunpack.i.h.bf16 %v8539_v63  ;;  %v8540_v56 = vunpack.i.l.bf16 %v8539_v63  ;;  %v3153_v14 = vadd.f32 %v11821_v47, %v3152_v18  ;;  %v2821_v22 = vsel %vm13449_vm2, %v2756_v16, %v8531_v9  ;;  %8843 = vrot.lane.b32.xlu1 %v11398_v54, %s9292_s22 }
 0x219   :  { %v3371_v26 = vmax.f32 %v3161_v6, 0.0  ;;  %vm13450_vm6 = vcmask 80896   ;;  %v3426_v20 = vmax.f32 %v3368_v40, %v3370_v4  ;;  %v8556_v41 = vunpack.i.h.bf16 %v8554_v46  ;;  %8838 = vrot.lane.b32.xlu0 %v11361_v24, %s9292_s22 }
 0x21a   :  { %v11838_v3 = vsel %vm13450_vm6, %v9228_v15, %v8546_v58  ;;  %vm13451_vm8 = vmmov %vm13450_vm6  ;;  %v2885_v17 = vsel %vm2844_vm11, %v2820_v50, %v8540_v56  ;;  %v2886_v28 = vsel %vm2844_vm11, %v2821_v22, %v8541_v38  ;;  %v3369_v62 = vmax.f32 %v3153_v14, 0.0  ;;  %v9230_v50 = vld [vmem:[#allocation2 + $0x260] sm:$0xff]  ;;  %v8564_v63 = vpop.permute.xlu1 %8563 }
 0x21b   :  { %v11841_v23 = vsel %vm13451_vm8, %v9229_v8, %v8545_v42  ;;  %v8555_v49 = vunpack.i.l.bf16 %v8554_v46  ;;  %v2929_v16 = vpack.c.bf16 %v2886_v28, %v2885_v17  ;;  %v11850_v9 = vsel %vm13445_vm10, %v5625_v13, %v5626_v48  ;;  %vm13452_vm13 = vmmov %vm13450_vm6  ;;  %v8559_v56 = vpop.permute.xlu0 %8558 }
 0x21c   :  { %v3586_v30 = vcombine.high %v3426_v20, %v3426_v20  ;;  %v3593_v37 = vrot.slane %v3426_v20, %v10996_v39  ;;  %v3427_v53 = vmax.f32 %v3369_v62, %v3371_v26  ;;  %v8551_v1 = vunpack.i.h.bf16 %v8549_v55  ;;  %vm13453_vm7 = vmmov %vm13450_vm6  ;;  %8853 = vrot.lane.b32.xlu1 %v11410_v25, %s9293_s23 }
 0x21d   :  { %v2437_v33 = vsel %vm13452_vm13, %v9230_v50, %v8556_v41  ;;  %v2436_v29 = vsel %vm13453_vm7, %v9231_v35, %v8555_v49  ;;  %v8550_v4 = vunpack.i.l.bf16 %v8549_v55  ;;  %7557 = vmatprep.mubr.msk.bf16.mxu0 %vm2966_vm12, %v2929_v16  ;;  %v5628_v13 = vrot.slane %v11847_v60, 2  ;;  %8848 = vrot.lane.b32.xlu0 %v11383_v44, %s9293_s23 }
 0x21e   :  { %v3600_v48 = vrot.slane %v3586_v30, %v10996_v39  ;;  %v3601_v6 = vcombine.high %v3593_v37, %v3593_v37  ;;  %v7225_v58 = vrot.slane %v3593_v37, 9  ;;  %v3603_v42 = vcombine.high %v3427_v53, %v3427_v53  ;;  %v8574_v41 = vpop.permute.xlu1 %8573 }
 0x21f   :  { %v3610_v18 = vrot.slane %v3427_v53, %v10996_v39  ;;  %v2888_v40 = vsel %vm2844_vm11, %v2823_v51, %v8551_v1  ;;  %v2887_v38 = vsel %vm2844_vm11, %v11815_v12, %v8550_v4  ;;  %v5629_v24 = vrot.slane %v11855_v57, 2 }
 0x220   :  { %v3602_v14 = vcombine.high %v3600_v48, %v3600_v48  ;;  %v7226_v22 = vrot.slane %v3601_v6, 9  ;;  %v7227_v26 = vrot.slane %v3600_v48, 9  ;;  %v4564_v15 = vmax.f32 %v3593_v37, %v7225_v58  ;;  %v8569_v37 = vpop.permute.xlu0 %8568  ;;  %8863 = vrot.lane.b32.xlu1 %v11383_v44, %s9289_s11 }
 0x221   :  { %v3617_v8 = vrot.slane %v3603_v42, %v10996_v39  ;;  %v3618_v20 = vcombine.high %v3610_v18, %v3610_v18  ;;  %v7229_v17 = vrot.slane %v3610_v18, 9  ;;  %v8565_v28 = vunpack.i.l.bf16 %v8564_v63  ;;  %8858 = vrot.lane.b32.xlu0 %v11389_v10, %s9294_s24 }
 0x222   :  { %v7228_v51 = vrot.slane %v3602_v14, 9  ;;  %v4565_v12 = vmax.f32 %v3601_v6, %v7226_v22  ;;  %v4566_v62 = vmax.f32 %v3600_v48, %v7227_v26  ;;  %v8566_v46 = vunpack.i.h.bf16 %v8564_v63  ;;  %v8584_v22 = vpop.permute.xlu1 %8583 }
 0x223   :  { %v3619_v49 = vcombine.high %v3617_v8, %v3617_v8  ;;  %v7230_v55 = vrot.slane %v3618_v20, 9  ;;  %v7231_v16 = vrot.slane %v3617_v8, 9  ;;  %v4568_v30 = vmax.f32 %v3610_v18, %v7229_v17 }
 0x224   :  { %v4567_v53 = vmax.f32 %v3602_v14, %v7228_v51  ;;  %v4937_v1 = vrot.slane %v4564_v15, %v11139_v32  ;;  %v4941_v50 = vrot.slane %v4565_v12, %v11139_v32  ;;  %v4945_v35 = vrot.slane %v4566_v62, %v11139_v32  ;;  %8873 = vrot.lane.b32.xlu1 %v11410_v25, %s9289_s11  ;;  %s9298_s11 = smov 96  }
 0x225   :  { %v7232_v4 = vrot.slane %v3619_v49, 9  ;;  %v4569_v6 = vmax.f32 %v3618_v20, %v7230_v55  ;;  %v4570_v48 = vmax.f32 %v3617_v8, %v7231_v16  ;;  %v2501_v58 = vsel %vm2454_vm5, %v2436_v29, %v8565_v28  ;;  %v8579_v20 = vpop.permute.xlu0 %8578  ;;  %8868 = vrot.lane.b32.xlu0 %v11445_v2, %s9294_s24 }
 0x226   :  { %v4949_v42 = vrot.slane %v4567_v53, %v11139_v32  ;;  %v5378_v63 = vsel %vm5350_vm15, %v4941_v50, %v4937_v1  ;;  %v4953_v18 = vrot.slane %v4568_v30, %v11139_v32  ;;  %v8561_v14 = vunpack.i.h.bf16 %v8559_v56 }
 0x227   :  { %v5379_v26 = vsel %vm5352_vm4, %v4945_v35, %v5378_v63  ;;  %v4571_v15 = vmax.f32 %v3619_v49, %v7232_v4  ;;  %v4957_v44 = vrot.slane %v4569_v6, %v11139_v32  ;;  %v2502_v8 = vsel %vm2454_vm5, %v2437_v33, %v8566_v46 }
 0x228   :  { %v4961_v29 = vrot.slane %v4570_v48, %v11139_v32  ;;  %v5380_v17 = vsel %vm5354_vm14, %v4949_v42, %v5379_v26  ;;  %v8560_v28 = vunpack.i.l.bf16 %v8559_v56  ;;  %v2930_v51 = vpack.c.bf16 %v2888_v40, %v2887_v38  ;;  %v8594_v56 = vpop.permute.xlu1 %8593  ;;  %8883 = vrot.lane.b32.xlu1 %v11445_v2, %s9288_s30 }
 0x229   :  { %v5381_v12 = vsel %vm13389_vm1, %v4953_v18, %v5380_v17  ;;  %v2500_v62 = vsel %vm2454_vm5, %v11838_v3, %v8561_v14  ;;  %v8576_v49 = vunpack.i.h.bf16 %v8574_v41  ;;  %v8575_v55 = vunpack.i.l.bf16 %v8574_v41  ;;  %v8589_v53 = vpop.permute.xlu0 %8588  ;;  %8878 = vrot.lane.b32.xlu0 %v11389_v10, %s9288_s30  ;;  %s9297_s30 = smov 64  }
 0x22a   :  { %v4965_v33 = vrot.slane %v4571_v15, %v11139_v32  ;;  %vm13454_vm0 = vcmask 1045509   ;;  %7558 = vmatmul.mubr.msk.bf16.gmra.mrb[40].mxu0 %vm2966_vm12, %v2930_v51  ;;  %v8571_v40 = vunpack.i.h.bf16 %v8569_v37  ;;  %v8570_v38 = vunpack.i.l.bf16 %v8569_v37 }
 0x22b   :  { %v5382_v46 = vsel %vm13454_vm0, %v4957_v44, %v5381_v12  ;;  %vm13455_vm2 = vcmask 1046534   ;;  %v2499_v30 = vsel %vm2454_vm5, %v11841_v23, %v8560_v28  ;;  %vm13456_vm6 = vcmask 244736  }
 0x22c   :  { %v5383_v16 = vsel %vm13455_vm2, %v4961_v29, %v5382_v46  ;;  %v2566_v3 = vsel %vm13456_vm6, %v2501_v58, %v8575_v55  ;;  %v8586_v41 = vunpack.i.h.bf16 %v8584_v22  ;;  %vm13457_vm8 = vcmask 1047559   ;;  %vm13458_vm10 = vmmov %vm13456_vm6  ;;  %v8604_v14 = vpop.permute.xlu1 %8603  ;;  %8893 = vrot.lane.b32.xlu1 %v11482_v27, %s9287_s29 }
 0x22d   :  { %v5384_v1 = vsel %vm13457_vm8, %v4965_v33, %v5383_v16  ;;  %v2567_v50 = vsel %vm13458_vm10, %v2502_v8, %v8576_v49  ;;  %vm13459_vm13 = vmmov %vm13456_vm6  ;;  %v8585_v4 = vunpack.i.l.bf16 %v8584_v22  ;;  %vm13460_vm7 = vcmask 261120   ;;  %v8599_v8 = vpop.permute.xlu0 %8598  ;;  %8888 = vrot.lane.b32.xlu0 %v11398_v54, %s9287_s29  ;;  %s9296_s29 = smov 32  }
 0x22e   :  { %v2564_v35 = vsel %vm13459_vm13, %v2499_v30, %v8570_v38  ;;  %5489 = vst.msk [vmem:[#allocation3 + $0x41] sm:$0xff] %vm13460_vm7, %v5384_v1  ;;  %vm13461_vm0 = vmmov %vm13456_vm6  ;;  %v8581_v6 = vunpack.i.h.bf16 %v8579_v20  ;;  %v8580_v23 = vunpack.i.l.bf16 %v8579_v20  ;;  %v8596_v48 = vunpack.i.h.bf16 %v8594_v56  ;;  %v11936_v38 = vld [vmem:[#allocation3 + $0x30] sm:$0xff] }
 0x22f   :  { %v2565_v37 = vsel %vm13461_vm0, %v2500_v62, %v8571_v40  ;;  %vm13462_vm2 = vcmask 326656   ;;  %v8595_v42 = vunpack.i.l.bf16 %v8594_v56  ;;  %v8591_v63 = vunpack.i.h.bf16 %v8589_v53 }
 0x230   :  { %v2632_v58 = vsel %vm13462_vm2, %v2567_v50, %v8586_v41  ;;  %v8590_v18 = vunpack.i.l.bf16 %v8589_v53  ;;  %vm13463_vm6 = vmmov %vm13462_vm2  ;;  %v8606_v44 = vunpack.i.h.bf16 %v8604_v14  ;;  %vm13466_vm13 = vcmask 408576   ;;  %v8614_v33 = vpop.permute.xlu1 %8613  ;;  %v7535_v53 = vpop.f32.mrb[16].mxu0  ;;  %8903 = vrot.lane.b32.xlu1 %v11585_v34, %s9290_s20 }
 0x231   :  { %v2631_v22 = vsel %vm13463_vm6, %v2566_v3, %v8585_v4  ;;  %vm13464_vm8 = vmmov %vm13462_vm2  ;;  %v8605_v17 = vunpack.i.l.bf16 %v8604_v14  ;;  %v8601_v51 = vunpack.i.h.bf16 %v8599_v8  ;;  %v8600_v12 = vunpack.i.l.bf16 %v8599_v8  ;;  %v8609_v30 = vpop.permute.xlu0 %8608  ;;  %8898 = vrot.lane.b32.xlu0 %v11410_v25, %s9290_s20  ;;  %v3165_v4 = vpop.f32.mrb[17].mxu0 }
 0x232   :  { %v2629_v26 = vsel %vm13464_vm8, %v2564_v35, %v8580_v23  ;;  %vm13465_vm10 = vmmov %vm13462_vm2  ;;  %v2696_v20 = vsel %vm13466_vm13, %v2631_v22, %v8595_v42  ;;  %vm13470_vm6 = vcmask 1045504   ;;  %v5577_v46 = vrot.slane %v11801_v59, 1 }
 0x233   :  { %v2630_v15 = vsel %vm13465_vm10, %v2565_v37, %v8581_v6  ;;  %vm13467_vm7 = vmmov %vm13466_vm13  ;;  %v11930_v62 = vsel %vm13470_vm6, %v5628_v13, %v5629_v24  ;;  %v2761_v49 = vsel %vm2714_vm9, %v2696_v20, %v8605_v17  ;;  %v5578_v40 = vrot.slane %v11804_v61, 1 }
 0x234   :  { %v2697_v29 = vsel %vm13467_vm7, %v2632_v58, %v8596_v48  ;;  %vm13468_vm0 = vmmov %vm13467_vm7  ;;  %v8616_v56 = vunpack.i.h.bf16 %v8614_v33  ;;  %v8615_v16 = vunpack.i.l.bf16 %v8614_v33  ;;  %v8947_v13 = vpack.i.bf16 %v11930_v62, %v11850_v9  ;;  %v7536_v58 = vpop.f32.mrb[18].mxu0  ;;  %v8624_v42 = vpop.permute.xlu1 %8623  ;;  %8913 = vrot.lane.b32.xlu1 %v11616_v36, %s9291_s21 }
 0x235   :  { %v2694_v10 = vsel %vm13468_vm0, %v2629_v26, %v8590_v18  ;;  %vm13469_vm2 = vmmov %vm13468_vm0  ;;  %v2762_v55 = vsel %vm2714_vm9, %v2697_v29, %v8606_v44  ;;  %v8611_v3 = vunpack.i.h.bf16 %v8609_v30  ;;  %v8610_v41 = vunpack.i.l.bf16 %v8609_v30  ;;  %v8619_v25 = vpop.permute.xlu0 %8618  ;;  %v3168_v26 = vpop.f32.mrb[19].mxu0  ;;  %8908 = vrot.lane.b32.xlu0 %v11445_v2, %s9291_s21 }
 0x236   :  { %v2695_v28 = vsel %vm13469_vm2, %v2630_v15, %v8591_v63  ;;  %v2759_v54 = vsel %vm2714_vm9, %v2694_v10, %v8600_v12  ;;  %v11945_v61 = vsel %vm480_vm3, %v5577_v46, %v5578_v40  ;;  %vm13471_vm8 = vcmask 572416   ;;  %v13475_v15 = vld [vmem:[#allocation7_spill] sm:$0xff] }
 0x237   :  { %v2760_v24 = vsel %vm2714_vm9, %v2695_v28, %v8601_v51  ;;  %v2826_v1 = vsel %vm13471_vm8, %v2761_v49, %v8615_v16  ;;  %vm13472_vm10 = vmmov %vm13471_vm8  ;;  %v3174_v35 = vadd.f32 %v11821_v47, %v7535_v53  ;;  %v8957_v37 = vpack.i.bf16 %v11936_v38, %v11847_v60  ;;  %v9232_v28 = vld [vmem:[#allocation2 + $0x278] sm:$0xff] }
 0x238   :  { %v2827_v50 = vsel %vm13472_vm10, %v2762_v55, %v8616_v56  ;;  %vm13473_vm13 = vmmov %vm13471_vm8  ;;  %v3166_v48 = vadd.f32 %v11821_v47, %v3165_v4  ;;  %v8952_v63 = vpack.i.bf16 %v11945_v61, %v11373_v45  ;;  %v3177_v14 = vadd.f32 %v11821_v47, %v7536_v58  ;;  %8923 = vrot.lane.b32.xlu1 %v8922_v19, %s9292_s22  ;;  %v9233_v4 = vld [vmem:[#allocation2 + $0x270] sm:$0xff]  ;;  %v9235_v58 = vld [vmem:[#allocation2 + $0x288] sm:$0xff] }
 0x239   :  { %v2824_v6 = vsel %vm13473_vm13, %v2759_v54, %v8610_v41  ;;  %vm13474_vm7 = vmmov %vm13471_vm8  ;;  %v3374_v18 = vmax.f32 %v3174_v35, 0.0  ;;  %v8626_v22 = vunpack.i.h.bf16 %v8624_v42  ;;  %v8962_v44 = vpack.i.bf16 %v11850_v9, %v13475_v15  ;;  %v8634_v54 = vpop.permute.xlu1 %8633  ;;  %v8629_v30 = vpop.permute.xlu0 %8628  ;;  %8918 = vrot.lane.b32.xlu0 %v11482_v27, %s9292_s22 }
 0x23a   :  { %v2825_v23 = vsel %vm13474_vm7, %v2760_v24, %v8611_v3  ;;  %v3372_v8 = vmax.f32 %v3166_v48, 0.0  ;;  %v8621_v20 = vunpack.i.h.bf16 %v8619_v25  ;;  %v8620_v29 = vunpack.i.l.bf16 %v8619_v25 }
 0x23b   :  { %v3169_v10 = vadd.f32 %v11821_v47, %v3168_v26  ;;  %v3375_v17 = vmax.f32 %v3177_v14, 0.0  ;;  %vm13476_vm0 = vcmask 80896   ;;  %v8625_v12 = vunpack.i.l.bf16 %v8624_v42 }
 0x23c   :  { %v11966_v51 = vsel %vm13476_vm0, %v9232_v28, %v8626_v22  ;;  %v5580_v49 = vrot.slane %v11847_v60, 1  ;;  %v3428_v55 = vmax.f32 %v3372_v8, %v3374_v18  ;;  %v2889_v33 = vsel %vm2844_vm11, %v2824_v6, %v8620_v29  ;;  %vm13477_vm2 = vmmov %vm13476_vm0  ;;  %8933 = vrot.lane.b32.xlu1 %v8932_v43, %s9293_s23 }
 0x23d   :  { %v2890_v46 = vsel %vm2844_vm11, %v2825_v23, %v8621_v20  ;;  %v3373_v40 = vmax.f32 %v3169_v10, 0.0  ;;  %v8636_v56 = vunpack.i.h.bf16 %v8634_v54  ;;  %v8635_v16 = vunpack.i.l.bf16 %v8634_v54  ;;  %v9234_v23 = vld [vmem:[#allocation2 + $0x290] sm:$0xff]  ;;  %vm13478_vm6 = vmmov %vm13476_vm0  ;;  %v8644_v14 = vpop.permute.xlu1 %8643  ;;  %v8639_v8 = vpop.permute.xlu0 %8638  ;;  %8928 = vrot.lane.b32.xlu0 %v11585_v34, %s9293_s23 }
 0x23e   :  { %v2931_v24 = vpack.c.bf16 %v2890_v46, %v2889_v33  ;;  %v5581_v3 = vrot.slane %v11855_v57, 1  ;;  %v3620_v41 = vcombine.high %v3428_v55, %v3428_v55  ;;  %v3627_v53 = vrot.slane %v3428_v55, %v10996_v39  ;;  %vm13479_vm8 = vmmov %vm13476_vm0 }
 0x23f   :  { %v3429_v35 = vmax.f32 %v3373_v40, %v3375_v17  ;;  %v8631_v2 = vunpack.i.h.bf16 %v8629_v30  ;;  %v11980_v6 = vsel %vm13477_vm2, %v9233_v4, %v8625_v12  ;;  %v2441_v48 = vsel %vm13478_vm6, %v9234_v23, %v8636_v56 }
 0x240   :  { %v2440_v57 = vsel %vm13479_vm8, %v9235_v58, %v8635_v16  ;;  %v8630_v42 = vunpack.i.l.bf16 %v8629_v30  ;;  %7561 = vmatprep.mubr.msk.bf16.mxu0 %vm2966_vm12, %v2931_v24  ;;  %v3634_v18 = vrot.slane %v3620_v41, %v10996_v39  ;;  %v3635_v31 = vcombine.high %v3627_v53, %v3627_v53  ;;  %8943 = vrot.lane.b32.xlu1 %v8942_v11, %s9294_s24 }
 0x241   :  { %v7233_v5 = vrot.slane %v3627_v53, 9  ;;  %v3637_v19 = vcombine.high %v3429_v35, %v3429_v35  ;;  %v3644_v22 = vrot.slane %v3429_v35, %v10996_v39  ;;  %v2892_v25 = vsel %vm2844_vm11, %v2827_v50, %v8631_v2  ;;  %v8654_v40 = vpop.permute.xlu1 %8653  ;;  %v8649_v24 = vpop.permute.xlu0 %8648  ;;  %8938 = vrot.lane.b32.xlu0 %v11616_v36, %s9294_s24 }
 0x242   :  { %v2891_v26 = vsel %vm2844_vm11, %v2826_v1, %v8630_v42  ;;  %v11992_v20 = vsel %vm480_vm3, %v5580_v49, %v5581_v3  ;;  %v3636_v29 = vcombine.high %v3634_v18, %v3634_v18  ;;  %v7234_v27 = vrot.slane %v3635_v31, 9 }
 0x243   :  { %v7235_v10 = vrot.slane %v3634_v18, 9  ;;  %v4572_v17 = vmax.f32 %v3627_v53, %v7233_v5  ;;  %v3651_v28 = vrot.slane %v3637_v19, %v10996_v39  ;;  %v3652_v12 = vcombine.high %v3644_v22, %v3644_v22 }
 0x244   :  { %v7237_v55 = vrot.slane %v3644_v22, 9  ;;  %v8645_v50 = vunpack.i.l.bf16 %v8644_v14  ;;  %v7236_v1 = vrot.slane %v3636_v29, 9  ;;  %v4573_v49 = vmax.f32 %v3635_v31, %v7234_v27  ;;  %8953 = vrot.lane.b32.xlu1 %v8952_v63, %s9296_s29 }
 0x245   :  { %v4574_v33 = vmax.f32 %v3634_v18, %v7235_v10  ;;  %v8646_v46 = vunpack.i.h.bf16 %v8644_v14  ;;  %v3653_v54 = vcombine.high %v3651_v28, %v3651_v28  ;;  %v7238_v56 = vrot.slane %v3652_v12, 9  ;;  %v8664_v42 = vpop.permute.xlu1 %8663  ;;  %v8659_v31 = vpop.permute.xlu0 %8658  ;;  %8948 = vrot.lane.b32.xlu0 %v8947_v13, %s9296_s29 }
 0x246   :  { %v7239_v16 = vrot.slane %v3651_v28, 9  ;;  %v4576_v30 = vmax.f32 %v3644_v22, %v7237_v55  ;;  %v4575_v52 = vmax.f32 %v3636_v29, %v7236_v1  ;;  %v4969_v21 = vrot.slane %v4572_v17, %v11139_v32 }
 0x247   :  { %v4973_v43 = vrot.slane %v4573_v49, %v11139_v32  ;;  %v4977_v3 = vrot.slane %v4574_v33, %v11139_v32  ;;  %v7240_v34 = vrot.slane %v3653_v54, 9  ;;  %v4577_v41 = vmax.f32 %v3652_v12, %v7238_v56 }
 0x248   :  { %v4578_v53 = vmax.f32 %v3651_v28, %v7239_v16  ;;  %v2505_v35 = vsel %vm2454_vm5, %v2440_v57, %v8645_v50  ;;  %v4981_v2 = vrot.slane %v4575_v52, %v11139_v32  ;;  %v4985_v23 = vrot.slane %v4576_v30, %v11139_v32  ;;  %8963 = vrot.lane.b32.xlu1 %v8962_v44, %s9297_s30  ;;  %v5509_v52 = vld [vmem:[#allocation3 + $0x38] sm:$0x3] }
 0x249   :  { %v5385_v4 = vsel %vm5350_vm15, %v4973_v43, %v4969_v21  ;;  %v8641_v58 = vunpack.i.h.bf16 %v8639_v8  ;;  %v4579_v7 = vmax.f32 %v3653_v54, %v7240_v34  ;;  %v4989_v0 = vrot.slane %v4577_v41, %v11139_v32  ;;  %v8669_v28 = vpop.permute.xlu0 %8668  ;;  %8958 = vrot.lane.b32.xlu0 %v8957_v37, %s9297_s30 }
 0x24a   :  { %v5386_v18 = vsel %vm5352_vm4, %v4977_v3, %v5385_v4  ;;  %v2506_v11 = vsel %vm2454_vm5, %v2441_v48, %v8646_v46  ;;  %v4993_v57 = vrot.slane %v4578_v53, %v11139_v32  ;;  %v8640_v5 = vunpack.i.l.bf16 %v8639_v8  ;;  %v8674_v8 = vpop.permute.xlu1 %8673 }
 0x24b   :  { %v5387_v36 = vsel %vm5354_vm14, %v4981_v2, %v5386_v18  ;;  %v2932_v19 = vpack.c.bf16 %v2892_v25, %v2891_v26  ;;  %v2504_v22 = vsel %vm2454_vm5, %v11966_v51, %v8641_v58  ;;  %v8656_v29 = vunpack.i.h.bf16 %v8654_v40 }
 0x24c   :  { %v5388_v14 = vsel %vm13389_vm1, %v4985_v23, %v5387_v36  ;;  %v8655_v48 = vunpack.i.l.bf16 %v8654_v40  ;;  %v4997_v25 = vrot.slane %v4579_v7, %v11139_v32  ;;  %vm13480_vm10 = vcmask 1045509  }
 0x24d   :  { %v5389_v26 = vsel %vm13480_vm10, %v4989_v0, %v5388_v14  ;;  %7562 = vmatmul.mubr.msk.bf16.gmra.mrb[44].mxu0 %vm2966_vm12, %v2932_v19  ;;  %v8651_v45 = vunpack.i.h.bf16 %v8649_v24  ;;  %v8650_v63 = vunpack.i.l.bf16 %v8649_v24  ;;  %vm13481_vm13 = vcmask 1046534   ;;  %v8679_v24 = vpop.permute.xlu0 %8678  ;;  %v12072_v19 = vld [vmem:[#allocation3 + $0x48] sm:$0x3] }
 0x24e   :  { %v5390_v27 = vsel %vm13481_vm13, %v4993_v57, %v5389_v26  ;;  %v2503_v51 = vsel %vm2454_vm5, %v11980_v6, %v8640_v5  ;;  %vm13482_vm7 = vcmask 244736   ;;  %v8666_v17 = vunpack.i.h.bf16 %v8664_v42  ;;  %v8684_v16 = vpop.permute.xlu1 %8683 }
 0x24f   :  { %v2570_v10 = vsel %vm13482_vm7, %v2505_v35, %v8655_v48  ;;  %vm13483_vm0 = vcmask 1047559   ;;  %vm13484_vm2 = vmmov %vm13482_vm7  ;;  %v8665_v50 = vunpack.i.l.bf16 %v8664_v42  ;;  %vm13486_vm8 = vcmask 261120  }
 0x250   :  { %v5391_v13 = vsel %vm13483_vm0, %v4997_v25, %v5390_v27  ;;  %v2571_v12 = vsel %vm13484_vm2, %v2506_v11, %v8656_v29  ;;  %vm13485_vm6 = vmmov %vm13484_vm2  ;;  %v8661_v1 = vunpack.i.h.bf16 %v8659_v31  ;;  %v8660_v49 = vunpack.i.l.bf16 %v8659_v31 }
 0x251   :  { %v2568_v55 = vsel %vm13485_vm6, %v2503_v51, %v8650_v63  ;;  %5490 = vst.msk [vmem:[#allocation3 + $0x51] sm:$0xff] %vm13486_vm8, %v5391_v13  ;;  %vm13487_vm10 = vmmov %vm13484_vm2  ;;  %v8676_v33 = vunpack.i.h.bf16 %v8674_v8  ;;  %vm13488_vm13 = vcmask 326656   ;;  %v8675_v40 = vunpack.i.l.bf16 %v8674_v8  ;;  %v8689_v31 = vpop.permute.xlu0 %8688 }
 0x252   :  { %v2569_v6 = vsel %vm13487_vm10, %v2504_v22, %v8651_v45  ;;  %v2636_v46 = vsel %vm13488_vm13, %v2571_v12, %v8666_v17  ;;  %v8671_v54 = vunpack.i.h.bf16 %v8669_v28  ;;  %v8670_v56 = vunpack.i.l.bf16 %v8669_v28  ;;  %vm13489_vm7 = vmmov %vm13488_vm13  ;;  %v8694_v58 = vpop.permute.xlu1 %8693 }
 0x253   :  { %v2635_v9 = vsel %vm13489_vm7, %v2570_v10, %v8665_v50  ;;  %vm13490_vm0 = vmmov %vm13489_vm7  ;;  %v8686_v30 = vunpack.i.h.bf16 %v8684_v16  ;;  %vm13492_vm6 = vcmask 408576   ;;  %v8685_v3 = vunpack.i.l.bf16 %v8684_v16 }
 0x254   :  { %v2633_v15 = vsel %vm13490_vm0, %v2568_v55, %v8660_v49  ;;  %vm13491_vm2 = vmmov %vm13490_vm0  ;;  %v2700_v21 = vsel %vm13492_vm6, %v2635_v9, %v8675_v40  ;;  %v8681_v41 = vunpack.i.h.bf16 %v8679_v24  ;;  %v8680_v53 = vunpack.i.l.bf16 %v8679_v24  ;;  %v9236_v24 = vld [vmem:[#allocation2 + $0x2a8] sm:$0xff] }
 0x255   :  { %v2634_v44 = vsel %vm13491_vm2, %v2569_v6, %v8661_v1  ;;  %vm13493_vm8 = vmmov %vm13492_vm6  ;;  %v5583_v35 = vrot.slane %v11936_v38, 1  ;;  %v5584_v4 = vrot.slane %v5509_v52, 1  ;;  %v8972_v23 = vpack.i.bf16 %v11847_v60, %v11801_v59  ;;  %v7539_v59 = vpop.f32.mrb[20].mxu0  ;;  %v12070_v60 = vld [vmem:[#allocation3 + $0x40] sm:$0xff]  ;;  %v8699_v12 = vpop.permute.xlu0 %8698 }
 0x256   :  { %v2701_v43 = vsel %vm13493_vm8, %v2636_v46, %v8676_v33  ;;  %vm13494_vm10 = vmmov %vm13492_vm6  ;;  %v5631_v42 = vrot.slane %v11936_v38, 2  ;;  %v2765_v18 = vsel %vm2714_vm9, %v2700_v21, %v8685_v3  ;;  %v8696_v0 = vunpack.i.h.bf16 %v8694_v58  ;;  %v3181_v26 = vpop.f32.mrb[21].mxu0  ;;  %v8704_v10 = vpop.permute.xlu1 %8703 }
 0x257   :  { %v2698_v37 = vsel %vm13494_vm10, %v2633_v15, %v8670_v56  ;;  %vm13495_vm13 = vmmov %vm13492_vm6  ;;  %v2766_v2 = vsel %vm2714_vm9, %v2701_v43, %v8686_v30  ;;  %v8695_v11 = vunpack.i.l.bf16 %v8694_v58  ;;  %v12067_v36 = vsel %vm480_vm3, %v5583_v35, %v5584_v4  ;;  %8973 = vrot.lane.b32.xlu1 %v8972_v23, %s9298_s11  ;;  %v7540_v51 = vpop.f32.mrb[22].mxu0 }
 0x258   :  { %v2699_v34 = vsel %vm13495_vm13, %v2634_v44, %v8671_v54  ;;  %v2763_v7 = vsel %vm2714_vm9, %v2698_v37, %v8680_v53  ;;  %v8690_v5 = vunpack.i.l.bf16 %v8689_v31  ;;  %v5632_v14 = vrot.slane %v5509_v52, 2  ;;  %v3184_v55 = vpop.f32.mrb[23].mxu0  ;;  %v12100_v44 = vld [vmem:[#allocation3 + $0x50] sm:$0xff] }
 0x259   :  { %v2764_v57 = vsel %vm2714_vm9, %v2699_v34, %v8681_v41  ;;  %v8967_v22 = vpack.i.bf16 %v12067_v36, %v11992_v20  ;;  %vm13496_vm7 = vcmask 572416   ;;  %v8691_v48 = vunpack.i.h.bf16 %v8689_v31  ;;  %v8709_v37 = vpop.permute.xlu0 %8708  ;;  %v9237_v41 = vld [vmem:[#allocation2 + $0x2a0] sm:$0xff] }
 0x25a   :  { %v12077_v29 = vsel %vm13496_vm7, %v2765_v18, %v8695_v11  ;;  %v3190_v25 = vadd.f32 %v11821_v47, %v7539_v59  ;;  %vm13497_vm0 = vmmov %vm13496_vm7  ;;  %v3182_v8 = vadd.f32 %v11821_v47, %v3181_v26  ;;  %vm13499_vm6 = vcmask 1045504   ;;  %v12102_v30 = vpop.permute.xlu1 %8713  ;;  %v9238_v59 = vld [vmem:[#allocation2 + $0x2b8] sm:$0xff] }
 0x25b   :  { %v12081_v45 = vsel %vm13497_vm0, %v2766_v2, %v8696_v0  ;;  %vm13498_vm2 = vmmov %vm13497_vm0  ;;  %v12086_v27 = vsel %vm13499_vm6, %v5631_v42, %v5632_v14  ;;  %8968 = vrot.lane.b32.xlu0 %v8967_v22, %s9298_s11  ;;  %v5634_v28 = vrot.slane %v12070_v60, 2  ;;  %v5635_v13 = vrot.slane %v12072_v19, 2  ;;  %8983 = vrot.lane.b32.xlu1 %v8967_v22, %s9296_s29 }
 0x25c   :  { %v2828_v63 = vsel %vm13498_vm2, %v2763_v7, %v8690_v5  ;;  %v3378_v17 = vmax.f32 %v3190_v25, 0.0  ;;  %v3376_v50 = vmax.f32 %v3182_v8, 0.0  ;;  %v3193_v6 = vadd.f32 %v11821_v47, %v7540_v51  ;;  %vm13500_vm8 = vmmov %vm13499_vm6 }
 0x25d   :  { %v8706_v1 = vunpack.i.h.bf16 %v8704_v10  ;;  %v8705_v49 = vunpack.i.l.bf16 %v8704_v10  ;;  %v12093_v33 = vsel %vm13500_vm8, %v5634_v28, %v5635_v13  ;;  %v8701_v46 = vunpack.i.h.bf16 %v8699_v12  ;;  %vm13501_vm10 = vmmov %vm13497_vm0  ;;  %v12129_v22 = vpop.permute.xlu0 %8718 }
 0x25e   :  { %v8700_v40 = vunpack.i.l.bf16 %v8699_v12  ;;  %v3185_v54 = vadd.f32 %v11821_v47, %v3184_v55  ;;  %v2829_v56 = vsel %vm13501_vm10, %v2764_v57, %v8691_v48  ;;  %v3430_v16 = vmax.f32 %v3376_v50, %v3378_v17  ;;  %v12121_v11 = vpop.permute.xlu1 %8723 }
 0x25f   :  { %v8977_v9 = vpack.i.bf16 %v12093_v33, %v12086_v27  ;;  %v3379_v15 = vmax.f32 %v3193_v6, 0.0  ;;  %vm13502_vm13 = vcmask 80896   ;;  %v2894_v43 = vsel %vm2844_vm11, %v2829_v56, %v8701_v46 }
 0x260   :  { %v12105_v52 = vsel %vm13502_vm13, %v9236_v24, %v8706_v1  ;;  %v2893_v21 = vsel %vm2844_vm11, %v2828_v63, %v8700_v40  ;;  %v3377_v47 = vmax.f32 %v3185_v54, 0.0  ;;  %v3654_v3 = vcombine.high %v3430_v16, %v3430_v16  ;;  %vm13503_vm7 = vmmov %vm13502_vm13 }
 0x261   :  { %v3661_v34 = vrot.slane %v3430_v16, %v10996_v39  ;;  %8978 = vrot.lane.b32.xlu0 %v8977_v9, %s9296_s29  ;;  %v12112_v53 = vsel %vm13503_vm7, %v9237_v41, %v8705_v49  ;;  %v2933_v35 = vpack.c.bf16 %v2894_v43, %v2893_v21  ;;  %v8987_v4 = vpack.i.bf16 %v12100_v44, %v12070_v60  ;;  %vm13504_vm0 = vmmov %vm13503_vm7  ;;  %v12138_v40 = vpop.permute.xlu0 %8728 }
 0x262   :  { %v3431_v2 = vmax.f32 %v3377_v47, %v3379_v15  ;;  %v8992_v23 = vpack.i.bf16 %v12086_v27, %v11930_v62  ;;  %v8715_v58 = vunpack.i.l.bf16 %v12102_v30  ;;  %v3668_v42 = vrot.slane %v3654_v3, %v10996_v39  ;;  %v12136_v50 = vpop.permute.xlu1 %8733  ;;  %vm13508_vm10 = vmmov %vm13504_vm0 }
 0x263   :  { %v3669_v18 = vcombine.high %v3661_v34, %v3661_v34  ;;  %v7241_v7 = vrot.slane %v3661_v34, 9  ;;  %v8711_v0 = vunpack.i.h.bf16 %v8709_v37  ;;  %7565 = vmatprep.mubr.msk.bf16.mxu0 %vm2966_vm12, %v2933_v35  ;;  %v8716_v5 = vunpack.i.h.bf16 %v12102_v30 }
 0x264   :  { %v3671_v31 = vcombine.high %v3431_v2, %v3431_v2  ;;  %v3678_v57 = vrot.slane %v3431_v2, %v10996_v39  ;;  %8993 = vrot.lane.b32.xlu1 %v8992_v23, %s9297_s30  ;;  %v12127_v14 = vsel %vm13504_vm0, %v9238_v59, %v8715_v58  ;;  %v3670_v48 = vcombine.high %v3668_v42, %v3668_v42 }
 0x265   :  { %v7242_v25 = vrot.slane %v3669_v18, 9  ;;  %v7243_v26 = vrot.slane %v3668_v42, 9  ;;  %v4580_v63 = vmax.f32 %v3661_v34, %v7241_v7  ;;  %8988 = vrot.lane.b32.xlu0 %v8987_v4, %s9297_s30  ;;  %v2896_v17 = vsel %vm2844_vm11, %v12081_v45, %v8711_v0  ;;  %v5513_v34 = vld [vmem:[#allocation3 + $0x58] sm:$0x3]  ;;  %v12151_v58 = vpop.permute.xlu0 %8738 }
 0x266   :  { %v3685_v8 = vrot.slane %v3671_v31, %v10996_v39  ;;  %v3686_v51 = vcombine.high %v3678_v57, %v3678_v57  ;;  %v7245_v10 = vrot.slane %v3678_v57, 9  ;;  %v7244_v28 = vrot.slane %v3670_v48, 9  ;;  %v8744_v35 = vpop.permute.xlu1 %8743 }
 0x267   :  { %v4581_v13 = vmax.f32 %v3669_v18, %v7242_v25  ;;  %v4582_v12 = vmax.f32 %v3668_v42, %v7243_v26  ;;  %v5001_v55 = vrot.slane %v4580_v63, %v11139_v32  ;;  %v8710_v9 = vunpack.i.l.bf16 %v8709_v37 }
 0x268   :  { %v3687_v6 = vcombine.high %v3685_v8, %v3685_v8  ;;  %v7246_v1 = vrot.slane %v3686_v51, 9  ;;  %v7247_v49 = vrot.slane %v3685_v8, 9  ;;  %v4584_v46 = vmax.f32 %v3678_v57, %v7245_v10 }
 0x269   :  { %v4583_v54 = vmax.f32 %v3670_v48, %v7244_v28  ;;  %v5005_v56 = vrot.slane %v4581_v13, %v11139_v32  ;;  %v5009_v16 = vrot.slane %v4582_v12, %v11139_v32  ;;  %v2895_v3 = vsel %vm2844_vm11, %v12077_v29, %v8710_v9  ;;  %v8749_v10 = vpop.permute.xlu0 %8748  ;;  %v9239_v28 = vld [vmem:[#allocation2 + $0x2c0] sm:$0xff] }
 0x26a   :  { %v7248_v45 = vrot.slane %v3687_v6, 9  ;;  %v4585_v15 = vmax.f32 %v3686_v51, %v7246_v1  ;;  %v4586_v24 = vmax.f32 %v3685_v8, %v7247_v49  ;;  %v5017_v21 = vrot.slane %v4584_v46, %v11139_v32 }
 0x26b   :  { %v5013_v43 = vrot.slane %v4583_v54, %v11139_v32  ;;  %v5392_v47 = vsel %vm5350_vm15, %v5005_v56, %v5001_v55  ;;  %v5586_v41 = vrot.slane %v12070_v60, 1  ;;  %v2934_v18 = vpack.c.bf16 %v2896_v17, %v2895_v3 }
 0x26c   :  { %v5393_v2 = vsel %vm5352_vm4, %v5009_v16, %v5392_v47  ;;  %v4587_v4 = vmax.f32 %v3687_v6, %v7248_v45  ;;  %v5021_v37 = vrot.slane %v4585_v15, %v11139_v32  ;;  %v5025_v23 = vrot.slane %v4586_v24, %v11139_v32 }
 0x26d   :  { %v5394_v42 = vsel %vm5354_vm14, %v5013_v43, %v5393_v2  ;;  %v5587_v7 = vrot.slane %v12072_v19, 1  ;;  %v5589_v29 = vrot.slane %v12100_v44, 1  ;;  %v5590_v57 = vrot.slane %v5513_v34, 1  ;;  %7566 = vmatmul.mubr.msk.bf16.gmra.mrb[48].mxu0 %vm2966_vm12, %v2934_v18  ;;  %v8754_v19 = vpop.permute.xlu1 %8753  ;;  %v8759_v16 = vpop.permute.xlu0 %8758 }
 0x26e   :  { %v5029_v0 = vrot.slane %v4587_v4, %v11139_v32  ;;  %v5395_v31 = vsel %vm13389_vm1, %v5017_v21, %v5394_v42  ;;  %v9002_v59 = vpack.i.bf16 %v12070_v60, %v11936_v38  ;;  %vm13505_vm2 = vcmask 1045509  }
 0x26f   :  { %v5396_v48 = vsel %vm13505_vm2, %v5021_v37, %v5395_v31  ;;  %v12162_v25 = vsel %vm480_vm3, %v5586_v41, %v5587_v7  ;;  %v8726_v26 = vunpack.i.h.bf16 %v12121_v11  ;;  %v8725_v63 = vunpack.i.l.bf16 %v12121_v11 }
 0x270   :  { %vm13506_vm6 = vcmask 1046534   ;;  %v12169_v51 = vsel %vm480_vm3, %v5589_v29, %v5590_v57  ;;  %9003 = vrot.lane.b32.xlu1 %v9002_v59, %s9298_s11  ;;  %v8721_v38 = vunpack.i.h.bf16 %v12129_v22  ;;  %v8720_v60 = vunpack.i.l.bf16 %v12129_v22  ;;  %v7543_v29 = vpop.f32.mrb[24].mxu0 }
 0x271   :  { %v5397_v8 = vsel %vm13506_vm6, %v5025_v23, %v5396_v48  ;;  %vm13507_vm8 = vcmask 1047559   ;;  %v2445_v11 = vsel %vm13508_vm10, %v9239_v28, %v8716_v5  ;;  %v8997_v13 = vpack.i.bf16 %v12169_v51, %v12162_v25  ;;  %v8769_v23 = vpop.permute.xlu0 %8768  ;;  %v3197_v48 = vpop.f32.mrb[25].mxu0 }
 0x272   :  { %v5398_v17 = vsel %vm13507_vm8, %v5029_v0, %v5397_v8  ;;  %v2509_v12 = vsel %vm2454_vm5, %v12127_v14, %v8725_v63  ;;  %vm13509_vm13 = vcmask 261120   ;;  %v2510_v55 = vsel %vm2454_vm5, %v2445_v11, %v8726_v26  ;;  %v8764_v14 = vpop.permute.xlu1 %8763 }
 0x273   :  { %5491 = vst.msk [vmem:[#allocation3 + $0x61] sm:$0xff] %vm13509_vm13, %v5398_v17  ;;  %v2508_v22 = vsel %vm2454_vm5, %v12105_v52, %v8721_v38  ;;  %v8736_v6 = vunpack.i.h.bf16 %v12136_v50  ;;  %8998 = vrot.lane.b32.xlu0 %v8997_v13, %s9298_s11  ;;  %v8735_v30 = vunpack.i.l.bf16 %v12136_v50  ;;  %v8731_v5 = vunpack.i.h.bf16 %v12138_v40  ;;  %v7544_v38 = vpop.f32.mrb[26].mxu0 }
 0x274   :  { %v8730_v1 = vunpack.i.l.bf16 %v12138_v40  ;;  %v5637_v49 = vrot.slane %v12100_v44, 2  ;;  %v2507_v46 = vsel %vm2454_vm5, %v12112_v53, %v8720_v60  ;;  %9013 = vrot.lane.b32.xlu1 %v8997_v13, %s9296_s29  ;;  %v5638_v54 = vrot.slane %v5513_v34, 2 }
 0x275   :  { %v8746_v52 = vunpack.i.h.bf16 %v8744_v35  ;;  %v8745_v56 = vunpack.i.l.bf16 %v8744_v35  ;;  %vm13510_vm7 = vcmask 244736   ;;  %v8741_v40 = vunpack.i.h.bf16 %v12151_v58  ;;  %v8779_v13 = vpop.permute.xlu0 %8778 }
 0x276   :  { %v2574_v9 = vsel %vm13510_vm7, %v2509_v12, %v8735_v30  ;;  %vm13511_vm0 = vmmov %vm13510_vm7  ;;  %vm13514_vm8 = vcmask 1045504   ;;  %vm13515_vm10 = vcmask 326656   ;;  %v8740_v21 = vunpack.i.l.bf16 %v12151_v58  ;;  %v8774_v41 = vpop.permute.xlu1 %8773  ;;  %v3200_v12 = vpop.f32.mrb[27].mxu0 }
 0x277   :  { %v2575_v50 = vsel %vm13511_vm0, %v2510_v55, %v8736_v6  ;;  %vm13512_vm2 = vmmov %vm13511_vm0  ;;  %v12201_v24 = vsel %vm13514_vm8, %v5637_v49, %v5638_v54  ;;  %v2639_v53 = vsel %vm13515_vm10, %v2574_v9, %v8745_v56  ;;  %v8756_v34 = vunpack.i.h.bf16 %v8754_v19 }
 0x278   :  { %v2572_v45 = vsel %vm13512_vm2, %v2507_v46, %v8730_v1  ;;  %vm13513_vm6 = vmmov %vm13511_vm0  ;;  %v9022_v43 = vpack.i.bf16 %v12201_v24, %v12093_v33  ;;  %v6125_v47 = vpack.c.bf16 %v12201_v24, %v12093_v33  ;;  %v8755_v2 = vunpack.i.l.bf16 %v8754_v19 }
 0x279   :  { %v2573_v15 = vsel %vm13513_vm6, %v2508_v22, %v8731_v5  ;;  %vm13516_vm13 = vmmov %vm13515_vm10  ;;  %v8751_v4 = vunpack.i.h.bf16 %v8749_v10  ;;  %v8750_v37 = vunpack.i.l.bf16 %v8749_v10  ;;  %v8766_v42 = vunpack.i.h.bf16 %v8764_v14  ;;  %v12224_v22 = vld [vmem:[%s13365_s2] ss:$0 sm:$0xff] }
 0x27a   :  { %v2640_v3 = vsel %vm13516_vm13, %v2575_v50, %v8746_v52  ;;  %vm13517_vm7 = vmmov %vm13515_vm10  ;;  %9023 = vrot.lane.b32.xlu1 %v9022_v43, %s9297_s30  ;;  %v8765_v18 = vunpack.i.l.bf16 %v8764_v14  ;;  %v8761_v7 = vunpack.i.h.bf16 %v8759_v16  ;;  %vm13519_vm2 = vcmask 408576   ;;  %v8784_v60 = vpop.permute.xlu1 %8783  ;;  %v12236_v54 = vld [vmem:[#allocation3 + $0x60] sm:$0xff]  ;;  %v12239_v50 = vld [vmem:[#allocation3 + $0x68] sm:$0x3]  ;;  %v12242_v43 = vpop.permute.xlu0 %8788 }
 0x27b   :  { %v2638_v35 = vsel %vm13517_vm7, %v2573_v15, %v8741_v40  ;;  %vm13518_vm0 = vmmov %vm13517_vm7  ;;  %v2704_v0 = vsel %vm13519_vm2, %v2639_v53, %v8755_v2  ;;  %v8760_v59 = vunpack.i.l.bf16 %v8759_v16  ;;  %v8776_v8 = vunpack.i.h.bf16 %v8774_v41 }
 0x27c   :  { %v2637_v58 = vsel %vm13518_vm0, %v2572_v45, %v8740_v21  ;;  %vm13520_vm6 = vmmov %vm13519_vm2  ;;  %v2769_v63 = vsel %vm2714_vm9, %v2704_v0, %v8765_v18  ;;  %v8775_v17 = vunpack.i.l.bf16 %v8774_v41  ;;  %v8771_v28 = vunpack.i.h.bf16 %v8769_v23 }
 0x27d   :  { %v2705_v31 = vsel %vm13520_vm6, %v2640_v3, %v8756_v34  ;;  %vm13521_vm8 = vmmov %vm13519_vm2  ;;  %v8770_v11 = vunpack.i.l.bf16 %v8769_v23  ;;  %v3206_v6 = vadd.f32 %v12224_v22, %v7543_v29  ;;  %v3198_v30 = vadd.f32 %v12224_v22, %v3197_v48  ;;  %v9241_v34 = vld [vmem:[#allocation2 + $0x2d8] sm:$0xff] }
 0x27e   :  { %v2702_v57 = vsel %vm13521_vm8, %v2637_v58, %v8750_v37  ;;  %vm13522_vm10 = vmmov %vm13519_vm2  ;;  %v2770_v19 = vsel %vm2714_vm9, %v2705_v31, %v8766_v42  ;;  %v3209_v5 = vadd.f32 %v12224_v22, %v7544_v38  ;;  %vm13523_vm13 = vcmask 572416   ;;  %v8794_v45 = vpop.permute.xlu1 %8793  ;;  %v9242_v31 = vld [vmem:[#allocation2 + $0x2d0] sm:$0xff] }
 0x27f   :  { %v2703_v26 = vsel %vm13522_vm10, %v2638_v35, %v8751_v4  ;;  %v2767_v55 = vsel %vm2714_vm9, %v2702_v57, %v8760_v59  ;;  %v12230_v1 = vsel %vm13523_vm13, %v2769_v63, %v8775_v17  ;;  %vm13524_vm7 = vmmov %vm13523_vm13  ;;  %v8786_v46 = vunpack.i.h.bf16 %v8784_v60  ;;  %v9243_v17 = vld [vmem:[#allocation2 + $0x2f0] sm:$0xff] }
 0x280   :  { %v2768_v10 = vsel %vm2714_vm9, %v2703_v26, %v8761_v7  ;;  %v12233_v49 = vsel %vm13524_vm7, %v2770_v19, %v8776_v8  ;;  %vm13525_vm0 = vmmov %vm13524_vm7  ;;  %v3382_v56 = vmax.f32 %v3206_v6, 0.0  ;;  %v3380_v16 = vmax.f32 %v3198_v30, 0.0  ;;  %v12263_v26 = vpop.permute.xlu0 %8798 }
 0x281   :  { %v2832_v14 = vsel %vm13525_vm0, %v2767_v55, %v8770_v11  ;;  %vm13526_vm2 = vmmov %vm13525_vm0  ;;  %v3383_v9 = vmax.f32 %v3209_v5, 0.0  ;;  %v8785_v40 = vunpack.i.l.bf16 %v8784_v60  ;;  %v8781_v15 = vunpack.i.h.bf16 %v8779_v13 }
 0x282   :  { %v2833_v52 = vsel %vm13526_vm2, %v2768_v10, %v8771_v28  ;;  %v8780_v53 = vunpack.i.l.bf16 %v8779_v13  ;;  %v3201_v21 = vadd.f32 %v12224_v22, %v3200_v12  ;;  %v3432_v3 = vmax.f32 %v3380_v16, %v3382_v56  ;;  %v12255_v0 = vpop.permute.xlu1 %8803 }
 0x283   :  { %vm13527_vm6 = vcmask 80896   ;;  %v9032_v35 = vpack.i.bf16 %v12236_v54, %v12100_v44  ;;  %v5640_v2 = vrot.slane %v12236_v54, 2  ;;  %v2898_v37 = vsel %vm2844_vm11, %v2833_v52, %v8781_v15  ;;  %v9244_v52 = vld [vmem:[#allocation2 + $0x2e8] sm:$0xff] }
 0x284   :  { %v12245_v41 = vsel %vm13527_vm6, %v9241_v34, %v8786_v46  ;;  %v2897_v4 = vsel %vm2844_vm11, %v2832_v14, %v8780_v53  ;;  %v3381_v23 = vmax.f32 %v3201_v21, 0.0  ;;  %v5641_v58 = vrot.slane %v12239_v50, 2  ;;  %vm13528_vm8 = vmmov %vm13527_vm6  ;;  %v12275_v16 = vpop.permute.xlu0 %8808 }
 0x285   :  { %v3688_v42 = vcombine.high %v3432_v3, %v3432_v3  ;;  %v3695_v18 = vrot.slane %v3432_v3, %v10996_v39  ;;  %v2935_v7 = vpack.c.bf16 %v2898_v37, %v2897_v4  ;;  %9033 = vrot.lane.b32.xlu1 %v9032_v35, %s9298_s11  ;;  %v8796_v29 = vunpack.i.h.bf16 %v8794_v45  ;;  %vm13530_vm13 = vmmov %vm13527_vm6 }
 0x286   :  { %v12258_v44 = vsel %vm13528_vm8, %v9242_v31, %v8785_v40  ;;  %v3433_v57 = vmax.f32 %v3381_v23, %v3383_v9  ;;  %vm13529_vm10 = vcmask 1045504   ;;  %v8795_v48 = vunpack.i.l.bf16 %v8794_v45  ;;  %v8814_v30 = vpop.permute.xlu1 %8813  ;;  %vm13531_vm7 = vmmov %vm13527_vm6 }
 0x287   :  { %v12261_v59 = vsel %vm13529_vm10, %v5640_v2, %v5641_v58  ;;  %v3702_v63 = vrot.slane %v3688_v42, %v10996_v39  ;;  %v3703_v19 = vcombine.high %v3695_v18, %v3695_v18  ;;  %v7249_v8 = vrot.slane %v3695_v18, 9  ;;  %7569 = vmatprep.mubr.msk.bf16.mxu0 %vm2966_vm12, %v2935_v7 }
 0x288   :  { %v9007_v38 = vpack.i.bf16 %v12261_v59, %v12201_v24  ;;  %v3705_v60 = vcombine.high %v3433_v57, %v3433_v57  ;;  %v3712_v10 = vrot.slane %v3433_v57, %v10996_v39  ;;  %v2449_v28 = vsel %vm13530_vm13, %v9243_v17, %v8796_v29  ;;  %v8819_v29 = vpop.permute.xlu0 %8818 }
 0x289   :  { %v8791_v11 = vunpack.i.h.bf16 %v12242_v43  ;;  %v3704_v13 = vcombine.high %v3702_v63, %v3702_v63  ;;  %v7250_v12 = vrot.slane %v3703_v19, 9  ;;  %v7251_v55 = vrot.slane %v3702_v63, 9 }
 0x28a   :  { %v4588_v6 = vmax.f32 %v3695_v18, %v7249_v8  ;;  %9008 = vrot.lane.b32.xlu0 %v9007_v38, %s9296_s29  ;;  %v3719_v5 = vrot.slane %v3705_v60, %v10996_v39  ;;  %v3720_v14 = vcombine.high %v3712_v10, %v3712_v10  ;;  %v7253_v46 = vrot.slane %v3712_v10, 9  ;;  %v8824_v23 = vpop.permute.xlu1 %8823 }
 0x28b   :  { %v2448_v56 = vsel %vm13531_vm7, %v9244_v52, %v8795_v48  ;;  %v7252_v9 = vrot.slane %v3704_v13, 9  ;;  %v4589_v45 = vmax.f32 %v3703_v19, %v7250_v12  ;;  %v4590_v40 = vmax.f32 %v3702_v63, %v7251_v55 }
 0x28c   :  { %v5033_v15 = vrot.slane %v4588_v6, %v11139_v32  ;;  %v3721_v53 = vcombine.high %v3719_v5, %v3719_v5  ;;  %v7254_v21 = vrot.slane %v3720_v14, 9  ;;  %v7255_v3 = vrot.slane %v3719_v5, 9  ;;  %v8829_v6 = vpop.permute.xlu0 %8828 }
 0x28d   :  { %v4592_v34 = vmax.f32 %v3712_v10, %v7253_v46  ;;  %v4591_v35 = vmax.f32 %v3704_v13, %v7252_v9  ;;  %v5037_v2 = vrot.slane %v4589_v45, %v11139_v32  ;;  %v5041_v4 = vrot.slane %v4590_v40, %v11139_v32 }
 0x28e   :  { %v8790_v37 = vunpack.i.l.bf16 %v12242_v43  ;;  %v7256_v58 = vrot.slane %v3721_v53, 9  ;;  %v4593_v42 = vmax.f32 %v3720_v14, %v7254_v21  ;;  %v4594_v18 = vmax.f32 %v3719_v5, %v7255_v3 }
 0x28f   :  { %v2900_v7 = vsel %vm2844_vm11, %v12233_v49, %v8791_v11  ;;  %v5045_v31 = vrot.slane %v4591_v35, %v11139_v32  ;;  %v5399_v57 = vsel %vm5350_vm15, %v5037_v2, %v5033_v15  ;;  %v8806_v63 = vunpack.i.h.bf16 %v12255_v0  ;;  %v8834_v11 = vpop.permute.xlu1 %8833 }
 0x290   :  { %v2899_v48 = vsel %vm2844_vm11, %v12230_v1, %v8790_v37  ;;  %v5400_v19 = vsel %vm5352_vm4, %v5041_v4, %v5399_v57  ;;  %v4595_v43 = vmax.f32 %v3721_v53, %v7256_v58  ;;  %v5049_v8 = vrot.slane %v4592_v34, %v11139_v32 }
 0x291   :  { %v5053_v38 = vrot.slane %v4593_v42, %v11139_v32  ;;  %v5057_v60 = vrot.slane %v4594_v18, %v11139_v32  ;;  %v5401_v49 = vsel %vm5354_vm14, %v5045_v31, %v5400_v19  ;;  %v2936_v10 = vpack.c.bf16 %v2900_v7, %v2899_v48 }
 0x292   :  { %v8805_v17 = vunpack.i.l.bf16 %v12255_v0  ;;  %v5402_v13 = vsel %vm13389_vm1, %v5049_v8, %v5401_v49  ;;  %v2514_v1 = vsel %vm2454_vm5, %v2449_v28, %v8806_v63  ;;  %v8801_v12 = vunpack.i.h.bf16 %v12263_v26 }
 0x293   :  { %v8800_v55 = vunpack.i.l.bf16 %v12263_v26  ;;  %v5061_v5 = vrot.slane %v4595_v43, %v11139_v32  ;;  %vm13532_vm0 = vcmask 1045509   ;;  %7570 = vmatmul.mubr.msk.bf16.gmra.mrb[52].mxu0 %vm2966_vm12, %v2936_v10  ;;  %v8816_v46 = vunpack.i.h.bf16 %v8814_v30  ;;  %v8844_v21 = vpop.permute.xlu1 %8843 }
 0x294   :  { %v5403_v14 = vsel %vm13532_vm0, %v5053_v38, %v5402_v13  ;;  %v8815_v52 = vunpack.i.l.bf16 %v8814_v30  ;;  %vm13533_vm2 = vcmask 1046534   ;;  %v2513_v9 = vsel %vm2454_vm5, %v2448_v56, %v8805_v17 }
 0x295   :  { %v5404_v0 = vsel %vm13533_vm2, %v5057_v60, %v5403_v14  ;;  %v2512_v28 = vsel %vm2454_vm5, %v12245_v41, %v8801_v12  ;;  %v8811_v45 = vunpack.i.h.bf16 %v12275_v16  ;;  %vm13534_vm6 = vcmask 1047559   ;;  %v8839_v41 = vpop.permute.xlu0 %8838 }
 0x296   :  { %v5405_v26 = vsel %vm13534_vm6, %v5061_v5, %v5404_v0  ;;  %v2511_v40 = vsel %vm2454_vm5, %v12258_v44, %v8800_v55  ;;  %vm13535_vm8 = vcmask 244736   ;;  %v8810_v53 = vunpack.i.l.bf16 %v12275_v16 }
 0x297   :  { %v2578_v15 = vsel %vm13535_vm8, %v2513_v9, %v8815_v52  ;;  %vm13536_vm10 = vcmask 261120   ;;  %vm13537_vm13 = vmmov %vm13535_vm8  ;;  %v8826_v56 = vunpack.i.h.bf16 %v8824_v23  ;;  %v8825_v3 = vunpack.i.l.bf16 %v8824_v23  ;;  %v8854_v57 = vpop.permute.xlu1 %8853 }
 0x298   :  { %5492 = vst.msk [vmem:[#allocation3 + $0x71] sm:$0xff] %vm13536_vm10, %v5405_v26  ;;  %v2579_v30 = vsel %vm13537_vm13, %v2514_v1, %v8816_v46  ;;  %v8821_v34 = vunpack.i.h.bf16 %v8819_v29  ;;  %vm13538_vm7 = vmmov %vm13535_vm8  ;;  %v8820_v2 = vunpack.i.l.bf16 %v8819_v29  ;;  %v8836_v4 = vunpack.i.h.bf16 %v8834_v11 }
 0x299   :  { %v2577_v35 = vsel %vm13538_vm7, %v2512_v28, %v8811_v45  ;;  %v8835_v37 = vunpack.i.l.bf16 %v8834_v11  ;;  %vm13539_vm0 = vmmov %vm13538_vm7  ;;  %vm13540_vm2 = vcmask 326656   ;;  %v8831_v42 = vunpack.i.h.bf16 %v8829_v6  ;;  %v8849_v43 = vpop.permute.xlu0 %8848 }
 0x29a   :  { %v2576_v44 = vsel %vm13539_vm0, %v2511_v40, %v8810_v53  ;;  %v2643_v58 = vsel %vm13540_vm2, %v2578_v15, %v8825_v3  ;;  %vm13541_vm6 = vmmov %vm13540_vm2  ;;  %vm13544_vm13 = vcmask 408576   ;;  %v8830_v31 = vunpack.i.l.bf16 %v8829_v6 }
 0x29b   :  { %v2644_v16 = vsel %vm13541_vm6, %v2579_v30, %v8826_v56  ;;  %vm13542_vm8 = vmmov %vm13540_vm2  ;;  %v2708_v23 = vsel %vm13544_vm13, %v2643_v58, %v8835_v37  ;;  %v8846_v29 = vunpack.i.h.bf16 %v8844_v21  ;;  %v8845_v63 = vunpack.i.l.bf16 %v8844_v21  ;;  %v8864_v5 = vpop.permute.xlu1 %8863  ;;  %v9245_v30 = vld [vmem:[#allocation2 + $0x308] sm:$0xff] }
 0x29c   :  { %v2641_v18 = vsel %vm13542_vm8, %v2576_v44, %v8820_v2  ;;  %vm13543_vm10 = vmmov %vm13540_vm2  ;;  %v8841_v19 = vunpack.i.h.bf16 %v8839_v41  ;;  %v8840_v38 = vunpack.i.l.bf16 %v8839_v41  ;;  %v8856_v60 = vunpack.i.h.bf16 %v8854_v57 }
 0x29d   :  { %v2642_v7 = vsel %vm13543_vm10, %v2577_v35, %v8821_v34  ;;  %vm13545_vm1 = vmmov %vm13544_vm13  ;;  %v8855_v49 = vunpack.i.l.bf16 %v8854_v57  ;;  %v2773_v17 = vsel %vm2714_vm9, %v2708_v23, %v8845_v63  ;;  %v8851_v13 = vunpack.i.h.bf16 %v8849_v43  ;;  %v8859_v9 = vpop.permute.xlu0 %8858  ;;  %v9246_v57 = vld [vmem:[#allocation2 + $0x300] sm:$0xff] }
 0x29e   :  { %v2709_v48 = vsel %vm13545_vm1, %v2644_v16, %v8836_v4  ;;  %vm13546_vm7 = vmmov %vm13545_vm1  ;;  %v8850_v6 = vunpack.i.l.bf16 %v8849_v43  ;;  %v8866_v0 = vunpack.i.h.bf16 %v8864_v5  ;;  %v8865_v26 = vunpack.i.l.bf16 %v8864_v5  ;;  %v9247_v63 = vld [vmem:[#allocation2 + $0x320] sm:$0xff] }
 0x29f   :  { %v2707_v8 = vsel %vm13546_vm7, %v2642_v7, %v8831_v42  ;;  %vm13547_vm0 = vmmov %vm13545_vm1  ;;  %v2774_v11 = vsel %vm2714_vm9, %v2709_v48, %v8846_v29  ;;  %vm13548_vm1 = vcmask 572416   ;;  %v12328_v14 = vld [vmem:[#allocation3 + $0x70] sm:$0xff]  ;;  %v5517_v45 = vld [vmem:[#allocation3 + $0x78] sm:$0x3]  ;;  %v8861_v40 = vunpack.i.h.bf16 %v8859_v9  ;;  %v8874_v4 = vpop.permute.xlu1 %8873 }
 0x2a0   :  { %v2706_v10 = vsel %vm13547_vm0, %v2641_v18, %v8830_v31  ;;  %v2772_v12 = vsel %vm2714_vm9, %v2707_v8, %v8841_v19  ;;  %v2838_v55 = vsel %vm13548_vm1, %v2773_v17, %v8855_v49  ;;  %vm13549_vm2 = vmmov %vm13548_vm1  ;;  %v9017_v28 = vpack.i.bf16 %v12328_v14, %v12236_v54  ;;  %v7547_v31 = vpop.f32.mrb[28].mxu0 }
 0x2a1   :  { %v2771_v1 = vsel %vm2714_vm9, %v2706_v10, %v8840_v38  ;;  %v2839_v46 = vsel %vm13549_vm2, %v2774_v11, %v8856_v60  ;;  %vm13550_vm6 = vmmov %vm13548_vm1  ;;  %v8860_v15 = vunpack.i.l.bf16 %v8859_v9  ;;  %v5592_v53 = vrot.slane %v12236_v54, 1  ;;  %v8869_v42 = vpop.permute.xlu0 %8868  ;;  %v3213_v8 = vpop.f32.mrb[29].mxu0 }
 0x2a2   :  { %v2837_v52 = vsel %vm13550_vm6, %v2772_v12, %v8851_v13  ;;  %vm13551_vm8 = vmmov %vm13548_vm1  ;;  %vm13552_vm10 = vcmask 80896   ;;  %9018 = vrot.lane.b32.xlu0 %v9017_v28, %s9297_s30  ;;  %v5593_v3 = vrot.slane %v12239_v50, 1  ;;  %v5595_v34 = vrot.slane %v12328_v14, 1  ;;  %v7548_v11 = vpop.f32.mrb[30].mxu0  ;;  %v9248_v13 = vld [vmem:[#allocation2 + $0x318] sm:$0xff] }
 0x2a3   :  { %v2836_v21 = vsel %vm13551_vm8, %v2771_v1, %v8850_v6  ;;  %v12337_v56 = vsel %vm13552_vm10, %v9245_v30, %v8866_v0  ;;  %v2902_v35 = vsel %vm2844_vm11, %v2837_v52, %v8861_v40  ;;  %v5596_v2 = vrot.slane %v5517_v45, 1  ;;  %vm13553_vm13 = vmmov %vm13552_vm10  ;;  %v8884_v10 = vpop.permute.xlu1 %8883  ;;  %v3216_v9 = vpop.f32.mrb[31].mxu0  ;;  %v6145_v30 = vld [vmem:[%s13366_s3 + $0x8] sm:$0xff] }
 0x2a4   :  { %v2901_v41 = vsel %vm2844_vm11, %v2836_v21, %v8860_v15  ;;  %v5643_v54 = vrot.slane %v12328_v14, 2  ;;  %v12346_v44 = vsel %vm480_vm3, %v5592_v53, %v5593_v3  ;;  %v8876_v58 = vunpack.i.h.bf16 %v8874_v4  ;;  %vm13554_vm7 = vmmov %vm13552_vm10  ;;  %v6144_v21 = vld [vmem:[%s13366_s3] sm:$0xff] }
 0x2a5   :  { %v2937_v37 = vpack.c.bf16 %v2902_v35, %v2901_v41  ;;  %v8875_v16 = vunpack.i.l.bf16 %v8874_v4  ;;  %v12349_v18 = vsel %vm480_vm3, %v5595_v34, %v5596_v2  ;;  %v8871_v50 = vunpack.i.h.bf16 %v8869_v42  ;;  %vm13556_vm1 = vmmov %vm13554_vm7  ;;  %v8879_v5 = vpop.permute.xlu0 %8878 }
 0x2a6   :  { %v8870_v7 = vunpack.i.l.bf16 %v8869_v42  ;;  %v5644_v23 = vrot.slane %v5517_v45, 2  ;;  %v2450_v48 = vsel %vm13553_vm13, %v9246_v57, %v8865_v26  ;;  %v9042_v29 = vpack.i.bf16 %v12349_v18, %v12346_v44  ;;  %v6162_v42 = vld [vmem:[%s13366_s3 + $0x90] sm:$0xff] }
 0x2a7   :  { %v2453_v19 = vsel %vm13554_vm7, %v9247_v63, %v8876_v58  ;;  %7573 = vmatprep.mubr.msk.bf16.mxu0 %vm2966_vm12, %v2937_v37  ;;  %v3222_v43 = vadd.f32 %v12224_v22, %v7547_v31  ;;  %v2904_v38 = vsel %vm2844_vm11, %v2839_v46, %v8871_v50  ;;  %vm13555_vm0 = vcmask 1045504   ;;  %v6161_v46 = vld [vmem:[%s13366_s3 + $0x88] sm:$0xff]  ;;  %v8894_v35 = vpop.permute.xlu1 %8893  ;;  %v6163_v50 = vld [vmem:[%s13366_s3 + $0x98] sm:$0xff] }
 0x2a8   :  { %v2903_v60 = vsel %vm2844_vm11, %v2838_v55, %v8870_v7  ;;  %v12360_v49 = vsel %vm13555_vm0, %v5643_v54, %v5644_v23  ;;  %v3214_v17 = vadd.f32 %v12224_v22, %v3213_v8  ;;  %9043 = vrot.lane.b32.xlu1 %v9042_v29, %s9296_s29  ;;  %v2452_v1 = vsel %vm13556_vm1, %v9248_v13, %v8875_v16  ;;  %v6160_v55 = vld [vmem:[%s13366_s3 + $0x80] sm:$0xff] }
 0x2a9   :  { %v2938_v12 = vpack.c.bf16 %v2904_v38, %v2903_v60  ;;  %9028 = vrot.lane.b32.xlu0 %v9042_v29, %s9298_s11  ;;  %v8886_v6 = vunpack.i.h.bf16 %v8884_v10  ;;  %v3386_v52 = vmax.f32 %v3222_v43, 0.0  ;;  %v3225_v0 = vadd.f32 %v12224_v22, %v7548_v11  ;;  %v8889_v16 = vpop.permute.xlu0 %8888 }
 0x2aa   :  { %v8885_v28 = vunpack.i.l.bf16 %v8884_v10  ;;  %v8881_v45 = vunpack.i.h.bf16 %v8879_v5  ;;  %v3384_v26 = vmax.f32 %v3214_v17, 0.0  ;;  %v3217_v40 = vadd.f32 %v12224_v22, %v3216_v9 }
 0x2ab   :  { %v9052_v15 = vpack.i.bf16 %v12360_v49, %v12261_v59  ;;  %v8880_v53 = vunpack.i.l.bf16 %v8879_v5  ;;  %7574 = vmatmul.mubr.msk.bf16.gmra.mrb[56].mxu0 %vm2966_vm12, %v2938_v12  ;;  %v3387_v3 = vmax.f32 %v3225_v0, 0.0  ;;  %v2518_v41 = vsel %vm2454_vm5, %v2453_v19, %v8886_v6  ;;  %v8904_v60 = vpop.permute.xlu1 %8903 }
 0x2ac   :  { %v2517_v34 = vsel %vm2454_vm5, %v2452_v1, %v8885_v28  ;;  %v6188_v2 = vpack.c.bf16 %v6161_v46, %v6160_v55  ;;  %v3434_v4 = vmax.f32 %v3384_v26, %v3386_v52  ;;  %v3385_v54 = vmax.f32 %v3217_v40, 0.0 }
 0x2ad   :  { %9053 = vrot.lane.b32.xlu1 %v9052_v15, %s9297_s30  ;;  %v2516_v37 = vsel %vm2454_vm5, %v12337_v56, %v8881_v45  ;;  %v8896_v58 = vunpack.i.h.bf16 %v8894_v35  ;;  %v8895_v7 = vunpack.i.l.bf16 %v8894_v35  ;;  %v8891_v23 = vunpack.i.h.bf16 %v8889_v16  ;;  %v8899_v12 = vpop.permute.xlu0 %8898 }
 0x2ae   :  { %v8890_v31 = vunpack.i.l.bf16 %v8889_v16  ;;  %7412 = vmatprep.subr.bf16.mxu1 %v6188_v2  ;;  %v6180_v57 = vpack.c.bf16 %v6145_v30, %v6144_v21  ;;  %v3722_v29 = vcombine.high %v3434_v4, %v3434_v4  ;;  %v3729_v63 = vrot.slane %v3434_v4, %v10996_v39 }
 0x2af   :  { %v3435_v19 = vmax.f32 %v3385_v54, %v3387_v3  ;;  %v2515_v56 = vsel %vm2454_vm5, %v2450_v48, %v8880_v53  ;;  %vm13557_vm2 = vcmask 244736   ;;  %v6189_v10 = vpack.c.bf16 %v6163_v50, %v6162_v42  ;;  %v8914_v15 = vpop.permute.xlu1 %8913 }
 0x2b0   :  { %v2582_v43 = vsel %vm13557_vm2, %v2517_v34, %v8895_v7  ;;  %vm13558_vm6 = vmmov %vm13557_vm2  ;;  %7413 = vmatpush3.bf16.msra.mxu1 %v6180_v57  ;;  %v3736_v17 = vrot.slane %v3722_v29, %v10996_v39  ;;  %v3737_v11 = vcombine.high %v3729_v63, %v3729_v63  ;;  %v7257_v13 = vrot.slane %v3729_v63, 9 }
 0x2b1   :  { %v2583_v8 = vsel %vm13558_vm6, %v2518_v41, %v8896_v58  ;;  %vm13559_vm8 = vmmov %vm13557_vm2  ;;  %v3739_v1 = vcombine.high %v3435_v19, %v3435_v19  ;;  %v3746_v6 = vrot.slane %v3435_v19, %v10996_v39  ;;  %v8906_v48 = vunpack.i.h.bf16 %v8904_v60  ;;  %7414 = vmatprep.subr.bf16.mxu1 %v6189_v10  ;;  %v8909_v34 = vpop.permute.xlu0 %8908 }
 0x2b2   :  { %v2580_v38 = vsel %vm13559_vm8, %v2515_v56, %v8890_v31  ;;  %vm13560_vm10 = vmmov %vm13557_vm2  ;;  %v8905_v55 = vunpack.i.l.bf16 %v8904_v60  ;;  %v3738_v46 = vcombine.high %v3736_v17, %v3736_v17  ;;  %v7258_v52 = vrot.slane %v3737_v11, 9 }
 0x2b3   :  { %v2581_v5 = vsel %vm13560_vm10, %v2516_v37, %v8891_v23  ;;  %v7259_v0 = vrot.slane %v3736_v17, 9  ;;  %v4596_v9 = vmax.f32 %v3729_v63, %v7257_v13  ;;  %v3753_v28 = vrot.slane %v3739_v1, %v10996_v39  ;;  %v8924_v31 = vpop.permute.xlu1 %8923 }
 0x2b4   :  { %v3754_v45 = vcombine.high %v3746_v6, %v3746_v6  ;;  %v7261_v26 = vrot.slane %v3746_v6, 9  ;;  %v8901_v40 = vunpack.i.h.bf16 %v8899_v12  ;;  %v7260_v53 = vrot.slane %v3738_v46, 9 }
 0x2b5   :  { %v4597_v21 = vmax.f32 %v3737_v11, %v7258_v52  ;;  %v4598_v30 = vmax.f32 %v3736_v17, %v7259_v0  ;;  %vm13561_vm5 = vcmask 326656   ;;  %v3755_v41 = vcombine.high %v3753_v28, %v3753_v28  ;;  %v8919_v56 = vpop.permute.xlu0 %8918  ;;  %v6147_v11 = vld [vmem:[%s13366_s3 + $0x18] sm:$0xff]  ;;  %v6164_v52 = vld [vmem:[%s13366_s3 + $0xa0] sm:$0xff] }
 0x2b6   :  { %v2647_v3 = vsel %vm13561_vm5, %v2582_v43, %v8905_v55  ;;  %v7262_v35 = vrot.slane %v3754_v45, 9  ;;  %v7263_v2 = vrot.slane %v3753_v28, 9  ;;  %v4600_v4 = vmax.f32 %v3746_v6, %v7261_v26  ;;  %vm13562_vm13 = vmmov %vm13561_vm5 }
 0x2b7   :  { %v4599_v54 = vmax.f32 %v3738_v46, %v7260_v53  ;;  %v5065_v37 = vrot.slane %v4596_v9, %v11139_v32  ;;  %v5069_v58 = vrot.slane %v4597_v21, %v11139_v32  ;;  %v5073_v16 = vrot.slane %v4598_v30, %v11139_v32  ;;  %vm13563_vm7 = vmmov %vm13561_vm5  ;;  %v8934_v0 = vpop.permute.xlu1 %8933 }
 0x2b8   :  { %v7264_v42 = vrot.slane %v3755_v41, 9  ;;  %v4601_v50 = vmax.f32 %v3754_v45, %v7262_v35  ;;  %v4602_v7 = vmax.f32 %v3753_v28, %v7263_v2  ;;  %v2648_v23 = vsel %vm13562_vm13, %v2583_v8, %v8906_v48  ;;  %v6146_v8 = vld [vmem:[%s13366_s3 + $0x10] sm:$0xff]  ;;  %vm13565_vm1 = vmmov %vm13561_vm5 }
 0x2b9   :  { %v5077_v57 = vrot.slane %v4599_v54, %v11139_v32  ;;  %v5406_v29 = vsel %vm5350_vm15, %v5069_v58, %v5065_v37  ;;  %v5081_v63 = vrot.slane %v4600_v4, %v11139_v32  ;;  %v8900_v19 = vunpack.i.l.bf16 %v8899_v12  ;;  %v8929_v53 = vpop.permute.xlu0 %8928  ;;  %v6166_v54 = vld [vmem:[%s13366_s3 + $0xb0] sm:$0xff]  ;;  %v6167_v37 = vld [vmem:[%s13366_s3 + $0xb8] sm:$0xff] }
 0x2ba   :  { %v5407_v43 = vsel %vm5352_vm4, %v5073_v16, %v5406_v29  ;;  %v4603_v60 = vmax.f32 %v3755_v41, %v7264_v42  ;;  %v5085_v10 = vrot.slane %v4601_v50, %v11139_v32  ;;  %v2646_v17 = vsel %vm13563_vm7, %v2581_v5, %v8901_v40  ;;  %v6165_v40 = vld [vmem:[%s13366_s3 + $0xa8] sm:$0xff] }
 0x2bb   :  { %v5089_v13 = vrot.slane %v4602_v7, %v11139_v32  ;;  %v5408_v1 = vsel %vm5354_vm14, %v5077_v57, %v5407_v43  ;;  %v8916_v12 = vunpack.i.h.bf16 %v8914_v15  ;;  %v8915_v6 = vunpack.i.l.bf16 %v8914_v15  ;;  %v6149_v15 = vld [vmem:[%s13366_s3 + $0x28] sm:$0xff]  ;;  %v6150_v7 = vld [vmem:[%s13366_s3 + $0x30] sm:$0xff] }
 0x2bc   :  { %vm13564_vm0 = vcmask 1044484   ;;  %v2645_v55 = vsel %vm13565_vm1, %v2580_v38, %v8900_v19  ;;  %v8911_v46 = vunpack.i.h.bf16 %v8909_v34  ;;  %v8910_v5 = vunpack.i.l.bf16 %v8909_v34  ;;  %v6148_v38 = vld [vmem:[%s13366_s3 + $0x20] sm:$0xff] }
 0x2bd   :  { %v5409_v48 = vsel %vm13564_vm0, %v5081_v63, %v5408_v1  ;;  %v5093_v9 = vrot.slane %v4603_v60, %v11139_v32  ;;  %vm13566_vm2 = vcmask 1045509   ;;  %vm13567_vm6 = vcmask 408576  }
 0x2be   :  { %v5410_v28 = vsel %vm13566_vm2, %v5085_v10, %v5409_v48  ;;  %v2712_v45 = vsel %vm13567_vm6, %v2647_v3, %v8915_v6  ;;  %v6181_v26 = vpack.c.bf16 %v6147_v11, %v6146_v8  ;;  %vm13568_vm8 = vcmask 1046534   ;;  %vm13569_vm10 = vmmov %vm13567_vm6  ;;  %v6168_v8 = vld [vmem:[%s13366_s3 + $0xc0] sm:$0xff]  ;;  %v6169_v11 = vld [vmem:[%s13366_s3 + $0xc8] sm:$0xff] }
 0x2bf   :  { %v5411_v21 = vsel %vm13568_vm8, %v5089_v13, %v5410_v28  ;;  %v2713_v30 = vsel %vm13569_vm10, %v2648_v23, %v8916_v12  ;;  %vm13570_vm5 = vmmov %vm13567_vm6  ;;  %v8926_v34 = vunpack.i.h.bf16 %v8924_v31  ;;  %vm13571_vm13 = vcmask 1047559   ;;  %v6151_v23 = vld [vmem:[%s13366_s3 + $0x38] sm:$0xff] }
 0x2c0   :  { %v2710_v3 = vsel %vm13570_vm5, %v2645_v55, %v8910_v5  ;;  %v5412_v41 = vsel %vm13571_vm13, %v5093_v9, %v5411_v21  ;;  %7415 = vmatpush3.bf16.msra.mxu1 %v6181_v26  ;;  %v8925_v35 = vunpack.i.l.bf16 %v8924_v31  ;;  %v8921_v2 = vunpack.i.h.bf16 %v8919_v56  ;;  %vm13573_vm0 = vmmov %vm13570_vm5  ;;  %v8944_v31 = vpop.permute.xlu1 %8943  ;;  %v6171_v21 = vld [vmem:[%s13366_s3 + $0xd8] sm:$0xff] }
 0x2c1   :  { %v8920_v4 = vunpack.i.l.bf16 %v8919_v56  ;;  %vm13572_vm7 = vcmask 261120   ;;  %v2711_v58 = vsel %vm13573_vm0, %v2646_v17, %v8911_v46  ;;  %v6190_v16 = vpack.c.bf16 %v6165_v40, %v6164_v52  ;;  %v8939_v56 = vpop.permute.xlu0 %8938  ;;  %v6152_v52 = vld [vmem:[%s13366_s3 + $0x40] sm:$0xff] }
 0x2c2   :  { %5493 = vst.msk [vmem:[#allocation3 + $0x81] sm:$0xff] %vm13572_vm7, %v5412_v41  ;;  %v6182_v42 = vpack.c.bf16 %v6149_v15, %v6148_v38  ;;  %v8936_v50 = vunpack.i.h.bf16 %v8934_v0  ;;  %v2777_v57 = vsel %vm2714_vm9, %v2712_v45, %v8925_v35  ;;  %v2778_v29 = vsel %vm2714_vm9, %v2713_v30, %v8926_v34  ;;  %v7551_v30 = vpop.f32.mrb[32].mxu0  ;;  %vm13580_vm8 = vmmov %vm13572_vm7 }
 0x2c3   :  { %v2775_v63 = vsel %vm2714_vm9, %v2710_v3, %v8920_v4  ;;  %v8935_v19 = vunpack.i.l.bf16 %v8934_v0  ;;  %v2776_v43 = vsel %vm2714_vm9, %v2711_v58, %v8921_v2  ;;  %7416 = vmatprep.subr.bf16.mxu1 %v6190_v16  ;;  %v8931_v60 = vunpack.i.h.bf16 %v8929_v53  ;;  %v6153_v0 = vld [vmem:[%s13366_s3 + $0x48] sm:$0xff] }
 0x2c4   :  { %v8930_v10 = vunpack.i.l.bf16 %v8929_v53  ;;  %v6191_v17 = vpack.c.bf16 %v6167_v37, %v6166_v54  ;;  %7417 = vmatpush3.bf16.msra.mxu1 %v6182_v42  ;;  %vm13574_vm1 = vcmask 572416   ;;  %v6183_v1 = vpack.c.bf16 %v6151_v23, %v6150_v7  ;;  %v6170_v53 = vld [vmem:[%s13366_s3 + $0xd0] sm:$0xff]  ;;  %v3229_v54 = vpop.f32.mrb[33].mxu0  ;;  %v8954_v42 = vpop.permute.xlu1 %8953 }
 0x2c5   :  { %v2843_v13 = vsel %vm13574_vm1, %v2778_v29, %v8936_v50  ;;  %v8946_v12 = vunpack.i.h.bf16 %v8944_v31  ;;  %v8945_v6 = vunpack.i.l.bf16 %v8944_v31  ;;  %vm13575_vm2 = vmmov %vm13574_vm1  ;;  %v8941_v46 = vunpack.i.h.bf16 %v8939_v56  ;;  %v12491_v2 = vpop.permute.xlu0 %8948  ;;  %v7552_v7 = vpop.f32.mrb[34].mxu0  ;;  %v6154_v31 = vld [vmem:[%s13366_s3 + $0x50] sm:$0xff] }
 0x2c6   :  { %v2842_v48 = vsel %vm13575_vm2, %v2777_v57, %v8935_v19  ;;  %vm13576_vm9 = vmmov %vm13574_vm1  ;;  %7418 = vmatprep.subr.bf16.mxu1 %v6191_v17  ;;  %v8940_v5 = vunpack.i.l.bf16 %v8939_v56  ;;  %v6192_v26 = vpack.c.bf16 %v6169_v11, %v6168_v8  ;;  %v6184_v35 = vpack.c.bf16 %v6153_v0, %v6152_v52  ;;  %v6172_v17 = vld [vmem:[%s13366_s3 + $0xe0] sm:$0xff]  ;;  %v6173_v8 = vld [vmem:[%s13366_s3 + $0xe8] sm:$0xff] }
 0x2c7   :  { %v2840_v55 = vsel %vm13576_vm9, %v2775_v63, %v8930_v10  ;;  %vm13577_vm6 = vmmov %vm13574_vm1  ;;  %v2907_v28 = vsel %vm2844_vm11, %v2842_v48, %v8945_v6  ;;  %v2908_v45 = vsel %vm2844_vm11, %v2843_v13, %v8946_v12  ;;  %v3238_v4 = vadd.f32 %v12224_v22, %v7551_v30  ;;  %v3232_v63 = vpop.f32.mrb[35].mxu0  ;;  %v12515_v10 = vld [vmem:[#allocation3 + $0x90] sm:$0xff]  ;;  %v6156_v52 = vld [vmem:[%s13366_s3 + $0x60] sm:$0xff] }
 0x2c8   :  { %v2841_v9 = vsel %vm13577_vm6, %v2776_v43, %v8931_v60  ;;  %v2940_v40 = vpack.c.bf16 %v2908_v45, %v2907_v28  ;;  %v2905_v38 = vsel %vm2844_vm11, %v2840_v55, %v8940_v5  ;;  %7419 = vmatpush3.bf16.msra.mxu1 %v6183_v1  ;;  %v3230_v50 = vadd.f32 %v12224_v22, %v3229_v54  ;;  %v12528_v5 = vld [vmem:[#allocation3 + $0x98] sm:$0x3]  ;;  %v6157_v0 = vld [vmem:[%s13366_s3 + $0x68] sm:$0xff]  ;;  %v12539_v45 = vpop.permute.xlu1 %8963  ;;  %v9249_v30 = vld [vmem:[#allocation3 + $0x10] sm:$0xff] }
 0x2c9   :  { %v2906_v15 = vsel %vm2844_vm11, %v2841_v9, %v8941_v46  ;;  %v12487_v34 = vld [vmem:[#allocation3 + $0x80] sm:$0xff]  ;;  %v12489_v41 = vld [vmem:[#allocation3 + $0x88] sm:$0x3]  ;;  %7420 = vmatprep.subr.bf16.mxu1 %v6192_v26  ;;  %v6193_v23 = vpack.c.bf16 %v6171_v21, %v6170_v53  ;;  %v3390_v57 = vmax.f32 %v3238_v4, 0.0  ;;  %v3241_v29 = vadd.f32 %v12224_v22, %v7552_v7  ;;  %v12526_v46 = vpop.permute.xlu0 %8958  ;;  %vm13584_vm1 = vmmov %vm13580_vm8 }
 0x2ca   :  { %v2939_v3 = vpack.c.bf16 %v2906_v15, %v2905_v38  ;;  %v9062_v37 = vpack.i.bf16 %v12487_v34, %v12328_v14  ;;  %v5696_v58 = vrot.slane %v12487_v34, 2  ;;  %v5697_v16 = vrot.slane %v12489_v41, 2  ;;  %v6155_v14 = vld [vmem:[%s13366_s3 + $0x58] sm:$0xff]  ;;  %vm13586_vm9 = vmmov %vm13584_vm1 }
 0x2cb   :  { %vm13578_vm11 = vcmask 1045504   ;;  %v3388_v56 = vmax.f32 %v3230_v50, 0.0  ;;  %v3233_v43 = vadd.f32 %v12224_v22, %v3232_v63  ;;  %v3391_v11 = vmax.f32 %v3241_v29, 0.0  ;;  %vm13587_vm6 = vmmov %vm13584_vm1 }
 0x2cc   :  { %7577 = vmatprep.mubr.msk.bf16.mxu0 %vm2966_vm12, %v2939_v3  ;;  %9063 = vrot.lane.b32.xlu1 %v9062_v37, %s9298_s11  ;;  %v12509_v19 = vsel %vm13578_vm11, %v5696_v58, %v5697_v16  ;;  %v8956_v13 = vunpack.i.h.bf16 %v8954_v42  ;;  %v8955_v1 = vunpack.i.l.bf16 %v8954_v42  ;;  %v6185_v12 = vpack.c.bf16 %v6155_v14, %v6154_v31  ;;  %vm13588_vm11 = vmmov %vm13584_vm1 }
 0x2cd   :  { %7578 = vmatmul.mubr.msk.bf16.gmra.mrb[60].mxu0 %vm2966_vm12, %v2940_v40  ;;  %v9037_v60 = vpack.i.bf16 %v12509_v19, %v12360_v49  ;;  %7421 = vmatpush3.bf16.msra.mxu1 %v6184_v35  ;;  %v3436_v22 = vmax.f32 %v3388_v56, %v3390_v57  ;;  %v3389_v6 = vmax.f32 %v3233_v43, 0.0  ;;  %v8951_v48 = vunpack.i.h.bf16 %v12491_v2  ;;  %vm13579_vm12 = vmmov %vm13572_vm7  ;;  %v9250_v35 = vld [vmem:[#allocation3] sm:$0xff]  ;;  %v12559_v63 = vpop.permute.xlu0 %8968 }
 0x2ce   :  { %7422 = vmatprep.subr.bf16.mxu1 %v6193_v23  ;;  %v8950_v55 = vunpack.i.l.bf16 %v12491_v2  ;;  %v5706_v9 = vrot.slane %v12515_v10, 1  ;;  %v9047_v28 = vpack.i.bf16 %v12515_v10, %v12487_v34  ;;  %v6194_v26 = vpack.c.bf16 %v6173_v8, %v6172_v17  ;;  %v8974_v8 = vpop.permute.xlu1 %8973 }
 0x2cf   :  { %9038 = vrot.lane.b32.xlu0 %v9037_v60, %s9296_s29  ;;  %v5674_v40 = vrot.slane %v12487_v34, 1  ;;  %v3756_v38 = vcombine.high %v3436_v22, %v3436_v22  ;;  %v3763_v15 = vrot.slane %v3436_v22, %v10996_v39  ;;  %v3437_v53 = vmax.f32 %v3389_v6, %v3391_v11 }
 0x2d0   :  { %v5675_v21 = vrot.slane %v12489_v41, 1  ;;  %v12545_v3 = vsel %vm13579_vm12, %v9249_v30, %v8956_v13  ;;  %v12548_v4 = vsel %vm13580_vm8, %v9250_v35, %v8955_v1  ;;  %v5707_v54 = vrot.slane %v12528_v5, 1  ;;  %v6175_v30 = vld [vmem:[%s13366_s3 + $0xf8] sm:$0xff]  ;;  %v6158_v35 = vld [vmem:[%s13366_s3 + $0x70] sm:$0xff]  ;;  %vm13589_vm12 = vmmov %vm13584_vm1 }
 0x2d1   :  { %7423 = vmatpush3.bf16.msra.mxu1 %v6185_v12  ;;  %v6186_v37 = vpack.c.bf16 %v6157_v0, %v6156_v52  ;;  %v3770_v34 = vrot.slane %v3756_v38, %v10996_v39  ;;  %v3771_v58 = vcombine.high %v3763_v15, %v3763_v15  ;;  %v7265_v16 = vrot.slane %v3763_v15, 9  ;;  %v6174_v38 = vld [vmem:[%s13366_s3 + $0xf0] sm:$0xff]  ;;  %vm13590_vm8 = vmmov %vm13584_vm1 }
 0x2d2   :  { %7424 = vmatprep.subr.bf16.mxu1 %v6194_v26  ;;  %v3773_v42 = vcombine.high %v3437_v53, %v3437_v53  ;;  %v3780_v41 = vrot.slane %v3437_v53, %v10996_v39  ;;  %v8961_v50 = vunpack.i.h.bf16 %v12526_v46  ;;  %v12556_v7 = vsel %vm480_vm3, %v5674_v40, %v5675_v21 }
 0x2d3   :  { %9048 = vrot.lane.b32.xlu0 %v9047_v28, %s9297_s30  ;;  %v5708_v23 = vsel %vm480_vm3, %v5706_v9, %v5707_v54  ;;  %v3772_v31 = vcombine.high %v3770_v34, %v3770_v34  ;;  %v7266_v14 = vrot.slane %v3771_v58, 9  ;;  %v7267_v57 = vrot.slane %v3770_v34, 9  ;;  %v6159_v54 = vld [vmem:[%s13366_s3 + $0x78] sm:$0xff] }
 0x2d4   :  { %v4604_v29 = vmax.f32 %v3763_v15, %v7265_v16  ;;  %v3787_v56 = vrot.slane %v3773_v42, %v10996_v39  ;;  %v3788_v43 = vcombine.high %v3780_v41, %v3780_v41  ;;  %v7269_v60 = vrot.slane %v3780_v41, 9  ;;  %v8979_v42 = vpop.permute.xlu0 %8978 }
 0x2d5   :  { %7425 = vmatpush3.bf16.msra.mxu1 %v6186_v37  ;;  %v9057_v17 = vpack.i.bf16 %v5708_v23, %v12556_v7  ;;  %v7268_v11 = vrot.slane %v3772_v31, 9  ;;  %v4605_v13 = vmax.f32 %v3771_v58, %v7266_v14  ;;  %v4606_v1 = vmax.f32 %v3770_v34, %v7267_v57  ;;  %v8984_v57 = vpop.permute.xlu1 %8983 }
 0x2d6   :  { %v8960_v12 = vunpack.i.l.bf16 %v12526_v46  ;;  %v3789_v22 = vcombine.high %v3787_v56, %v3787_v56  ;;  %v7270_v6 = vrot.slane %v3788_v43, 9  ;;  %v7271_v52 = vrot.slane %v3787_v56, 9 }
 0x2d7   :  { %v4608_v0 = vmax.f32 %v3780_v41, %v7269_v60  ;;  %9058 = vrot.lane.b32.xlu0 %v9057_v17, %s9298_s11  ;;  %v4607_v9 = vmax.f32 %v3772_v31, %v7268_v11  ;;  %v5097_v28 = vrot.slane %v4604_v29, %v11139_v32  ;;  %v5101_v26 = vrot.slane %v4605_v13, %v11139_v32 }
 0x2d8   :  { %v5105_v40 = vrot.slane %v4606_v1, %v11139_v32  ;;  %v7272_v15 = vrot.slane %v3789_v22, 9  ;;  %v4609_v53 = vmax.f32 %v3788_v43, %v7270_v6  ;;  %v4610_v21 = vmax.f32 %v3787_v56, %v7271_v52 }
 0x2d9   :  { %vm6038_vm10 = vcmask 523264   ;;  %v5109_v37 = vrot.slane %v4607_v9, %v11139_v32  ;;  %v5413_v34 = vsel %vm5350_vm15, %v5101_v26, %v5097_v28  ;;  %v8966_v58 = vunpack.i.h.bf16 %v12539_v45 }
 0x2da   :  { %v8965_v16 = vunpack.i.l.bf16 %v12539_v45  ;;  %v5414_v41 = vsel %vm5352_vm4, %v5105_v40, %v5413_v34  ;;  %v4611_v23 = vmax.f32 %v3789_v22, %v7272_v15  ;;  %v5113_v31 = vrot.slane %v4608_v0, %v11139_v32  ;;  %v8994_v15 = vpop.permute.xlu1 %8993 }
 0x2db   :  { %v8976_v14 = vunpack.i.h.bf16 %v8974_v8  ;;  %v5117_v29 = vrot.slane %v4609_v53, %v11139_v32  ;;  %v5415_v56 = vsel %vm5354_vm14, %v5109_v37, %v5414_v41  ;;  %v6195_v43 = vpack.c.bf16 %v6175_v30, %v6174_v38  ;;  %v5522_v37 = vld [vmem:[#allocation3 + $0xa0] sm:$0xff] }
 0x2dc   :  { %v6187_v60 = vpack.c.bf16 %v6159_v54, %v6158_v35  ;;  %v5121_v17 = vrot.slane %v4610_v21, %v11139_v32  ;;  %vm13581_vm5 = vcmask 1044484   ;;  %v8970_v45 = vunpack.i.l.bf16 %v12559_v63  ;;  %v9252_v41 = vld [vmem:[#allocation3 + $0x20] sm:$0xff] }
 0x2dd   :  { %v5416_v11 = vsel %vm13581_vm5, %v5113_v31, %v5415_v56  ;;  %v8975_v13 = vunpack.i.l.bf16 %v8974_v8  ;;  %v5125_v1 = vrot.slane %v4611_v23, %v11139_v32  ;;  %vm13582_vm13 = vcmask 1045509   ;;  %7426 = vmatprep.subr.bf16.mxu1 %v6195_v43  ;;  %vm13591_vm5 = vmmov %vm13584_vm1  ;;  %v7555_v43 = vpop.f32.mrb[36].mxu0 }
 0x2de   :  { %v5417_v22 = vsel %vm13582_vm13, %v5117_v29, %v5416_v11  ;;  %v8971_v6 = vunpack.i.h.bf16 %v12559_v63  ;;  %vm6055_vm7 = vcmask 785408   ;;  %vm13583_vm0 = vcmask 1046534   ;;  %7427 = vmatpush3.bf16.msra.mxu1 %v6187_v60 }
 0x2df   :  { %v5418_v52 = vsel %vm13583_vm0, %v5121_v17, %v5417_v22  ;;  %v6039_v0 = vsel %vm6038_vm10, %v12548_v4, %v8965_v16  ;;  %v6040_v9 = vsel %vm6038_vm10, %v12545_v3, %v8966_v58  ;;  %v6072_v8 = vsel %vm13584_vm1, %v11945_v61, %v8950_v55  ;;  %v8989_v4 = vpop.permute.xlu0 %8988  ;;  %v9251_v16 = vld [vmem:[#allocation3 + $0x30] sm:$0xff] }
 0x2e0   :  { %vm13585_vm2 = vcmask 1047559   ;;  %v8981_v26 = vunpack.i.h.bf16 %v8979_v42  ;;  %v6073_v63 = vsel %vm13586_vm9, %v11992_v20, %v8951_v48  ;;  %v6088_v40 = vsel %vm6038_vm10, %v6072_v8, %v8960_v12 }
 0x2e1   :  { %v5419_v28 = vsel %vm13585_vm2, %v5125_v1, %v5418_v52  ;;  %v6089_v3 = vsel %vm6038_vm10, %v6073_v63, %v8961_v50  ;;  %v6104_v38 = vsel %vm6055_vm7, %v6088_v40, %v8970_v45  ;;  %v6056_v61 = vsel %vm6055_vm7, %v6039_v0, %v8975_v13  ;;  %v5523_v50 = vld [vmem:[#allocation3 + $0xa8] sm:$0x3]  ;;  %v12632_v1 = vld [vmem:[%s13365_s2] ss:$0 sm:$0xff] }
 0x2e2   :  { %5494 = vst.msk [vmem:[#allocation3 + $0xb1] sm:$0xff] %vm13587_vm6, %v5419_v28  ;;  %v6057_v55 = vsel %vm6055_vm7, %v6040_v9, %v8976_v14  ;;  %v8980_v2 = vunpack.i.l.bf16 %v8979_v42  ;;  %v8986_v53 = vunpack.i.h.bf16 %v8984_v57  ;;  %v6105_v20 = vsel %vm6055_vm7, %v6089_v3, %v8971_v6  ;;  %v3245_v6 = vpop.f32.mrb[37].mxu0 }
 0x2e3   :  { %v6120_v48 = vpack.c.bf16 %v6057_v55, %v6056_v61  ;;  %v8985_v12 = vunpack.i.l.bf16 %v8984_v57  ;;  %v6121_v21 = vpack.c.bf16 %v6105_v20, %v6104_v38  ;;  %v8991_v30 = vunpack.i.h.bf16 %v8989_v4  ;;  %v7556_v9 = vpop.f32.mrb[38].mxu0 }
 0x2e4   :  { %v8990_v35 = vunpack.i.l.bf16 %v8989_v4  ;;  %v8996_v54 = vunpack.i.h.bf16 %v8994_v15  ;;  %v8995_v46 = vunpack.i.l.bf16 %v8994_v15  ;;  %v6075_v34 = vsel %vm13588_vm11, %v12162_v25, %v8981_v26  ;;  %v9004_v25 = vpop.permute.xlu1 %9003  ;;  %v3248_v61 = vpop.f32.mrb[39].mxu0  ;;  %vm13598_vm11 = vmmov %vm13591_vm5 }
 0x2e5   :  { %6261 = vmatprep.mubr.bf16.mxu1 %v6121_v21  ;;  %v6074_v58 = vsel %vm13589_vm12, %v12067_v36, %v8980_v2  ;;  %v6025_v42 = vsel %vm13590_vm8, %v9251_v16, %v8986_v53  ;;  %v6024_v23 = vsel %vm13591_vm5, %v9252_v41, %v8985_v12  ;;  %v6091_v14 = vsel %vm6038_vm10, %v6075_v34, %v8991_v30  ;;  %v8999_v63 = vpop.permute.xlu0 %8998 }
 0x2e6   :  { %6262 = vmatmul.mubr.bf16.vlgmr.msra.gmra.mrb[0].mxu1 %v6120_v48  ;;  %v6090_v31 = vsel %vm6038_vm10, %v6074_v58, %v8990_v35  ;;  %v5598_v57 = vrot.slane %v5522_v37, 1  ;;  %v6041_v29 = vsel %vm6038_vm10, %v6024_v23, %v8995_v46  ;;  %v6042_v56 = vsel %vm6038_vm10, %v6025_v42, %v8996_v54 }
 0x2e7   :  { %v5599_v17 = vrot.slane %v5523_v50, 1  ;;  %v5646_v11 = vrot.slane %v5522_v37, 2  ;;  %v9006_v45 = vunpack.i.h.bf16 %v9004_v25  ;;  %v9005_v13 = vunpack.i.l.bf16 %v9004_v25 }
 0x2e8   :  { %v3254_v22 = vadd.f32 %v12632_v1, %v7555_v43  ;;  %v5647_v52 = vrot.slane %v5523_v50, 2  ;;  %v3246_v0 = vadd.f32 %v12632_v1, %v3245_v6  ;;  %v3257_v4 = vadd.f32 %v12632_v1, %v7556_v9 }
 0x2e9   :  { %v12627_v60 = vld [vmem:[#allocation3 + $0xb0] sm:$0xff]  ;;  %v5525_v36 = vld [vmem:[#allocation3 + $0xb8] sm:$0x3]  ;;  %v6058_v3 = vsel %vm6055_vm7, %v6041_v29, %v9005_v13  ;;  %v6059_v38 = vsel %vm6055_vm7, %v6042_v56, %v9006_v45  ;;  %v9001_v55 = vunpack.i.h.bf16 %v8999_v63  ;;  %v9000_v15 = vunpack.i.l.bf16 %v8999_v63 }
 0x2ea   :  { %v5601_v8 = vrot.slane %v12627_v60, 1  ;;  %v5602_v28 = vrot.slane %v5525_v36, 1  ;;  %v5649_v26 = vrot.slane %v12627_v60, 2  ;;  %v3394_v40 = vmax.f32 %v3254_v22, 0.0 }
 0x2eb   :  { %v3392_v2 = vmax.f32 %v3246_v0, 0.0  ;;  %v5650_v53 = vrot.slane %v5525_v36, 2  ;;  %v3395_v20 = vmax.f32 %v3257_v4, 0.0  ;;  %v6123_v48 = vpack.c.bf16 %v6059_v38, %v6058_v3 }
 0x2ec   :  { %v3249_v12 = vadd.f32 %v12632_v1, %v3248_v61  ;;  %v5600_v21 = vsel %vm480_vm3, %v5598_v57, %v5599_v17  ;;  %v6106_v35 = vsel %vm6055_vm7, %v6090_v31, %v9000_v15  ;;  %v6107_v54 = vsel %vm6055_vm7, %v6091_v14, %v9001_v55 }
 0x2ed   :  { %v3438_v30 = vmax.f32 %v3392_v2, %v3394_v40  ;;  %v12646_v46 = vsel %vm480_vm3, %v5601_v8, %v5602_v28  ;;  %v6124_v37 = vpack.c.bf16 %v6107_v54, %v6106_v35  ;;  %vm13592_vm13 = vcmask 1045504  }
 0x2ee   :  { %v3393_v50 = vmax.f32 %v3249_v12, 0.0  ;;  %v5648_v34 = vsel %vm13592_vm13, %v5646_v11, %v5647_v52  ;;  %v9072_v42 = vpack.i.bf16 %v12646_v46, %v5600_v21  ;;  %vm13593_vm0 = vmmov %vm13592_vm13  ;;  %vm13594_vm1 = vcmask 1044484  }
 0x2ef   :  { %v3790_v58 = vcombine.high %v3438_v30, %v3438_v30  ;;  %v3797_v16 = vrot.slane %v3438_v30, %v10996_v39  ;;  %v12652_v41 = vsel %vm13593_vm0, %v5649_v26, %v5650_v53  ;;  %6269 = vmatprep.mubr.bf16.mxu1 %v6124_v37  ;;  %vm13595_vm2 = vcmask 1045509   ;;  %vm13599_vm12 = vmmov %vm13593_vm0 }
 0x2f0   :  { %v3439_v23 = vmax.f32 %v3393_v50, %v3395_v20  ;;  %6270 = vmatmul.mubr.bf16.gmra.mrb[4].mxu1 %v6123_v48  ;;  %9073 = vrot.lane.b32.xlu1 %v9072_v42, %s9296_s29  ;;  %v9082_v25 = vpack.i.bf16 %v12652_v41, %v5648_v34  ;;  %vm13596_vm9 = vcmask 1046534   ;;  %v5712_v34 = vrot.slane %v12515_v10, 2  ;;  %vm13600_vm8 = vmmov %vm13593_vm0 }
 0x2f1   :  { %v3804_v31 = vrot.slane %v3790_v58, %v10996_v39  ;;  %v3805_v14 = vcombine.high %v3797_v16, %v3797_v16  ;;  %v7273_v57 = vrot.slane %v3797_v16, 9  ;;  %vm13597_vm6 = vcmask 1047559   ;;  %vm13601_vm13 = vmmov %vm13591_vm5 }
 0x2f2   :  { %v3807_v29 = vcombine.high %v3439_v23, %v3439_v23  ;;  %v3814_v56 = vrot.slane %v3439_v23, %v10996_v39  ;;  %vm13602_vm0 = vmmov %vm13591_vm5 }
 0x2f3   :  { %v3806_v43 = vcombine.high %v3804_v31, %v3804_v31  ;;  %v7274_v36 = vrot.slane %v3805_v14, 9  ;;  %v7275_v17 = vrot.slane %v3804_v31, 9  ;;  %v4612_v11 = vmax.f32 %v3797_v16, %v7273_v57 }
 0x2f4   :  { %v3821_v45 = vrot.slane %v3807_v29, %v10996_v39  ;;  %v3822_v13 = vcombine.high %v3814_v56, %v3814_v56  ;;  %v7277_v22 = vrot.slane %v3814_v56, 9  ;;  %9083 = vrot.lane.b32.xlu1 %v9082_v25, %s9297_s30  ;;  %v5713_v16 = vrot.slane %v12528_v5, 2 }
 0x2f5   :  { %v7276_v6 = vrot.slane %v3806_v43, 9  ;;  %v4613_v52 = vmax.f32 %v3805_v14, %v7274_v36  ;;  %v4614_v0 = vmax.f32 %v3804_v31, %v7275_v17  ;;  %v5129_v40 = vrot.slane %v4612_v11, %v11139_v32  ;;  %v9014_v31 = vpop.permute.xlu1 %9013 }
 0x2f6   :  { %v3823_v9 = vcombine.high %v3821_v45, %v3821_v45  ;;  %v7278_v8 = vrot.slane %v3822_v13, 9  ;;  %v7279_v28 = vrot.slane %v3821_v45, 9  ;;  %v4616_v26 = vmax.f32 %v3814_v56, %v7277_v22 }
 0x2f7   :  { %v4615_v63 = vmax.f32 %v3806_v43, %v7276_v6  ;;  %v5133_v4 = vrot.slane %v4613_v52, %v11139_v32  ;;  %v5137_v3 = vrot.slane %v4614_v0, %v11139_v32  ;;  %v12679_v42 = vsel %vm13599_vm12, %v5712_v34, %v5713_v16  ;;  %vm13608_vm12 = vmmov %vm13602_vm0 }
 0x2f8   :  { %v7280_v38 = vrot.slane %v3823_v9, 9  ;;  %v4617_v61 = vmax.f32 %v3822_v13, %v7278_v8  ;;  %v4618_v55 = vmax.f32 %v3821_v45, %v7279_v28  ;;  %v5145_v48 = vrot.slane %v4616_v26, %v11139_v32 }
 0x2f9   :  { %v5141_v15 = vrot.slane %v4615_v63, %v11139_v32  ;;  %v5420_v2 = vsel %vm5350_vm15, %v5133_v4, %v5129_v40  ;;  %v6131_v23 = vpack.c.bf16 %v12679_v42, %v12509_v19  ;;  %v9024_v6 = vpop.permute.xlu1 %9023  ;;  %v9016_v63 = vunpack.i.h.bf16 %v9014_v31 }
 0x2fa   :  { %v5421_v53 = vsel %vm5352_vm4, %v5137_v3, %v5420_v2  ;;  %v4619_v20 = vmax.f32 %v3823_v9, %v7280_v38  ;;  %v5149_v12 = vrot.slane %v4617_v61, %v11139_v32  ;;  %v5153_v30 = vrot.slane %v4618_v55, %v11139_v32  ;;  %v9254_v61 = vld [vmem:[#allocation3 + $0x40] sm:$0xff] }
 0x2fb   :  { %v5422_v21 = vsel %vm5354_vm14, %v5141_v15, %v5421_v53  ;;  %v9015_v9 = vunpack.i.l.bf16 %v9014_v31  ;;  %v9025_v40 = vunpack.i.l.bf16 %v9024_v6 }
 0x2fc   :  { %v5423_v35 = vsel %vm13594_vm1, %v5145_v48, %v5422_v21  ;;  %v5157_v54 = vrot.slane %v4619_v20, %v11139_v32  ;;  %v9009_v2 = vpop.permute.xlu0 %9008  ;;  %vm13603_vm1 = vmmov %vm13602_vm0 }
 0x2fd   :  { %v5424_v37 = vsel %vm13595_vm2, %v5149_v12, %v5423_v35  ;;  %v7559_v14 = vpop.f32.mrb[40].mxu0  ;;  %v6026_v55 = vsel %vm13591_vm5, %v9254_v61, %v9015_v9  ;;  %v9034_v15 = vpop.permute.xlu1 %9033  ;;  %v9255_v12 = vld [vmem:[#allocation3 + $0x50] sm:$0xff]  ;;  %v9010_v9 = vunpack.i.l.bf16 %v9009_v2  ;;  %vm13604_vm2 = vcmask 1044484  }
 0x2fe   :  { %v5425_v50 = vsel %vm13596_vm9, %v5153_v30, %v5424_v37  ;;  %v3270_v10 = vadd.f32 %v12632_v1, %v7559_v14  ;;  %v3261_v56 = vpop.f32.mrb[41].mxu0  ;;  %v6027_v21 = vsel %vm13601_vm13, %v9255_v12, %v9016_v63  ;;  %v9026_v30 = vunpack.i.h.bf16 %v9024_v6  ;;  %vm13609_vm5 = vmmov %vm13604_vm2 }
 0x2ff   :  { %v5426_v58 = vsel %vm13597_vm6, %v5157_v54, %v5425_v50  ;;  %v3262_v36 = vadd.f32 %v12632_v1, %v3261_v56  ;;  %v7560_v17 = vpop.f32.mrb[42].mxu0  ;;  %v6043_v35 = vsel %vm6038_vm10, %v6026_v55, %v9025_v40  ;;  %v9035_v16 = vunpack.i.l.bf16 %v9034_v15 }
 0x300   :  { %5495 = vst.msk [vmem:[#allocation3 + $0xc1] sm:$0xff] %vm13598_vm11, %v5426_v58  ;;  %v3398_v11 = vmax.f32 %v3270_v10, 0.0  ;;  %v3273_v45 = vadd.f32 %v12632_v1, %v7560_v17  ;;  %v3264_v13 = vpop.f32.mrb[43].mxu0  ;;  %v9011_v56 = vunpack.i.h.bf16 %v9009_v2  ;;  %v9036_v63 = vunpack.i.h.bf16 %v9034_v15 }
 0x301   :  { %v3396_v52 = vmax.f32 %v3262_v36, 0.0  ;;  %v6060_v15 = vsel %vm6055_vm7, %v6043_v35, %v9035_v16  ;;  %vm13605_vm9 = vcmask 1045509   ;;  %vm13606_vm6 = vcmask 1046534  }
 0x302   :  { %v3399_v8 = vmax.f32 %v3273_v45, 0.0  ;;  %v6077_v12 = vsel %vm13602_vm0, %v12346_v44, %v9011_v56  ;;  %vm13607_vm11 = vcmask 1047559   ;;  %vm13610_vm13 = vmmov %vm13605_vm9 }
 0x303   :  { %v3440_v28 = vmax.f32 %v3396_v52, %v3398_v11  ;;  %vm13611_vm0 = vmmov %vm13606_vm6 }
 0x305   :  { %v3824_v4 = vcombine.high %v3440_v28, %v3440_v28  ;;  %v3831_v3 = vrot.slane %v3440_v28, %v10996_v39 }
 0x307   :  { %v12683_v57 = vld [vmem:[#allocation3 + $0xc0] sm:$0xff]  ;;  %v12685_v29 = vld [vmem:[#allocation3 + $0xc8] sm:$0x3]  ;;  %v3838_v53 = vrot.slane %v3824_v4, %v10996_v39  ;;  %v7281_v20 = vrot.slane %v3831_v3, 9 }
 0x308   :  { %v9092_v25 = vpack.i.bf16 %v12683_v57, %v12627_v60  ;;  %v5652_v5 = vrot.slane %v12683_v57, 2  ;;  %v5653_v43 = vrot.slane %v12685_v29, 2  ;;  %v3265_v60 = vadd.f32 %v12632_v1, %v3264_v13 }
 0x309   :  { %v3840_v37 = vcombine.high %v3838_v53, %v3838_v53  ;;  %v7283_v34 = vrot.slane %v3838_v53, 9  ;;  %v4620_v58 = vmax.f32 %v3831_v3, %v7281_v20 }
 0x30a   :  { %9093 = vrot.lane.b32.xlu1 %v9092_v25, %s9298_s11  ;;  %v12696_v22 = vsel %vm13600_vm8, %v5652_v5, %v5653_v43  ;;  %v3397_v26 = vmax.f32 %v3265_v60, 0.0 }
 0x30b   :  { %v9067_v0 = vpack.i.bf16 %v12696_v22, %v12652_v41  ;;  %v3839_v41 = vcombine.high %v3831_v3, %v3831_v3  ;;  %v7284_v25 = vrot.slane %v3840_v37, 9  ;;  %v4622_v43 = vmax.f32 %v3838_v53, %v7283_v34 }
 0x30c   :  { %v3441_v38 = vmax.f32 %v3397_v26, %v3399_v8  ;;  %v5161_v52 = vrot.slane %v4620_v58, %v11139_v32 }
 0x30d   :  { %9068 = vrot.lane.b32.xlu0 %v9067_v0, %s9296_s29  ;;  %v7282_v50 = vrot.slane %v3839_v41, 9  ;;  %v4623_v6 = vmax.f32 %v3840_v37, %v7284_v25  ;;  %v5169_v0 = vrot.slane %v4622_v43, %v11139_v32  ;;  %v5605_v43 = vrot.slane %v12685_v29, 1 }
 0x30e   :  { %v3841_v48 = vcombine.high %v3441_v38, %v3441_v38  ;;  %v3848_v54 = vrot.slane %v3441_v38, %v10996_v39 }
 0x30f   :  { %v4621_v5 = vmax.f32 %v3839_v41, %v7282_v50  ;;  %v5173_v40 = vrot.slane %v4623_v6, %v11139_v32  ;;  %v6044_v41 = vsel %vm6038_vm10, %v6027_v21, %v9026_v30 }
 0x310   :  { %v3855_v31 = vrot.slane %v3841_v48, %v10996_v39  ;;  %v3856_v14 = vcombine.high %v3848_v54, %v3848_v54  ;;  %v7285_v10 = vrot.slane %v3848_v54, 9  ;;  %v6061_v44 = vsel %vm6055_vm7, %v6044_v41, %v9036_v63 }
 0x311   :  { %v5165_v60 = vrot.slane %v4621_v5, %v11139_v32  ;;  %v6126_v25 = vpack.c.bf16 %v6061_v44, %v6060_v15  ;;  %v5604_v5 = vrot.slane %v12683_v57, 1 }
 0x312   :  { %v3857_v17 = vcombine.high %v3855_v31, %v3855_v31  ;;  %v7286_v11 = vrot.slane %v3856_v14, 9  ;;  %v7287_v45 = vrot.slane %v3855_v31, 9  ;;  %v4624_v13 = vmax.f32 %v3848_v54, %v7285_v10 }
 0x313   :  { %v5427_v4 = vsel %vm5350_vm15, %v5165_v60, %v5161_v52  ;;  %v6076_v54 = vsel %vm13603_vm1, %v12169_v51, %v9010_v9  ;;  %vm13612_vm1 = vmmov %vm13607_vm11 }
 0x314   :  { %v9019_v36 = vpop.permute.xlu0 %9018  ;;  %v7288_v8 = vrot.slane %v3857_v17, 9  ;;  %v4625_v28 = vmax.f32 %v3856_v14, %v7286_v11  ;;  %v4626_v26 = vmax.f32 %v3855_v31, %v7287_v45  ;;  %v5428_v38 = vsel %vm5352_vm4, %v5169_v0, %v5427_v4 }
 0x315   :  { %v9021_v3 = vunpack.i.h.bf16 %v9019_v36  ;;  %v5177_v55 = vrot.slane %v4624_v13, %v11139_v32  ;;  %v9020_v53 = vunpack.i.l.bf16 %v9019_v36  ;;  %v5429_v2 = vsel %vm5354_vm14, %v5173_v40, %v5428_v38 }
 0x316   :  { %v4627_v61 = vmax.f32 %v3857_v17, %v7288_v8  ;;  %v5181_v20 = vrot.slane %v4625_v28, %v11139_v32  ;;  %v5185_v37 = vrot.slane %v4626_v26, %v11139_v32  ;;  %v12749_v40 = vsel %vm480_vm3, %v5604_v5, %v5605_v43 }
 0x317   :  { %v5430_v50 = vsel %vm13604_vm2, %v5177_v55, %v5429_v2  ;;  %v6092_v35 = vsel %vm6038_vm10, %v6076_v54, %v9020_v53  ;;  %v6093_v16 = vsel %vm6038_vm10, %v6077_v12, %v9021_v3  ;;  %vm13613_vm2 = vmmov %vm13608_vm12 }
 0x318   :  { %v5189_v34 = vrot.slane %v4627_v61, %v11139_v32  ;;  %v5431_v21 = vsel %vm13605_vm9, %v5181_v20, %v5430_v50  ;;  %vm13614_vm9 = vmmov %vm13613_vm2 }
 0x319   :  { %v5432_v31 = vsel %vm13606_vm6, %v5185_v37, %v5431_v21  ;;  %vm13615_vm6 = vmmov %vm13613_vm2 }
 0x31a   :  { %v5433_v51 = vsel %vm13607_vm11, %v5189_v34, %v5432_v31  ;;  %vm13616_vm11 = vmmov %vm13613_vm2 }
 0x31b   :  { %v9029_v48 = vpop.permute.xlu0 %9028  ;;  %5496 = vst.msk [vmem:[#allocation3 + $0xd1] sm:$0xff] %vm13608_vm12, %v5433_v51  ;;  %vm13617_vm12 = vmmov %vm13613_vm2 }
 0x31c   :  { %v9031_v30 = vunpack.i.h.bf16 %v9029_v48  ;;  %v9030_v58 = vunpack.i.l.bf16 %v9029_v48 }
 0x31e   :  { %v6108_v14 = vsel %vm6055_vm7, %v6092_v35, %v9030_v58  ;;  %v6109_v10 = vsel %vm6055_vm7, %v6093_v16, %v9031_v30 }
 0x31f   :  { %v6127_v56 = vpack.c.bf16 %v6109_v10, %v6108_v14 }
 0x320   :  { %v7563_v36 = vpop.f32.mrb[44].mxu0 }
 0x321   :  { %6277 = vmatprep.mubr.bf16.mxu1 %v6127_v56  ;;  %v3286_v45 = vadd.f32 %v12632_v1, %v7563_v36  ;;  %v3277_v13 = vpop.f32.mrb[45].mxu0  ;;  %v9044_v56 = vpop.permute.xlu1 %9043 }
 0x322   :  { %6278 = vmatmul.mubr.bf16.gmra.mrb[8].mxu1 %v6126_v25  ;;  %v12738_v17 = vld [vmem:[#allocation3 + $0xd0] sm:$0xff]  ;;  %v5529_v11 = vld [vmem:[#allocation3 + $0xd8] sm:$0x3]  ;;  %v3278_v0 = vadd.f32 %v12632_v1, %v3277_v13  ;;  %v7564_v9 = vpop.f32.mrb[46].mxu0 }
 0x323   :  { %v9077_v6 = vpack.i.bf16 %v12738_v17, %v12683_v57  ;;  %v5607_v52 = vrot.slane %v12738_v17, 1  ;;  %v5608_v60 = vrot.slane %v5529_v11, 1  ;;  %v5655_v8 = vrot.slane %v12738_v17, 2  ;;  %v3280_v63 = vpop.f32.mrb[47].mxu0 }
 0x324   :  { %v5656_v28 = vrot.slane %v5529_v11, 2  ;;  %v3402_v29 = vmax.f32 %v3286_v45, 0.0  ;;  %v3289_v26 = vadd.f32 %v12632_v1, %v7564_v9  ;;  %v3400_v4 = vmax.f32 %v3278_v0, 0.0 }
 0x325   :  { %9078 = vrot.lane.b32.xlu0 %v9077_v6, %s9297_s30  ;;  %v12752_v57 = vsel %vm480_vm3, %v5607_v52, %v5608_v60  ;;  %v3281_v3 = vadd.f32 %v12632_v1, %v3280_v63 }
 0x326   :  { %v9102_v38 = vpack.i.bf16 %v12752_v57, %v12749_v40  ;;  %v3403_v61 = vmax.f32 %v3289_v26, 0.0  ;;  %v12758_v55 = vsel %vm13600_vm8, %v5655_v8, %v5656_v28  ;;  %v3442_v53 = vmax.f32 %v3400_v4, %v3402_v29 }
 0x327   :  { %v3401_v41 = vmax.f32 %v3281_v3, 0.0  ;;  %v9112_v15 = vpack.i.bf16 %v12758_v55, %v12696_v22  ;;  %v9054_v3 = vpop.permute.xlu1 %9053 }
 0x328   :  { %9103 = vrot.lane.b32.xlu1 %v9102_v38, %s9296_s29  ;;  %v3858_v20 = vcombine.high %v3442_v53, %v3442_v53  ;;  %v3865_v2 = vrot.slane %v3442_v53, %v10996_v39 }
 0x329   :  { %9088 = vrot.lane.b32.xlu0 %v9102_v38, %s9298_s11  ;;  %v3443_v48 = vmax.f32 %v3401_v41, %v3403_v61 }
 0x32a   :  { %v3872_v12 = vrot.slane %v3858_v20, %v10996_v39  ;;  %v3873_v54 = vcombine.high %v3865_v2, %v3865_v2  ;;  %v7289_v37 = vrot.slane %v3865_v2, 9 }
 0x32b   :  { %v3875_v50 = vcombine.high %v3443_v48, %v3443_v48  ;;  %v3882_v34 = vrot.slane %v3443_v48, %v10996_v39 }
 0x32c   :  { %9113 = vrot.lane.b32.xlu1 %v9112_v15, %s9297_s30  ;;  %v3874_v21 = vcombine.high %v3872_v12, %v3872_v12  ;;  %v7290_v30 = vrot.slane %v3873_v54, 9  ;;  %v7291_v58 = vrot.slane %v3872_v12, 9  ;;  %v4628_v31 = vmax.f32 %v3865_v2, %v7289_v37 }
 0x32d   :  { %v3889_v35 = vrot.slane %v3875_v50, %v10996_v39  ;;  %v3890_v16 = vcombine.high %v3882_v34, %v3882_v34  ;;  %v7293_v44 = vrot.slane %v3882_v34, 9  ;;  %v9056_v37 = vunpack.i.h.bf16 %v9054_v3 }
 0x32e   :  { %v7292_v51 = vrot.slane %v3874_v21, 9  ;;  %v4629_v14 = vmax.f32 %v3873_v54, %v7290_v30  ;;  %v4630_v10 = vmax.f32 %v3872_v12, %v7291_v58  ;;  %v5193_v45 = vrot.slane %v4628_v31, %v11139_v32 }
 0x32f   :  { %v3891_v25 = vcombine.high %v3889_v35, %v3889_v35  ;;  %v7294_v5 = vrot.slane %v3890_v16, 9  ;;  %v7295_v43 = vrot.slane %v3889_v35, 9  ;;  %v4632_v36 = vmax.f32 %v3882_v34, %v7293_v44  ;;  %v9257_v44 = vld [vmem:[#allocation3 + $0x60] sm:$0xff] }
 0x330   :  { %v4631_v11 = vmax.f32 %v3874_v21, %v7292_v51  ;;  %v5197_v13 = vrot.slane %v4629_v14, %v11139_v32  ;;  %v5201_v6 = vrot.slane %v4630_v10, %v11139_v32  ;;  %v9046_v12 = vunpack.i.h.bf16 %v9044_v56 }
 0x331   :  { %v7296_v52 = vrot.slane %v3891_v25, 9  ;;  %v4633_v60 = vmax.f32 %v3890_v16, %v7294_v5  ;;  %v4634_v0 = vmax.f32 %v3889_v35, %v7295_v43  ;;  %v5209_v26 = vrot.slane %v4632_v36, %v11139_v32  ;;  %v9256_v35 = vld [vmem:[#allocation3 + $0x70] sm:$0xff] }
 0x332   :  { %v5205_v9 = vrot.slane %v4631_v11, %v11139_v32  ;;  %v5434_v8 = vsel %vm5350_vm15, %v5197_v13, %v5193_v45  ;;  %v9045_v54 = vunpack.i.l.bf16 %v9044_v56  ;;  %v9055_v50 = vunpack.i.l.bf16 %v9054_v3 }
 0x333   :  { %v5435_v28 = vsel %vm5352_vm4, %v5201_v6, %v5434_v8  ;;  %v4635_v29 = vmax.f32 %v3891_v25, %v7296_v52  ;;  %v5213_v63 = vrot.slane %v4633_v60, %v11139_v32  ;;  %v5217_v38 = vrot.slane %v4634_v0, %v11139_v32 }
 0x334   :  { %v5436_v4 = vsel %vm5354_vm14, %v5205_v9, %v5435_v28  ;;  %v6029_v16 = vsel %vm13614_vm9, %v9256_v35, %v9046_v12  ;;  %v6028_v51 = vsel %vm13615_vm6, %v9257_v44, %v9045_v54  ;;  %vm13618_vm9 = vmmov %vm13600_vm8 }
 0x335   :  { %v5437_v61 = vsel %vm13609_vm5, %v5209_v26, %v5436_v4  ;;  %v5221_v53 = vrot.slane %v4635_v29, %v11139_v32  ;;  %v6045_v10 = vsel %vm6038_vm10, %v6028_v51, %v9055_v50  ;;  %v6046_v25 = vsel %vm6038_vm10, %v6029_v16, %v9056_v37  ;;  %vm13619_vm6 = vmmov %vm13609_vm5 }
 0x336   :  { %v5438_v41 = vsel %vm13610_vm13, %v5213_v63, %v5437_v61 }
 0x337   :  { %v5439_v20 = vsel %vm13611_vm0, %v5217_v38, %v5438_v41 }
 0x338   :  { %v5440_v2 = vsel %vm13612_vm1, %v5221_v53, %v5439_v20 }
 0x339   :  { %5497 = vst.msk [vmem:[#allocation3 + $0xe1] sm:$0xff] %vm13613_vm2, %v5440_v2 }
 0x33e   :  { %v9064_v15 = vpop.permute.xlu1 %9063 }
 0x33f   :  { %v9066_v34 = vunpack.i.h.bf16 %v9064_v15  ;;  %v9065_v21 = vunpack.i.l.bf16 %v9064_v15 }
 0x340   :  { %v7567_v36 = vpop.f32.mrb[48].mxu0  ;;  %v12793_v11 = vld [vmem:[#allocation3 + $0xe0] sm:$0xff]  ;;  %v12795_v45 = vld [vmem:[#allocation3 + $0xe8] sm:$0x3] }
 0x341   :  { %v9039_v48 = vpop.permute.xlu0 %9038  ;;  %v6062_v13 = vsel %vm6055_vm7, %v6045_v10, %v9065_v21  ;;  %v6063_v6 = vsel %vm6055_vm7, %v6046_v25, %v9066_v34  ;;  %v3302_v52 = vadd.f32 %v12632_v1, %v7567_v36  ;;  %v3293_v0 = vpop.f32.mrb[49].mxu0  ;;  %v9122_v9 = vpack.i.bf16 %v12793_v11, %v12738_v17 }
 0x342   :  { %v9041_v30 = vunpack.i.h.bf16 %v9039_v48  ;;  %v9040_v58 = vunpack.i.l.bf16 %v9039_v48  ;;  %v3294_v26 = vadd.f32 %v12632_v1, %v3293_v0  ;;  %v7568_v63 = vpop.f32.mrb[50].mxu0  ;;  %v6129_v34 = vpack.c.bf16 %v6063_v6, %v6062_v13 }
 0x343   :  { %v3406_v3 = vmax.f32 %v3302_v52, 0.0  ;;  %v3305_v38 = vadd.f32 %v12632_v1, %v7568_v63  ;;  %v3296_v61 = vpop.f32.mrb[51].mxu0  ;;  %9123 = vrot.lane.b32.xlu1 %v9122_v9, %s9298_s11 }
 0x344   :  { %v6079_v56 = vsel %vm13616_vm11, %v12556_v7, %v9041_v30  ;;  %v6078_v43 = vsel %vm13617_vm12, %v12349_v18, %v9040_v58  ;;  %v5658_v7 = vrot.slane %v12793_v11, 2  ;;  %v5659_v18 = vrot.slane %v12795_v45, 2  ;;  %vm13620_vm11 = vmmov %vm13610_vm13 }
 0x345   :  { %v9049_v31 = vpop.permute.xlu0 %9048  ;;  %v3404_v41 = vmax.f32 %v3294_v26, 0.0  ;;  %v3297_v20 = vadd.f32 %v12632_v1, %v3296_v61  ;;  %v3407_v15 = vmax.f32 %v3305_v38, 0.0  ;;  %vm13621_vm12 = vmmov %vm13611_vm0 }
 0x346   :  { %v9050_v14 = vunpack.i.l.bf16 %v9049_v31  ;;  %v9051_v5 = vunpack.i.h.bf16 %v9049_v31  ;;  %v12810_v53 = vsel %vm13600_vm8, %v5658_v7, %v5659_v18  ;;  %vm13622_vm8 = vmmov %vm13612_vm1 }
 0x347   :  { %v9097_v2 = vpack.i.bf16 %v12810_v53, %v12758_v55  ;;  %v3444_v54 = vmax.f32 %v3404_v41, %v3406_v3  ;;  %v3405_v37 = vmax.f32 %v3297_v20, 0.0 }
 0x348   :  { %v6094_v8 = vsel %vm6038_vm10, %v6078_v43, %v9050_v14  ;;  %v6095_v4 = vsel %vm6038_vm10, %v6079_v56, %v9051_v5 }
 0x349   :  { %v9059_v60 = vpop.permute.xlu0 %9058  ;;  %9098 = vrot.lane.b32.xlu0 %v9097_v2, %s9296_s29  ;;  %v3892_v21 = vcombine.high %v3444_v54, %v3444_v54  ;;  %v3899_v30 = vrot.slane %v3444_v54, %v10996_v39  ;;  %v3445_v58 = vmax.f32 %v3405_v37, %v3407_v15 }
 0x34a   :  { %v9061_v28 = vunpack.i.h.bf16 %v9059_v60  ;;  %v9060_v29 = vunpack.i.l.bf16 %v9059_v60 }
 0x34b   :  { %v3906_v31 = vrot.slane %v3892_v21, %v10996_v39  ;;  %v3907_v35 = vcombine.high %v3899_v30, %v3899_v30  ;;  %v7297_v16 = vrot.slane %v3899_v30, 9  ;;  %v3909_v44 = vcombine.high %v3445_v58, %v3445_v58 }
 0x34c   :  { %v6110_v48 = vsel %vm6055_vm7, %v6094_v8, %v9060_v29  ;;  %v6111_v12 = vsel %vm6055_vm7, %v6095_v4, %v9061_v28  ;;  %v3916_v51 = vrot.slane %v3445_v58, %v10996_v39  ;;  %v5610_v58 = vrot.slane %v12793_v11, 1 }
 0x34d   :  { %v6130_v50 = vpack.c.bf16 %v6111_v12, %v6110_v48  ;;  %v3908_v14 = vcombine.high %v3906_v31, %v3906_v31  ;;  %v7298_v10 = vrot.slane %v3907_v35, 9  ;;  %v7299_v25 = vrot.slane %v3906_v31, 9 }
 0x34e   :  { %v4636_v5 = vmax.f32 %v3899_v30, %v7297_v16  ;;  %v3923_v56 = vrot.slane %v3909_v44, %v10996_v39  ;;  %v3924_v43 = vcombine.high %v3916_v51, %v3916_v51  ;;  %v7301_v36 = vrot.slane %v3916_v51, 9 }
 0x34f   :  { %6285 = vmatprep.mubr.bf16.mxu1 %v6130_v50  ;;  %v7300_v13 = vrot.slane %v3908_v14, 9  ;;  %v4637_v6 = vmax.f32 %v3907_v35, %v7298_v10  ;;  %v4638_v52 = vmax.f32 %v3906_v31, %v7299_v25  ;;  %v5611_v31 = vrot.slane %v12795_v45, 1 }
 0x350   :  { %6286 = vmatmul.mubr.bf16.gmra.mrb[12].mxu1 %v6129_v34  ;;  %v3925_v60 = vcombine.high %v3923_v56, %v3923_v56  ;;  %v7302_v0 = vrot.slane %v3924_v43, 9  ;;  %v7303_v9 = vrot.slane %v3923_v56, 9  ;;  %v4640_v7 = vmax.f32 %v3916_v51, %v7301_v36 }
 0x351   :  { %v4639_v18 = vmax.f32 %v3908_v14, %v7300_v13  ;;  %v5225_v8 = vrot.slane %v4636_v5, %v11139_v32  ;;  %v5229_v28 = vrot.slane %v4637_v6, %v11139_v32  ;;  %v5233_v29 = vrot.slane %v4638_v52, %v11139_v32 }
 0x352   :  { %v7304_v26 = vrot.slane %v3925_v60, 9  ;;  %v4641_v63 = vmax.f32 %v3924_v43, %v7302_v0  ;;  %v4642_v4 = vmax.f32 %v3923_v56, %v7303_v9  ;;  %v5241_v20 = vrot.slane %v4640_v7, %v11139_v32 }
 0x353   :  { %v5237_v3 = vrot.slane %v4639_v18, %v11139_v32  ;;  %v5441_v38 = vsel %vm5350_vm15, %v5229_v28, %v5225_v8  ;;  %v12850_v45 = vsel %vm480_vm3, %v5610_v58, %v5611_v31 }
 0x354   :  { %v5442_v61 = vsel %vm5352_vm4, %v5233_v29, %v5441_v38  ;;  %v4643_v41 = vmax.f32 %v3925_v60, %v7304_v26  ;;  %v5245_v2 = vrot.slane %v4641_v63, %v11139_v32  ;;  %v5249_v15 = vrot.slane %v4642_v4, %v11139_v32 }
 0x355   :  { %v5443_v48 = vsel %vm5354_vm14, %v5237_v3, %v5442_v61 }
 0x356   :  { %v5444_v12 = vsel %vm13609_vm5, %v5241_v20, %v5443_v48  ;;  %v5253_v54 = vrot.slane %v4643_v41, %v11139_v32  ;;  %vm13623_vm5 = vmmov %vm13613_vm2 }
 0x357   :  { %v5445_v37 = vsel %vm13610_vm13, %v5245_v2, %v5444_v12  ;;  %vm13624_vm13 = vmmov %vm13618_vm9 }
 0x358   :  { %v5446_v50 = vsel %vm13611_vm0, %v5249_v15, %v5445_v37  ;;  %vm13625_vm0 = vmmov %vm13619_vm6 }
 0x359   :  { %v5447_v34 = vsel %vm13612_vm1, %v5253_v54, %v5446_v50  ;;  %vm13626_vm1 = vmmov %vm13620_vm11 }
 0x35a   :  { %5498 = vst.msk [vmem:[#allocation3 + $0xf1] sm:$0xff] %vm13613_vm2, %v5447_v34  ;;  %vm13627_vm2 = vmmov %vm13621_vm12 }
 0x361   :  { %v12838_v21 = vld [vmem:[#allocation3 + $0xf0] sm:$0xff]  ;;  %v5533_v30 = vld [vmem:[#allocation3 + $0xf8] sm:$0x3] }
 0x362   :  { %v9107_v35 = vpack.i.bf16 %v12838_v21, %v12793_v11  ;;  %v5613_v16 = vrot.slane %v12838_v21, 1  ;;  %v5614_v51 = vrot.slane %v5533_v30, 1  ;;  %v5661_v14 = vrot.slane %v12838_v21, 2 }
 0x363   :  { %v5662_v10 = vrot.slane %v5533_v30, 2 }
 0x364   :  { %9108 = vrot.lane.b32.xlu0 %v9107_v35, %s9297_s30  ;;  %v12853_v36 = vsel %vm480_vm3, %v5613_v16, %v5614_v51 }
 0x365   :  { %v9132_v60 = vpack.i.bf16 %v12853_v36, %v12850_v45  ;;  %v12860_v7 = vsel %vm13618_vm9, %v5661_v14, %v5662_v10  ;;  %vm13628_vm9 = vmmov %vm13622_vm8 }
 0x366   :  { %v7571_v44 = vpop.f32.mrb[52].mxu0  ;;  %v9142_v29 = vpack.i.bf16 %v12860_v7, %v12810_v53 }
 0x367   :  { %v3318_v25 = vadd.f32 %v12632_v1, %v7571_v44  ;;  %v3309_v5 = vpop.f32.mrb[53].mxu0  ;;  %9133 = vrot.lane.b32.xlu1 %v9132_v60, %s9296_s29 }
 0x368   :  { %v3310_v56 = vadd.f32 %v12632_v1, %v3309_v5  ;;  %v7572_v43 = vpop.f32.mrb[54].mxu0  ;;  %9118 = vrot.lane.b32.xlu0 %v9132_v60, %s9298_s11 }
 0x369   :  { %v3410_v13 = vmax.f32 %v3318_v25, 0.0  ;;  %v3321_v6 = vadd.f32 %v12632_v1, %v7572_v43  ;;  %v3312_v52 = vpop.f32.mrb[55].mxu0 }
 0x36a   :  { %v3408_v0 = vmax.f32 %v3310_v56, 0.0  ;;  %v3313_v9 = vadd.f32 %v12632_v1, %v3312_v52 }
 0x36b   :  { %v3411_v18 = vmax.f32 %v3321_v6, 0.0  ;;  %9143 = vrot.lane.b32.xlu1 %v9142_v29, %s9297_s30 }
 0x36c   :  { %v3446_v8 = vmax.f32 %v3408_v0, %v3410_v13  ;;  %v3409_v28 = vmax.f32 %v3313_v9, 0.0 }
 0x36e   :  { %v3926_v26 = vcombine.high %v3446_v8, %v3446_v8  ;;  %v3933_v63 = vrot.slane %v3446_v8, %v10996_v39  ;;  %v3447_v4 = vmax.f32 %v3409_v28, %v3411_v18 }
 0x370   :  { %v3940_v3 = vrot.slane %v3926_v26, %v10996_v39  ;;  %v3941_v38 = vcombine.high %v3933_v63, %v3933_v63  ;;  %v7305_v61 = vrot.slane %v3933_v63, 9  ;;  %v3943_v41 = vcombine.high %v3447_v4, %v3447_v4 }
 0x371   :  { %v3950_v20 = vrot.slane %v3447_v4, %v10996_v39 }
 0x372   :  { %v3942_v2 = vcombine.high %v3940_v3, %v3940_v3  ;;  %v7306_v48 = vrot.slane %v3941_v38, 9  ;;  %v7307_v15 = vrot.slane %v3940_v3, 9  ;;  %v4644_v12 = vmax.f32 %v3933_v63, %v7305_v61 }
 0x373   :  { %v3957_v54 = vrot.slane %v3943_v41, %v10996_v39  ;;  %v3958_v37 = vcombine.high %v3950_v20, %v3950_v20  ;;  %v7309_v50 = vrot.slane %v3950_v20, 9 }
 0x374   :  { %v7308_v34 = vrot.slane %v3942_v2, 9  ;;  %v4645_v30 = vmax.f32 %v3941_v38, %v7306_v48  ;;  %v4646_v58 = vmax.f32 %v3940_v3, %v7307_v15  ;;  %v5257_v14 = vrot.slane %v4644_v12, %v11139_v32 }
 0x375   :  { %v3959_v31 = vcombine.high %v3957_v54, %v3957_v54  ;;  %v7310_v35 = vrot.slane %v3958_v37, 9  ;;  %v7311_v16 = vrot.slane %v3957_v54, 9  ;;  %v4648_v44 = vmax.f32 %v3950_v20, %v7309_v50 }
 0x376   :  { %v4647_v51 = vmax.f32 %v3942_v2, %v7308_v34  ;;  %v5261_v10 = vrot.slane %v4645_v30, %v11139_v32  ;;  %v5265_v25 = vrot.slane %v4646_v58, %v11139_v32 }
 0x377   :  { %v7312_v5 = vrot.slane %v3959_v31, 9  ;;  %v4649_v56 = vmax.f32 %v3958_v37, %v7310_v35  ;;  %v4650_v43 = vmax.f32 %v3957_v54, %v7311_v16  ;;  %v5273_v0 = vrot.slane %v4648_v44, %v11139_v32 }
 0x378   :  { %v5269_v13 = vrot.slane %v4647_v51, %v11139_v32  ;;  %v5448_v6 = vsel %vm5350_vm15, %v5261_v10, %v5257_v14 }
 0x379   :  { %v5449_v52 = vsel %vm5352_vm4, %v5265_v25, %v5448_v6  ;;  %v4651_v60 = vmax.f32 %v3959_v31, %v7312_v5  ;;  %v5277_v9 = vrot.slane %v4649_v56, %v11139_v32  ;;  %v5281_v8 = vrot.slane %v4650_v43, %v11139_v32 }
 0x37a   :  { %v5450_v18 = vsel %vm5354_vm14, %v5269_v13, %v5449_v52 }
 0x37b   :  { %v5451_v28 = vsel %vm13619_vm6, %v5273_v0, %v5450_v18  ;;  %v5285_v26 = vrot.slane %v4651_v60, %v11139_v32  ;;  %v9074_v60 = vpop.permute.xlu1 %9073  ;;  %vm13629_vm6 = vmmov %vm13623_vm5 }
 0x37c   :  { %v5452_v63 = vsel %vm13620_vm11, %v5277_v9, %v5451_v28  ;;  %vm13630_vm11 = vmmov %vm13623_vm5 }
 0x37d   :  { %v5453_v38 = vsel %vm13621_vm12, %v5281_v8, %v5452_v63  ;;  %vm13631_vm12 = vmmov %vm13623_vm5 }
 0x37e   :  { %v7575_v29 = vpop.f32.mrb[56].mxu0  ;;  %v5454_v20 = vsel %vm13622_vm8, %v5285_v26, %v5453_v38  ;;  %vm13632_vm8 = vmmov %vm13623_vm5 }
 0x37f   :  { %v3334_v4 = vadd.f32 %v12632_v1, %v7575_v29  ;;  %v3325_v3 = vpop.f32.mrb[57].mxu0  ;;  %5499 = vst.msk [vmem:[#allocation3 + $0x101] sm:$0xff] %vm13623_vm5, %v5454_v20 }
 0x380   :  { %v3326_v61 = vadd.f32 %v12632_v1, %v3325_v3  ;;  %v7576_v41 = vpop.f32.mrb[58].mxu0 }
 0x381   :  { %v3414_v2 = vmax.f32 %v3334_v4, 0.0  ;;  %v3337_v48 = vadd.f32 %v12632_v1, %v7576_v41  ;;  %v3328_v15 = vpop.f32.mrb[59].mxu0 }
 0x382   :  { %v3412_v12 = vmax.f32 %v3326_v61, 0.0  ;;  %v3329_v54 = vadd.f32 %v12632_v1, %v3328_v15 }
 0x383   :  { %v3415_v37 = vmax.f32 %v3337_v48, 0.0 }
 0x384   :  { %v3448_v50 = vmax.f32 %v3412_v12, %v3414_v2  ;;  %v3413_v34 = vmax.f32 %v3329_v54, 0.0 }
 0x386   :  { %v3960_v30 = vcombine.high %v3448_v50, %v3448_v50  ;;  %v3967_v58 = vrot.slane %v3448_v50, %v10996_v39  ;;  %v3449_v31 = vmax.f32 %v3413_v34, %v3415_v37  ;;  %v12894_v10 = vld [vmem:[#allocation3 + $0x100] sm:$0xff]  ;;  %v12901_v4 = vld [vmem:[#allocation3 + $0x108] sm:$0x3] }
 0x387   :  { %v9152_v52 = vpack.i.bf16 %v12894_v10, %v12838_v21  ;;  %v5664_v41 = vrot.slane %v12894_v10, 2  ;;  %v5665_v54 = vrot.slane %v12901_v4, 2 }
 0x388   :  { %v3974_v35 = vrot.slane %v3960_v30, %v10996_v39  ;;  %v3975_v16 = vcombine.high %v3967_v58, %v3967_v58  ;;  %v7313_v44 = vrot.slane %v3967_v58, 9  ;;  %v3977_v51 = vcombine.high %v3449_v31, %v3449_v31  ;;  %v9084_v30 = vpop.permute.xlu1 %9083 }
 0x389   :  { %v3984_v14 = vrot.slane %v3449_v31, %v10996_v39  ;;  %9153 = vrot.lane.b32.xlu1 %v9152_v52, %s9298_s11 }
 0x38a   :  { %v3976_v25 = vcombine.high %v3974_v35, %v3974_v35  ;;  %v7314_v5 = vrot.slane %v3975_v16, 9  ;;  %v7315_v56 = vrot.slane %v3974_v35, 9  ;;  %v4652_v1 = vmax.f32 %v3967_v58, %v7313_v44 }
 0x38b   :  { %v3991_v43 = vrot.slane %v3977_v51, %v10996_v39  ;;  %v3992_v13 = vcombine.high %v3984_v14, %v3984_v14  ;;  %v7317_v6 = vrot.slane %v3984_v14, 9 }
 0x38c   :  { %v7316_v0 = vrot.slane %v3976_v25, 9  ;;  %v4653_v9 = vmax.f32 %v3975_v16, %v7314_v5  ;;  %v4654_v18 = vmax.f32 %v3974_v35, %v7315_v56  ;;  %v5289_v8 = vrot.slane %v4652_v1, %v11139_v32  ;;  %v9094_v56 = vpop.permute.xlu1 %9093 }
 0x38d   :  { %v3993_v28 = vcombine.high %v3991_v43, %v3991_v43  ;;  %v7318_v29 = vrot.slane %v3992_v13, 9  ;;  %v7319_v26 = vrot.slane %v3991_v43, 9  ;;  %v4656_v63 = vmax.f32 %v3984_v14, %v7317_v6 }
 0x38e   :  { %v4655_v3 = vmax.f32 %v3976_v25, %v7316_v0  ;;  %v5293_v38 = vrot.slane %v4653_v9, %v11139_v32  ;;  %v5297_v61 = vrot.slane %v4654_v18, %v11139_v32  ;;  %v12914_v35 = vsel %vm13624_vm13, %v5664_v41, %v5665_v54  ;;  %v9069_v18 = vpop.permute.xlu0 %9068 }
 0x38f   :  { %v7320_v20 = vrot.slane %v3993_v28, 9  ;;  %v4657_v2 = vmax.f32 %v3992_v13, %v7318_v29  ;;  %v4658_v48 = vmax.f32 %v3991_v43, %v7319_v26  ;;  %v5305_v34 = vrot.slane %v4656_v63, %v11139_v32  ;;  %v6176_v43 = vld [vmem:[%s13366_s3 + $0x100] sm:$0xff]  ;;  %v6177_v13 = vld [vmem:[%s13366_s3 + $0x108] sm:$0xff] }
 0x390   :  { %v5301_v15 = vrot.slane %v4655_v3, %v11139_v32  ;;  %v5455_v12 = vsel %vm5350_vm15, %v5293_v38, %v5289_v8  ;;  %v9127_v51 = vpack.i.bf16 %v12914_v35, %v12860_v7  ;;  %v9075_v6 = vunpack.i.l.bf16 %v9074_v60  ;;  %v9258_v26 = vld [vmem:[#allocation3 + $0xa0] sm:$0xff] }
 0x391   :  { %v5456_v37 = vsel %vm5352_vm4, %v5297_v61, %v5455_v12  ;;  %v4659_v50 = vmax.f32 %v3993_v28, %v7320_v20  ;;  %v5309_v58 = vrot.slane %v4657_v2, %v11139_v32  ;;  %v5313_v16 = vrot.slane %v4658_v48, %v11139_v32  ;;  %v9259_v61 = vld [vmem:[#allocation3 + $0xb0] sm:$0xff] }
 0x392   :  { %v5457_v31 = vsel %vm5354_vm14, %v5301_v15, %v5456_v37  ;;  %9128 = vrot.lane.b32.xlu0 %v9127_v51, %s9296_s29  ;;  %v6196_v52 = vpack.c.bf16 %v6177_v13, %v6176_v43  ;;  %v9076_v0 = vunpack.i.h.bf16 %v9074_v60  ;;  %v9085_v9 = vunpack.i.l.bf16 %v9084_v30  ;;  %v9260_v37 = vld [vmem:[%s13365_s2] ss:$0 sm:$0xff] }
 0x393   :  { %v5458_v44 = vsel %vm13625_vm0, %v5305_v34, %v5457_v31  ;;  %v5317_v14 = vrot.slane %v4659_v50, %v11139_v32  ;;  %v9086_v8 = vunpack.i.h.bf16 %v9084_v30  ;;  %v9095_v28 = vunpack.i.l.bf16 %v9094_v56 }
 0x394   :  { %v5459_v25 = vsel %vm13626_vm1, %v5309_v58, %v5458_v44  ;;  %7581 = vmatprep.subr.bf16.mxu1 %v6196_v52  ;;  %v9096_v29 = vunpack.i.h.bf16 %v9094_v56  ;;  %v6030_v63 = vsel %vm13630_vm11, %v9258_v26, %v9075_v6  ;;  %v9071_v3 = vunpack.i.h.bf16 %v9069_v18  ;;  %vm13634_vm11 = vmmov %vm13624_vm13 }
 0x395   :  { %v5460_v5 = vsel %vm13627_vm2, %v5313_v16, %v5459_v25  ;;  %7582 = vmatpush3.bf16.msra.mxu1 %v6196_v52  ;;  %v9070_v38 = vunpack.i.l.bf16 %v9069_v18  ;;  %v6031_v41 = vsel %vm13631_vm12, %v9259_v61, %v9076_v0  ;;  %v6047_v20 = vsel %vm6038_vm10, %v6030_v63, %v9085_v9 }
 0x396   :  { %v5461_v1 = vsel %vm13628_vm9, %v5317_v14, %v5460_v5  ;;  %v6048_v60 = vsel %vm6038_vm10, %v6031_v41, %v9086_v8  ;;  %v6064_v15 = vsel %vm6055_vm7, %v6047_v20, %v9095_v28  ;;  %v6081_v31 = vsel %vm13632_vm8, %v12749_v40, %v9071_v3 }
 0x397   :  { %5500 = vst.msk [vmem:[#allocation3 + $0x111] sm:$0xff] %vm13629_vm6, %v5461_v1  ;;  %v9079_v2 = vpop.permute.xlu0 %9078  ;;  %v6065_v30 = vsel %vm6055_vm7, %v6048_v60, %v9096_v29  ;;  %v6080_v16 = vsel %vm13623_vm5, %v12646_v46, %v9070_v38  ;;  %v5616_v43 = vrot.slane %v12894_v10, 1  ;;  %v5617_v13 = vrot.slane %v12901_v4, 1  ;;  %vm13633_vm6 = vmmov %vm13623_vm5 }
 0x398   :  { %v9081_v12 = vunpack.i.h.bf16 %v9079_v2  ;;  %v9080_v54 = vunpack.i.l.bf16 %v9079_v2  ;;  %v6132_v38 = vpack.c.bf16 %v6065_v30, %v6064_v15 }
 0x39a   :  { %v6096_v9 = vsel %vm6038_vm10, %v6080_v16, %v9080_v54  ;;  %v6097_v18 = vsel %vm6038_vm10, %v6081_v31, %v9081_v12 }
 0x39b   :  { %v9089_v25 = vpop.permute.xlu0 %9088 }
 0x39c   :  { %v9091_v6 = vunpack.i.h.bf16 %v9089_v25  ;;  %v9090_v52 = vunpack.i.l.bf16 %v9089_v25 }
 0x39e   :  { %v12941_v58 = vld [vmem:[#allocation3 + $0x110] sm:$0xff]  ;;  %v5537_v46 = vld [vmem:[#allocation3 + $0x118] sm:$0x3]  ;;  %v6112_v26 = vsel %vm6055_vm7, %v6096_v9, %v9090_v52  ;;  %v6113_v63 = vsel %vm6055_vm7, %v6097_v18, %v9091_v6 }
 0x39f   :  { %v9137_v14 = vpack.i.bf16 %v12941_v58, %v12894_v10  ;;  %v5619_v28 = vrot.slane %v12941_v58, 1  ;;  %v6133_v3 = vpack.c.bf16 %v6113_v63, %v6112_v26  ;;  %v5620_v61 = vrot.slane %v5537_v46, 1 }
 0x3a0   :  { %v7579_v48 = vpop.f32.mrb[60].mxu0  ;;  %v5667_v60 = vrot.slane %v12941_v58, 2  ;;  %v5668_v54 = vrot.slane %v5537_v46, 2 }
 0x3a1   :  { %v3350_v50 = vadd.f32 %v9260_v37, %v7579_v48  ;;  %v3341_v34 = vpop.f32.mrb[61].mxu0  ;;  %9138 = vrot.lane.b32.xlu0 %v9137_v14, %s9297_s30  ;;  %6293 = vmatprep.mubr.bf16.mxu1 %v6133_v3  ;;  %v12960_v48 = vsel %vm480_vm3, %v5616_v43, %v5617_v13  ;;  %v12963_v12 = vsel %vm480_vm3, %v5619_v28, %v5620_v61 }
 0x3a2   :  { %v3342_v44 = vadd.f32 %v9260_v37, %v3341_v34  ;;  %v7580_v51 = vpop.f32.mrb[62].mxu0  ;;  %6294 = vmatmul.mubr.bf16.gmra.mrb[16].mxu1 %v6132_v38  ;;  %v9162_v31 = vpack.i.bf16 %v12963_v12, %v12960_v48  ;;  %v12970_v16 = vsel %vm13624_vm13, %v5667_v60, %v5668_v54 }
 0x3a3   :  { %v3418_v5 = vmax.f32 %v3350_v50, 0.0  ;;  %v3353_v56 = vadd.f32 %v9260_v37, %v7580_v51  ;;  %v3344_v1 = vpop.f32.mrb[63].mxu0  ;;  %v9172_v52 = vpack.i.bf16 %v12970_v16, %v12914_v35  ;;  %v6140_v33 = vpack.c.bf16 %v12970_v16, %v12914_v35 }
 0x3a4   :  { %v3416_v0 = vmax.f32 %v3342_v44, 0.0  ;;  %v3345_v40 = vadd.f32 %v9260_v37, %v3344_v1  ;;  %9163 = vrot.lane.b32.xlu1 %v9162_v31, %s9296_s29 }
 0x3a5   :  { %v3419_v8 = vmax.f32 %v3353_v56, 0.0  ;;  %9148 = vrot.lane.b32.xlu0 %v9162_v31, %s9298_s11 }
 0x3a6   :  { %v3450_v29 = vmax.f32 %v3416_v0, %v3418_v5  ;;  %v3417_v4 = vmax.f32 %v3345_v40, 0.0 }
 0x3a8   :  { %v3994_v41 = vcombine.high %v3450_v29, %v3450_v29  ;;  %v4001_v20 = vrot.slane %v3450_v29, %v10996_v39  ;;  %v3451_v2 = vmax.f32 %v3417_v4, %v3419_v8  ;;  %9173 = vrot.lane.b32.xlu1 %v9172_v52, %s9297_s30 }
 0x3aa   :  { %v4008_v37 = vrot.slane %v3994_v41, %v10996_v39  ;;  %v4009_v50 = vcombine.high %v4001_v20, %v4001_v20  ;;  %v7321_v34 = vrot.slane %v4001_v20, 9  ;;  %v4011_v15 = vcombine.high %v3451_v2, %v3451_v2 }
 0x3ab   :  { %v4018_v30 = vrot.slane %v3451_v2, %v10996_v39 }
 0x3ac   :  { %v4010_v44 = vcombine.high %v4008_v37, %v4008_v37  ;;  %v7322_v51 = vrot.slane %v4009_v50, 9  ;;  %v7323_v14 = vrot.slane %v4008_v37, 9  ;;  %v4660_v25 = vmax.f32 %v4001_v20, %v7321_v34 }
 0x3ad   :  { %v4025_v5 = vrot.slane %v4011_v15, %v10996_v39  ;;  %v4026_v56 = vcombine.high %v4018_v30, %v4018_v30  ;;  %v7325_v1 = vrot.slane %v4018_v30, 9 }
 0x3ae   :  { %v7324_v43 = vrot.slane %v4010_v44, 9  ;;  %v4661_v13 = vmax.f32 %v4009_v50, %v7322_v51  ;;  %v4662_v6 = vmax.f32 %v4008_v37, %v7323_v14  ;;  %v5321_v8 = vrot.slane %v4660_v25, %v11139_v32  ;;  %v6179_v51 = vld [vmem:[%s13366_s3 + $0x118] sm:$0xff] }
 0x3af   :  { %v4027_v0 = vcombine.high %v4025_v5, %v4025_v5  ;;  %v7326_v40 = vrot.slane %v4026_v56, 9  ;;  %v7327_v46 = vrot.slane %v4025_v5, 9  ;;  %v4664_v9 = vmax.f32 %v4018_v30, %v7325_v1 }
 0x3b0   :  { %v4663_v18 = vmax.f32 %v4010_v44, %v7324_v43  ;;  %v5325_v28 = vrot.slane %v4661_v13, %v11139_v32  ;;  %v5329_v29 = vrot.slane %v4662_v6, %v11139_v32  ;;  %v6178_v44 = vld [vmem:[%s13366_s3 + $0x110] sm:$0xff] }
 0x3b1   :  { %v7328_v26 = vrot.slane %v4027_v0, 9  ;;  %v4665_v63 = vmax.f32 %v4026_v56, %v7326_v40  ;;  %v4666_v4 = vmax.f32 %v4025_v5, %v7327_v46  ;;  %v5337_v20 = vrot.slane %v4664_v9, %v11139_v32  ;;  %v13005_v46 = vld [vmem:[#allocation3 + $0x130] sm:$0xff]  ;;  %v13007_v9 = vld [vmem:[#allocation3 + $0x138] sm:$0x3] }
 0x3b2   :  { %v5333_v3 = vrot.slane %v4663_v18, %v11139_v32  ;;  %v5462_v38 = vsel %vm5350_vm15, %v5325_v28, %v5321_v8  ;;  %v6197_v25 = vpack.c.bf16 %v6179_v51, %v6178_v44  ;;  %v5709_v28 = vrot.slane %v13005_v46, 1 }
 0x3b3   :  { %v5463_v61 = vsel %vm5352_vm4, %v5329_v29, %v5462_v38  ;;  %v4667_v41 = vmax.f32 %v4027_v0, %v7328_v26  ;;  %v5341_v2 = vrot.slane %v4665_v63, %v11139_v32  ;;  %v5345_v54 = vrot.slane %v4666_v4, %v11139_v32 }
 0x3b4   :  { %v5464_v60 = vsel %vm5354_vm14, %v5333_v3, %v5463_v61  ;;  %7583 = vmatprep.subr.bf16.mxu1 %v6197_v25  ;;  %v5710_v63 = vrot.slane %v13007_v9, 1  ;;  %v5716_v24 = vrot.slane %v13007_v9, 2 }
 0x3b5   :  { %v5465_v37 = vsel %vm13625_vm0, %v5337_v20, %v5464_v60  ;;  %v5349_v50 = vrot.slane %v4667_v41, %v11139_v32  ;;  %7584 = vmatpush3.bf16.msra.mxu1 %v6197_v25 }
 0x3b6   :  { %v5466_v34 = vsel %vm13626_vm1, %v5341_v2, %v5465_v37  ;;  %v5711_v2 = vsel %vm480_vm3, %v5709_v28, %v5710_v63 }
 0x3b7   :  { %v5467_v15 = vsel %vm13627_vm2, %v5345_v54, %v5466_v34 }
 0x3b8   :  { %v5468_v30 = vsel %vm13628_vm9, %v5349_v50, %v5467_v15  ;;  %v9104_v50 = vpop.permute.xlu1 %9103 }
 0x3b9   :  { %5501 = vst.msk [vmem:[#allocation3 + $0x121] sm:$0xff] %vm13633_vm6, %v5468_v30  ;;  %v7428_v31 = vpop.f32.mrb[0].mxu1  ;;  %v9106_v30 = vunpack.i.h.bf16 %v9104_v50 }
 0x3ba   :  { %v7429_v14 = vpop.f32.mrb[1].mxu1 }
 0x3bb   :  { %v13000_v5 = vadd.f32 %v7429_v14, %v7428_v31  ;;  %v7431_v56 = vpop.f32.mrb[2].mxu1  ;;  %v9099_v15 = vpop.permute.xlu0 %9098  ;;  %v9105_v31 = vunpack.i.l.bf16 %v9104_v50 }
 0x3bc   :  { %v7432_v1 = vpop.f32.mrb[3].mxu1  ;;  %v9114_v34 = vpop.permute.xlu1 %9113 }
 0x3bd   :  { %v13002_v43 = vadd.f32 %v7432_v1, %v7431_v56  ;;  %v9116_v51 = vunpack.i.h.bf16 %v9114_v34  ;;  %v9115_v14 = vunpack.i.l.bf16 %v9114_v34  ;;  %v9101_v56 = vunpack.i.h.bf16 %v9099_v15 }
 0x3be   :  { %v9100_v1 = vunpack.i.l.bf16 %v9099_v15 }
 0x3c0   :  { %v5538_v13 = vld [vmem:[#allocation3 + $0x120] sm:$0xff]  ;;  %v5539_v6 = vld [vmem:[#allocation3 + $0x128] sm:$0x3]  ;;  %v9124_v44 = vpop.permute.xlu1 %9123 }
 0x3c1   :  { %v9182_v52 = vpack.i.bf16 %v5538_v13, %v12941_v58  ;;  %v5699_v0 = vrot.slane %v5538_v13, 2  ;;  %v5700_v40 = vrot.slane %v5539_v6, 2  ;;  %v5677_v29 = vrot.slane %v5538_v13, 1 }
 0x3c2   :  { %v5678_v26 = vrot.slane %v5539_v6, 1  ;;  %v9167_v38 = vpack.i.bf16 %v13005_v46, %v5538_v13  ;;  %v9126_v13 = vunpack.i.h.bf16 %v9124_v44  ;;  %v9125_v6 = vunpack.i.l.bf16 %v9124_v44 }
 0x3c3   :  { %9183 = vrot.lane.b32.xlu1 %v9182_v52, %s9298_s11  ;;  %v13011_v18 = vsel %vm13634_vm11, %v5699_v0, %v5700_v40  ;;  %v7434_v4 = vpop.f32.mrb[4].mxu1 }
 0x3c4   :  { %v9157_v8 = vpack.i.bf16 %v13011_v18, %v12970_v16  ;;  %v7435_v3 = vpop.f32.mrb[5].mxu1  ;;  %v13022_v20 = vsel %vm480_vm3, %v5677_v29, %v5678_v26  ;;  %vm13635_vm3 = vmmov %vm13623_vm5 }
 0x3c5   :  { %v13019_v61 = vadd.f32 %v7435_v3, %v7434_v4  ;;  %v7437_v41 = vpop.f32.mrb[6].mxu1  ;;  %v9177_v37 = vpack.i.bf16 %v5711_v2, %v13022_v20  ;;  %v6033_v40 = vsel %vm13635_vm3, %v12738_v17, %v9106_v30  ;;  %vm13636_vm12 = vmmov %vm13635_vm3 }
 0x3c6   :  { %9158 = vrot.lane.b32.xlu0 %v9157_v8, %s9296_s29  ;;  %v7438_v60 = vpop.f32.mrb[7].mxu1  ;;  %v9261_v8 = vld [vmem:[#allocation3 + $0xc0] sm:$0xff]  ;;  %v6050_v26 = vsel %vm6038_vm10, %v6033_v40, %v9116_v51  ;;  %vm13637_vm8 = vmmov %vm13635_vm3 }
 0x3c7   :  { %v13026_v54 = vadd.f32 %v7438_v60, %v7437_v41  ;;  %v6032_v28 = vsel %vm13636_vm12, %v9261_v8, %v9105_v31  ;;  %v6083_v4 = vsel %vm13637_vm8, %v12850_v45, %v9101_v56  ;;  %vm13638_vm5 = vmmov %vm13635_vm3 }
 0x3c8   :  { %v6049_v29 = vsel %vm6038_vm10, %v6032_v28, %v9115_v14  ;;  %v6082_v3 = vsel %vm13638_vm5, %v12752_v57, %v9100_v1  ;;  %vm13639_vm13 = vmmov %vm13635_vm3 }
 0x3c9   :  { %v6066_v60 = vsel %vm6055_vm7, %v6049_v29, %v9125_v6  ;;  %vm13640_vm0 = vmmov %vm13635_vm3 }
 0x3ca   :  { %9168 = vrot.lane.b32.xlu0 %v9167_v38, %s9297_s30  ;;  %vm13641_vm1 = vmmov %vm13640_vm0 }
 0x3cb   :  { %vm13642_vm2 = vmmov %vm13640_vm0 }
 0x3cc   :  { %vm13643_vm9 = vmmov %vm13640_vm0 }
 0x3cd   :  { %vm13644_vm6 = vmmov %vm13640_vm0 }
 0x3ce   :  { %9178 = vrot.lane.b32.xlu0 %v9177_v37, %s9298_s11  ;;  %v6067_v37 = vsel %vm6055_vm7, %v6050_v26, %v9126_v13  ;;  %vm13645_vm11 = vmmov %vm13640_vm0 }
 0x3cf   :  { %v6135_v30 = vpack.c.bf16 %v6067_v37, %v6066_v60  ;;  %vm13646_vm3 = vmmov %vm13640_vm0 }
 0x3d0   :  { %vm13647_vm12 = vmmov %vm13640_vm0 }
 0x3d1   :  { %vm13648_vm8 = vmmov %vm13640_vm0 }
 0x3d2   :  { %vm13649_vm5 = vmmov %vm13640_vm0 }
 0x3d6   :  { %v9109_v25 = vpop.permute.xlu0 %9108 }
 0x3d7   :  { %v9111_v52 = vunpack.i.h.bf16 %v9109_v25  ;;  %v9110_v0 = vunpack.i.l.bf16 %v9109_v25 }
 0x3d9   :  { %v6098_v2 = vsel %vm6038_vm10, %v6082_v3, %v9110_v0  ;;  %v6099_v17 = vsel %vm6038_vm10, %v6083_v4, %v9111_v52  ;;  %v9134_v25 = vpop.permute.xlu1 %9133 }
 0x3da   :  { %v9119_v63 = vpop.permute.xlu0 %9118  ;;  %v9136_v6 = vunpack.i.h.bf16 %v9134_v25  ;;  %v9135_v52 = vunpack.i.l.bf16 %v9134_v25 }
 0x3db   :  { %v9121_v38 = vunpack.i.h.bf16 %v9119_v63  ;;  %v9120_v41 = vunpack.i.l.bf16 %v9119_v63 }
 0x3dd   :  { %v6114_v50 = vsel %vm6055_vm7, %v6098_v2, %v9120_v41  ;;  %v6115_v34 = vsel %vm6055_vm7, %v6099_v17, %v9121_v38  ;;  %v9144_v1 = vpop.permute.xlu1 %9143  ;;  %v6035_v38 = vsel %vm13639_vm13, %v12838_v21, %v9136_v6  ;;  %v6034_v41 = vsel %vm13640_vm0, %v12793_v11, %v9135_v52  ;;  %vm13651_vm13 = vmmov %vm13640_vm0 }
 0x3de   :  { %v6136_v15 = vpack.c.bf16 %v6115_v34, %v6114_v50  ;;  %v9146_v40 = vunpack.i.h.bf16 %v9144_v1  ;;  %v9145_v8 = vunpack.i.l.bf16 %v9144_v1 }
 0x3e0   :  { %6301 = vmatprep.mubr.bf16.mxu1 %v6136_v15  ;;  %v6051_v2 = vsel %vm6038_vm10, %v6034_v41, %v9145_v8  ;;  %v6052_v17 = vsel %vm6038_vm10, %v6035_v38, %v9146_v40 }
 0x3e1   :  { %6302 = vmatmul.mubr.bf16.gmra.mrb[20].mxu1 %v6135_v30 }
 0x3f5   :  { %v7440_v45 = vpop.f32.mrb[8].mxu1 }
 0x3f6   :  { %v7441_v57 = vpop.f32.mrb[9].mxu1 }
 0x3f7   :  { %v13045_v31 = vadd.f32 %v7441_v57, %v7440_v45  ;;  %v7443_v44 = vpop.f32.mrb[10].mxu1 }
 0x3f8   :  { %v7444_v51 = vpop.f32.mrb[11].mxu1 }
 0x3f9   :  { %v13047_v14 = vadd.f32 %v7444_v51, %v7443_v44 }
 0x3fb   :  { %v9154_v0 = vpop.permute.xlu1 %9153 }
 0x3fc   :  { %v9156_v26 = vunpack.i.h.bf16 %v9154_v0  ;;  %v9155_v63 = vunpack.i.l.bf16 %v9154_v0 }
 0x3fe   :  { %v6068_v45 = vsel %vm6055_vm7, %v6051_v2, %v9155_v63  ;;  %v6069_v11 = vsel %vm6055_vm7, %v6052_v17, %v9156_v26 }
 0x3ff   :  { %v6138_v25 = vpack.c.bf16 %v6069_v11, %v6068_v45 }
 0x404   :  { %v9129_v56 = vpop.permute.xlu0 %9128 }
 0x405   :  { %v9131_v28 = vunpack.i.h.bf16 %v9129_v56  ;;  %v9130_v29 = vunpack.i.l.bf16 %v9129_v56 }
 0x407   :  { %v6085_v37 = vsel %vm13641_vm1, %v12960_v48, %v9131_v28  ;;  %v6084_v50 = vsel %vm13642_vm2, %v12853_v36, %v9130_v29  ;;  %vm13652_vm1 = vmmov %vm13640_vm0  ;;  %vm13653_vm2 = vcmask 1045504  }
 0x413   :  { %v9139_v13 = vpop.permute.xlu0 %9138 }
 0x414   :  { %v9141_v4 = vunpack.i.h.bf16 %v9139_v13  ;;  %v9140_v3 = vunpack.i.l.bf16 %v9139_v13 }
 0x416   :  { %v6100_v30 = vsel %vm6038_vm10, %v6084_v50, %v9140_v3  ;;  %v6101_v21 = vsel %vm6038_vm10, %v6085_v37, %v9141_v4  ;;  %v9164_v52 = vpop.permute.xlu1 %9163 }
 0x417   :  { %v9149_v60 = vpop.permute.xlu0 %9148  ;;  %v9166_v8 = vunpack.i.h.bf16 %v9164_v52  ;;  %v9165_v28 = vunpack.i.l.bf16 %v9164_v52  ;;  %v9299_v52 = vmov 0.0|0.0  }
 0x418   :  { %v9151_v34 = vunpack.i.h.bf16 %v9149_v60  ;;  %v9150_v15 = vunpack.i.l.bf16 %v9149_v60  ;;  %7644 = vmatprep.subr.bf16.mxu1 %v9299_v52 }
 0x419   :  { %v6037_v37 = vsel %vm13643_vm9, %v12941_v58, %v9166_v8  ;;  %v6036_v50 = vsel %vm13644_vm6, %v12894_v10, %v9165_v28  ;;  %vm13654_vm9 = vmmov %vm13640_vm0  ;;  %vm9300_vm6 = vmmov 0  }
 0x41a   :  { %v6116_v57 = vsel %vm6055_vm7, %v6100_v30, %v9150_v15  ;;  %v6117_v44 = vsel %vm6055_vm7, %v6101_v21, %v9151_v34  ;;  %v9174_v0 = vpop.permute.xlu1 %9173 }
 0x41b   :  { %v6139_v51 = vpack.c.bf16 %v6117_v44, %v6116_v57  ;;  %v9176_v26 = vunpack.i.h.bf16 %v9174_v0  ;;  %v9175_v63 = vunpack.i.l.bf16 %v9174_v0  ;;  %v13655_v0 = vmov 0.0  }
 0x41c   :  { %7640 = vmatprep.mubr.msk.bf16.mxu0 %vm9300_vm6, %v13655_v0 }
 0x41d   :  { %6309 = vmatprep.mubr.bf16.mxu1 %v6139_v51  ;;  %v6053_v34 = vsel %vm6038_vm10, %v6036_v50, %v9175_v63  ;;  %v6054_v15 = vsel %vm6038_vm10, %v6037_v37, %v9176_v26 }
 0x41e   :  { %6310 = vmatmul.mubr.bf16.gmra.mrb[24].mxu1 %v6138_v25 }
 0x423   :  { %v7446_v48 = vpop.f32.mrb[12].mxu1 }
 0x424   :  { %v7447_v36 = vpop.f32.mrb[13].mxu1 }
 0x425   :  { %v13065_v56 = vadd.f32 %v7447_v36, %v7446_v48  ;;  %v7449_v1 = vpop.f32.mrb[14].mxu1 }
 0x426   :  { %v7450_v13 = vpop.f32.mrb[15].mxu1 }
 0x427   :  { %v13067_v6 = vadd.f32 %v7450_v13, %v7449_v1  ;;  %v6134_v13 = vpack.c.bf16 %v12758_v55, %v12696_v22 }
 0x435   :  { %v9184_v29 = vpop.permute.xlu1 %9183 }
 0x436   :  { %v9186_v41 = vunpack.i.h.bf16 %v9184_v29  ;;  %v9185_v2 = vunpack.i.l.bf16 %v9184_v29 }
 0x438   :  { %v9159_v40 = vpop.permute.xlu0 %9158  ;;  %v6070_v51 = vsel %vm6055_vm7, %v6053_v34, %v9185_v2  ;;  %v6071_v10 = vsel %vm6055_vm7, %v6054_v15, %v9186_v41 }
 0x439   :  { %v9161_v3 = vunpack.i.h.bf16 %v9159_v40  ;;  %v9160_v38 = vunpack.i.l.bf16 %v9159_v40  ;;  %v6141_v1 = vpack.c.bf16 %v6071_v10, %v6070_v51 }
 0x43b   :  { %v6087_v21 = vsel %vm13645_vm11, %v13022_v20, %v9161_v3  ;;  %v6086_v45 = vsel %vm13646_vm3, %v12963_v12, %v9160_v38  ;;  %v6122_v12 = vpack.c.bf16 %v12086_v27, %v11930_v62  ;;  %v6128_v20 = vpack.c.bf16 %v12360_v49, %v12261_v59 }
 0x43c   :  { %v9169_v4 = vpop.permute.xlu0 %9168  ;;  %v6137_v62 = vpack.c.bf16 %v12860_v7, %v12810_v53  ;;  %v5715_v27 = vrot.slane %v13005_v46, 2  ;;  %vm13656_vm11 = vcmask 1044484   ;;  %vm13657_vm3 = vcmask 1045509  }
 0x43d   :  { %v9171_v17 = vunpack.i.h.bf16 %v9169_v4  ;;  %v9170_v60 = vunpack.i.l.bf16 %v9169_v4 }
 0x43f   :  { %v6102_v44 = vsel %vm6038_vm10, %v6086_v45, %v9170_v60  ;;  %v6103_v58 = vsel %vm6038_vm10, %v6087_v21, %v9171_v17  ;;  %v7329_v17 = vld [vmem:[%s13367_s4] ss:$0 sm:$0xff] }
 0x440   :  { %v9179_v30 = vpop.permute.xlu0 %9178  ;;  %v6272_v60 = vadd.f32 %v13019_v61, %v7329_v17  ;;  %v6264_v50 = vadd.f32 %v13000_v5, %v7329_v17  ;;  %v6288_v61 = vadd.f32 %v13065_v56, %v7329_v17  ;;  %v6280_v5 = vadd.f32 %v13045_v31, %v7329_v17 }
 0x441   :  { %v9181_v11 = vunpack.i.h.bf16 %v9179_v30  ;;  %v9180_v57 = vunpack.i.l.bf16 %v9179_v30  ;;  %v6275_v30 = vadd.f32 %v13026_v54, %v7329_v17  ;;  %v6291_v54 = vadd.f32 %v13067_v6, %v7329_v17 }
 0x443   :  { %v6118_v25 = vsel %vm6055_vm7, %v6102_v44, %v9180_v57  ;;  %v6119_v48 = vsel %vm6055_vm7, %v6103_v58, %v9181_v11  ;;  %vm13650_vm7 = vmmov %vm13640_vm0  ;;  %v6267_v11 = vadd.f32 %v13002_v43, %v7329_v17 }
 0x444   :  { %v6142_v36 = vpack.c.bf16 %v6119_v48, %v6118_v25 }
 0x446   :  { %6317 = vmatprep.mubr.bf16.mxu1 %v6142_v36 }
 0x447   :  { %6318 = vmatmul.mubr.bf16.gmra.mrb[28].mxu1 %v6141_v1 }
 0x448   :  { %7585 = vmatprep.mubr.msk.bf16.mxu1 %vm13647_vm12, %v6122_v12  ;;  %vm13658_vm12 = vcmask 1046534  }
 0x44f   :  { %7586 = vmatmul.mubr.msk.bf16.vlgmr.msra.gmra.mrb[32].mxu1 %vm13648_vm8, %v6125_v47  ;;  %v5717_v47 = vsel %vm13653_vm2, %v5715_v27, %v5716_v24  ;;  %vm13659_vm8 = vmmov %vm13656_vm11 }
 0x450   :  { %7589 = vmatprep.mubr.msk.bf16.mxu1 %vm13649_vm5, %v6128_v20  ;;  %v6143_v59 = vpack.c.bf16 %v5717_v47, %v13011_v18  ;;  %v6283_v20 = vadd.f32 %v13047_v14, %v7329_v17  ;;  %vm13660_vm5 = vcmask 1047559   ;;  %vm13665_vm2 = vmmov %vm13657_vm3 }
 0x457   :  { %7590 = vmatmul.mubr.msk.bf16.gmra.mrb[36].mxu1 %vm13650_vm7, %v6131_v23  ;;  %vm13661_vm7 = vmmov %vm13657_vm3 }
 0x458   :  { %7593 = vmatprep.mubr.msk.bf16.mxu1 %vm13651_vm13, %v6134_v13  ;;  %vm13662_vm13 = vmmov %vm13658_vm12 }
 0x45f   :  { %7594 = vmatmul.mubr.msk.bf16.gmra.mrb[40].mxu1 %vm13640_vm0, %v6137_v62  ;;  %vm13663_vm0 = vmmov %vm13660_vm5 }
 0x460   :  { %7597 = vmatprep.mubr.msk.bf16.mxu1 %vm13652_vm1, %v6140_v33  ;;  %vm13664_vm1 = vmmov %vm13659_vm8 }
 0x467   :  { %7598 = vmatmul.mubr.msk.bf16.gmra.mrb[44].mxu1 %vm13654_vm9, %v6143_v59  ;;  %vm13666_vm9 = vmmov %vm13658_vm12 }
 0x468   :  { %7609 = vmatprep.mubr.msk.f32.mxu1 %vm9300_vm6, %v13655_v0 }
 0x475   :  { %v7452_v49 = vpop.f32.mrb[16].mxu1 }
 0x476   :  { %v7453_v19 = vpop.f32.mrb[17].mxu1 }
 0x477   :  { %v7454_v42 = vadd.f32 %v7453_v19, %v7452_v49  ;;  %v7455_v23 = vpop.f32.mrb[18].mxu1 }
 0x478   :  { %v7456_v22 = vpop.f32.mrb[19].mxu1 }
 0x479   :  { %v7457_v55 = vadd.f32 %v7456_v22, %v7455_v23  ;;  %v6296_v13 = vadd.f32 %v7454_v42, %v7329_v17 }
 0x47b   :  { %v6299_v24 = vadd.f32 %v7457_v55, %v7329_v17 }
 0x4b4   :  { %v7458_v53 = vpop.f32.mrb[20].mxu1 }
 0x4b5   :  { %v7459_v7 = vpop.f32.mrb[21].mxu1 }
 0x4b6   :  { %v7460_v35 = vadd.f32 %v7459_v7, %v7458_v53  ;;  %v7461_v16 = vpop.f32.mrb[22].mxu1 }
 0x4b7   :  { %v7462_v46 = vpop.f32.mrb[23].mxu1 }
 0x4b8   :  { %v7463_v9 = vadd.f32 %v7462_v46, %v7461_v16  ;;  %v6304_v19 = vadd.f32 %v7460_v35, %v7329_v17 }
 0x4ba   :  { %v6307_v53 = vadd.f32 %v7463_v9, %v7329_v17 }
 0x4f1   :  { %v7464_v18 = vpop.f32.mrb[24].mxu1 }
 0x4f2   :  { %v7465_v40 = vpop.f32.mrb[25].mxu1 }
 0x4f3   :  { %v7466_v8 = vadd.f32 %v7465_v40, %v7464_v18  ;;  %v7467_v28 = vpop.f32.mrb[26].mxu1 }
 0x4f4   :  { %v7468_v29 = vpop.f32.mrb[27].mxu1 }
 0x4f5   :  { %v7469_v26 = vadd.f32 %v7468_v29, %v7467_v28  ;;  %v13133_v16 = vadd.f32 %v7466_v8, %v7329_v17 }
 0x4f7   :  { %v13135_v40 = vadd.f32 %v7469_v26, %v7329_v17 }
 0x51a   :  { %v7470_v63 = vpop.f32.mrb[28].mxu1 }
 0x51b   :  { %v7471_v4 = vpop.f32.mrb[29].mxu1 }
 0x51c   :  { %v7472_v3 = vadd.f32 %v7471_v4, %v7470_v63  ;;  %v7473_v38 = vpop.f32.mrb[30].mxu1 }
 0x51d   :  { %v7474_v41 = vpop.f32.mrb[31].mxu1 }
 0x51e   :  { %v7475_v2 = vadd.f32 %v7474_v41, %v7473_v38  ;;  %v6320_v41 = vadd.f32 %v7472_v3, %v7329_v17 }
 0x520   :  { %v13139_v9 = vadd.f32 %v7475_v2, %v7329_v17 }
 0x522   :  { %v7587_v37 = vpop.f32.mrb[32].mxu1 }
 0x523   :  { %v6369_v34 = vadd.f32 %v7587_v37, %v6272_v60  ;;  %v6360_v15 = vpop.f32.mrb[33].mxu1 }
 0x524   :  { %v6361_v21 = vadd.f32 %v6360_v15, %v6264_v50  ;;  %v7588_v45 = vpop.f32.mrb[34].mxu1 }
 0x525   :  { %v6372_v57 = vadd.f32 %v7588_v45, %v6275_v30  ;;  %v6363_v44 = vpop.f32.mrb[35].mxu1  ;;  %v6425_v51 = vmax.f32 %v6369_v34, 0.0 }
 0x526   :  { %v6364_v58 = vadd.f32 %v6363_v44, %v6267_v11  ;;  %v6423_v25 = vmax.f32 %v6361_v21, 0.0 }
 0x527   :  { %v6426_v10 = vmax.f32 %v6372_v57, 0.0 }
 0x528   :  { %v6424_v48 = vmax.f32 %v6364_v58, 0.0 }
 0x529   :  { %v6440_v36 = vmax.f32 %v6425_v51, %v6426_v10 }
 0x52a   :  { %v6439_v1 = vmax.f32 %v6423_v25, %v6424_v48  ;;  %v7591_v12 = vpop.f32.mrb[36].mxu1 }
 0x52b   :  { %v6472_v43 = vcombine.high %v6440_v36, %v6440_v36  ;;  %v6479_v62 = vrot.slane %v6440_v36, %v10996_v39  ;;  %v6385_v27 = vadd.f32 %v7591_v12, %v6288_v61  ;;  %v6376_v33 = vpop.f32.mrb[37].mxu1 }
 0x52c   :  { %v6455_v47 = vcombine.high %v6439_v1, %v6439_v1  ;;  %v6462_v59 = vrot.slane %v6439_v1, %v10996_v39  ;;  %v6377_v49 = vadd.f32 %v6376_v33, %v6280_v5  ;;  %v7592_v56 = vpop.f32.mrb[38].mxu1 }
 0x52d   :  { %v6486_v31 = vrot.slane %v6472_v43, %v10996_v39  ;;  %v6487_v23 = vcombine.high %v6479_v62, %v6479_v62  ;;  %v7342_v22 = vrot.slane %v6479_v62, 9  ;;  %v6379_v6 = vpop.f32.mrb[39].mxu1  ;;  %v6429_v4 = vmax.f32 %v6385_v27, 0.0 }
 0x52e   :  { %v6469_v14 = vrot.slane %v6455_v47, %v10996_v39  ;;  %v6470_v42 = vcombine.high %v6462_v59, %v6462_v59  ;;  %v7338_v7 = vrot.slane %v6462_v59, 9  ;;  %v6427_v38 = vmax.f32 %v6377_v49, 0.0 }
 0x52f   :  { %v6488_v46 = vcombine.high %v6486_v31, %v6486_v31  ;;  %v7343_v55 = vrot.slane %v6487_v23, 9  ;;  %v7344_v18 = vrot.slane %v6486_v31, 9  ;;  %v13137_v28 = vmax.f32 %v6479_v62, %v7342_v22 }
 0x530   :  { %v6471_v35 = vcombine.high %v6469_v14, %v6469_v14  ;;  %v7339_v29 = vrot.slane %v6470_v42, 9  ;;  %v7340_v63 = vrot.slane %v6469_v14, 9  ;;  %v6719_v50 = vmax.f32 %v6462_v59, %v7338_v7 }
 0x531   :  { %v7345_v60 = vrot.slane %v6488_v46, 9  ;;  %v13141_v15 = vmax.f32 %v6487_v23, %v7343_v55  ;;  %v13143_v30 = vmax.f32 %v6486_v31, %v7344_v18  ;;  %v6388_v21 = vadd.f32 %v7592_v56, %v6291_v54 }
 0x532   :  { %v7341_v37 = vrot.slane %v6471_v35, 9  ;;  %v6720_v8 = vmax.f32 %v6470_v42, %v7339_v29  ;;  %v7595_v34 = vpop.f32.mrb[40].mxu1  ;;  %v6721_v26 = vmax.f32 %v6469_v14, %v7340_v63  ;;  %v6803_v11 = vrot.slane %v13137_v28, %v11139_v32 }
 0x533   :  { %v6392_v45 = vpop.f32.mrb[41].mxu1  ;;  %v6380_v2 = vadd.f32 %v6379_v6, %v6283_v20  ;;  %v6430_v44 = vmax.f32 %v6388_v21, 0.0  ;;  %v6401_v58 = vadd.f32 %v7595_v34, %v6304_v19  ;;  %v13148_v48 = vmax.f32 %v6488_v46, %v7345_v60 }
 0x534   :  { %v6722_v57 = vmax.f32 %v6471_v35, %v7341_v37  ;;  %v6791_v3 = vrot.slane %v6720_v8, %v11139_v32  ;;  %v7596_v17 = vpop.f32.mrb[42].mxu1  ;;  %v6393_v51 = vadd.f32 %v6392_v45, %v6296_v13  ;;  %v6787_v36 = vrot.slane %v6719_v50, %v11139_v32 }
 0x535   :  { %v6404_v10 = vadd.f32 %v7596_v17, %v6307_v53  ;;  %v6395_v25 = vpop.f32.mrb[43].mxu1  ;;  %v6428_v61 = vmax.f32 %v6380_v2, 0.0  ;;  %v6807_v1 = vrot.slane %v13141_v15, %v11139_v32  ;;  %v6795_v12 = vrot.slane %v6721_v26, %v11139_v32 }
 0x536   :  { %v6396_v5 = vadd.f32 %v6395_v25, %v6299_v24  ;;  %v6442_v54 = vmax.f32 %v6429_v4, %v6430_v44  ;;  %v6433_v43 = vmax.f32 %v6401_v58, 0.0  ;;  %v6431_v62 = vmax.f32 %v6393_v51, 0.0 }
 0x537   :  { %v6441_v20 = vmax.f32 %v6427_v38, %v6428_v61  ;;  %v6434_v27 = vmax.f32 %v6404_v10, 0.0  ;;  %v6799_v13 = vrot.slane %v6722_v57, %v11139_v32  ;;  %v6912_v47 = vsel %vm5350_vm15, %v6791_v3, %v6787_v36 }
 0x538   :  { %v6432_v33 = vmax.f32 %v6396_v5, 0.0  ;;  %v6506_v59 = vcombine.high %v6442_v54, %v6442_v54  ;;  %v6513_v49 = vrot.slane %v6442_v54, %v10996_v39  ;;  %v6913_v7 = vsel %vm5352_vm4, %v6795_v12, %v6912_v47 }
 0x539   :  { %v6489_v56 = vcombine.high %v6441_v20, %v6441_v20  ;;  %v6496_v24 = vrot.slane %v6441_v20, %v10996_v39  ;;  %v6444_v19 = vmax.f32 %v6433_v43, %v6434_v27  ;;  %v6815_v21 = vrot.slane %v13148_v48, %v11139_v32 }
 0x53a   :  { %v6443_v31 = vmax.f32 %v6431_v62, %v6432_v33  ;;  %v7599_v23 = vpop.f32.mrb[44].mxu1  ;;  %v6520_v22 = vrot.slane %v6506_v59, %v10996_v39  ;;  %v6521_v6 = vcombine.high %v6513_v49, %v6513_v49  ;;  %v7350_v53 = vrot.slane %v6513_v49, 9 }
 0x53b   :  { %v13159_v14 = vadd.f32 %v7599_v23, %v6320_v41  ;;  %v6408_v42 = vpop.f32.mrb[45].mxu1  ;;  %v6503_v46 = vrot.slane %v6489_v56, %v10996_v39  ;;  %v6504_v55 = vcombine.high %v6496_v24, %v6496_v24  ;;  %v7346_v18 = vrot.slane %v6496_v24, 9 }
 0x53c   :  { %v7600_v35 = vpop.f32.mrb[46].mxu1  ;;  %v6522_v29 = vcombine.high %v6520_v22, %v6520_v22  ;;  %v7351_v63 = vrot.slane %v6521_v6, 9  ;;  %v7352_v4 = vrot.slane %v6520_v22, 9  ;;  %v6540_v38 = vcombine.high %v6444_v19, %v6444_v19 }
 0x53d   :  { %v6411_v60 = vpop.f32.mrb[47].mxu1  ;;  %v6505_v37 = vcombine.high %v6503_v46, %v6503_v46  ;;  %v7347_v50 = vrot.slane %v6504_v55, 9  ;;  %v7348_v8 = vrot.slane %v6503_v46, 9  ;;  %v6727_v34 = vmax.f32 %v6496_v24, %v7346_v18 }
 0x53e   :  { %v6811_v41 = vrot.slane %v13143_v30, %v11139_v32  ;;  %v13165_v26 = vmax.f32 %v6513_v49, %v7350_v53  ;;  %v6914_v45 = vsel %vm5354_vm14, %v6799_v13, %v6913_v7  ;;  %v7353_v57 = vrot.slane %v6522_v29, 9 }
 0x53f   :  { %v7349_v3 = vrot.slane %v6505_v37, 9  ;;  %v6728_v2 = vmax.f32 %v6504_v55, %v7347_v50  ;;  %v6729_v17 = vmax.f32 %v6503_v46, %v7348_v8  ;;  %v6732_v44 = vmax.f32 %v6521_v6, %v7351_v63 }
 0x540   :  { %v13170_v58 = vmax.f32 %v6520_v22, %v7352_v4  ;;  %v6819_v51 = vrot.slane %v6727_v34, %v11139_v32  ;;  %v6547_v10 = vrot.slane %v6444_v19, %v10996_v39  ;;  %v6554_v5 = vrot.slane %v6540_v38, %v10996_v39 }
 0x541   :  { %v6730_v25 = vmax.f32 %v6505_v37, %v7349_v3  ;;  %v6823_v36 = vrot.slane %v6728_v2, %v11139_v32  ;;  %v6827_v61 = vrot.slane %v6729_v17, %v11139_v32  ;;  %v6523_v43 = vcombine.high %v6443_v31, %v6443_v31 }
 0x542   :  { %v6555_v12 = vcombine.high %v6547_v10, %v6547_v10  ;;  %v7358_v54 = vrot.slane %v6547_v10, 9  ;;  %v6530_v20 = vrot.slane %v6443_v31, %v10996_v39  ;;  %v6835_v62 = vrot.slane %v13165_v26, %v11139_v32 }
 0x543   :  { %v6919_v27 = vsel %vm5350_vm15, %v6823_v36, %v6819_v51  ;;  %v6556_v33 = vcombine.high %v6554_v5, %v6554_v5  ;;  %v7360_v13 = vrot.slane %v6554_v5, 9  ;;  %v6734_v47 = vmax.f32 %v6522_v29, %v7353_v57 }
 0x544   :  { %v6839_v59 = vrot.slane %v6732_v44, %v11139_v32  ;;  %v7359_v49 = vrot.slane %v6555_v12, 9  ;;  %v6537_v56 = vrot.slane %v6523_v43, %v10996_v39  ;;  %v6843_v24 = vrot.slane %v13170_v58, %v11139_v32 }
 0x545   :  { %v6831_v19 = vrot.slane %v6730_v25, %v11139_v32  ;;  %v6538_v23 = vcombine.high %v6530_v20, %v6530_v20  ;;  %v7354_v31 = vrot.slane %v6530_v20, 9  ;;  %v6920_v22 = vsel %vm5352_vm4, %v6827_v61, %v6919_v27 }
 0x546   :  { %v6739_v6 = vmax.f32 %v6547_v10, %v7358_v54  ;;  %v6539_v53 = vcombine.high %v6537_v56, %v6537_v56  ;;  %v7356_v7 = vrot.slane %v6537_v56, 9  ;;  %v7361_v46 = vrot.slane %v6556_v33, 9 }
 0x547   :  { %v13187_v55 = vmax.f32 %v6554_v5, %v7360_v13  ;;  %v7355_v18 = vrot.slane %v6538_v23, 9  ;;  %v6735_v29 = vmax.f32 %v6530_v20, %v7354_v31  ;;  %v13189_v63 = vmax.f32 %v6555_v12, %v7359_v49 }
 0x548   :  { %v7357_v4 = vrot.slane %v6539_v53, 9  ;;  %v6737_v38 = vmax.f32 %v6537_v56, %v7356_v7  ;;  %v6437_v37 = vmax.f32 %v13159_v14, 0.0  ;;  %v6409_v34 = vadd.f32 %v6408_v42, %v13133_v16 }
 0x549   :  { %v6736_v50 = vmax.f32 %v6538_v23, %v7355_v18  ;;  %v6851_v8 = vrot.slane %v6735_v29, %v11139_v32  ;;  %v6420_v26 = vadd.f32 %v7600_v35, %v13139_v9  ;;  %v6412_v2 = vadd.f32 %v6411_v60, %v13135_v40 }
 0x54a   :  { %v6738_v57 = vmax.f32 %v6539_v53, %v7357_v4  ;;  %v6859_v3 = vrot.slane %v6737_v38, %v11139_v32  ;;  %v6847_v17 = vrot.slane %v6734_v47, %v11139_v32  ;;  %v6435_v58 = vmax.f32 %v6409_v34, 0.0 }
 0x54b   :  { %v6855_v44 = vrot.slane %v6736_v50, %v11139_v32  ;;  %v6438_v51 = vmax.f32 %v6420_v26, 0.0  ;;  %v6915_v14 = vsel %vm13656_vm11, %v6803_v11, %v6914_v45  ;;  %v6436_v42 = vmax.f32 %v6412_v2, 0.0  ;;  %vm13667_vm11 = vmmov %vm13663_vm0 }
 0x54c   :  { %v6863_v16 = vrot.slane %v6738_v57, %v11139_v32  ;;  %v6916_v9 = vsel %vm13657_vm3, %v6807_v1, %v6915_v14  ;;  %v6921_v40 = vsel %vm5354_vm14, %v6831_v19, %v6920_v22  ;;  %v6867_v25 = vrot.slane %v6739_v6, %v11139_v32  ;;  %vm13668_vm3 = vmmov %vm13664_vm1 }
 0x54d   :  { %v6926_v35 = vsel %vm5350_vm15, %v6855_v44, %v6851_v8  ;;  %v6446_v60 = vmax.f32 %v6437_v37, %v6438_v51  ;;  %v6917_v28 = vsel %vm13658_vm12, %v6811_v41, %v6916_v9  ;;  %v6922_v11 = vsel %vm13659_vm8, %v6835_v62, %v6921_v40  ;;  %vm13669_vm12 = vmmov %vm13665_vm2 }
 0x54e   :  { %v6927_v45 = vsel %vm5352_vm4, %v6859_v3, %v6926_v35  ;;  %v6445_v10 = vmax.f32 %v6435_v58, %v6436_v42  ;;  %v6918_v15 = vsel %vm13660_vm5, %v6815_v21, %v6917_v28  ;;  %v6923_v1 = vsel %vm13661_vm7, %v6839_v59, %v6922_v11  ;;  %vm13670_vm8 = vmmov %vm13666_vm9  ;;  %v7018_v35 = vld [vmem:[%s13369_s6] sm:$0xff] }
 0x54f   :  { %v6574_v36 = vcombine.high %v6446_v60, %v6446_v60  ;;  %v6581_v61 = vrot.slane %v6446_v60, %v10996_v39  ;;  %v6924_v30 = vsel %vm13662_vm13, %v6843_v24, %v6923_v1  ;;  %v6928_v54 = vsel %vm5354_vm14, %v6863_v16, %v6927_v45  ;;  %vm13671_vm5 = vmmov %vm13663_vm0  ;;  %v7019_v60 = vld [vmem:[%s13369_s6 + $0x8] sm:$0xff]  ;;  %v7020_v45 = vld [vmem:[%s13369_s6 + $0x10] sm:$0xff] }
 0x550   :  { %v6557_v41 = vcombine.high %v6445_v10, %v6445_v10  ;;  %v6564_v5 = vrot.slane %v6445_v10, %v10996_v39  ;;  %v6925_v12 = vsel %vm13663_vm0, %v6847_v17, %v6924_v30  ;;  %v6742_v43 = vmax.f32 %v6556_v33, %v7361_v46  ;;  %v7021_v10 = vld [vmem:[%s13369_s6 + $0x18] sm:$0xff]  ;;  %v7022_v1 = vld [vmem:[%s13369_s6 + $0x20] sm:$0xff] }
 0x551   :  { %v6588_v48 = vrot.slane %v6574_v36, %v10996_v39  ;;  %v6589_v21 = vcombine.high %v6581_v61, %v6581_v61  ;;  %v7645_v20 = vpack.c.bf16 %v6925_v12, %v6918_v15  ;;  %v6929_v47 = vsel %vm13664_vm1, %v6867_v25, %v6928_v54  ;;  %v7023_v25 = vld [vmem:[%s13369_s6 + $0x28] sm:$0xff]  ;;  %v7025_v30 = vld [vmem:[%s13369_s6 + $0x38] sm:$0xff]  ;;  %v7084_v54 = vld [vmem:[%s13371_s8 + $0x10] sm:$0xff] }
 0x552   :  { %v6571_v62 = vrot.slane %v6557_v41, %v10996_v39  ;;  %v6572_v27 = vcombine.high %v6564_v5, %v6564_v5  ;;  %v7362_v13 = vrot.slane %v6564_v5, 9  ;;  %v7366_v49 = vrot.slane %v6581_v61, 9  ;;  %v7083_v12 = vld [vmem:[%s13371_s8 + $0x8] sm:$0xff] }
 0x553   :  { %v6590_v59 = vcombine.high %v6588_v48, %v6588_v48  ;;  %v7367_v56 = vrot.slane %v6589_v21, 9  ;;  %7646 = vmatpush3.bf16.msra.mxu1 %v7645_v20  ;;  %v6871_v33 = vrot.slane %v13189_v63, %v11139_v32  ;;  %v6875_v39 = vrot.slane %v13187_v55, %v11139_v32  ;;  %v7086_v20 = vld [vmem:[%s13371_s8 + $0x20] sm:$0xff] }
 0x554   :  { %v6573_v24 = vcombine.high %v6571_v62, %v6571_v62  ;;  %v7363_v19 = vrot.slane %v6572_v27, 9  ;;  %v7364_v23 = vrot.slane %v6571_v62, 9  ;;  %v6743_v31 = vmax.f32 %v6564_v5, %v7362_v13  ;;  %7647 = vmatprep.subr.bf16.mxu1 %v9299_v52  ;;  %v7082_v5 = vld [vmem:[%s13371_s8] sm:$0xff]  ;;  %v7088_v13 = vld [vmem:[%s13371_s8 + $0x30] sm:$0xff] }
 0x555   :  { %v7368_v22 = vrot.slane %v6588_v48, 9  ;;  %v6879_v6 = vrot.slane %v6742_v43, %v11139_v32  ;;  %v7369_v53 = vrot.slane %v6590_v59, 9  ;;  %v6747_v29 = vmax.f32 %v6581_v61, %v7366_v49  ;;  %v7024_v61 = vld [vmem:[%s13369_s6 + $0x30] sm:$0xff]  ;;  %v7090_v49 = vld [vmem:[%s13371_s8 + $0x40] sm:$0xff]  ;;  %s9301_s6 = smov [#allocation4]  }
 0x556   :  { %v7365_v7 = vrot.slane %v6573_v24, 9  ;;  %v6744_v46 = vmax.f32 %v6572_v27, %v7363_v19  ;;  %v6745_v18 = vmax.f32 %v6571_v62, %v7364_v23  ;;  %v6748_v4 = vmax.f32 %v6589_v21, %v7367_v56  ;;  %v7087_v62 = vld [vmem:[%s13371_s8 + $0x28] sm:$0xff]  ;;  %v7092_v19 = vld [vmem:[%s13371_s8 + $0x50] sm:$0xff]  ;;  %v7093_v23 = vld [vmem:[%s13371_s8 + $0x58] sm:$0xff]  ;;  %s7160_s4 = sshll.u32 %s9301_s6, 4  ;;  %s7161_s4 = int_to_ptr.vmem [resolvable:$true] %s7160_s4 }
 0x557   :  { %v6883_v38 = vrot.slane %v6743_v31, %v11139_v32  ;;  %v6930_v37 = vsel %vm13665_vm2, %v6871_v33, %v6929_v47  ;;  %v6749_v8 = vmax.f32 %v6588_v48, %v7368_v22  ;;  %v6750_v26 = vmax.f32 %v6590_v59, %v7369_v53  ;;  %v7085_v48 = vld [vmem:[%s13371_s8 + $0x18] sm:$0xff]  ;;  %v7091_v56 = vld [vmem:[%s13371_s8 + $0x48] sm:$0xff]  ;;  %v7094_v33 = vld [vmem:[%s13371_s8 + $0x60] sm:$0xff]  ;;  %p9267_p1 = scmp.lt.s32.totalorder %s7161_s4, %s7161_s4 }
 0x558   :  { %v6746_v52 = vmax.f32 %v6573_v24, %v7365_v7  ;;  %v6887_v50 = vrot.slane %v6744_v46, %v11139_v32  ;;  %v6891_v63 = vrot.slane %v6745_v18, %v11139_v32  ;;  %v6931_v55 = vsel %vm13666_vm9, %v6875_v39, %v6930_v37  ;;  %v7089_v47 = vld [vmem:[%s13371_s8 + $0x38] sm:$0xff]  ;;  %v7095_v39 = vld [vmem:[%s13371_s8 + $0x68] sm:$0xff] }
 0x559   :  { %v6932_v34 = vsel %vm13667_vm11, %v6879_v6, %v6931_v55  ;;  %v6899_v2 = vrot.slane %v6747_v29, %v11139_v32  ;;  %v6903_v44 = vrot.slane %v6748_v4, %v11139_v32  ;;  %v6907_v51 = vrot.slane %v6749_v8, %v11139_v32  ;;  %v7096_v6 = vld [vmem:[%s13371_s8 + $0x70] sm:$0xff]  ;;  %v7097_v53 = vld [vmem:[%s13371_s8 + $0x78] sm:$0xff]  ;;  %v7371_v4 = vld [vmem:[%s13370_s7] ss:$0 sm:$0xff]  ;;  %s9262_s7 = scalar_lea.vmem %s7161_s4, 32 }
 0x55a   :  { %v6895_v57 = vrot.slane %v6746_v52, %v11139_v32  ;;  %v6933_v3 = vsel %vm5350_vm15, %v6887_v50, %v6883_v38  ;;  %v6911_v16 = vrot.slane %v6750_v26, %v11139_v32  ;;  %v6751_v32 = vld [vmem:[%s13368_s5] sm:$0x3]  ;;  %v7026_v11 = vpack.c.bf16 %v7019_v60, %v7018_v35  ;;  %p9263_p0 = scmp.ne.s32.totalorder %s7161_s4, %s9262_s7  ;;  %p9268_p2 = scmp.lt.s32.totalorder %s9262_s7, %s9262_s7 }
 0x55b   :  { %v6934_v17 = vsel %vm5352_vm4, %v6891_v63, %v6933_v3  ;;  %vm13672_vm15 = vcmask 261120   ;;  %v7027_v15 = vpack.c.bf16 %v7021_v10, %v7020_v45  ;;  %v7028_v36 = vpack.c.bf16 %v7023_v25, %v7022_v1 }
 0x55c   :  { %v6935_v58 = vsel %vm5354_vm14, %v6895_v57, %v6934_v17  ;;  %v7029_v41 = vpack.c.bf16 %v7025_v30, %v7024_v61  ;;  %v7098_v43 = vpack.c.bf16 %v7083_v12, %v7082_v5  ;;  %v7099_v21 = vpack.c.bf16 %v7085_v48, %v7084_v54  ;;  %p9269_p3 = por %p9268_p2, %p9267_p1 }
 0x55d   :  { %v6936_v14 = vsel %vm13668_vm3, %v6899_v2, %v6935_v58  ;;  %v7100_v27 = vpack.c.bf16 %v7087_v62, %v7086_v20  ;;  %v7101_v59 = vpack.c.bf16 %v7089_v47, %v7088_v13  ;;  %v7102_v24 = vpack.c.bf16 %v7091_v56, %v7090_v49 }
 0x55e   :  { %v6937_v42 = vsel %vm13669_vm12, %v6903_v44, %v6936_v14  ;;  %7625 = vmatpush3.bf16.msra.mxu0 %v7098_v43  ;;  %v7103_v31 = vpack.c.bf16 %v7093_v23, %v7092_v19  ;;  %v7104_v22 = vpack.c.bf16 %v7095_v39, %v7094_v33  ;;  %v7105_v7 = vpack.c.bf16 %v7097_v53, %v7096_v6  ;;  %p9270_p4 = pnand %p9269_p3, %p9263_p0 }
 0x55f   :  { %v6938_v9 = vsel %vm13670_vm8, %v6907_v51, %v6937_v42  ;;  %7626 = vmatprep.subr.bf16.mxu0 %v13655_v0  ;;  %vm13673_vm4 = vcmask 74752  }
 0x560   :  { %v6939_v40 = vsel %vm13671_vm5, %v6911_v16, %v6938_v9 }
 0x561   :  { %v7648_v28 = vpack.c.bf16 %v6939_v40, %v6932_v34 }
 0x562   :  { %7627 = vmatpush3.bf16.msra.mxu0 %v7099_v21 }
 0x563   :  { %7649 = vmatpush3.bf16.msra.mxu1 %v7648_v28  ;;  %7628 = vmatprep.subr.bf16.mxu0 %v13655_v0 }
 0x564   :  { %7612 = vmatprep.subr.bf16.mxu1 %v13655_v0 }
 0x566   :  { %7610 = vmatmul.mubr.msk.f32.vlgmr.msra.gmra.mrb[48].mxu1 %vm13672_vm15, %v6751_v32  ;;  %7629 = vmatpush3.bf16.msra.mxu0 %v7100_v27 }
 0x567   :  { %7613 = vmatpush3.bf16.msra.mxu1 %v7026_v11  ;;  %7620 = vmatprep.mubr.msk.bf16.mxu1 %vm9300_vm6, %v13655_v0 }
 0x568   :  { %7614 = vmatprep.subr.bf16.mxu1 %v13655_v0  ;;  %7630 = vmatprep.subr.bf16.mxu0 %v13655_v0 }
 0x56a   :  { %7631 = vmatpush3.bf16.msra.mxu0 %v7101_v59 }
 0x56b   :  { %7615 = vmatpush3.bf16.msra.mxu1 %v7027_v15  ;;  %7632 = vmatprep.subr.bf16.mxu0 %v13655_v0 }
 0x56c   :  { %7616 = vmatprep.subr.bf16.mxu1 %v13655_v0 }
 0x56e   :  { %7633 = vmatpush3.bf16.msra.mxu0 %v7102_v24 }
 0x56f   :  { %7617 = vmatpush3.bf16.msra.mxu1 %v7028_v36  ;;  %7634 = vmatprep.subr.bf16.mxu0 %v13655_v0 }
 0x570   :  { %7618 = vmatprep.subr.bf16.mxu1 %v13655_v0 }
 0x572   :  { %7635 = vmatpush3.bf16.msra.mxu0 %v7103_v31 }
 0x573   :  { %7619 = vmatpush3.bf16.msra.mxu1 %v7029_v41  ;;  %7636 = vmatprep.subr.bf16.mxu0 %v13655_v0 }
 0x576   :  { %7637 = vmatpush3.bf16.msra.mxu0 %v7104_v22 }
 0x577   :  { %7638 = vmatprep.subr.bf16.mxu0 %v13655_v0  ;;  %v7373_v0 = vld [vmem:[%s13372_s9] ss:$0 sm:$0xff] }
 0x57a   :  { %7639 = vmatpush3.bf16.msra.mxu0 %v7105_v7 }
 0x639   :  { %v7013_v46 = vpop.f32.mrb[48].mxu1 }
 0x63a   :  { %v7017_v18 = vpack.c.bf16 %v7013_v46, %v7013_v46  ;;  %v7611_v29 = vpop.f32.mrb[49].mxu1 }
 0x63c   :  { %7621 = vmatmul.mubr.msk.bf16.vlgmr.msra.gmra.mrb[52].mxu1 %vm6038_vm10, %v7017_v18 }
 0x70f   :  { %v7074_v38 = vpop.f32.mrb[52].mxu1 }
 0x710   :  { %v7075_v37 = vadd.f32 %v7371_v4, %v7074_v38  ;;  %v7622_v52 = vpop.f32.mrb[53].mxu1 }
 0x711   :  { %v7077_v50 = vpop.f32.mrb[54].mxu1 }
 0x712   :  { %v7080_v63 = vmax.f32 %v7075_v37, 0.0  ;;  %v7623_v55 = vpop.f32.mrb[55].mxu1 }
 0x714   :  { %v7081_v8 = vpack.c.bf16 %v7080_v63, %v7080_v63 }
 0x716   :  { %7641 = vmatmul.mubr.bf16.vlgmr.msra.gmra.mrb[64].mxu0 %v7081_v8 }
 0x7e9   :  { %v7147_v34 = vpop.f32.mrb[64].mxu0 }
 0x7ea   :  { %v7148_v26 = vadd.f32 %v7373_v0, %v7147_v34  ;;  %v7642_v57 = vpop.f32.mrb[65].mxu0 }
 0x7eb   :  { %v7150_v3 = vpop.f32.mrb[66].mxu0 }
 0x7ec   :  { %7153 = vst.msk [vmem:[#allocation4] sm:$0x3] %vm13673_vm4, %v7148_v26  ;;  %v7643_v2 = vpop.f32.mrb[67].mxu0 }
 0x7ed   :  { %9273 = shalt.err (!%p9270_p4)
}
 0x7ee   :  { %s9274_s9 = scalar_lea.hbm %s13373_s10, 32 }
 0x7ef   :  { %p9275_p5 = scmp.ne.s32.totalorder %s13373_s10, %s9274_s9  ;;  %p9278_p6 = scmp.lt.u32.totalorder %s9274_s9, %s13373_s10 }
 0x7f1   :  { %p9280_p7 = pnand %p9278_p6, %p9275_p5 }
 0x7f3   :  { %9283 = shalt.err (!%p9280_p7)
}
 0x7f4   :  { %7163 = dma.vmem_to_hbm [thread:$0]  %s7161_s4, 32, %s13373_s10, [#allocation5]  }
 0x7f5   :  { %9284 = dma.done.wait [#allocation5], 32  }
 0x7f6   :  { %9285 = vsyncadd [#allocation5], 4294967264 }
 0x7f7   :  { %7167 = vsyncpa [#allocation5], 1 }

</bundles_post_ra>
